<compile_context>
chip_gen: v6e
topology: v6e:2x2x1
jax: 0.10.0
libtpu: 0.0.40
codegen_flags: <defaults>
</compile_context>

<pallas_src>
import jax
import jax.numpy as jnp
from jax.experimental import pallas as pl
from jax.experimental.pallas import tpu as pltpu

L1 = 64  # hidden width `l1` of the first Linear layer


# ---------------------------------------------------------------------------
# Kernel 1: conv1 (1->32, 3x3, pad 1) + bias + ReLU + 2x2 maxpool, one image per grid step.
#   x_ref : (1, 60, 15, 1) f32   parity-split padded input, row index = (a*2+b)*15 + r
#   w_ref : (9, 32)        f32   taps [kh*3+kw, oc]
#   b_ref : (1, 32)        f32
#   o_ref : (1, 14, 14, 32) bf16 pooled NHWC output
# ---------------------------------------------------------------------------
def _conv1_pool_kernel(x_ref, w_ref, b_ref, o_ref):
    # 16 distinct shifted (14,14,1) slabs; S[u][v] = X_{u&1, v&1}[u>>1 : +14, v>>1 : +14]
    slabs = {}
    for u in range(4):
        for v in range(4):
            ab = (u % 2) * 2 + (v % 2)
            base = ab * 15 + (u // 2)
            r = v // 2
            slabs[(u, v)] = x_ref[0, base:base + 14, r:r + 14, :]      # (14,14,1)
    # hoist the 9 weight broadcasts out of the candidate loops
    w_taps = [w_ref[t:t + 1, :].reshape(1, 1, 32) for t in range(9)]    # (1,1,32) each

    cands = []
    for i in range(2):
        for j in range(2):
            acc = jnp.zeros((14, 14, 32), jnp.float32)
            for kh in range(3):
                for kw in range(3):
                    acc = acc + slabs[(i + kh, j + kw)] * w_taps[kh * 3 + kw]
            cands.append(acc)

    pooled = jnp.maximum(jnp.maximum(cands[0], cands[1]),
                         jnp.maximum(cands[2], cands[3]))
    out = jnp.maximum(pooled + b_ref[...].reshape(1, 1, 32), 0.0)
    o_ref[0] = out.astype(o_ref.dtype)


def conv1_pool(x1, w1, b1):
    N = x1.shape[0]
    return pl.pallas_call(
        _conv1_pool_kernel,
        out_shape=jax.ShapeDtypeStruct((N, 14, 14, 32), jnp.bfloat16),
        grid=(N,),
        in_specs=[
            pl.BlockSpec((1, 60, 15, 1), lambda n: (n, 0, 0, 0)),
            pl.BlockSpec((9, 32), lambda n: (0, 0)),        # resident weights
            pl.BlockSpec((1, 32), lambda n: (0, 0)),
        ],
        out_specs=pl.BlockSpec((1, 14, 14, 32), lambda n: (n, 0, 0, 0)),
        compiler_params=pltpu.CompilerParams(dimension_semantics=("parallel",)),
    )(x1, w1, b1)


# ---------------------------------------------------------------------------
# Kernel 2: conv2 (32->64, 3x3, pad 1) + bias + ReLU + 2x2 maxpool, one image per grid step.
#   x_ref : (1, 256, 32) bf16  parity-split padded conv1 output,
#                              flat row index = ((a*2+b)*8 + r)*8 + c, channels on lanes
#   w_ref : (9, 32, 64)  bf16  taps [kh*3+kw, ic, oc]
#   b_ref : (1, 64)      f32
#   o_ref : (1, 7, 7, 64) bf16 pooled NHWC output
# Each tap contribution is a full-width (56,32)@(32,64) bf16 MXU matmul with f32 accumulation.
# ---------------------------------------------------------------------------
def _conv2_pool_kernel(x_ref, w_ref, b_ref, o_ref):
    # 8 distinct full-width slabs: FW[(u,b)] = X_{u&1, b}[u>>1 : +7, :, :] flattened to (56,32)
    fw = {}
    for u in range(4):
        for b in range(2):
            ab = (u % 2) * 2 + b
            start = (ab * 8 + u // 2) * 8
            fw[(u, b)] = x_ref[0, start:start + 56, :]                  # (56,32) bf16
    w_taps = [w_ref[t] for t in range(9)]                               # (32,64) bf16 each

    cands = []
    for i in range(2):
        for j in range(2):
            # group the 9 taps by their column shift r in {0,1}; combine with one shifted add
            accs = [jnp.zeros((7, 8, 64), jnp.float32) for _ in range(2)]
            for kh in range(3):
                for kw in range(3):
                    u = i + kh
                    v = j + kw
                    b, r = v % 2, v // 2
                    prod = jnp.dot(fw[(u, b)], w_taps[kh * 3 + kw],
                                   preferred_element_type=jnp.float32)  # (56,64) f32
                    accs[r] = accs[r] + prod.reshape(7, 8, 64)
            cands.append(accs[0][:, 0:7, :] + accs[1][:, 1:8, :])       # (7,7,64)

    pooled = jnp.maximum(jnp.maximum(cands[0], cands[1]),
                         jnp.maximum(cands[2], cands[3]))
    out = jnp.maximum(pooled + b_ref[...].reshape(1, 1, 64), 0.0)
    o_ref[0] = out.astype(o_ref.dtype)


def conv2_pool(x2, w2, b2):
    N = x2.shape[0]
    return pl.pallas_call(
        _conv2_pool_kernel,
        out_shape=jax.ShapeDtypeStruct((N, 7, 7, 64), jnp.bfloat16),
        grid=(N,),
        in_specs=[
            pl.BlockSpec((1, 256, 32), lambda n: (n, 0, 0)),
            pl.BlockSpec((9, 32, 64), lambda n: (0, 0, 0)),   # resident weights
            pl.BlockSpec((1, 64), lambda n: (0, 0)),
        ],
        out_specs=pl.BlockSpec((1, 7, 7, 64), lambda n: (n, 0, 0, 0)),
        compiler_params=pltpu.CompilerParams(dimension_semantics=("parallel",)),
    )(x2, w2, b2)


# ---------------------------------------------------------------------------
# Kernel 3: fused Linear(3136->l1) -> Linear(l1->32) -> Linear(32->10) head.
# (No activations between the Linears — matches the PyTorch module.)
# Batch-tiled grid, weights VMEM-resident via constant index_maps, bf16 matmuls / f32 accum.
# ---------------------------------------------------------------------------
def _mlp_kernel(x_ref, w1_ref, b1_ref, w2_ref, b2_ref, w3_ref, b3_ref, o_ref):
    h = jnp.dot(x_ref[...], w1_ref[...], preferred_element_type=jnp.float32) + b1_ref[...]
    h = jnp.dot(h.astype(w2_ref.dtype), w2_ref[...],
                preferred_element_type=jnp.float32) + b2_ref[...]
    h = jnp.dot(h.astype(w3_ref.dtype), w3_ref[...],
                preferred_element_type=jnp.float32) + b3_ref[...]
    o_ref[...] = h.astype(o_ref.dtype)


def mlp_head(x, w1, b1, w2, b2, w3, b3):
    N, K = x.shape
    l1 = w1.shape[1]
    h2 = w2.shape[1]
    out_dim = w3.shape[1]
    TB = N if N <= 256 else 256            # batch tile; weights stream once, stay resident
    return pl.pallas_call(
        _mlp_kernel,
        out_shape=jax.ShapeDtypeStruct((N, out_dim), jnp.float32),
        grid=(pl.cdiv(N, TB),),
        in_specs=[
            pl.BlockSpec((TB, K), lambda i: (i, 0)),
            pl.BlockSpec((K, l1), lambda i: (0, 0)),
            pl.BlockSpec((1, l1), lambda i: (0, 0)),
            pl.BlockSpec((l1, h2), lambda i: (0, 0)),
            pl.BlockSpec((1, h2), lambda i: (0, 0)),
            pl.BlockSpec((h2, out_dim), lambda i: (0, 0)),
            pl.BlockSpec((1, out_dim), lambda i: (0, 0)),
        ],
        out_specs=pl.BlockSpec((TB, out_dim), lambda i: (i, 0)),
        compiler_params=pltpu.CompilerParams(dimension_semantics=("parallel",)),
    )(x, w1, b1, w2, b2, w3, b3)


# ---------------------------------------------------------------------------
# Parameter handling (PyTorch convention -> kernel layout, done once)
# ---------------------------------------------------------------------------
def init_params(key, l1=L1):
    """Parameters in the exact PyTorch convention (OIHW convs, (out,in) Linears)."""
    ks = jax.random.split(key, 10)
    s = 0.05
    return {
        "conv1_w": s * jax.random.normal(ks[0], (32, 1, 3, 3), jnp.float32),
        "conv1_b": s * jax.random.normal(ks[1], (32,), jnp.float32),
        "conv2_w": s * jax.random.normal(ks[2], (64, 32, 3, 3), jnp.float32),
        "conv2_b": s * jax.random.normal(ks[3], (64,), jnp.float32),
        "fc_w": s * jax.random.normal(ks[4], (l1, 7 * 7 * 64), jnp.float32),
        "fc_b": s * jax.random.normal(ks[5], (l1,), jnp.float32),
        "fc2_w": s * jax.random.normal(ks[6], (32, l1), jnp.float32),
        "fc2_b": s * jax.random.normal(ks[7], (32,), jnp.float32),
        "last_w": s * jax.random.normal(ks[8], (10, 32), jnp.float32),
        "last_b": s * jax.random.normal(ks[9], (10,), jnp.float32),
    }


def prepare_params(p):
    """Convert PyTorch-layout params to the kernel layout (done once, outside the hot path)."""
    l1 = p["fc_w"].shape[0]
    w1 = p["conv1_w"].reshape(32, 9).T.astype(jnp.float32)                       # (9, 32)
    w2 = p["conv2_w"].transpose(2, 3, 1, 0).reshape(9, 32, 64).astype(jnp.bfloat16)
    # fc_w rows are permuted from PyTorch's C-major flatten (c*49+h*7+w) to HWC-major,
    # matching the NHWC flatten the kernels produce -> numerics preserved.
    fc_w = (p["fc_w"].reshape(l1, 64, 7, 7).transpose(0, 2, 3, 1)
            .reshape(l1, 7 * 7 * 64).T).astype(jnp.bfloat16)                     # (3136, l1)
    return {
        "w1": w1, "b1": p["conv1_b"].reshape(1, 32).astype(jnp.float32),
        "w2": w2, "b2": p["conv2_b"].reshape(1, 64).astype(jnp.float32),
        "fc_w": fc_w, "fc_b": p["fc_b"].reshape(1, l1).astype(jnp.float32),
        "fc2_w": p["fc2_w"].T.astype(jnp.bfloat16),
        "fc2_b": p["fc2_b"].reshape(1, 32).astype(jnp.float32),
        "last_w": p["last_w"].T.astype(jnp.bfloat16),
        "last_b": p["last_b"].reshape(1, 10).astype(jnp.float32),
    }


# ---------------------------------------------------------------------------
# Forward pass
# ---------------------------------------------------------------------------
def _parity_split_conv1(x):
    """(N,1,28,28) NCHW -> (N, 60, 15, 1): zero-pad then 2x2 parity split of the spatial dims."""
    N = x.shape[0]
    xp = jnp.pad(x[:, 0], ((0, 0), (1, 1), (1, 1)))                    # (N,30,30)
    xs = xp.reshape(N, 15, 2, 15, 2).transpose(0, 2, 4, 1, 3)          # (N,2,2,15,15) [a,b,r,c]
    return xs.reshape(N, 60, 15)[..., None]


def _parity_split_conv2(y1):
    """(N,14,14,32) -> (N, 256, 32): zero-pad then 2x2 parity split, channels kept on lanes."""
    N = y1.shape[0]
    yp = jnp.pad(y1, ((0, 0), (1, 1), (1, 1), (0, 0)))                 # (N,16,16,32)
    ys = yp.reshape(N, 8, 2, 8, 2, 32).transpose(0, 2, 4, 1, 3, 5)     # (N,2,2,8,8,32)
    return ys.reshape(N, 256, 32)


def mnist_net_forward(x, prep):
    N = x.shape[0]
    x1 = _parity_split_conv1(x)                                        # tiny XLA-side glue
    y1 = conv1_pool(x1, prep["w1"], prep["b1"])                        # (N,14,14,32) bf16
    x2 = _parity_split_conv2(y1)                                       # tiny XLA-side glue
    y2 = conv2_pool(x2, prep["w2"], prep["b2"])                        # (N,7,7,64) bf16
    flat = y2.reshape(N, 7 * 7 * 64)                                   # HWC-major flatten
    return mlp_head(flat, prep["fc_w"], prep["fc_b"], prep["fc2_w"], prep["fc2_b"],
                    prep["last_w"], prep["last_b"])                    # (N,10) f32


# Pure-JAX reference mirroring the PyTorch module exactly (NCHW, C-major flatten).
def reference_forward(x, p):
    dn = ("NCHW", "OIHW", "NCHW")

    def conv(h, w, b):
        y = jax.lax.conv_general_dilated(h, w, (1, 1), "SAME", dimension_numbers=dn)
        return jnp.maximum(y + b[None, :, None, None], 0.0)

    def pool(h):
        return jax.lax.reduce_window(h, -jnp.inf, jax.lax.max,
                                     (1, 1, 2, 2), (1, 1, 2, 2), "VALID")

    h = pool(conv(x, p["conv1_w"], p["conv1_b"]))
    h = pool(conv(h, p["conv2_w"], p["conv2_b"]))
    h = h.reshape(h.shape[0], -1)
    h = h @ p["fc_w"].T + p["fc_b"]
    h = h @ p["fc2_w"].T + p["fc2_b"]
    return h @ p["last_w"].T + p["last_b"]


if __name__ == "__main__":
    key = jax.random.PRNGKey(0)
    kx, kp = jax.random.split(key)
    # fc expects 7*7*64 features, so the module implies 28x28 single-channel inputs.
    x = jax.random.normal(kx, (2, 1, 28, 28), jnp.float32)
    params = init_params(kp)
    prep = prepare_params(params)

    fwd = jax.jit(mnist_net_forward)
    out = jax.block_until_ready(fwd(x, prep))
    assert out.shape == (2, 10), out.shape

    ref = jax.block_until_ready(reference_forward(x, params))
    err = jnp.max(jnp.abs(out - ref))
    assert jnp.allclose(out, ref, rtol=2e-2, atol=2e-2), f"max abs err {err}"

    print("KERNEL_OK")
</pallas_src>

<mosaic_0001>
module attributes {stable_mosaic.version = 11 : i64} {
  func.func @_conv1_pool_kernel(%arg0: i32, %arg1: memref<1x60x15x1xf32, #tpu.memory_space<vmem>>, %arg2: memref<9x32xf32, #tpu.memory_space<vmem>>, %arg3: memref<1x32xf32, #tpu.memory_space<vmem>>, %arg4: memref<1x14x14x32xbf16, #tpu.memory_space<vmem>>) attributes {dimension_semantics = [#tpu.dimension_semantics<parallel>], iteration_bounds = array<i64: 2>, scalar_prefetch = 0 : i64, scratch_operands = 0 : i64, tpu.core_type = #tpu.core_type<tc>, window_params = [{transform_indices = @transform_0, window_bounds = array<i64: 1, 60, 15, 1>}, {pipeline_mode = #tpu.pipeline_mode<synchronous>, transform_indices = @transform_1, window_bounds = array<i64: 9, 32>}, {pipeline_mode = #tpu.pipeline_mode<synchronous>, transform_indices = @transform_2, window_bounds = array<i64: 1, 32>}, {transform_indices = @transform_3, window_bounds = array<i64: 1, 14, 14, 32>}]} {
    %c0 = arith.constant 0 : index
    %c0_0 = arith.constant 0 : index
    %c0_1 = arith.constant 0 : index
    %c0_2 = arith.constant 0 : index
    %0 = vector.load %arg1[%c0, %c0_0, %c0_1, %c0_2] : memref<1x60x15x1xf32, #tpu.memory_space<vmem>>, vector<1x14x14x1xf32>
    %1 = vector.shape_cast %0 : vector<1x14x14x1xf32> to vector<14x14x1xf32>
    %c0_3 = arith.constant 0 : index
    %c15 = arith.constant 15 : index
    %c0_4 = arith.constant 0 : index
    %c0_5 = arith.constant 0 : index
    %2 = vector.load %arg1[%c0_3, %c15, %c0_4, %c0_5] : memref<1x60x15x1xf32, #tpu.memory_space<vmem>>, vector<1x14x14x1xf32>
    %3 = vector.shape_cast %2 : vector<1x14x14x1xf32> to vector<14x14x1xf32>
    %c0_6 = arith.constant 0 : index
    %c0_7 = arith.constant 0 : index
    %c1 = arith.constant 1 : index
    %c0_8 = arith.constant 0 : index
    %4 = vector.load %arg1[%c0_6, %c0_7, %c1, %c0_8] : memref<1x60x15x1xf32, #tpu.memory_space<vmem>>, vector<1x14x14x1xf32>
    %5 = vector.shape_cast %4 : vector<1x14x14x1xf32> to vector<14x14x1xf32>
    %c0_9 = arith.constant 0 : index
    %c15_10 = arith.constant 15 : index
    %c1_11 = arith.constant 1 : index
    %c0_12 = arith.constant 0 : index
    %6 = vector.load %arg1[%c0_9, %c15_10, %c1_11, %c0_12] : memref<1x60x15x1xf32, #tpu.memory_space<vmem>>, vector<1x14x14x1xf32>
    %7 = vector.shape_cast %6 : vector<1x14x14x1xf32> to vector<14x14x1xf32>
    %c0_13 = arith.constant 0 : index
    %c30 = arith.constant 30 : index
    %c0_14 = arith.constant 0 : index
    %c0_15 = arith.constant 0 : index
    %8 = vector.load %arg1[%c0_13, %c30, %c0_14, %c0_15] : memref<1x60x15x1xf32, #tpu.memory_space<vmem>>, vector<1x14x14x1xf32>
    %9 = vector.shape_cast %8 : vector<1x14x14x1xf32> to vector<14x14x1xf32>
    %c0_16 = arith.constant 0 : index
    %c45 = arith.constant 45 : index
    %c0_17 = arith.constant 0 : index
    %c0_18 = arith.constant 0 : index
    %10 = vector.load %arg1[%c0_16, %c45, %c0_17, %c0_18] : memref<1x60x15x1xf32, #tpu.memory_space<vmem>>, vector<1x14x14x1xf32>
    %11 = vector.shape_cast %10 : vector<1x14x14x1xf32> to vector<14x14x1xf32>
    %c0_19 = arith.constant 0 : index
    %c30_20 = arith.constant 30 : index
    %c1_21 = arith.constant 1 : index
    %c0_22 = arith.constant 0 : index
    %12 = vector.load %arg1[%c0_19, %c30_20, %c1_21, %c0_22] : memref<1x60x15x1xf32, #tpu.memory_space<vmem>>, vector<1x14x14x1xf32>
    %13 = vector.shape_cast %12 : vector<1x14x14x1xf32> to vector<14x14x1xf32>
    %c0_23 = arith.constant 0 : index
    %c45_24 = arith.constant 45 : index
    %c1_25 = arith.constant 1 : index
    %c0_26 = arith.constant 0 : index
    %14 = vector.load %arg1[%c0_23, %c45_24, %c1_25, %c0_26] : memref<1x60x15x1xf32, #tpu.memory_space<vmem>>, vector<1x14x14x1xf32>
    %15 = vector.shape_cast %14 : vector<1x14x14x1xf32> to vector<14x14x1xf32>
    %c0_27 = arith.constant 0 : index
    %c1_28 = arith.constant 1 : index
    %c0_29 = arith.constant 0 : index
    %c0_30 = arith.constant 0 : index
    %16 = vector.load %arg1[%c0_27, %c1_28, %c0_29, %c0_30] : memref<1x60x15x1xf32, #tpu.memory_space<vmem>>, vector<1x14x14x1xf32>
    %17 = vector.shape_cast %16 : vector<1x14x14x1xf32> to vector<14x14x1xf32>
    %c0_31 = arith.constant 0 : index
    %c16 = arith.constant 16 : index
    %c0_32 = arith.constant 0 : index
    %c0_33 = arith.constant 0 : index
    %18 = vector.load %arg1[%c0_31, %c16, %c0_32, %c0_33] : memref<1x60x15x1xf32, #tpu.memory_space<vmem>>, vector<1x14x14x1xf32>
    %19 = vector.shape_cast %18 : vector<1x14x14x1xf32> to vector<14x14x1xf32>
    %c0_34 = arith.constant 0 : index
    %c1_35 = arith.constant 1 : index
    %c1_36 = arith.constant 1 : index
    %c0_37 = arith.constant 0 : index
    %20 = vector.load %arg1[%c0_34, %c1_35, %c1_36, %c0_37] : memref<1x60x15x1xf32, #tpu.memory_space<vmem>>, vector<1x14x14x1xf32>
    %21 = vector.shape_cast %20 : vector<1x14x14x1xf32> to vector<14x14x1xf32>
    %c0_38 = arith.constant 0 : index
    %c16_39 = arith.constant 16 : index
    %c1_40 = arith.constant 1 : index
    %c0_41 = arith.constant 0 : index
    %22 = vector.load %arg1[%c0_38, %c16_39, %c1_40, %c0_41] : memref<1x60x15x1xf32, #tpu.memory_space<vmem>>, vector<1x14x14x1xf32>
    %23 = vector.shape_cast %22 : vector<1x14x14x1xf32> to vector<14x14x1xf32>
    %c0_42 = arith.constant 0 : index
    %c31 = arith.constant 31 : index
    %c0_43 = arith.constant 0 : index
    %c0_44 = arith.constant 0 : index
    %24 = vector.load %arg1[%c0_42, %c31, %c0_43, %c0_44] : memref<1x60x15x1xf32, #tpu.memory_space<vmem>>, vector<1x14x14x1xf32>
    %25 = vector.shape_cast %24 : vector<1x14x14x1xf32> to vector<14x14x1xf32>
    %c0_45 = arith.constant 0 : index
    %c46 = arith.constant 46 : index
    %c0_46 = arith.constant 0 : index
    %c0_47 = arith.constant 0 : index
    %26 = vector.load %arg1[%c0_45, %c46, %c0_46, %c0_47] : memref<1x60x15x1xf32, #tpu.memory_space<vmem>>, vector<1x14x14x1xf32>
    %27 = vector.shape_cast %26 : vector<1x14x14x1xf32> to vector<14x14x1xf32>
    %c0_48 = arith.constant 0 : index
    %c31_49 = arith.constant 31 : index
    %c1_50 = arith.constant 1 : index
    %c0_51 = arith.constant 0 : index
    %28 = vector.load %arg1[%c0_48, %c31_49, %c1_50, %c0_51] : memref<1x60x15x1xf32, #tpu.memory_space<vmem>>, vector<1x14x14x1xf32>
    %29 = vector.shape_cast %28 : vector<1x14x14x1xf32> to vector<14x14x1xf32>
    %c0_52 = arith.constant 0 : index
    %c46_53 = arith.constant 46 : index
    %c1_54 = arith.constant 1 : index
    %c0_55 = arith.constant 0 : index
    %30 = vector.load %arg1[%c0_52, %c46_53, %c1_54, %c0_55] : memref<1x60x15x1xf32, #tpu.memory_space<vmem>>, vector<1x14x14x1xf32>
    %31 = vector.shape_cast %30 : vector<1x14x14x1xf32> to vector<14x14x1xf32>
    %c0_56 = arith.constant 0 : index
    %c0_57 = arith.constant 0 : index
    %32 = vector.load %arg2[%c0_56, %c0_57] : memref<9x32xf32, #tpu.memory_space<vmem>>, vector<1x32xf32>
    %33 = vector.shape_cast %32 : vector<1x32xf32> to vector<1x1x32xf32>
    %c1_58 = arith.constant 1 : index
    %c0_59 = arith.constant 0 : index
    %34 = vector.load %arg2[%c1_58, %c0_59] : memref<9x32xf32, #tpu.memory_space<vmem>>, vector<1x32xf32>
    %35 = vector.shape_cast %34 : vector<1x32xf32> to vector<1x1x32xf32>
    %c2 = arith.constant 2 : index
    %c0_60 = arith.constant 0 : index
    %36 = vector.load %arg2[%c2, %c0_60] : memref<9x32xf32, #tpu.memory_space<vmem>>, vector<1x32xf32>
    %37 = vector.shape_cast %36 : vector<1x32xf32> to vector<1x1x32xf32>
    %c3 = arith.constant 3 : index
    %c0_61 = arith.constant 0 : index
    %38 = vector.load %arg2[%c3, %c0_61] : memref<9x32xf32, #tpu.memory_space<vmem>>, vector<1x32xf32>
    %39 = vector.shape_cast %38 : vector<1x32xf32> to vector<1x1x32xf32>
    %c4 = arith.constant 4 : index
    %c0_62 = arith.constant 0 : index
    %40 = vector.load %arg2[%c4, %c0_62] : memref<9x32xf32, #tpu.memory_space<vmem>>, vector<1x32xf32>
    %41 = vector.shape_cast %40 : vector<1x32xf32> to vector<1x1x32xf32>
    %c5 = arith.constant 5 : index
    %c0_63 = arith.constant 0 : index
    %42 = vector.load %arg2[%c5, %c0_63] : memref<9x32xf32, #tpu.memory_space<vmem>>, vector<1x32xf32>
    %43 = vector.shape_cast %42 : vector<1x32xf32> to vector<1x1x32xf32>
    %c6 = arith.constant 6 : index
    %c0_64 = arith.constant 0 : index
    %44 = vector.load %arg2[%c6, %c0_64] : memref<9x32xf32, #tpu.memory_space<vmem>>, vector<1x32xf32>
    %45 = vector.shape_cast %44 : vector<1x32xf32> to vector<1x1x32xf32>
    %c7 = arith.constant 7 : index
    %c0_65 = arith.constant 0 : index
    %46 = vector.load %arg2[%c7, %c0_65] : memref<9x32xf32, #tpu.memory_space<vmem>>, vector<1x32xf32>
    %47 = vector.shape_cast %46 : vector<1x32xf32> to vector<1x1x32xf32>
    %c8 = arith.constant 8 : index
    %c0_66 = arith.constant 0 : index
    %48 = vector.load %arg2[%c8, %c0_66] : memref<9x32xf32, #tpu.memory_space<vmem>>, vector<1x32xf32>
    %49 = vector.shape_cast %48 : vector<1x32xf32> to vector<1x1x32xf32>
    %cst = arith.constant 0.000000e+00 : f32
    %50 = vector.broadcast %cst : f32 to vector<14x14x32xf32>
    %51 = vector.broadcast %1 : vector<14x14x1xf32> to vector<14x14x32xf32>
    %52 = vector.broadcast %33 : vector<1x1x32xf32> to vector<14x14x32xf32>
    %53 = arith.mulf %51, %52 : vector<14x14x32xf32>
    %54 = arith.addf %50, %53 : vector<14x14x32xf32>
    %55 = vector.broadcast %3 : vector<14x14x1xf32> to vector<14x14x32xf32>
    %56 = vector.broadcast %35 : vector<1x1x32xf32> to vector<14x14x32xf32>
    %57 = arith.mulf %55, %56 : vector<14x14x32xf32>
    %58 = arith.addf %54, %57 : vector<14x14x32xf32>
    %59 = vector.broadcast %5 : vector<14x14x1xf32> to vector<14x14x32xf32>
    %60 = vector.broadcast %37 : vector<1x1x32xf32> to vector<14x14x32xf32>
    %61 = arith.mulf %59, %60 : vector<14x14x32xf32>
    %62 = arith.addf %58, %61 : vector<14x14x32xf32>
    %63 = vector.broadcast %9 : vector<14x14x1xf32> to vector<14x14x32xf32>
    %64 = vector.broadcast %39 : vector<1x1x32xf32> to vector<14x14x32xf32>
    %65 = arith.mulf %63, %64 : vector<14x14x32xf32>
    %66 = arith.addf %62, %65 : vector<14x14x32xf32>
    %67 = vector.broadcast %11 : vector<14x14x1xf32> to vector<14x14x32xf32>
    %68 = vector.broadcast %41 : vector<1x1x32xf32> to vector<14x14x32xf32>
    %69 = arith.mulf %67, %68 : vector<14x14x32xf32>
    %70 = arith.addf %66, %69 : vector<14x14x32xf32>
    %71 = vector.broadcast %13 : vector<14x14x1xf32> to vector<14x14x32xf32>
    %72 = vector.broadcast %43 : vector<1x1x32xf32> to vector<14x14x32xf32>
    %73 = arith.mulf %71, %72 : vector<14x14x32xf32>
    %74 = arith.addf %70, %73 : vector<14x14x32xf32>
    %75 = vector.broadcast %17 : vector<14x14x1xf32> to vector<14x14x32xf32>
    %76 = vector.broadcast %45 : vector<1x1x32xf32> to vector<14x14x32xf32>
    %77 = arith.mulf %75, %76 : vector<14x14x32xf32>
    %78 = arith.addf %74, %77 : vector<14x14x32xf32>
    %79 = vector.broadcast %19 : vector<14x14x1xf32> to vector<14x14x32xf32>
    %80 = vector.broadcast %47 : vector<1x1x32xf32> to vector<14x14x32xf32>
    %81 = arith.mulf %79, %80 : vector<14x14x32xf32>
    %82 = arith.addf %78, %81 : vector<14x14x32xf32>
    %83 = vector.broadcast %21 : vector<14x14x1xf32> to vector<14x14x32xf32>
    %84 = vector.broadcast %49 : vector<1x1x32xf32> to vector<14x14x32xf32>
    %85 = arith.mulf %83, %84 : vector<14x14x32xf32>
    %86 = arith.addf %82, %85 : vector<14x14x32xf32>
    %cst_67 = arith.constant 0.000000e+00 : f32
    %87 = vector.broadcast %cst_67 : f32 to vector<14x14x32xf32>
    %88 = vector.broadcast %3 : vector<14x14x1xf32> to vector<14x14x32xf32>
    %89 = vector.broadcast %33 : vector<1x1x32xf32> to vector<14x14x32xf32>
    %90 = arith.mulf %88, %89 : vector<14x14x32xf32>
    %91 = arith.addf %87, %90 : vector<14x14x32xf32>
    %92 = vector.broadcast %5 : vector<14x14x1xf32> to vector<14x14x32xf32>
    %93 = vector.broadcast %35 : vector<1x1x32xf32> to vector<14x14x32xf32>
    %94 = arith.mulf %92, %93 : vector<14x14x32xf32>
    %95 = arith.addf %91, %94 : vector<14x14x32xf32>
    %96 = vector.broadcast %7 : vector<14x14x1xf32> to vector<14x14x32xf32>
    %97 = vector.broadcast %37 : vector<1x1x32xf32> to vector<14x14x32xf32>
    %98 = arith.mulf %96, %97 : vector<14x14x32xf32>
    %99 = arith.addf %95, %98 : vector<14x14x32xf32>
    %100 = vector.broadcast %11 : vector<14x14x1xf32> to vector<14x14x32xf32>
    %101 = vector.broadcast %39 : vector<1x1x32xf32> to vector<14x14x32xf32>
    %102 = arith.mulf %100, %101 : vector<14x14x32xf32>
    %103 = arith.addf %99, %102 : vector<14x14x32xf32>
    %104 = vector.broadcast %13 : vector<14x14x1xf32> to vector<14x14x32xf32>
    %105 = vector.broadcast %41 : vector<1x1x32xf32> to vector<14x14x32xf32>
    %106 = arith.mulf %104, %105 : vector<14x14x32xf32>
    %107 = arith.addf %103, %106 : vector<14x14x32xf32>
    %108 = vector.broadcast %15 : vector<14x14x1xf32> to vector<14x14x32xf32>
    %109 = vector.broadcast %43 : vector<1x1x32xf32> to vector<14x14x32xf32>
    %110 = arith.mulf %108, %109 : vector<14x14x32xf32>
    %111 = arith.addf %107, %110 : vector<14x14x32xf32>
    %112 = vector.broadcast %19 : vector<14x14x1xf32> to vector<14x14x32xf32>
    %113 = vector.broadcast %45 : vector<1x1x32xf32> to vector<14x14x32xf32>
    %114 = arith.mulf %112, %113 : vector<14x14x32xf32>
    %115 = arith.addf %111, %114 : vector<14x14x32xf32>
    %116 = vector.broadcast %21 : vector<14x14x1xf32> to vector<14x14x32xf32>
    %117 = vector.broadcast %47 : vector<1x1x32xf32> to vector<14x14x32xf32>
    %118 = arith.mulf %116, %117 : vector<14x14x32xf32>
    %119 = arith.addf %115, %118 : vector<14x14x32xf32>
    %120 = vector.broadcast %23 : vector<14x14x1xf32> to vector<14x14x32xf32>
    %121 = vector.broadcast %49 : vector<1x1x32xf32> to vector<14x14x32xf32>
    %122 = arith.mulf %120, %121 : vector<14x14x32xf32>
    %123 = arith.addf %119, %122 : vector<14x14x32xf32>
    %cst_68 = arith.constant 0.000000e+00 : f32
    %124 = vector.broadcast %cst_68 : f32 to vector<14x14x32xf32>
    %125 = vector.broadcast %9 : vector<14x14x1xf32> to vector<14x14x32xf32>
    %126 = vector.broadcast %33 : vector<1x1x32xf32> to vector<14x14x32xf32>
    %127 = arith.mulf %125, %126 : vector<14x14x32xf32>
    %128 = arith.addf %124, %127 : vector<14x14x32xf32>
    %129 = vector.broadcast %11 : vector<14x14x1xf32> to vector<14x14x32xf32>
    %130 = vector.broadcast %35 : vector<1x1x32xf32> to vector<14x14x32xf32>
    %131 = arith.mulf %129, %130 : vector<14x14x32xf32>
    %132 = arith.addf %128, %131 : vector<14x14x32xf32>
    %133 = vector.broadcast %13 : vector<14x14x1xf32> to vector<14x14x32xf32>
    %134 = vector.broadcast %37 : vector<1x1x32xf32> to vector<14x14x32xf32>
    %135 = arith.mulf %133, %134 : vector<14x14x32xf32>
    %136 = arith.addf %132, %135 : vector<14x14x32xf32>
    %137 = vector.broadcast %17 : vector<14x14x1xf32> to vector<14x14x32xf32>
    %138 = vector.broadcast %39 : vector<1x1x32xf32> to vector<14x14x32xf32>
    %139 = arith.mulf %137, %138 : vector<14x14x32xf32>
    %140 = arith.addf %136, %139 : vector<14x14x32xf32>
    %141 = vector.broadcast %19 : vector<14x14x1xf32> to vector<14x14x32xf32>
    %142 = vector.broadcast %41 : vector<1x1x32xf32> to vector<14x14x32xf32>
    %143 = arith.mulf %141, %142 : vector<14x14x32xf32>
    %144 = arith.addf %140, %143 : vector<14x14x32xf32>
    %145 = vector.broadcast %21 : vector<14x14x1xf32> to vector<14x14x32xf32>
    %146 = vector.broadcast %43 : vector<1x1x32xf32> to vector<14x14x32xf32>
    %147 = arith.mulf %145, %146 : vector<14x14x32xf32>
    %148 = arith.addf %144, %147 : vector<14x14x32xf32>
    %149 = vector.broadcast %25 : vector<14x14x1xf32> to vector<14x14x32xf32>
    %150 = vector.broadcast %45 : vector<1x1x32xf32> to vector<14x14x32xf32>
    %151 = arith.mulf %149, %150 : vector<14x14x32xf32>
    %152 = arith.addf %148, %151 : vector<14x14x32xf32>
    %153 = vector.broadcast %27 : vector<14x14x1xf32> to vector<14x14x32xf32>
    %154 = vector.broadcast %47 : vector<1x1x32xf32> to vector<14x14x32xf32>
    %155 = arith.mulf %153, %154 : vector<14x14x32xf32>
    %156 = arith.addf %152, %155 : vector<14x14x32xf32>
    %157 = vector.broadcast %29 : vector<14x14x1xf32> to vector<14x14x32xf32>
    %158 = vector.broadcast %49 : vector<1x1x32xf32> to vector<14x14x32xf32>
    %159 = arith.mulf %157, %158 : vector<14x14x32xf32>
    %160 = arith.addf %156, %159 : vector<14x14x32xf32>
    %cst_69 = arith.constant 0.000000e+00 : f32
    %161 = vector.broadcast %cst_69 : f32 to vector<14x14x32xf32>
    %162 = vector.broadcast %11 : vector<14x14x1xf32> to vector<14x14x32xf32>
    %163 = vector.broadcast %33 : vector<1x1x32xf32> to vector<14x14x32xf32>
    %164 = arith.mulf %162, %163 : vector<14x14x32xf32>
    %165 = arith.addf %161, %164 : vector<14x14x32xf32>
    %166 = vector.broadcast %13 : vector<14x14x1xf32> to vector<14x14x32xf32>
    %167 = vector.broadcast %35 : vector<1x1x32xf32> to vector<14x14x32xf32>
    %168 = arith.mulf %166, %167 : vector<14x14x32xf32>
    %169 = arith.addf %165, %168 : vector<14x14x32xf32>
    %170 = vector.broadcast %15 : vector<14x14x1xf32> to vector<14x14x32xf32>
    %171 = vector.broadcast %37 : vector<1x1x32xf32> to vector<14x14x32xf32>
    %172 = arith.mulf %170, %171 : vector<14x14x32xf32>
    %173 = arith.addf %169, %172 : vector<14x14x32xf32>
    %174 = vector.broadcast %19 : vector<14x14x1xf32> to vector<14x14x32xf32>
    %175 = vector.broadcast %39 : vector<1x1x32xf32> to vector<14x14x32xf32>
    %176 = arith.mulf %174, %175 : vector<14x14x32xf32>
    %177 = arith.addf %173, %176 : vector<14x14x32xf32>
    %178 = vector.broadcast %21 : vector<14x14x1xf32> to vector<14x14x32xf32>
    %179 = vector.broadcast %41 : vector<1x1x32xf32> to vector<14x14x32xf32>
    %180 = arith.mulf %178, %179 : vector<14x14x32xf32>
    %181 = arith.addf %177, %180 : vector<14x14x32xf32>
    %182 = vector.broadcast %23 : vector<14x14x1xf32> to vector<14x14x32xf32>
    %183 = vector.broadcast %43 : vector<1x1x32xf32> to vector<14x14x32xf32>
    %184 = arith.mulf %182, %183 : vector<14x14x32xf32>
    %185 = arith.addf %181, %184 : vector<14x14x32xf32>
    %186 = vector.broadcast %27 : vector<14x14x1xf32> to vector<14x14x32xf32>
    %187 = vector.broadcast %45 : vector<1x1x32xf32> to vector<14x14x32xf32>
    %188 = arith.mulf %186, %187 : vector<14x14x32xf32>
    %189 = arith.addf %185, %188 : vector<14x14x32xf32>
    %190 = vector.broadcast %29 : vector<14x14x1xf32> to vector<14x14x32xf32>
    %191 = vector.broadcast %47 : vector<1x1x32xf32> to vector<14x14x32xf32>
    %192 = arith.mulf %190, %191 : vector<14x14x32xf32>
    %193 = arith.addf %189, %192 : vector<14x14x32xf32>
    %194 = vector.broadcast %31 : vector<14x14x1xf32> to vector<14x14x32xf32>
    %195 = vector.broadcast %49 : vector<1x1x32xf32> to vector<14x14x32xf32>
    %196 = arith.mulf %194, %195 : vector<14x14x32xf32>
    %197 = arith.addf %193, %196 : vector<14x14x32xf32>
    %198 = arith.maximumf %86, %123 : vector<14x14x32xf32>
    %199 = arith.maximumf %160, %197 : vector<14x14x32xf32>
    %200 = arith.maximumf %198, %199 : vector<14x14x32xf32>
    %c0_70 = arith.constant 0 : index
    %c0_71 = arith.constant 0 : index
    %201 = vector.load %arg3[%c0_70, %c0_71] : memref<1x32xf32, #tpu.memory_space<vmem>>, vector<1x32xf32>
    %202 = vector.shape_cast %201 : vector<1x32xf32> to vector<1x1x32xf32>
    %203 = vector.broadcast %202 : vector<1x1x32xf32> to vector<14x14x32xf32>
    %204 = arith.addf %200, %203 : vector<14x14x32xf32>
    %cst_72 = arith.constant 0.000000e+00 : f32
    %205 = vector.broadcast %cst_72 : f32 to vector<14x14x32xf32>
    %206 = arith.maximumf %204, %205 : vector<14x14x32xf32>
    %207 = arith.truncf %206 : vector<14x14x32xf32> to vector<14x14x32xbf16>
    %c0_73 = arith.constant 0 : index
    %c0_74 = arith.constant 0 : index
    %c0_75 = arith.constant 0 : index
    %c0_76 = arith.constant 0 : index
    %208 = vector.load %arg4[%c0_73, %c0_74, %c0_75, %c0_76] : memref<1x14x14x32xbf16, #tpu.memory_space<vmem>>, vector<1x14x14x32xbf16>
    %209 = vector.shape_cast %208 : vector<1x14x14x32xbf16> to vector<14x14x32xbf16>
    %210 = vector.shape_cast %207 : vector<14x14x32xbf16> to vector<1x14x14x32xbf16>
    tpu.vector_store %arg4[%c0_73, %c0_74, %c0_75, %c0_76], %210 {strides = array<i32>} : memref<1x14x14x32xbf16, #tpu.memory_space<vmem>>, vector<1x14x14x32xbf16>,
    return
  }
  func.func @transform_0(%arg0: i32) -> (i32, i32, i32, i32) {
    %c0_i32 = arith.constant 0 : i32
    %c0_i32_0 = arith.constant 0 : i32
    %c0_i32_1 = arith.constant 0 : i32
    %c0_i32_2 = arith.constant 0 : i32
    return %arg0, %c0_i32, %c0_i32_0, %c0_i32_1 : i32, i32, i32, i32
  }
  func.func @transform_1(%arg0: i32) -> (i32, i32) {
    %c0_i32 = arith.constant 0 : i32
    %c0_i32_0 = arith.constant 0 : i32
    %c0_i32_1 = arith.constant 0 : i32
    return %c0_i32, %c0_i32_0 : i32, i32
  }
  func.func @transform_2(%arg0: i32) -> (i32, i32) {
    %c0_i32 = arith.constant 0 : i32
    %c0_i32_0 = arith.constant 0 : i32
    %c0_i32_1 = arith.constant 0 : i32
    return %c0_i32, %c0_i32_0 : i32, i32
  }
  func.func @transform_3(%arg0: i32) -> (i32, i32, i32, i32) {
    %c0_i32 = arith.constant 0 : i32
    %c0_i32_0 = arith.constant 0 : i32
    %c0_i32_1 = arith.constant 0 : i32
    %c0_i32_2 = arith.constant 0 : i32
    return %arg0, %c0_i32, %c0_i32_0, %c0_i32_1 : i32, i32, i32, i32
  }
}

module attributes {stable_mosaic.version = 11 : i64} {
  func.func @_conv2_pool_kernel(%arg0: i32, %arg1: memref<1x256x32xbf16, #tpu.memory_space<vmem>>, %arg2: memref<9x32x64xbf16, #tpu.memory_space<vmem>>, %arg3: memref<1x64xf32, #tpu.memory_space<vmem>>, %arg4: memref<1x7x7x64xbf16, #tpu.memory_space<vmem>>) attributes {dimension_semantics = [#tpu.dimension_semantics<parallel>], iteration_bounds = array<i64: 2>, scalar_prefetch = 0 : i64, scratch_operands = 0 : i64, tpu.core_type = #tpu.core_type<tc>, window_params = [{transform_indices = @transform_0, window_bounds = array<i64: 1, 256, 32>}, {pipeline_mode = #tpu.pipeline_mode<synchronous>, transform_indices = @transform_1, window_bounds = array<i64: 9, 32, 64>}, {pipeline_mode = #tpu.pipeline_mode<synchronous>, transform_indices = @transform_2, window_bounds = array<i64: 1, 64>}, {transform_indices = @transform_3, window_bounds = array<i64: 1, 7, 7, 64>}]} {
    %c0 = arith.constant 0 : index
    %c0_0 = arith.constant 0 : index
    %c0_1 = arith.constant 0 : index
    %0 = vector.load %arg1[%c0, %c0_0, %c0_1] : memref<1x256x32xbf16, #tpu.memory_space<vmem>>, vector<1x56x32xbf16>
    %1 = vector.shape_cast %0 : vector<1x56x32xbf16> to vector<56x32xbf16>
    %c0_2 = arith.constant 0 : index
    %c64 = arith.constant 64 : index
    %c0_3 = arith.constant 0 : index
    %2 = vector.load %arg1[%c0_2, %c64, %c0_3] : memref<1x256x32xbf16, #tpu.memory_space<vmem>>, vector<1x56x32xbf16>
    %3 = vector.shape_cast %2 : vector<1x56x32xbf16> to vector<56x32xbf16>
    %c0_4 = arith.constant 0 : index
    %c128 = arith.constant 128 : index
    %c0_5 = arith.constant 0 : index
    %4 = vector.load %arg1[%c0_4, %c128, %c0_5] : memref<1x256x32xbf16, #tpu.memory_space<vmem>>, vector<1x56x32xbf16>
    %5 = vector.shape_cast %4 : vector<1x56x32xbf16> to vector<56x32xbf16>
    %c0_6 = arith.constant 0 : index
    %c192 = arith.constant 192 : index
    %c0_7 = arith.constant 0 : index
    %6 = vector.load %arg1[%c0_6, %c192, %c0_7] : memref<1x256x32xbf16, #tpu.memory_space<vmem>>, vector<1x56x32xbf16>
    %7 = vector.shape_cast %6 : vector<1x56x32xbf16> to vector<56x32xbf16>
    %c0_8 = arith.constant 0 : index
    %c8 = arith.constant 8 : index
    %c0_9 = arith.constant 0 : index
    %8 = vector.load %arg1[%c0_8, %c8, %c0_9] : memref<1x256x32xbf16, #tpu.memory_space<vmem>>, vector<1x56x32xbf16>
    %9 = vector.shape_cast %8 : vector<1x56x32xbf16> to vector<56x32xbf16>
    %c0_10 = arith.constant 0 : index
    %c72 = arith.constant 72 : index
    %c0_11 = arith.constant 0 : index
    %10 = vector.load %arg1[%c0_10, %c72, %c0_11] : memref<1x256x32xbf16, #tpu.memory_space<vmem>>, vector<1x56x32xbf16>
    %11 = vector.shape_cast %10 : vector<1x56x32xbf16> to vector<56x32xbf16>
    %c0_12 = arith.constant 0 : index
    %c136 = arith.constant 136 : index
    %c0_13 = arith.constant 0 : index
    %12 = vector.load %arg1[%c0_12, %c136, %c0_13] : memref<1x256x32xbf16, #tpu.memory_space<vmem>>, vector<1x56x32xbf16>
    %13 = vector.shape_cast %12 : vector<1x56x32xbf16> to vector<56x32xbf16>
    %c0_14 = arith.constant 0 : index
    %c200 = arith.constant 200 : index
    %c0_15 = arith.constant 0 : index
    %14 = vector.load %arg1[%c0_14, %c200, %c0_15] : memref<1x256x32xbf16, #tpu.memory_space<vmem>>, vector<1x56x32xbf16>
    %15 = vector.shape_cast %14 : vector<1x56x32xbf16> to vector<56x32xbf16>
    %c0_16 = arith.constant 0 : index
    %c0_17 = arith.constant 0 : index
    %c0_18 = arith.constant 0 : index
    %16 = vector.load %arg2[%c0_16, %c0_17, %c0_18] : memref<9x32x64xbf16, #tpu.memory_space<vmem>>, vector<1x32x64xbf16>
    %17 = vector.shape_cast %16 : vector<1x32x64xbf16> to vector<32x64xbf16>
    %c1 = arith.constant 1 : index
    %c0_19 = arith.constant 0 : index
    %c0_20 = arith.constant 0 : index
    %18 = vector.load %arg2[%c1, %c0_19, %c0_20] : memref<9x32x64xbf16, #tpu.memory_space<vmem>>, vector<1x32x64xbf16>
    %19 = vector.shape_cast %18 : vector<1x32x64xbf16> to vector<32x64xbf16>
    %c2 = arith.constant 2 : index
    %c0_21 = arith.constant 0 : index
    %c0_22 = arith.constant 0 : index
    %20 = vector.load %arg2[%c2, %c0_21, %c0_22] : memref<9x32x64xbf16, #tpu.memory_space<vmem>>, vector<1x32x64xbf16>
    %21 = vector.shape_cast %20 : vector<1x32x64xbf16> to vector<32x64xbf16>
    %c3 = arith.constant 3 : index
    %c0_23 = arith.constant 0 : index
    %c0_24 = arith.constant 0 : index
    %22 = vector.load %arg2[%c3, %c0_23, %c0_24] : memref<9x32x64xbf16, #tpu.memory_space<vmem>>, vector<1x32x64xbf16>
    %23 = vector.shape_cast %22 : vector<1x32x64xbf16> to vector<32x64xbf16>
    %c4 = arith.constant 4 : index
    %c0_25 = arith.constant 0 : index
    %c0_26 = arith.constant 0 : index
    %24 = vector.load %arg2[%c4, %c0_25, %c0_26] : memref<9x32x64xbf16, #tpu.memory_space<vmem>>, vector<1x32x64xbf16>
    %25 = vector.shape_cast %24 : vector<1x32x64xbf16> to vector<32x64xbf16>
    %c5 = arith.constant 5 : index
    %c0_27 = arith.constant 0 : index
    %c0_28 = arith.constant 0 : index
    %26 = vector.load %arg2[%c5, %c0_27, %c0_28] : memref<9x32x64xbf16, #tpu.memory_space<vmem>>, vector<1x32x64xbf16>
    %27 = vector.shape_cast %26 : vector<1x32x64xbf16> to vector<32x64xbf16>
    %c6 = arith.constant 6 : index
    %c0_29 = arith.constant 0 : index
    %c0_30 = arith.constant 0 : index
    %28 = vector.load %arg2[%c6, %c0_29, %c0_30] : memref<9x32x64xbf16, #tpu.memory_space<vmem>>, vector<1x32x64xbf16>
    %29 = vector.shape_cast %28 : vector<1x32x64xbf16> to vector<32x64xbf16>
    %c7 = arith.constant 7 : index
    %c0_31 = arith.constant 0 : index
    %c0_32 = arith.constant 0 : index
    %30 = vector.load %arg2[%c7, %c0_31, %c0_32] : memref<9x32x64xbf16, #tpu.memory_space<vmem>>, vector<1x32x64xbf16>
    %31 = vector.shape_cast %30 : vector<1x32x64xbf16> to vector<32x64xbf16>
    %c8_33 = arith.constant 8 : index
    %c0_34 = arith.constant 0 : index
    %c0_35 = arith.constant 0 : index
    %32 = vector.load %arg2[%c8_33, %c0_34, %c0_35] : memref<9x32x64xbf16, #tpu.memory_space<vmem>>, vector<1x32x64xbf16>
    %33 = vector.shape_cast %32 : vector<1x32x64xbf16> to vector<32x64xbf16>
    %cst = arith.constant 0.000000e+00 : f32
    %34 = vector.broadcast %cst : f32 to vector<7x8x64xf32>
    %cst_36 = arith.constant 0.000000e+00 : f32
    %35 = vector.broadcast %cst_36 : f32 to vector<7x8x64xf32>
    %cst_37 = arith.constant dense<0.000000e+00> : vector<56x64xf32>
    %36 = tpu.matmul %1, %17, %cst_37 {dimension_numbers = #tpu.dot_dimension_numbers<[1], [0], [0], [1], [0, 0, 1, 1], [], []>} : vector<56x32xbf16>, vector<32x64xbf16>, vector<56x64xf32> -> vector<56x64xf32>
    %37 = vector.shape_cast %36 : vector<56x64xf32> to vector<7x8x64xf32>
    %38 = arith.addf %34, %37 : vector<7x8x64xf32>
    %cst_38 = arith.constant dense<0.000000e+00> : vector<56x64xf32>
    %39 = tpu.matmul %3, %19, %cst_38 {dimension_numbers = #tpu.dot_dimension_numbers<[1], [0], [0], [1], [0, 0, 1, 1], [], []>} : vector<56x32xbf16>, vector<32x64xbf16>, vector<56x64xf32> -> vector<56x64xf32>
    %40 = vector.shape_cast %39 : vector<56x64xf32> to vector<7x8x64xf32>
    %41 = arith.addf %38, %40 : vector<7x8x64xf32>
    %cst_39 = arith.constant dense<0.000000e+00> : vector<56x64xf32>
    %42 = tpu.matmul %1, %21, %cst_39 {dimension_numbers = #tpu.dot_dimension_numbers<[1], [0], [0], [1], [0, 0, 1, 1], [], []>} : vector<56x32xbf16>, vector<32x64xbf16>, vector<56x64xf32> -> vector<56x64xf32>
    %43 = vector.shape_cast %42 : vector<56x64xf32> to vector<7x8x64xf32>
    %44 = arith.addf %35, %43 : vector<7x8x64xf32>
    %cst_40 = arith.constant dense<0.000000e+00> : vector<56x64xf32>
    %45 = tpu.matmul %5, %23, %cst_40 {dimension_numbers = #tpu.dot_dimension_numbers<[1], [0], [0], [1], [0, 0, 1, 1], [], []>} : vector<56x32xbf16>, vector<32x64xbf16>, vector<56x64xf32> -> vector<56x64xf32>
    %46 = vector.shape_cast %45 : vector<56x64xf32> to vector<7x8x64xf32>
    %47 = arith.addf %41, %46 : vector<7x8x64xf32>
    %cst_41 = arith.constant dense<0.000000e+00> : vector<56x64xf32>
    %48 = tpu.matmul %7, %25, %cst_41 {dimension_numbers = #tpu.dot_dimension_numbers<[1], [0], [0], [1], [0, 0, 1, 1], [], []>} : vector<56x32xbf16>, vector<32x64xbf16>, vector<56x64xf32> -> vector<56x64xf32>
    %49 = vector.shape_cast %48 : vector<56x64xf32> to vector<7x8x64xf32>
    %50 = arith.addf %47, %49 : vector<7x8x64xf32>
    %cst_42 = arith.constant dense<0.000000e+00> : vector<56x64xf32>
    %51 = tpu.matmul %5, %27, %cst_42 {dimension_numbers = #tpu.dot_dimension_numbers<[1], [0], [0], [1], [0, 0, 1, 1], [], []>} : vector<56x32xbf16>, vector<32x64xbf16>, vector<56x64xf32> -> vector<56x64xf32>
    %52 = vector.shape_cast %51 : vector<56x64xf32> to vector<7x8x64xf32>
    %53 = arith.addf %44, %52 : vector<7x8x64xf32>
    %cst_43 = arith.constant dense<0.000000e+00> : vector<56x64xf32>
    %54 = tpu.matmul %9, %29, %cst_43 {dimension_numbers = #tpu.dot_dimension_numbers<[1], [0], [0], [1], [0, 0, 1, 1], [], []>} : vector<56x32xbf16>, vector<32x64xbf16>, vector<56x64xf32> -> vector<56x64xf32>
    %55 = vector.shape_cast %54 : vector<56x64xf32> to vector<7x8x64xf32>
    %56 = arith.addf %50, %55 : vector<7x8x64xf32>
    %cst_44 = arith.constant dense<0.000000e+00> : vector<56x64xf32>
    %57 = tpu.matmul %11, %31, %cst_44 {dimension_numbers = #tpu.dot_dimension_numbers<[1], [0], [0], [1], [0, 0, 1, 1], [], []>} : vector<56x32xbf16>, vector<32x64xbf16>, vector<56x64xf32> -> vector<56x64xf32>
    %58 = vector.shape_cast %57 : vector<56x64xf32> to vector<7x8x64xf32>
    %59 = arith.addf %56, %58 : vector<7x8x64xf32>
    %cst_45 = arith.constant dense<0.000000e+00> : vector<56x64xf32>
    %60 = tpu.matmul %9, %33, %cst_45 {dimension_numbers = #tpu.dot_dimension_numbers<[1], [0], [0], [1], [0, 0, 1, 1], [], []>} : vector<56x32xbf16>, vector<32x64xbf16>, vector<56x64xf32> -> vector<56x64xf32>
    %61 = vector.shape_cast %60 : vector<56x64xf32> to vector<7x8x64xf32>
    %62 = arith.addf %53, %61 : vector<7x8x64xf32>
    %63 = vector.extract_strided_slice %59 {offsets = [0, 0, 0], sizes = [7, 7, 64], strides = [1, 1, 1]} : vector<7x8x64xf32> to vector<7x7x64xf32>
    %64 = vector.extract_strided_slice %62 {offsets = [0, 1, 0], sizes = [7, 7, 64], strides = [1, 1, 1]} : vector<7x8x64xf32> to vector<7x7x64xf32>
    %65 = arith.addf %63, %64 : vector<7x7x64xf32>
    %cst_46 = arith.constant 0.000000e+00 : f32
    %66 = vector.broadcast %cst_46 : f32 to vector<7x8x64xf32>
    %cst_47 = arith.constant 0.000000e+00 : f32
    %67 = vector.broadcast %cst_47 : f32 to vector<7x8x64xf32>
    %cst_48 = arith.constant dense<0.000000e+00> : vector<56x64xf32>
    %68 = tpu.matmul %3, %17, %cst_48 {dimension_numbers = #tpu.dot_dimension_numbers<[1], [0], [0], [1], [0, 0, 1, 1], [], []>} : vector<56x32xbf16>, vector<32x64xbf16>, vector<56x64xf32> -> vector<56x64xf32>
    %69 = vector.shape_cast %68 : vector<56x64xf32> to vector<7x8x64xf32>
    %70 = arith.addf %66, %69 : vector<7x8x64xf32>
    %cst_49 = arith.constant dense<0.000000e+00> : vector<56x64xf32>
    %71 = tpu.matmul %1, %19, %cst_49 {dimension_numbers = #tpu.dot_dimension_numbers<[1], [0], [0], [1], [0, 0, 1, 1], [], []>} : vector<56x32xbf16>, vector<32x64xbf16>, vector<56x64xf32> -> vector<56x64xf32>
    %72 = vector.shape_cast %71 : vector<56x64xf32> to vector<7x8x64xf32>
    %73 = arith.addf %67, %72 : vector<7x8x64xf32>
    %cst_50 = arith.constant dense<0.000000e+00> : vector<56x64xf32>
    %74 = tpu.matmul %3, %21, %cst_50 {dimension_numbers = #tpu.dot_dimension_numbers<[1], [0], [0], [1], [0, 0, 1, 1], [], []>} : vector<56x32xbf16>, vector<32x64xbf16>, vector<56x64xf32> -> vector<56x64xf32>
    %75 = vector.shape_cast %74 : vector<56x64xf32> to vector<7x8x64xf32>
    %76 = arith.addf %73, %75 : vector<7x8x64xf32>
    %cst_51 = arith.constant dense<0.000000e+00> : vector<56x64xf32>
    %77 = tpu.matmul %7, %23, %cst_51 {dimension_numbers = #tpu.dot_dimension_numbers<[1], [0], [0], [1], [0, 0, 1, 1], [], []>} : vector<56x32xbf16>, vector<32x64xbf16>, vector<56x64xf32> -> vector<56x64xf32>
    %78 = vector.shape_cast %77 : vector<56x64xf32> to vector<7x8x64xf32>
    %79 = arith.addf %70, %78 : vector<7x8x64xf32>
    %cst_52 = arith.constant dense<0.000000e+00> : vector<56x64xf32>
    %80 = tpu.matmul %5, %25, %cst_52 {dimension_numbers = #tpu.dot_dimension_numbers<[1], [0], [0], [1], [0, 0, 1, 1], [], []>} : vector<56x32xbf16>, vector<32x64xbf16>, vector<56x64xf32> -> vector<56x64xf32>
    %81 = vector.shape_cast %80 : vector<56x64xf32> to vector<7x8x64xf32>
    %82 = arith.addf %76, %81 : vector<7x8x64xf32>
    %cst_53 = arith.constant dense<0.000000e+00> : vector<56x64xf32>
    %83 = tpu.matmul %7, %27, %cst_53 {dimension_numbers = #tpu.dot_dimension_numbers<[1], [0], [0], [1], [0, 0, 1, 1], [], []>} : vector<56x32xbf16>, vector<32x64xbf16>, vector<56x64xf32> -> vector<56x64xf32>
    %84 = vector.shape_cast %83 : vector<56x64xf32> to vector<7x8x64xf32>
    %85 = arith.addf %82, %84 : vector<7x8x64xf32>
    %cst_54 = arith.constant dense<0.000000e+00> : vector<56x64xf32>
    %86 = tpu.matmul %11, %29, %cst_54 {dimension_numbers = #tpu.dot_dimension_numbers<[1], [0], [0], [1], [0, 0, 1, 1], [], []>} : vector<56x32xbf16>, vector<32x64xbf16>, vector<56x64xf32> -> vector<56x64xf32>
    %87 = vector.shape_cast %86 : vector<56x64xf32> to vector<7x8x64xf32>
    %88 = arith.addf %79, %87 : vector<7x8x64xf32>
    %cst_55 = arith.constant dense<0.000000e+00> : vector<56x64xf32>
    %89 = tpu.matmul %9, %31, %cst_55 {dimension_numbers = #tpu.dot_dimension_numbers<[1], [0], [0], [1], [0, 0, 1, 1], [], []>} : vector<56x32xbf16>, vector<32x64xbf16>, vector<56x64xf32> -> vector<56x64xf32>
    %90 = vector.shape_cast %89 : vector<56x64xf32> to vector<7x8x64xf32>
    %91 = arith.addf %85, %90 : vector<7x8x64xf32>
    %cst_56 = arith.constant dense<0.000000e+00> : vector<56x64xf32>
    %92 = tpu.matmul %11, %33, %cst_56 {dimension_numbers = #tpu.dot_dimension_numbers<[1], [0], [0], [1], [0, 0, 1, 1], [], []>} : vector<56x32xbf16>, vector<32x64xbf16>, vector<56x64xf32> -> vector<56x64xf32>
    %93 = vector.shape_cast %92 : vector<56x64xf32> to vector<7x8x64xf32>
    %94 = arith.addf %91, %93 : vector<7x8x64xf32>
    %95 = vector.extract_strided_slice %88 {offsets = [0, 0, 0], sizes = [7, 7, 64], strides = [1, 1, 1]} : vector<7x8x64xf32> to vector<7x7x64xf32>
    %96 = vector.extract_strided_slice %94 {offsets = [0, 1, 0], sizes = [7, 7, 64], strides = [1, 1, 1]} : vector<7x8x64xf32> to vector<7x7x64xf32>
    %97 = arith.addf %95, %96 : vector<7x7x64xf32>
    %cst_57 = arith.constant 0.000000e+00 : f32
    %98 = vector.broadcast %cst_57 : f32 to vector<7x8x64xf32>
    %cst_58 = arith.constant 0.000000e+00 : f32
    %99 = vector.broadcast %cst_58 : f32 to vector<7x8x64xf32>
    %cst_59 = arith.constant dense<0.000000e+00> : vector<56x64xf32>
    %100 = tpu.matmul %5, %17, %cst_59 {dimension_numbers = #tpu.dot_dimension_numbers<[1], [0], [0], [1], [0, 0, 1, 1], [], []>} : vector<56x32xbf16>, vector<32x64xbf16>, vector<56x64xf32> -> vector<56x64xf32>
    %101 = vector.shape_cast %100 : vector<56x64xf32> to vector<7x8x64xf32>
    %102 = arith.addf %98, %101 : vector<7x8x64xf32>
    %cst_60 = arith.constant dense<0.000000e+00> : vector<56x64xf32>
    %103 = tpu.matmul %7, %19, %cst_60 {dimension_numbers = #tpu.dot_dimension_numbers<[1], [0], [0], [1], [0, 0, 1, 1], [], []>} : vector<56x32xbf16>, vector<32x64xbf16>, vector<56x64xf32> -> vector<56x64xf32>
    %104 = vector.shape_cast %103 : vector<56x64xf32> to vector<7x8x64xf32>
    %105 = arith.addf %102, %104 : vector<7x8x64xf32>
    %cst_61 = arith.constant dense<0.000000e+00> : vector<56x64xf32>
    %106 = tpu.matmul %5, %21, %cst_61 {dimension_numbers = #tpu.dot_dimension_numbers<[1], [0], [0], [1], [0, 0, 1, 1], [], []>} : vector<56x32xbf16>, vector<32x64xbf16>, vector<56x64xf32> -> vector<56x64xf32>
    %107 = vector.shape_cast %106 : vector<56x64xf32> to vector<7x8x64xf32>
    %108 = arith.addf %99, %107 : vector<7x8x64xf32>
    %cst_62 = arith.constant dense<0.000000e+00> : vector<56x64xf32>
    %109 = tpu.matmul %9, %23, %cst_62 {dimension_numbers = #tpu.dot_dimension_numbers<[1], [0], [0], [1], [0, 0, 1, 1], [], []>} : vector<56x32xbf16>, vector<32x64xbf16>, vector<56x64xf32> -> vector<56x64xf32>
    %110 = vector.shape_cast %109 : vector<56x64xf32> to vector<7x8x64xf32>
    %111 = arith.addf %105, %110 : vector<7x8x64xf32>
    %cst_63 = arith.constant dense<0.000000e+00> : vector<56x64xf32>
    %112 = tpu.matmul %11, %25, %cst_63 {dimension_numbers = #tpu.dot_dimension_numbers<[1], [0], [0], [1], [0, 0, 1, 1], [], []>} : vector<56x32xbf16>, vector<32x64xbf16>, vector<56x64xf32> -> vector<56x64xf32>
    %113 = vector.shape_cast %112 : vector<56x64xf32> to vector<7x8x64xf32>
    %114 = arith.addf %111, %113 : vector<7x8x64xf32>
    %cst_64 = arith.constant dense<0.000000e+00> : vector<56x64xf32>
    %115 = tpu.matmul %9, %27, %cst_64 {dimension_numbers = #tpu.dot_dimension_numbers<[1], [0], [0], [1], [0, 0, 1, 1], [], []>} : vector<56x32xbf16>, vector<32x64xbf16>, vector<56x64xf32> -> vector<56x64xf32>
    %116 = vector.shape_cast %115 : vector<56x64xf32> to vector<7x8x64xf32>
    %117 = arith.addf %108, %116 : vector<7x8x64xf32>
    %cst_65 = arith.constant dense<0.000000e+00> : vector<56x64xf32>
    %118 = tpu.matmul %13, %29, %cst_65 {dimension_numbers = #tpu.dot_dimension_numbers<[1], [0], [0], [1], [0, 0, 1, 1], [], []>} : vector<56x32xbf16>, vector<32x64xbf16>, vector<56x64xf32> -> vector<56x64xf32>
    %119 = vector.shape_cast %118 : vector<56x64xf32> to vector<7x8x64xf32>
    %120 = arith.addf %114, %119 : vector<7x8x64xf32>
    %cst_66 = arith.constant dense<0.000000e+00> : vector<56x64xf32>
    %121 = tpu.matmul %15, %31, %cst_66 {dimension_numbers = #tpu.dot_dimension_numbers<[1], [0], [0], [1], [0, 0, 1, 1], [], []>} : vector<56x32xbf16>, vector<32x64xbf16>, vector<56x64xf32> -> vector<56x64xf32>
    %122 = vector.shape_cast %121 : vector<56x64xf32> to vector<7x8x64xf32>
    %123 = arith.addf %120, %122 : vector<7x8x64xf32>
    %cst_67 = arith.constant dense<0.000000e+00> : vector<56x64xf32>
    %124 = tpu.matmul %13, %33, %cst_67 {dimension_numbers = #tpu.dot_dimension_numbers<[1], [0], [0], [1], [0, 0, 1, 1], [], []>} : vector<56x32xbf16>, vector<32x64xbf16>, vector<56x64xf32> -> vector<56x64xf32>
    %125 = vector.shape_cast %124 : vector<56x64xf32> to vector<7x8x64xf32>
    %126 = arith.addf %117, %125 : vector<7x8x64xf32>
    %127 = vector.extract_strided_slice %123 {offsets = [0, 0, 0], sizes = [7, 7, 64], strides = [1, 1, 1]} : vector<7x8x64xf32> to vector<7x7x64xf32>
    %128 = vector.extract_strided_slice %126 {offsets = [0, 1, 0], sizes = [7, 7, 64], strides = [1, 1, 1]} : vector<7x8x64xf32> to vector<7x7x64xf32>
    %129 = arith.addf %127, %128 : vector<7x7x64xf32>
    %cst_68 = arith.constant 0.000000e+00 : f32
    %130 = vector.broadcast %cst_68 : f32 to vector<7x8x64xf32>
    %cst_69 = arith.constant 0.000000e+00 : f32
    %131 = vector.broadcast %cst_69 : f32 to vector<7x8x64xf32>
    %cst_70 = arith.constant dense<0.000000e+00> : vector<56x64xf32>
    %132 = tpu.matmul %7, %17, %cst_70 {dimension_numbers = #tpu.dot_dimension_numbers<[1], [0], [0], [1], [0, 0, 1, 1], [], []>} : vector<56x32xbf16>, vector<32x64xbf16>, vector<56x64xf32> -> vector<56x64xf32>
    %133 = vector.shape_cast %132 : vector<56x64xf32> to vector<7x8x64xf32>
    %134 = arith.addf %130, %133 : vector<7x8x64xf32>
    %cst_71 = arith.constant dense<0.000000e+00> : vector<56x64xf32>
    %135 = tpu.matmul %5, %19, %cst_71 {dimension_numbers = #tpu.dot_dimension_numbers<[1], [0], [0], [1], [0, 0, 1, 1], [], []>} : vector<56x32xbf16>, vector<32x64xbf16>, vector<56x64xf32> -> vector<56x64xf32>
    %136 = vector.shape_cast %135 : vector<56x64xf32> to vector<7x8x64xf32>
    %137 = arith.addf %131, %136 : vector<7x8x64xf32>
    %cst_72 = arith.constant dense<0.000000e+00> : vector<56x64xf32>
    %138 = tpu.matmul %7, %21, %cst_72 {dimension_numbers = #tpu.dot_dimension_numbers<[1], [0], [0], [1], [0, 0, 1, 1], [], []>} : vector<56x32xbf16>, vector<32x64xbf16>, vector<56x64xf32> -> vector<56x64xf32>
    %139 = vector.shape_cast %138 : vector<56x64xf32> to vector<7x8x64xf32>
    %140 = arith.addf %137, %139 : vector<7x8x64xf32>
    %cst_73 = arith.constant dense<0.000000e+00> : vector<56x64xf32>
    %141 = tpu.matmul %11, %23, %cst_73 {dimension_numbers = #tpu.dot_dimension_numbers<[1], [0], [0], [1], [0, 0, 1, 1], [], []>} : vector<56x32xbf16>, vector<32x64xbf16>, vector<56x64xf32> -> vector<56x64xf32>
    %142 = vector.shape_cast %141 : vector<56x64xf32> to vector<7x8x64xf32>
    %143 = arith.addf %134, %142 : vector<7x8x64xf32>
    %cst_74 = arith.constant dense<0.000000e+00> : vector<56x64xf32>
    %144 = tpu.matmul %9, %25, %cst_74 {dimension_numbers = #tpu.dot_dimension_numbers<[1], [0], [0], [1], [0, 0, 1, 1], [], []>} : vector<56x32xbf16>, vector<32x64xbf16>, vector<56x64xf32> -> vector<56x64xf32>
    %145 = vector.shape_cast %144 : vector<56x64xf32> to vector<7x8x64xf32>
    %146 = arith.addf %140, %145 : vector<7x8x64xf32>
    %cst_75 = arith.constant dense<0.000000e+00> : vector<56x64xf32>
    %147 = tpu.matmul %11, %27, %cst_75 {dimension_numbers = #tpu.dot_dimension_numbers<[1], [0], [0], [1], [0, 0, 1, 1], [], []>} : vector<56x32xbf16>, vector<32x64xbf16>, vector<56x64xf32> -> vector<56x64xf32>
    %148 = vector.shape_cast %147 : vector<56x64xf32> to vector<7x8x64xf32>
    %149 = arith.addf %146, %148 : vector<7x8x64xf32>
    %cst_76 = arith.constant dense<0.000000e+00> : vector<56x64xf32>
    %150 = tpu.matmul %15, %29, %cst_76 {dimension_numbers = #tpu.dot_dimension_numbers<[1], [0], [0], [1], [0, 0, 1, 1], [], []>} : vector<56x32xbf16>, vector<32x64xbf16>, vector<56x64xf32> -> vector<56x64xf32>
    %151 = vector.shape_cast %150 : vector<56x64xf32> to vector<7x8x64xf32>
    %152 = arith.addf %143, %151 : vector<7x8x64xf32>
    %cst_77 = arith.constant dense<0.000000e+00> : vector<56x64xf32>
    %153 = tpu.matmul %13, %31, %cst_77 {dimension_numbers = #tpu.dot_dimension_numbers<[1], [0], [0], [1], [0, 0, 1, 1], [], []>} : vector<56x32xbf16>, vector<32x64xbf16>, vector<56x64xf32> -> vector<56x64xf32>
    %154 = vector.shape_cast %153 : vector<56x64xf32> to vector<7x8x64xf32>
    %155 = arith.addf %149, %154 : vector<7x8x64xf32>
    %cst_78 = arith.constant dense<0.000000e+00> : vector<56x64xf32>
    %156 = tpu.matmul %15, %33, %cst_78 {dimension_numbers = #tpu.dot_dimension_numbers<[1], [0], [0], [1], [0, 0, 1, 1], [], []>} : vector<56x32xbf16>, vector<32x64xbf16>, vector<56x64xf32> -> vector<56x64xf32>
    %157 = vector.shape_cast %156 : vector<56x64xf32> to vector<7x8x64xf32>
    %158 = arith.addf %155, %157 : vector<7x8x64xf32>
    %159 = vector.extract_strided_slice %152 {offsets = [0, 0, 0], sizes = [7, 7, 64], strides = [1, 1, 1]} : vector<7x8x64xf32> to vector<7x7x64xf32>
    %160 = vector.extract_strided_slice %158 {offsets = [0, 1, 0], sizes = [7, 7, 64], strides = [1, 1, 1]} : vector<7x8x64xf32> to vector<7x7x64xf32>
    %161 = arith.addf %159, %160 : vector<7x7x64xf32>
    %162 = arith.maximumf %65, %97 : vector<7x7x64xf32>
    %163 = arith.maximumf %129, %161 : vector<7x7x64xf32>
    %164 = arith.maximumf %162, %163 : vector<7x7x64xf32>
    %c0_79 = arith.constant 0 : index
    %c0_80 = arith.constant 0 : index
    %165 = vector.load %arg3[%c0_79, %c0_80] : memref<1x64xf32, #tpu.memory_space<vmem>>, vector<1x64xf32>
    %166 = vector.shape_cast %165 : vector<1x64xf32> to vector<1x1x64xf32>
    %167 = vector.broadcast %166 : vector<1x1x64xf32> to vector<7x7x64xf32>
    %168 = arith.addf %164, %167 : vector<7x7x64xf32>
    %cst_81 = arith.constant 0.000000e+00 : f32
    %169 = vector.broadcast %cst_81 : f32 to vector<7x7x64xf32>
    %170 = arith.maximumf %168, %169 : vector<7x7x64xf32>
    %171 = arith.truncf %170 : vector<7x7x64xf32> to vector<7x7x64xbf16>
    %c0_82 = arith.constant 0 : index
    %c0_83 = arith.constant 0 : index
    %c0_84 = arith.constant 0 : index
    %c0_85 = arith.constant 0 : index
    %172 = vector.load %arg4[%c0_82, %c0_83, %c0_84, %c0_85] : memref<1x7x7x64xbf16, #tpu.memory_space<vmem>>, vector<1x7x7x64xbf16>
    %173 = vector.shape_cast %172 : vector<1x7x7x64xbf16> to vector<7x7x64xbf16>
    %174 = vector.shape_cast %171 : vector<7x7x64xbf16> to vector<1x7x7x64xbf16>
    tpu.vector_store %arg4[%c0_82, %c0_83, %c0_84, %c0_85], %174 {strides = array<i32>} : memref<1x7x7x64xbf16, #tpu.memory_space<vmem>>, vector<1x7x7x64xbf16>,
    return
  }
  func.func @transform_0(%arg0: i32) -> (i32, i32, i32) {
    %c0_i32 = arith.constant 0 : i32
    %c0_i32_0 = arith.constant 0 : i32
    %c0_i32_1 = arith.constant 0 : i32
    return %arg0, %c0_i32, %c0_i32_0 : i32, i32, i32
  }
  func.func @transform_1(%arg0: i32) -> (i32, i32, i32) {
    %c0_i32 = arith.constant 0 : i32
    %c0_i32_0 = arith.constant 0 : i32
    %c0_i32_1 = arith.constant 0 : i32
    %c0_i32_2 = arith.constant 0 : i32
    return %c0_i32, %c0_i32_0, %c0_i32_1 : i32, i32, i32
  }
  func.func @transform_2(%arg0: i32) -> (i32, i32) {
    %c0_i32 = arith.constant 0 : i32
    %c0_i32_0 = arith.constant 0 : i32
    %c0_i32_1 = arith.constant 0 : i32
    return %c0_i32, %c0_i32_0 : i32, i32
  }
  func.func @transform_3(%arg0: i32) -> (i32, i32, i32, i32) {
    %c0_i32 = arith.constant 0 : i32
    %c0_i32_0 = arith.constant 0 : i32
    %c0_i32_1 = arith.constant 0 : i32
    %c0_i32_2 = arith.constant 0 : i32
    return %arg0, %c0_i32, %c0_i32_0, %c0_i32_1 : i32, i32, i32, i32
  }
}

module attributes {stable_mosaic.version = 11 : i64} {
  func.func @_mlp_kernel(%arg0: i32, %arg1: memref<2x3136xbf16, #tpu.memory_space<vmem>>, %arg2: memref<3136x64xbf16, #tpu.memory_space<vmem>>, %arg3: memref<1x64xf32, #tpu.memory_space<vmem>>, %arg4: memref<64x32xbf16, #tpu.memory_space<vmem>>, %arg5: memref<1x32xf32, #tpu.memory_space<vmem>>, %arg6: memref<32x10xbf16, #tpu.memory_space<vmem>>, %arg7: memref<1x10xf32, #tpu.memory_space<vmem>>, %arg8: memref<2x10xf32, #tpu.memory_space<vmem>>) attributes {dimension_semantics = [#tpu.dimension_semantics<parallel>], iteration_bounds = array<i64: 1>, scalar_prefetch = 0 : i64, scratch_operands = 0 : i64, tpu.core_type = #tpu.core_type<tc>, window_params = [{transform_indices = @transform_0, window_bounds = array<i64: 2, 3136>}, {pipeline_mode = #tpu.pipeline_mode<synchronous>, transform_indices = @transform_1, window_bounds = array<i64: 3136, 64>}, {pipeline_mode = #tpu.pipeline_mode<synchronous>, transform_indices = @transform_2, window_bounds = array<i64: 1, 64>}, {pipeline_mode = #tpu.pipeline_mode<synchronous>, transform_indices = @transform_3, window_bounds = array<i64: 64, 32>}, {pipeline_mode = #tpu.pipeline_mode<synchronous>, transform_indices = @transform_4, window_bounds = array<i64: 1, 32>}, {pipeline_mode = #tpu.pipeline_mode<synchronous>, transform_indices = @transform_5, window_bounds = array<i64: 32, 10>}, {pipeline_mode = #tpu.pipeline_mode<synchronous>, transform_indices = @transform_6, window_bounds = array<i64: 1, 10>}, {transform_indices = @transform_7, window_bounds = array<i64: 2, 10>}]} {
    %c0 = arith.constant 0 : index
    %c0_0 = arith.constant 0 : index
    %0 = vector.load %arg1[%c0, %c0_0] : memref<2x3136xbf16, #tpu.memory_space<vmem>>, vector<2x3136xbf16>
    %c0_1 = arith.constant 0 : index
    %c0_2 = arith.constant 0 : index
    %1 = vector.load %arg2[%c0_1, %c0_2] : memref<3136x64xbf16, #tpu.memory_space<vmem>>, vector<3136x64xbf16>
    %cst = arith.constant dense<0.000000e+00> : vector<2x64xf32>
    %2 = tpu.matmul %0, %1, %cst {dimension_numbers = #tpu.dot_dimension_numbers<[1], [0], [0], [1], [0, 0, 1, 1], [], []>} : vector<2x3136xbf16>, vector<3136x64xbf16>, vector<2x64xf32> -> vector<2x64xf32>
    %c0_3 = arith.constant 0 : index
    %c0_4 = arith.constant 0 : index
    %3 = vector.load %arg3[%c0_3, %c0_4] : memref<1x64xf32, #tpu.memory_space<vmem>>, vector<1x64xf32>
    %4 = vector.broadcast %3 : vector<1x64xf32> to vector<2x64xf32>
    %5 = arith.addf %2, %4 : vector<2x64xf32>
    %6 = arith.truncf %5 : vector<2x64xf32> to vector<2x64xbf16>
    %c0_5 = arith.constant 0 : index
    %c0_6 = arith.constant 0 : index
    %7 = vector.load %arg4[%c0_5, %c0_6] : memref<64x32xbf16, #tpu.memory_space<vmem>>, vector<64x32xbf16>
    %cst_7 = arith.constant dense<0.000000e+00> : vector<2x32xf32>
    %8 = tpu.matmul %6, %7, %cst_7 {dimension_numbers = #tpu.dot_dimension_numbers<[1], [0], [0], [1], [0, 0, 1, 1], [], []>} : vector<2x64xbf16>, vector<64x32xbf16>, vector<2x32xf32> -> vector<2x32xf32>
    %c0_8 = arith.constant 0 : index
    %c0_9 = arith.constant 0 : index
    %9 = vector.load %arg5[%c0_8, %c0_9] : memref<1x32xf32, #tpu.memory_space<vmem>>, vector<1x32xf32>
    %10 = vector.broadcast %9 : vector<1x32xf32> to vector<2x32xf32>
    %11 = arith.addf %8, %10 : vector<2x32xf32>
    %12 = arith.truncf %11 : vector<2x32xf32> to vector<2x32xbf16>
    %c0_10 = arith.constant 0 : index
    %c0_11 = arith.constant 0 : index
    %13 = vector.load %arg6[%c0_10, %c0_11] : memref<32x10xbf16, #tpu.memory_space<vmem>>, vector<32x10xbf16>
    %cst_12 = arith.constant dense<0.000000e+00> : vector<2x10xf32>
    %14 = tpu.matmul %12, %13, %cst_12 {dimension_numbers = #tpu.dot_dimension_numbers<[1], [0], [0], [1], [0, 0, 1, 1], [], []>} : vector<2x32xbf16>, vector<32x10xbf16>, vector<2x10xf32> -> vector<2x10xf32>
    %c0_13 = arith.constant 0 : index
    %c0_14 = arith.constant 0 : index
    %15 = vector.load %arg7[%c0_13, %c0_14] : memref<1x10xf32, #tpu.memory_space<vmem>>, vector<1x10xf32>
    %16 = vector.broadcast %15 : vector<1x10xf32> to vector<2x10xf32>
    %17 = arith.addf %14, %16 : vector<2x10xf32>
    %c0_15 = arith.constant 0 : index
    %c0_16 = arith.constant 0 : index
    %18 = vector.load %arg8[%c0_15, %c0_16] : memref<2x10xf32, #tpu.memory_space<vmem>>, vector<2x10xf32>
    tpu.vector_store %arg8[%c0_15, %c0_16], %17 {strides = array<i32>} : memref<2x10xf32, #tpu.memory_space<vmem>>, vector<2x10xf32>,
    return
  }
  func.func @transform_0(%arg0: i32) -> (i32, i32) {
    %c0_i32 = arith.constant 0 : i32
    %c0_i32_0 = arith.constant 0 : i32
    return %arg0, %c0_i32 : i32, i32
  }
  func.func @transform_1(%arg0: i32) -> (i32, i32) {
    %c0_i32 = arith.constant 0 : i32
    %c0_i32_0 = arith.constant 0 : i32
    %c0_i32_1 = arith.constant 0 : i32
    return %c0_i32, %c0_i32_0 : i32, i32
  }
  func.func @transform_2(%arg0: i32) -> (i32, i32) {
    %c0_i32 = arith.constant 0 : i32
    %c0_i32_0 = arith.constant 0 : i32
    %c0_i32_1 = arith.constant 0 : i32
    return %c0_i32, %c0_i32_0 : i32, i32
  }
  func.func @transform_3(%arg0: i32) -> (i32, i32) {
    %c0_i32 = arith.constant 0 : i32
    %c0_i32_0 = arith.constant 0 : i32
    %c0_i32_1 = arith.constant 0 : i32
    return %c0_i32, %c0_i32_0 : i32, i32
  }
  func.func @transform_4(%arg0: i32) -> (i32, i32) {
    %c0_i32 = arith.constant 0 : i32
    %c0_i32_0 = arith.constant 0 : i32
    %c0_i32_1 = arith.constant 0 : i32
    return %c0_i32, %c0_i32_0 : i32, i32
  }
  func.func @transform_5(%arg0: i32) -> (i32, i32) {
    %c0_i32 = arith.constant 0 : i32
    %c0_i32_0 = arith.constant 0 : i32
    %c0_i32_1 = arith.constant 0 : i32
    return %c0_i32, %c0_i32_0 : i32, i32
  }
  func.func @transform_6(%arg0: i32) -> (i32, i32) {
    %c0_i32 = arith.constant 0 : i32
    %c0_i32_0 = arith.constant 0 : i32
    %c0_i32_1 = arith.constant 0 : i32
    return %c0_i32, %c0_i32_0 : i32, i32
  }
  func.func @transform_7(%arg0: i32) -> (i32, i32) {
    %c0_i32 = arith.constant 0 : i32
    %c0_i32_0 = arith.constant 0 : i32
    return %arg0, %c0_i32 : i32, i32
  }
}

</mosaic_0001>

<bundles_post_ra>
// kernel: mnist_net_forward.4
= control target key start
LH: loop header
LB: loop body
LE: loop exit
PB: predicated region body
PF: predicated region fallthrough
CT: control target
= control target key end

     0   :  { %s4318_s12 = smov 0   ;;  %s5276_s0 = inlined_call_operand.vmem [shape: bf16[2,256,32], index: 0, kind: input, shape index: {}]   ;;  %s5277_s1 = inlined_call_operand.vmem [shape: bf16[9,32,64], index: 1, kind: input, shape index: {}]   ;;  %s5278_s2 = inlined_call_operand.vmem [shape: f32[1,64], index: 2, kind: input, shape index: {}]   ;;  %s5279_s3 = inlined_call_operand.vmem [shape: bf16[2,7,7,64], index: 3, kind: output, shape index: {}]  }
   0x1 LB: > { %s3345_s13 = sadd.s32 4294967295, %s4296_s12   ;;  %p3349_p0 = scmp.ge.s32.totalorder %s4296_s12, 1  ;;  %s4296_s12 = sphi %s4318_s12, %s13_s12  }
   0x2   : > { %p137_p1 = scmp.lt.s32.totalorder %s4296_s12, 3 }
   0x4   : > { %p138_p2 = pnand %p3349_p0, %p137_p1 }
   0x6   : > { %141 = sbr.rel (%p138_p2) target bundleno = 520 (0x208), region = 32 }
   0xb   : > { %v4329_v0 = vld [vmem:[%s5277_s1 + $0x8] sm:$0xff]   ;;  %p161_p3 = scmp.lt.s32.totalorder %s3345_s13, 1  ;;  %v4334_v1 = vld [vmem:[%s5277_s1 + $0x18] sm:$0xff]   ;;  %v4340_v2 = vld [vmem:[%s5277_s1] sm:$0xff]   ;;  %vm278_vm0 = vcmask 261120   ;;  %vm3266_vm1 = vcmask 519168  }
   0xc   : > { %3799 = vmatprep.subr.bf16.mxu0 %v4329_v0  ;;  %3811 = vmatprep.subr.bf16.mxu1 %v4334_v1  ;;  %v4349_v3 = vld [vmem:[%s5277_s1 + $0x10] sm:$0xff]   ;;  %v4357_v4 = vld [vmem:[%s5277_s1 + $0x28] sm:$0xff]   ;;  %v4368_v5 = vld [vmem:[%s5277_s1 + $0x38] sm:$0xff]   ;;  %vm3267_vm2 = vsmask.f32 3328 }
   0xd   : > { %s5344_s13 = smov (!%p161_p3, %s3345_s13), 1  ;;  %3800 = vmatpush3.bf16.msra.mxu0 %v4329_v0  ;;  %3812 = vmatpush3.bf16.msra.mxu1 %v4334_v1  ;;  %v4442_v25 = vld [vmem:[%s5277_s1 + $0x20] sm:$0xff]   ;;  %v4452_v27 = vld [vmem:[%s5277_s1 + $0x30] sm:$0xff]   ;;  %v4467_v30 = vld [vmem:[%s5277_s1 + $0x48] sm:$0xff]  }
   0xe   : > { %3801 = vmatprep.subr.bf16.mxu0 %v4340_v2  ;;  %s3582_s22 = sshll.u32 %s5344_s13, 7  ;;  %3813 = vmatprep.subr.bf16.mxu1 %v4349_v3  ;;  %v4480_v33 = vld [vmem:[%s5277_s1 + $0x58] sm:$0xff]   ;;  %v4523_v42 = vld [vmem:[%s5277_s1 + $0x40] sm:$0xff]   ;;  %v4528_v43 = vld [vmem:[%s5277_s1 + $0x50] sm:$0xff]  }
   0xf   : > { %s4363_s27 = scalar_lea.vmem %s5276_s0, %s3582_s22  ;;  %v4547_v46 = vld [vmem:[%s5277_s1 + $0x68] sm:$0xff]   ;;  %v4552_v47 = vld [vmem:[%s5277_s1 + $0x78] sm:$0xff]   ;;  %v4589_v56 = vld [vmem:[%s5277_s1 + $0x60] sm:$0xff]  }
  0x10   : > { %v172_v6 = vld [vmem:[%s4363_s27] sm:$0xf]  ;;  %v4372_v7 = vld [vmem:[%s4363_s27 + $0x4] sm:$0xf]  ;;  %v4375_v8 = vld [vmem:[%s4363_s27 + $0x8] sm:$0xf] }
  0x11   : > { %3802 = vmatpush3.bf16.msra.mxu0 %v4340_v2  ;;  %v4379_v9 = vcombine.low %v172_v6, %v4372_v7  ;;  %v179_v10 = vld [vmem:[%s4363_s27 + $0x20] sm:$0xf]  ;;  %v4383_v11 = vld [vmem:[%s4363_s27 + $0x24] sm:$0xf]  ;;  %v4386_v12 = vld [vmem:[%s4363_s27 + $0x28] sm:$0xf]  ;;  %3814 = vmatpush3.bf16.msra.mxu1 %v4349_v3  ;;  %v4618_v61 = vcombine.low %v4372_v7, %v4375_v8 }
  0x12   : > { %v4390_v13 = vcombine.low %v179_v10, %v4383_v11  ;;  %v4393_v14 = vld [vmem:[%s4363_s27 + $0xc] sm:$0xf]  ;;  %3823 = vmatprep.subr.bf16.mxu0 %v4357_v4  ;;  %v4400_v16 = vld [vmem:[%s4363_s27 + $0x10] sm:$0xf]  ;;  %3835 = vmatprep.subr.bf16.mxu1 %v4368_v5  ;;  %v4414_v19 = vld [vmem:[%s4363_s27 + $0x14] sm:$0xf]  ;;  %v4622_v62 = vcombine.low %v4383_v11, %v4386_v12 }
  0x13   : > { %v4396_v15 = vld [vmem:[%s4363_s27 + $0x2c] sm:$0xf]  ;;  %3803 = vmatprep.mubr.msk.bf16.mxu0 %vm278_vm0, %v4379_v9  ;;  %v4406_v17 = vcombine.low %v4375_v8, %v4393_v14  ;;  %v4417_v20 = vld [vmem:[%s4363_s27 + $0x30] sm:$0xf]  ;;  %v4420_v21 = vld [vmem:[%s4363_s27 + $0x34] sm:$0xf]  ;;  %v4426_v22 = vcombine.low %v4400_v16, %v4414_v19  ;;  %v4638_v63 = vcombine.low %v4393_v14, %v4400_v16 }
  0x14   : > { %v4410_v18 = vcombine.low %v4386_v12, %v4396_v15  ;;  %3815 = vmatprep.mubr.msk.bf16.mxu1 %vm278_vm0, %v4390_v13  ;;  %v4430_v23 = vcombine.low %v4417_v20, %v4420_v21  ;;  %v4433_v24 = vld [vmem:[%s4363_s27 + $0x18] sm:$0xf]  ;;  %v186_v28 = vld [vmem:[%s4363_s27 + $0x40] sm:$0xf]  ;;  %v4460_v29 = vld [vmem:[%s4363_s27 + $0x44] sm:$0xf]  ;;  %v4642_v6 = vcombine.low %v4396_v15, %v4417_v20 }
  0x15   : > { %3804 = vmatmul.mubr.msk.bf16.vlgmr.msra.gmra.mxu0 %vm278_vm0, %v4406_v17  ;;  %v4447_v26 = vld [vmem:[%s4363_s27 + $0x38] sm:$0xf]  ;;  %v4471_v31 = vcombine.low %v4433_v24, %v4433_v24  ;;  %v4485_v34 = vcombine.low %v186_v28, %v4460_v29  ;;  %v4494_v35 = vld [vmem:[%s4363_s27 + $0x48] sm:$0xf]  ;;  %v4501_v36 = vld [vmem:[%s4363_s27 + $0x4c] sm:$0xf]  ;;  %v4646_v7 = vcombine.low %v4414_v19, %v4433_v24 }
  0x16   : > { %3816 = vmatmul.mubr.msk.bf16.vlgmr.msra.gmra.mxu1 %vm278_vm0, %v4410_v18  ;;  %3824 = vmatpush3.bf16.msra.mxu0 %v4357_v4  ;;  %v4475_v32 = vcombine.low %v4447_v26, %v4447_v26  ;;  %v4504_v37 = vld [vmem:[%s4363_s27 + $0x50] sm:$0xf]  ;;  %v4507_v38 = vld [vmem:[%s4363_s27 + $0x54] sm:$0xf]  ;;  %v4511_v39 = vcombine.low %v4494_v35, %v4501_v36  ;;  %v4518_v41 = vld [vmem:[%s4363_s27 + $0x58] sm:$0xf]  ;;  %v4650_v8 = vcombine.low %v4420_v21, %v4447_v26 }
  0x17   : > { %3836 = vmatpush3.bf16.msra.mxu1 %v4368_v5  ;;  %3807 = vmatprep.mubr.msk.bf16.mxu0 %vm278_vm0, %v4426_v22  ;;  %v4515_v40 = vcombine.low %v4504_v37, %v4507_v38  ;;  %v193_v44 = vld [vmem:[%s4363_s27 + $0x60] sm:$0xf]  ;;  %v4538_v45 = vld [vmem:[%s4363_s27 + $0x64] sm:$0xf]  ;;  %v4558_v48 = vcombine.low %v4518_v41, %v4518_v41  ;;  %v195_v50 = vld [vmem:[%s4363_s27 + $0x68] sm:$0xf]  ;;  %v4685_v14 = vcombine.low %v4460_v29, %v4494_v35 }
  0x18   : > { %3819 = vmatprep.mubr.msk.bf16.mxu1 %vm278_vm0, %v4430_v23  ;;  %3825 = vmatprep.subr.bf16.mxu0 %v4442_v25  ;;  %v4563_v49 = vcombine.low %v193_v44, %v4538_v45  ;;  %v196_v51 = vld [vmem:[%s4363_s27 + $0x6c] sm:$0xf]  ;;  %v197_v52 = vld [vmem:[%s4363_s27 + $0x70] sm:$0xf]  ;;  %v4579_v53 = vld [vmem:[%s4363_s27 + $0x74] sm:$0xf]  ;;  %v4692_v15 = vcombine.low %v4538_v45, %v195_v50  ;;  %v4696_v16 = vcombine.low %v4501_v36, %v4504_v37 }
  0x19   : > { %3837 = vmatprep.subr.bf16.mxu1 %v4452_v27  ;;  %v4581_v54 = vcombine.low %v195_v50, %v196_v51  ;;  %v4584_v55 = vcombine.low %v197_v52, %v4579_v53  ;;  %v4594_v57 = vld [vmem:[%s5277_s1 + $0x70] sm:$0xff]   ;;  %v199_v58 = vld [vmem:[%s4363_s27 + $0x78] sm:$0xf]  ;;  %v4610_v59 = vld [vmem:[%s5277_s1 + $0x88] sm:$0xff]   ;;  %v4698_v19 = vcombine.low %v196_v51, %v197_v52  ;;  %v4716_v20 = vcombine.low %v4507_v38, %v4518_v41 }
  0x1a   : > { %3826 = vmatpush3.bf16.msra.mxu0 %v4442_v25  ;;  %v4614_v60 = vcombine.low %v199_v58, %v199_v58  ;;  %v4655_v10 = vld [vmem:[%s5277_s1 + $0x80] sm:$0xff]   ;;  %v4670_v11 = vld [vmem:[%s4363_s27 + $0x1c] ss:$0 sps:$4 sm:$0xff]   ;;  %v4719_v21 = vcombine.low %v4579_v53, %v199_v58  ;;  %vm5218_vm3 = vmand %vm3266_vm1, %vm3267_vm2 }
  0x1b   : > { %3838 = vmatpush3.bf16.msra.mxu1 %v4452_v27  ;;  %3847 = vmatprep.subr.bf16.mxu0 %v4467_v30  ;;  %v4673_v12 = vld [vmem:[%s4363_s27 + $0x3c] ss:$0 sps:$4 sm:$0xff]  }
  0x1c   : > { %3859 = vmatprep.subr.bf16.mxu1 %v4480_v33  ;;  %v4912_v28 = vld [vmem:[%s4363_s27 + $0x5c] ss:$0 sps:$4 sm:$0xff]  }
  0x1d   : > { %3808 = vmatmul.mubr.msk.bf16.gmra.mxu0 %vm278_vm0, %v4471_v31  ;;  %v4915_v29 = vld [vmem:[%s4363_s27 + $0x7c] ss:$0 sps:$4 sm:$0xff]   ;;  %s4231_s27 = smul.u32 28, %s5344_s13 }
  0x1e   : > { %3820 = vmatmul.mubr.msk.bf16.gmra.mxu1 %vm278_vm0, %v4475_v32  ;;  %3827 = vmatprep.mubr.msk.bf16.mxu0 %vm278_vm0, %v4379_v9 }
  0x1f   : > { %3839 = vmatprep.mubr.msk.bf16.mxu1 %vm278_vm0, %v4485_v34  ;;  %s5201_s6 = scalar_lea.vmem %s5279_s3, %s4231_s27 }
  0x25   : > { %3828 = vmatmul.mubr.msk.bf16.vlgmr.msra.gmra.mxu0 %vm278_vm0, %v4406_v17 }
  0x26   : > { %3840 = vmatmul.mubr.msk.bf16.vlgmr.msra.gmra.mxu1 %vm278_vm0, %v4511_v39  ;;  %3848 = vmatpush3.bf16.msra.mxu0 %v4467_v30 }
  0x27   : > { %3860 = vmatpush3.bf16.msra.mxu1 %v4480_v33  ;;  %3831 = vmatprep.mubr.msk.bf16.mxu0 %vm278_vm0, %v4426_v22 }
  0x28   : > { %3843 = vmatprep.mubr.msk.bf16.mxu1 %vm278_vm0, %v4515_v40  ;;  %3849 = vmatprep.subr.bf16.mxu0 %v4523_v42 }
  0x29   : > { %3861 = vmatprep.subr.bf16.mxu1 %v4528_v43 }
  0x2a   : > { %3850 = vmatpush3.bf16.msra.mxu0 %v4523_v42 }
  0x2b   : > { %3862 = vmatpush3.bf16.msra.mxu1 %v4528_v43  ;;  %3871 = vmatprep.subr.bf16.mxu0 %v4547_v46 }
  0x2c   : > { %3883 = vmatprep.subr.bf16.mxu1 %v4552_v47 }
  0x2d   : > { %3832 = vmatmul.mubr.msk.bf16.gmra.mxu0 %vm278_vm0, %v4471_v31 }
  0x2e   : > { %3844 = vmatmul.mubr.msk.bf16.gmra.mxu1 %vm278_vm0, %v4558_v48  ;;  %3851 = vmatprep.mubr.msk.bf16.mxu0 %vm278_vm0, %v4563_v49 }
  0x2f   : > { %3863 = vmatprep.mubr.msk.bf16.mxu1 %vm278_vm0, %v4485_v34 }
  0x35   : > { %3852 = vmatmul.mubr.msk.bf16.vlgmr.msra.gmra.mxu0 %vm278_vm0, %v4581_v54 }
  0x36   : > { %3864 = vmatmul.mubr.msk.bf16.vlgmr.msra.gmra.mxu1 %vm278_vm0, %v4511_v39  ;;  %3872 = vmatpush3.bf16.msra.mxu0 %v4547_v46 }
  0x37   : > { %3884 = vmatpush3.bf16.msra.mxu1 %v4552_v47  ;;  %3855 = vmatprep.mubr.msk.bf16.mxu0 %vm278_vm0, %v4584_v55 }
  0x38   : > { %3867 = vmatprep.mubr.msk.bf16.mxu1 %vm278_vm0, %v4515_v40  ;;  %3873 = vmatprep.subr.bf16.mxu0 %v4589_v56 }
  0x39   : > { %3885 = vmatprep.subr.bf16.mxu1 %v4594_v57 }
  0x3a   : > { %3874 = vmatpush3.bf16.msra.mxu0 %v4589_v56 }
  0x3b   : > { %3886 = vmatpush3.bf16.msra.mxu1 %v4594_v57  ;;  %3895 = vmatprep.subr.bf16.mxu0 %v4610_v59 }
  0x3c   : > { %3907 = vmatprep.subr.bf16.mxu1 %v4329_v0 }
  0x3d   : > { %3856 = vmatmul.mubr.msk.bf16.gmra.mxu0 %vm278_vm0, %v4614_v60 }
  0x3e   : > { %3868 = vmatmul.mubr.msk.bf16.gmra.mxu1 %vm278_vm0, %v4558_v48  ;;  %3875 = vmatprep.mubr.msk.bf16.mxu0 %vm278_vm0, %v4618_v61 }
  0x3f   : > { %3887 = vmatprep.mubr.msk.bf16.mxu1 %vm278_vm0, %v4622_v62 }
  0x45   : > { %3876 = vmatmul.mubr.msk.bf16.vlgmr.msra.gmra.mxu0 %vm278_vm0, %v4638_v63 }
  0x46   : > { %3888 = vmatmul.mubr.msk.bf16.vlgmr.msra.gmra.mxu1 %vm278_vm0, %v4642_v6  ;;  %3896 = vmatpush3.bf16.msra.mxu0 %v4610_v59 }
  0x47   : > { %3908 = vmatpush3.bf16.msra.mxu1 %v4329_v0  ;;  %3879 = vmatprep.mubr.msk.bf16.mxu0 %vm278_vm0, %v4646_v7 }
  0x48   : > { %3891 = vmatprep.mubr.msk.bf16.mxu1 %vm278_vm0, %v4650_v8  ;;  %3897 = vmatprep.subr.bf16.mxu0 %v4655_v10 }
  0x49   : > { %3909 = vmatprep.subr.bf16.mxu1 %v4340_v2 }
  0x4a   : > { %3898 = vmatpush3.bf16.msra.mxu0 %v4655_v10 }
  0x4b   : > { %3910 = vmatpush3.bf16.msra.mxu1 %v4340_v2  ;;  %3919 = vmatprep.subr.bf16.mxu0 %v4334_v1 }
  0x4c   : > { %3931 = vmatprep.subr.bf16.mxu1 %v4357_v4 }
  0x4d   : > { %3880 = vmatmul.mubr.msk.bf16.gmra.mxu0 %vm278_vm0, %v4670_v11 }
  0x4e   : > { %3892 = vmatmul.mubr.msk.bf16.gmra.mxu1 %vm278_vm0, %v4673_v12  ;;  %3899 = vmatprep.mubr.msk.bf16.mxu0 %vm278_vm0, %v4618_v61 }
  0x4f   : > { %3911 = vmatprep.mubr.msk.bf16.mxu1 %vm278_vm0, %v4390_v13 }
  0x55   : > { %3900 = vmatmul.mubr.msk.bf16.vlgmr.msra.gmra.mxu0 %vm278_vm0, %v4638_v63 }
  0x56   : > { %3912 = vmatmul.mubr.msk.bf16.vlgmr.msra.gmra.mxu1 %vm278_vm0, %v4410_v18  ;;  %3920 = vmatpush3.bf16.msra.mxu0 %v4334_v1 }
  0x57   : > { %3932 = vmatpush3.bf16.msra.mxu1 %v4357_v4  ;;  %3903 = vmatprep.mubr.msk.bf16.mxu0 %vm278_vm0, %v4646_v7 }
  0x58   : > { %3915 = vmatprep.mubr.msk.bf16.mxu1 %vm278_vm0, %v4430_v23  ;;  %3921 = vmatprep.subr.bf16.mxu0 %v4349_v3 }
  0x59   : > { %3933 = vmatprep.subr.bf16.mxu1 %v4442_v25 }
  0x5a   : > { %3922 = vmatpush3.bf16.msra.mxu0 %v4349_v3 }
  0x5b   : > { %3934 = vmatpush3.bf16.msra.mxu1 %v4442_v25  ;;  %3943 = vmatprep.subr.bf16.mxu0 %v4368_v5 }
  0x5c   : > { %3955 = vmatprep.subr.bf16.mxu1 %v4467_v30 }
  0x5d   : > { %3904 = vmatmul.mubr.msk.bf16.gmra.mxu0 %vm278_vm0, %v4670_v11 }
  0x5e   : > { %3916 = vmatmul.mubr.msk.bf16.gmra.mxu1 %vm278_vm0, %v4475_v32  ;;  %3923 = vmatprep.mubr.msk.bf16.mxu0 %vm278_vm0, %v4379_v9 }
  0x5f   : > { %3935 = vmatprep.mubr.msk.bf16.mxu1 %vm278_vm0, %v4390_v13 }
  0x65   : > { %3924 = vmatmul.mubr.msk.bf16.vlgmr.msra.gmra.mxu0 %vm278_vm0, %v4406_v17 }
  0x66   : > { %3936 = vmatmul.mubr.msk.bf16.vlgmr.msra.gmra.mxu1 %vm278_vm0, %v4410_v18  ;;  %3944 = vmatpush3.bf16.msra.mxu0 %v4368_v5 }
  0x67   : > { %3956 = vmatpush3.bf16.msra.mxu1 %v4467_v30  ;;  %3927 = vmatprep.mubr.msk.bf16.mxu0 %vm278_vm0, %v4426_v22 }
  0x68   : > { %3939 = vmatprep.mubr.msk.bf16.mxu1 %vm278_vm0, %v4430_v23  ;;  %3945 = vmatprep.subr.bf16.mxu0 %v4452_v27 }
  0x69   : > { %3957 = vmatprep.subr.bf16.mxu1 %v4523_v42 }
  0x6a   : > { %3946 = vmatpush3.bf16.msra.mxu0 %v4452_v27 }
  0x6b   : > { %3958 = vmatpush3.bf16.msra.mxu1 %v4523_v42  ;;  %3967 = vmatprep.subr.bf16.mxu0 %v4480_v33 }
  0x6c   : > { %3979 = vmatprep.subr.bf16.mxu1 %v4547_v46 }
  0x6d   : > { %3928 = vmatmul.mubr.msk.bf16.gmra.mxu0 %vm278_vm0, %v4471_v31 }
  0x6e   : > { %3940 = vmatmul.mubr.msk.bf16.gmra.mxu1 %vm278_vm0, %v4475_v32  ;;  %3947 = vmatprep.mubr.msk.bf16.mxu0 %vm278_vm0, %v4563_v49 }
  0x6f   : > { %3959 = vmatprep.mubr.msk.bf16.mxu1 %vm278_vm0, %v4485_v34 }
  0x75   : > { %3948 = vmatmul.mubr.msk.bf16.vlgmr.msra.gmra.mxu0 %vm278_vm0, %v4581_v54 }
  0x76   : > { %3960 = vmatmul.mubr.msk.bf16.vlgmr.msra.gmra.mxu1 %vm278_vm0, %v4511_v39  ;;  %3968 = vmatpush3.bf16.msra.mxu0 %v4480_v33 }
  0x77   : > { %3980 = vmatpush3.bf16.msra.mxu1 %v4547_v46  ;;  %3951 = vmatprep.mubr.msk.bf16.mxu0 %vm278_vm0, %v4584_v55 }
  0x78   : > { %3963 = vmatprep.mubr.msk.bf16.mxu1 %vm278_vm0, %v4515_v40  ;;  %3969 = vmatprep.subr.bf16.mxu0 %v4528_v43 }
  0x79   : > { %3981 = vmatprep.subr.bf16.mxu1 %v4589_v56 }
  0x7a   : > { %3970 = vmatpush3.bf16.msra.mxu0 %v4528_v43 }
  0x7b   : > { %3982 = vmatpush3.bf16.msra.mxu1 %v4589_v56  ;;  %3991 = vmatprep.subr.bf16.mxu0 %v4552_v47 }
  0x7c   : > { %4003 = vmatprep.subr.bf16.mxu1 %v4610_v59 }
  0x7d   : > { %3952 = vmatmul.mubr.msk.bf16.gmra.mxu0 %vm278_vm0, %v4614_v60 }
  0x7e   : > { %3964 = vmatmul.mubr.msk.bf16.gmra.mxu1 %vm278_vm0, %v4558_v48  ;;  %3971 = vmatprep.mubr.msk.bf16.mxu0 %vm278_vm0, %v4563_v49 }
  0x7f   : > { %3983 = vmatprep.mubr.msk.bf16.mxu1 %vm278_vm0, %v4622_v62 }
  0x85   : > { %3972 = vmatmul.mubr.msk.bf16.vlgmr.msra.gmra.mxu0 %vm278_vm0, %v4581_v54 }
  0x86   : > { %3984 = vmatmul.mubr.msk.bf16.vlgmr.msra.gmra.mxu1 %vm278_vm0, %v4642_v6  ;;  %3992 = vmatpush3.bf16.msra.mxu0 %v4552_v47 }
  0x87   : > { %4004 = vmatpush3.bf16.msra.mxu1 %v4610_v59  ;;  %3975 = vmatprep.mubr.msk.bf16.mxu0 %vm278_vm0, %v4584_v55 }
  0x88   : > { %3987 = vmatprep.mubr.msk.bf16.mxu1 %vm278_vm0, %v4650_v8  ;;  %3993 = vmatprep.subr.bf16.mxu0 %v4594_v57 }
  0x89   : > { %4005 = vmatprep.subr.bf16.mxu1 %v4655_v10 }
  0x8a   : > { %3994 = vmatpush3.bf16.msra.mxu0 %v4594_v57 }
  0x8b   : > { %4006 = vmatpush3.bf16.msra.mxu1 %v4655_v10  ;;  %4015 = vmatprep.subr.bf16.mxu0 %v4329_v0 }
  0x8c   : > { %4027 = vmatprep.subr.bf16.mxu1 %v4334_v1 }
  0x8d   : > { %3976 = vmatmul.mubr.msk.bf16.gmra.mxu0 %vm278_vm0, %v4614_v60 }
  0x8e   : > { %3988 = vmatmul.mubr.msk.bf16.gmra.mxu1 %vm278_vm0, %v4673_v12  ;;  %3995 = vmatprep.mubr.msk.bf16.mxu0 %vm278_vm0, %v4618_v61 }
  0x8f   : > { %4007 = vmatprep.mubr.msk.bf16.mxu1 %vm278_vm0, %v4622_v62 }
  0x95   : > { %3996 = vmatmul.mubr.msk.bf16.vlgmr.msra.gmra.mxu0 %vm278_vm0, %v4638_v63 }
  0x96   : > { %4008 = vmatmul.mubr.msk.bf16.vlgmr.msra.gmra.mxu1 %vm278_vm0, %v4642_v6  ;;  %4016 = vmatpush3.bf16.msra.mxu0 %v4329_v0 }
  0x97   : > { %4028 = vmatpush3.bf16.msra.mxu1 %v4334_v1  ;;  %3999 = vmatprep.mubr.msk.bf16.mxu0 %vm278_vm0, %v4646_v7 }
  0x98   : > { %4011 = vmatprep.mubr.msk.bf16.mxu1 %vm278_vm0, %v4650_v8  ;;  %4017 = vmatprep.subr.bf16.mxu0 %v4340_v2 }
  0x99   : > { %4029 = vmatprep.subr.bf16.mxu1 %v4349_v3 }
  0x9a   : > { %4018 = vmatpush3.bf16.msra.mxu0 %v4340_v2 }
  0x9b   : > { %4030 = vmatpush3.bf16.msra.mxu1 %v4349_v3  ;;  %4039 = vmatprep.subr.bf16.mxu0 %v4357_v4 }
  0x9c   : > { %4051 = vmatprep.subr.bf16.mxu1 %v4368_v5 }
  0x9d   : > { %4000 = vmatmul.mubr.msk.bf16.gmra.mxu0 %vm278_vm0, %v4670_v11 }
  0x9e   : > { %4012 = vmatmul.mubr.msk.bf16.gmra.mxu1 %vm278_vm0, %v4673_v12  ;;  %4019 = vmatprep.mubr.msk.bf16.mxu0 %vm278_vm0, %v4485_v34 }
  0x9f   : > { %4031 = vmatprep.mubr.msk.bf16.mxu1 %vm278_vm0, %v4563_v49 }
  0xa5   : > { %4020 = vmatmul.mubr.msk.bf16.vlgmr.msra.gmra.mxu0 %vm278_vm0, %v4511_v39 }
  0xa6   : > { %4032 = vmatmul.mubr.msk.bf16.vlgmr.msra.gmra.mxu1 %vm278_vm0, %v4581_v54  ;;  %4040 = vmatpush3.bf16.msra.mxu0 %v4357_v4 }
  0xa7   : > { %4052 = vmatpush3.bf16.msra.mxu1 %v4368_v5  ;;  %4023 = vmatprep.mubr.msk.bf16.mxu0 %vm278_vm0, %v4515_v40 }
  0xa8   : > { %4035 = vmatprep.mubr.msk.bf16.mxu1 %vm278_vm0, %v4584_v55  ;;  %4041 = vmatprep.subr.bf16.mxu0 %v4442_v25 }
  0xa9   : > { %4053 = vmatprep.subr.bf16.mxu1 %v4452_v27 }
  0xaa   : > { %4042 = vmatpush3.bf16.msra.mxu0 %v4442_v25 }
  0xab   : > { %4054 = vmatpush3.bf16.msra.mxu1 %v4452_v27  ;;  %4063 = vmatprep.subr.bf16.mxu0 %v4467_v30 }
  0xac   : > { %4075 = vmatprep.subr.bf16.mxu1 %v4480_v33 }
  0xad   : > { %4024 = vmatmul.mubr.msk.bf16.gmra.mxu0 %vm278_vm0, %v4558_v48 }
  0xae   : > { %4036 = vmatmul.mubr.msk.bf16.gmra.mxu1 %vm278_vm0, %v4614_v60  ;;  %4043 = vmatprep.mubr.msk.bf16.mxu0 %vm278_vm0, %v4485_v34 }
  0xaf   : > { %4055 = vmatprep.mubr.msk.bf16.mxu1 %vm278_vm0, %v4618_v61 }
  0xb5   : > { %4044 = vmatmul.mubr.msk.bf16.vlgmr.msra.gmra.mxu0 %vm278_vm0, %v4511_v39 }
  0xb6   : > { %4056 = vmatmul.mubr.msk.bf16.vlgmr.msra.gmra.mxu1 %vm278_vm0, %v4638_v63  ;;  %4064 = vmatpush3.bf16.msra.mxu0 %v4467_v30 }
  0xb7   : > { %4076 = vmatpush3.bf16.msra.mxu1 %v4480_v33  ;;  %4047 = vmatprep.mubr.msk.bf16.mxu0 %vm278_vm0, %v4515_v40 }
  0xb8   : > { %4059 = vmatprep.mubr.msk.bf16.mxu1 %vm278_vm0, %v4646_v7  ;;  %4065 = vmatprep.subr.bf16.mxu0 %v4523_v42 }
  0xb9   : > { %4077 = vmatprep.subr.bf16.mxu1 %v4528_v43 }
  0xba   : > { %4066 = vmatpush3.bf16.msra.mxu0 %v4523_v42 }
  0xbb   : > { %4078 = vmatpush3.bf16.msra.mxu1 %v4528_v43  ;;  %4087 = vmatprep.subr.bf16.mxu0 %v4547_v46 }
  0xbc   : > { %4099 = vmatprep.subr.bf16.mxu1 %v4552_v47 }
  0xbd   : > { %4048 = vmatmul.mubr.msk.bf16.gmra.mxu0 %vm278_vm0, %v4558_v48 }
  0xbe   : > { %4060 = vmatmul.mubr.msk.bf16.gmra.mxu1 %vm278_vm0, %v4670_v11  ;;  %4067 = vmatprep.mubr.msk.bf16.mxu0 %vm278_vm0, %v4622_v62 }
  0xbf   : > { %4079 = vmatprep.mubr.msk.bf16.mxu1 %vm278_vm0, %v4618_v61 }
  0xc5   : > { %4068 = vmatmul.mubr.msk.bf16.vlgmr.msra.gmra.mxu0 %vm278_vm0, %v4642_v6 }
  0xc6   : > { %4080 = vmatmul.mubr.msk.bf16.vlgmr.msra.gmra.mxu1 %vm278_vm0, %v4638_v63  ;;  %4088 = vmatpush3.bf16.msra.mxu0 %v4547_v46 }
  0xc7   : > { %4100 = vmatpush3.bf16.msra.mxu1 %v4552_v47  ;;  %4071 = vmatprep.mubr.msk.bf16.mxu0 %vm278_vm0, %v4650_v8 }
  0xc8   : > { %4083 = vmatprep.mubr.msk.bf16.mxu1 %vm278_vm0, %v4646_v7  ;;  %4089 = vmatprep.subr.bf16.mxu0 %v4589_v56 }
  0xc9   : > { %4101 = vmatprep.subr.bf16.mxu1 %v4594_v57 }
  0xca   : > { %4090 = vmatpush3.bf16.msra.mxu0 %v4589_v56 }
  0xcb   : > { %4102 = vmatpush3.bf16.msra.mxu1 %v4594_v57  ;;  %4111 = vmatprep.subr.bf16.mxu0 %v4610_v59 }
  0xcc   : > { %4123 = vmatprep.subr.bf16.mxu1 %v4329_v0 }
  0xcd   : > { %4072 = vmatmul.mubr.msk.bf16.gmra.mxu0 %vm278_vm0, %v4673_v12 }
  0xce   : > { %4084 = vmatmul.mubr.msk.bf16.gmra.mxu1 %vm278_vm0, %v4670_v11  ;;  %4091 = vmatprep.mubr.msk.bf16.mxu0 %vm278_vm0, %v4685_v14 }
  0xcf   : > { %4103 = vmatprep.mubr.msk.bf16.mxu1 %vm278_vm0, %v4692_v15 }
  0xd5   : > { %v3805_v9 = vpop.f32.mrf.mxu0  ;;  %4092 = vmatmul.mubr.msk.bf16.vlgmr.msra.gmra.mxu0 %vm278_vm0, %v4696_v16 }
  0xd6   : > { %v3817_v13 = vpop.f32.mrf.mxu1  ;;  %4104 = vmatmul.mubr.msk.bf16.vlgmr.msra.gmra.mxu1 %vm278_vm0, %v4698_v19  ;;  %4112 = vmatpush3.bf16.msra.mxu0 %v4610_v59 }
  0xd7   : > { %v470_v17 = vadd.f32 %v3817_v13, %v3805_v9  ;;  %4124 = vmatpush3.bf16.msra.mxu1 %v4329_v0  ;;  %v325_v18 = vpop.f32.mrf.mxu0  ;;  %4095 = vmatprep.mubr.msk.bf16.mxu0 %vm278_vm0, %v4716_v20 }
  0xd8   : > { %v438_v22 = vpop.f32.mrf.mxu1  ;;  %4107 = vmatprep.mubr.msk.bf16.mxu1 %vm278_vm0, %v4719_v21  ;;  %4113 = vmatprep.subr.bf16.mxu0 %v4655_v10 }
  0xd9   : > { %v468_v23 = vadd.f32 %v438_v22, %v325_v18  ;;  %4125 = vmatprep.subr.bf16.mxu1 %v4340_v2  ;;  %v3806_v24 = vpop.f32.mrf.mxu0 }
  0xda   : > { %v3818_v26 = vpop.f32.mrf.mxu1  ;;  %4114 = vmatpush3.bf16.msra.mxu0 %v4655_v10 }
  0xdb   : > { %v471_v0 = vadd.f32 %v3818_v26, %v3806_v24  ;;  %4126 = vmatpush3.bf16.msra.mxu1 %v4340_v2  ;;  %v328_v31 = vpop.f32.mrf.mxu0  ;;  %4135 = vmatprep.subr.bf16.mxu0 %v4334_v1 }
  0xdc   : > { %v441_v32 = vpop.f32.mrf.mxu1  ;;  %4147 = vmatprep.subr.bf16.mxu1 %v4357_v4 }
  0xdd   : > { %v469_v35 = vadd.f32 %v441_v32, %v328_v31  ;;  %v3809_v36 = vpop.f32.mrf.mxu0  ;;  %4096 = vmatmul.mubr.msk.bf16.gmra.mxu0 %vm278_vm0, %v4912_v28 }
  0xde   : > { %v3821_v37 = vpop.f32.mrf.mxu1  ;;  %4108 = vmatmul.mubr.msk.bf16.gmra.mxu1 %vm278_vm0, %v4915_v29  ;;  %4115 = vmatprep.mubr.msk.bf16.mxu0 %vm278_vm0, %v4685_v14 }
  0xdf   : > { %v474_v38 = vadd.f32 %v3821_v37, %v3809_v36  ;;  %4127 = vmatprep.mubr.msk.bf16.mxu1 %vm278_vm0, %v4563_v49  ;;  %v341_v2 = vpop.f32.mrf.mxu0 }
  0xe0   : > { %v454_v41 = vpop.f32.mrf.mxu1 }
  0xe1   : > { %v472_v44 = vadd.f32 %v454_v41, %v341_v2  ;;  %v3810_v45 = vpop.f32.mrf.mxu0 }
  0xe2   : > { %v3822_v50 = vpop.f32.mrf.mxu1 }
  0xe3   : > { %v344_v51 = vpop.f32.mrf.mxu0 }
  0xe4   : > { %v457_v52 = vpop.f32.mrf.mxu1 }
  0xe5   : > { %v473_v53 = vadd.f32 %v457_v52, %v344_v51  ;;  %v3829_v58 = vpop.f32.mrf.mxu0  ;;  %4116 = vmatmul.mubr.msk.bf16.vlgmr.msra.gmra.mxu0 %vm278_vm0, %v4696_v16 }
  0xe6   : > { %v3841_v9 = vpop.f32.mrf.mxu1  ;;  %4128 = vmatmul.mubr.msk.bf16.vlgmr.msra.gmra.mxu1 %vm278_vm0, %v4581_v54  ;;  %4136 = vmatpush3.bf16.msra.mxu0 %v4334_v1 }
  0xe7   : > { %v666_v13 = vadd.f32 %v3841_v9, %v470_v17  ;;  %4148 = vmatpush3.bf16.msra.mxu1 %v4357_v4  ;;  %v521_v18 = vpop.f32.mrf.mxu0  ;;  %4119 = vmatprep.mubr.msk.bf16.mxu0 %vm278_vm0, %v4716_v20 }
  0xe8   : > { %v634_v22 = vpop.f32.mrf.mxu1  ;;  %4131 = vmatprep.mubr.msk.bf16.mxu1 %vm278_vm0, %v4584_v55  ;;  %4137 = vmatprep.subr.bf16.mxu0 %v4349_v3 }
  0xe9   : > { %v664_v24 = vadd.f32 %v634_v22, %v468_v23  ;;  %4149 = vmatprep.subr.bf16.mxu1 %v4442_v25  ;;  %v3830_v26 = vpop.f32.mrf.mxu0 }
  0xea   : > { %v3842_v31 = vpop.f32.mrf.mxu1  ;;  %4138 = vmatpush3.bf16.msra.mxu0 %v4349_v3 }
  0xeb   : > { %v667_v17 = vadd.f32 %v3842_v31, %v471_v0  ;;  %4150 = vmatpush3.bf16.msra.mxu1 %v4442_v25  ;;  %v524_v1 = vpop.f32.mrf.mxu0  ;;  %4159 = vmatprep.subr.bf16.mxu0 %v4368_v5 }
  0xec   : > { %v637_v4 = vpop.f32.mrf.mxu1  ;;  %4171 = vmatprep.subr.bf16.mxu1 %v4467_v30 }
  0xed   : > { %v665_v32 = vadd.f32 %v637_v4, %v469_v35  ;;  %v3833_v36 = vpop.f32.mrf.mxu0  ;;  %4120 = vmatmul.mubr.msk.bf16.gmra.mxu0 %vm278_vm0, %v4912_v28 }
  0xee   : > { %v3845_v23 = vpop.f32.mrf.mxu1  ;;  %4132 = vmatmul.mubr.msk.bf16.gmra.mxu1 %vm278_vm0, %v4614_v60  ;;  %4139 = vmatprep.mubr.msk.bf16.mxu0 %vm278_vm0, %v4485_v34 }
  0xef   : > { %v670_v0 = vadd.f32 %v3845_v23, %v474_v38  ;;  %4151 = vmatprep.mubr.msk.bf16.mxu1 %vm278_vm0, %v4563_v49  ;;  %v537_v3 = vpop.f32.mrf.mxu0 }
  0xf0   : > { %v650_v25 = vpop.f32.mrf.mxu1 }
  0xf1   : > { %v668_v37 = vadd.f32 %v650_v25, %v472_v44  ;;  %v3834_v2 = vpop.f32.mrf.mxu0 }
  0xf2   : > { %v3846_v35 = vpop.f32.mrf.mxu1 }
  0xf3   : > { %v540_v41 = vpop.f32.mrf.mxu0 }
  0xf4   : > { %v653_v45 = vpop.f32.mrf.mxu1 }
  0xf5   : > { %v669_v50 = vadd.f32 %v653_v45, %v473_v53  ;;  %v3853_v51 = vpop.f32.mrf.mxu0  ;;  %4140 = vmatmul.mubr.msk.bf16.vlgmr.msra.gmra.mxu0 %vm278_vm0, %v4511_v39 }
  0xf6   : > { %v3865_v52 = vpop.f32.mrf.mxu1  ;;  %4152 = vmatmul.mubr.msk.bf16.vlgmr.msra.gmra.mxu1 %vm278_vm0, %v4581_v54  ;;  %v779_v34 = vadd.f32 %v3853_v51, %v666_v13  ;;  %4160 = vmatpush3.bf16.msra.mxu0 %v4368_v5 }
  0xf7   : > { %v4957_v38 = vadd.f32 %v3865_v52, %v3829_v58  ;;  %4172 = vmatpush3.bf16.msra.mxu1 %v4467_v30  ;;  %v747_v49 = vpop.f32.mrf.mxu0  ;;  %4143 = vmatprep.mubr.msk.bf16.mxu0 %vm278_vm0, %v4515_v40 }
  0xf8   : > { %v830_v44 = vpop.f32.mrf.mxu1  ;;  %4155 = vmatprep.mubr.msk.bf16.mxu1 %vm278_vm0, %v4584_v55  ;;  %v777_v53 = vadd.f32 %v747_v49, %v664_v24  ;;  %4161 = vmatprep.subr.bf16.mxu0 %v4452_v27 }
  0xf9   : > { %v4965_v39 = vadd.f32 %v830_v44, %v521_v18  ;;  %4173 = vmatprep.subr.bf16.mxu1 %v4523_v42  ;;  %v3854_v54 = vpop.f32.mrf.mxu0 }
  0xfa   : > { %v3866_v58 = vpop.f32.mrf.mxu1  ;;  %v780_v5 = vadd.f32 %v3854_v54, %v667_v17  ;;  %4162 = vmatpush3.bf16.msra.mxu0 %v4452_v27 }
  0xfb   : > { %v4969_v9 = vadd.f32 %v3866_v58, %v3830_v26  ;;  %4174 = vmatpush3.bf16.msra.mxu1 %v4523_v42  ;;  %v750_v30 = vpop.f32.mrf.mxu0  ;;  %4183 = vmatprep.subr.bf16.mxu0 %v4480_v33 }
  0xfc   : > { %v833_v40 = vpop.f32.mrf.mxu1  ;;  %4195 = vmatprep.subr.bf16.mxu1 %v4547_v46  ;;  %v778_v55 = vadd.f32 %v750_v30, %v665_v32 }
  0xfd   : > { %v4975_v13 = vadd.f32 %v833_v40, %v524_v1  ;;  %v3857_v18 = vpop.f32.mrf.mxu0  ;;  %4144 = vmatmul.mubr.msk.bf16.gmra.mxu0 %vm278_vm0, %v4558_v48 }
  0xfe   : > { %v3869_v22 = vpop.f32.mrf.mxu1  ;;  %4156 = vmatmul.mubr.msk.bf16.gmra.mxu1 %vm278_vm0, %v4614_v60  ;;  %v783_v27 = vadd.f32 %v3857_v18, %v670_v0  ;;  %4163 = vmatprep.mubr.msk.bf16.mxu0 %vm278_vm0, %v4622_v62 }
  0xff   : > { %v4981_v24 = vadd.f32 %v3869_v22, %v3833_v36  ;;  %4175 = vmatprep.mubr.msk.bf16.mxu1 %vm278_vm0, %v4618_v61  ;;  %v763_v42 = vpop.f32.mrf.mxu0 }
 0x100   : > { %v846_v26 = vpop.f32.mrf.mxu1  ;;  %v781_v31 = vadd.f32 %v763_v42, %v668_v37 }
 0x101   : > { %v4987_v17 = vadd.f32 %v846_v26, %v537_v3  ;;  %v3858_v1 = vpop.f32.mrf.mxu0 }
 0x102   : > { %v3870_v4 = vpop.f32.mrf.mxu1 }
 0x103   : > { %v766_v48 = vpop.f32.mrf.mxu0 }
 0x104   : > { %v849_v32 = vpop.f32.mrf.mxu1  ;;  %v782_v23 = vadd.f32 %v766_v48, %v669_v50 }
 0x105   : > { %v4989_v60 = vadd.f32 %v849_v32, %v540_v41  ;;  %v3877_v36 = vpop.f32.mrf.mxu0  ;;  %4164 = vmatmul.mubr.msk.bf16.vlgmr.msra.gmra.mxu0 %vm278_vm0, %v4642_v6 }
 0x106   : > { %v3889_v0 = vpop.f32.mrf.mxu1  ;;  %4176 = vmatmul.mubr.msk.bf16.vlgmr.msra.gmra.mxu1 %vm278_vm0, %v4638_v63  ;;  %v963_v61 = vadd.f32 %v3877_v36, %v779_v34  ;;  %4184 = vmatpush3.bf16.msra.mxu0 %v4480_v33 }
 0x107   : > { %4196 = vmatpush3.bf16.msra.mxu1 %v4547_v46  ;;  %v931_v3 = vpop.f32.mrf.mxu0  ;;  %4167 = vmatprep.mubr.msk.bf16.mxu0 %vm278_vm0, %v4650_v8 }
 0x108   : > { %v1032_v25 = vpop.f32.mrf.mxu1  ;;  %4179 = vmatprep.mubr.msk.bf16.mxu1 %vm278_vm0, %v4646_v7  ;;  %v1064_v37 = vadd.f32 %v3889_v0, %v963_v61  ;;  %v961_v2 = vadd.f32 %v931_v3, %v777_v53  ;;  %4185 = vmatprep.subr.bf16.mxu0 %v4528_v43 }
 0x109   : > { %4197 = vmatprep.subr.bf16.mxu1 %v4589_v56  ;;  %v3878_v63 = vpop.f32.mrf.mxu0 }
 0x10a   : > { %v3890_v35 = vpop.f32.mrf.mxu1  ;;  %v1062_v41 = vadd.f32 %v1032_v25, %v961_v2  ;;  %v964_v33 = vadd.f32 %v3878_v63, %v780_v5  ;;  %4186 = vmatpush3.bf16.msra.mxu0 %v4528_v43 }
 0x10b   : > { %4198 = vmatpush3.bf16.msra.mxu1 %v4589_v56  ;;  %v934_v46 = vpop.f32.mrf.mxu0  ;;  %4207 = vmatprep.subr.bf16.mxu0 %v4552_v47 }
 0x10c   : > { %v1035_v45 = vpop.f32.mrf.mxu1  ;;  %4219 = vmatprep.subr.bf16.mxu1 %v4610_v59  ;;  %v1065_v7 = vadd.f32 %v3890_v35, %v964_v33  ;;  %v962_v50 = vadd.f32 %v934_v46, %v778_v55 }
 0x10d   : > { %v3881_v51 = vpop.f32.mrf.mxu0  ;;  %4168 = vmatmul.mubr.msk.bf16.gmra.mxu0 %vm278_vm0, %v4673_v12 }
 0x10e   : > { %v3893_v52 = vpop.f32.mrf.mxu1  ;;  %4180 = vmatmul.mubr.msk.bf16.gmra.mxu1 %vm278_vm0, %v4670_v11  ;;  %v1063_v34 = vadd.f32 %v1035_v45, %v962_v50  ;;  %v967_v43 = vadd.f32 %v3881_v51, %v783_v27  ;;  %4187 = vmatprep.mubr.msk.bf16.mxu0 %vm278_vm0, %v4622_v62 }
 0x10f   : > { %4199 = vmatprep.mubr.msk.bf16.mxu1 %vm278_vm0, %v4692_v15  ;;  %v947_v56 = vpop.f32.mrf.mxu0 }
 0x110   : > { %v1048_v49 = vpop.f32.mrf.mxu1  ;;  %v1068_v44 = vadd.f32 %v3893_v52, %v967_v43  ;;  %v965_v53 = vadd.f32 %v947_v56, %v781_v31 }
 0x111   : > { %v3882_v54 = vpop.f32.mrf.mxu0 }
 0x112   : > { %v3894_v58 = vpop.f32.mrf.mxu1  ;;  %v1066_v5 = vadd.f32 %v1048_v49, %v965_v53 }
 0x113   : > { %v950_v30 = vpop.f32.mrf.mxu0 }
 0x114   : > { %v1051_v40 = vpop.f32.mrf.mxu1  ;;  %v966_v55 = vadd.f32 %v950_v30, %v782_v23 }
 0x115   : > { %v3901_v18 = vpop.f32.mrf.mxu0  ;;  %4188 = vmatmul.mubr.msk.bf16.vlgmr.msra.gmra.mxu0 %vm278_vm0, %v4642_v6 }
 0x116   : > { %v5015_v11 = vpop.f32.mrf.mxu1  ;;  %4200 = vmatmul.mubr.msk.bf16.vlgmr.msra.gmra.mxu1 %vm278_vm0, %v4698_v19  ;;  %v1067_v62 = vadd.f32 %v1051_v40, %v966_v55  ;;  %v1147_v22 = vadd.f32 %v3901_v18, %v4957_v38  ;;  %4208 = vmatpush3.bf16.msra.mxu0 %v4552_v47 }
 0x117   : > { %4220 = vmatpush3.bf16.msra.mxu1 %v4610_v59  ;;  %v1115_v27 = vpop.f32.mrf.mxu0  ;;  %4191 = vmatprep.mubr.msk.bf16.mxu0 %vm278_vm0, %v4650_v8 }
 0x118   : > { %v5024_v42 = vpop.f32.mrf.mxu1  ;;  %4203 = vmatprep.mubr.msk.bf16.mxu1 %vm278_vm0, %v4719_v21  ;;  %v1161_v6 = vrot.slane %v1147_v22, 1  ;;  %v1145_v26 = vadd.f32 %v1115_v27, %v4965_v39  ;;  %4209 = vmatprep.subr.bf16.mxu0 %v4594_v57 }
 0x119   : > { %4221 = vmatprep.subr.bf16.mxu1 %v4655_v10  ;;  %v3902_v38 = vpop.f32.mrf.mxu0 }
 0x11a   : > { %v5033_v47 = vpop.f32.mrf.mxu1  ;;  %v5035_v59 = vadd.f32 %v1161_v6, %v1064_v37  ;;  %v1159_v31 = vrot.slane %v1145_v26, 1  ;;  %v1148_v1 = vadd.f32 %v3902_v38, %v4969_v9  ;;  %4210 = vmatpush3.bf16.msra.mxu0 %v4594_v57 }
 0x11b   : > { %4222 = vmatpush3.bf16.msra.mxu1 %v4655_v10  ;;  %v1118_v8 = vpop.f32.mrf.mxu0 }
 0x11c   : > { %v5040_v4 = vpop.f32.mrf.mxu1  ;;  %v5042_v39 = vadd.f32 %v1159_v31, %v1062_v41  ;;  %v1162_v48 = vrot.slane %v1148_v1, 1  ;;  %v1146_v32 = vadd.f32 %v1118_v8, %v4975_v13 }
 0x11d   : > { %v3905_v23 = vpop.f32.mrf.mxu0  ;;  %4192 = vmatmul.mubr.msk.bf16.gmra.mxu0 %vm278_vm0, %v4673_v12 }
 0x11e   : > { %5292 = vst [vmem:[#allocation2_spill] sm:$0xff] %v5042_v39  ;;  %v5045_v36 = vpop.f32.mrf.mxu1  ;;  %4204 = vmatmul.mubr.msk.bf16.gmra.mxu1 %vm278_vm0, %v4915_v29  ;;  %v5051_v57 = vadd.f32 %v1162_v48, %v1065_v7  ;;  %v1160_v10 = vrot.slane %v1146_v32, 1  ;;  %v1151_v9 = vadd.f32 %v3905_v23, %v4981_v24  ;;  %4211 = vmatprep.mubr.msk.bf16.mxu0 %vm278_vm0, %v4685_v14 }
 0x11f   : > { %4223 = vmatprep.mubr.msk.bf16.mxu1 %vm278_vm0, %v4692_v15  ;;  %v1131_v13 = vpop.f32.mrf.mxu0 }
 0x120   : > { %5293 = vst [vmem:[#allocation3_spill] sm:$0xff] %v5051_v57  ;;  %v5058_v0 = vpop.f32.mrf.mxu1  ;;  %v5060_v61 = vadd.f32 %v1160_v10, %v1063_v34  ;;  %v1165_v12 = vrot.slane %v1151_v9, 1  ;;  %v1149_v3 = vadd.f32 %v1131_v13, %v4987_v17 }
 0x121   : > { %v3906_v25 = vpop.f32.mrf.mxu0 }
 0x122   : > { %5294 = vst [vmem:[#allocation4_spill] sm:$0xff] %v5060_v61  ;;  %v3918_v37 = vpop.f32.mrf.mxu1  ;;  %v5063_v2 = vadd.f32 %v1165_v12, %v1068_v44  ;;  %v1163_v63 = vrot.slane %v1149_v3, 1 }
 0x123   : > { %v1134_v24 = vpop.f32.mrf.mxu0 }
 0x124   : > { %5295 = vst [vmem:[#allocation5_spill] sm:$0xff] %v5063_v2  ;;  %v1233_v35 = vpop.f32.mrf.mxu1  ;;  %v5065_v41 = vadd.f32 %v1163_v63, %v1066_v5  ;;  %v1150_v14 = vadd.f32 %v1134_v24, %v4989_v60 }
 0x125   : > { %v3925_v15 = vpop.f32.mrf.mxu0  ;;  %4212 = vmatmul.mubr.msk.bf16.vlgmr.msra.gmra.mxu0 %vm278_vm0, %v4696_v16 }
 0x126   : > { %5296 = vst [vmem:[#allocation6_spill] sm:$0xff] %v5065_v41  ;;  %v3937_v33 = vpop.f32.mrf.mxu1  ;;  %4224 = vmatmul.mubr.msk.bf16.vlgmr.msra.gmra.mxu1 %vm278_vm0, %v4698_v19  ;;  %v1164_v17 = vrot.slane %v1150_v14, 1  ;;  %4215 = vmatprep.mubr.msk.bf16.mxu0 %vm278_vm0, %v4716_v20 }
 0x127   : > { %v1388_v46 = vadd.f32 %v3937_v33, %v3925_v15  ;;  %4227 = vmatprep.mubr.msk.bf16.mxu1 %vm278_vm0, %v4719_v21  ;;  %v1285_v45 = vpop.f32.mrf.mxu0 }
 0x128   : > { %v1356_v7 = vpop.f32.mrf.mxu1  ;;  %v5076_v50 = vadd.f32 %v1164_v17, %v1067_v62 }
 0x129   : > { %v1386_v60 = vadd.f32 %v1356_v7, %v1285_v45  ;;  %v3926_v51 = vpop.f32.mrf.mxu0 }
 0x12a   : > { %5297 = vst [vmem:[#allocation7_spill] sm:$0xff] %v5076_v50  ;;  %v3938_v52 = vpop.f32.mrf.mxu1 }
 0x12b   : > { %v1389_v34 = vadd.f32 %v3938_v52, %v3926_v51  ;;  %v1288_v16 = vpop.f32.mrf.mxu0 }
 0x12c   : > { %v1359_v43 = vpop.f32.mrf.mxu1 }
 0x12d   : > { %v1387_v56 = vadd.f32 %v1359_v43, %v1288_v16  ;;  %v3929_v19 = vpop.f32.mrf.mxu0  ;;  %4216 = vmatmul.mubr.msk.bf16.gmra.mxu0 %vm278_vm0, %v4912_v28 }
 0x12e   : > { %v3941_v49 = vpop.f32.mrf.mxu1  ;;  %4228 = vmatmul.mubr.msk.bf16.gmra.mxu1 %vm278_vm0, %v4915_v29 }
 0x12f   : > { %v1392_v20 = vadd.f32 %v3941_v49, %v3929_v19  ;;  %v1301_v21 = vpop.f32.mrf.mxu0 }
 0x130   : > { %v1372_v44 = vpop.f32.mrf.mxu1 }
 0x131   : > { %v1390_v53 = vadd.f32 %v1372_v44, %v1301_v21  ;;  %v3930_v54 = vpop.f32.mrf.mxu0 }
 0x132   : > { %v3942_v58 = vpop.f32.mrf.mxu1 }
 0x133   : > { %v1304_v5 = vpop.f32.mrf.mxu0 }
 0x134   : > { %v1375_v30 = vpop.f32.mrf.mxu1 }
 0x135   : > { %v1391_v40 = vadd.f32 %v1375_v30, %v1304_v5  ;;  %v3949_v55 = vpop.f32.mrf.mxu0 }
 0x136   : > { %v3961_v18 = vpop.f32.mrf.mxu1  ;;  %v1459_v62 = vadd.f32 %v3949_v55, %v5015_v11 }
 0x137   : > { %v1530_v22 = vadd.f32 %v3961_v18, %v1388_v46  ;;  %v1427_v27 = vpop.f32.mrf.mxu0 }
 0x138   : > { %v1498_v6 = vpop.f32.mrf.mxu1  ;;  %v1457_v28 = vadd.f32 %v1427_v27, %v5024_v42 }
 0x139   : > { %v1528_v26 = vadd.f32 %v1498_v6, %v1386_v60  ;;  %v3950_v29 = vpop.f32.mrf.mxu0 }
 0x13a   : > { %v3962_v38 = vpop.f32.mrf.mxu1  ;;  %v1460_v31 = vadd.f32 %v3950_v29, %v5033_v47 }
 0x13b   : > { %v1531_v1 = vadd.f32 %v3962_v38, %v1389_v34  ;;  %v1430_v8 = vpop.f32.mrf.mxu0 }
 0x13c   : > { %v1501_v48 = vpop.f32.mrf.mxu1  ;;  %v1458_v32 = vadd.f32 %v1430_v8, %v5040_v4 }
 0x13d   : > { %v1529_v23 = vadd.f32 %v1501_v48, %v1387_v56  ;;  %v3953_v10 = vpop.f32.mrf.mxu0 }
 0x13e   : > { %v3965_v9 = vpop.f32.mrf.mxu1  ;;  %v1463_v11 = vadd.f32 %v3953_v10, %v5045_v36 }
 0x13f   : > { %v1534_v13 = vadd.f32 %v3965_v9, %v1392_v20  ;;  %v1443_v12 = vpop.f32.mrf.mxu0 }
 0x140   : > { %v1514_v3 = vpop.f32.mrf.mxu1  ;;  %v1461_v42 = vadd.f32 %v1443_v12, %v5058_v0 }
 0x141   : > { %v1532_v25 = vadd.f32 %v1514_v3, %v1390_v53  ;;  %v3954_v37 = vpop.f32.mrf.mxu0 }
 0x142   : > { %v3966_v63 = vpop.f32.mrf.mxu1 }
 0x143   : > { %v1446_v24 = vpop.f32.mrf.mxu0 }
 0x144   : > { %v1517_v47 = vpop.f32.mrf.mxu1  ;;  %v1462_v14 = vadd.f32 %v1446_v24, %v1233_v35 }
 0x145   : > { %v1533_v15 = vadd.f32 %v1517_v47, %v1391_v40  ;;  %v3973_v33 = vpop.f32.mrf.mxu0 }
 0x146   : > { %v3985_v17 = vpop.f32.mrf.mxu1  ;;  %v1601_v4 = vadd.f32 %v3973_v33, %v1530_v22 }
 0x147   : > { %v1672_v46 = vadd.f32 %v3985_v17, %v1459_v62  ;;  %v1569_v45 = vpop.f32.mrf.mxu0 }
 0x148   : > { %v1640_v7 = vpop.f32.mrf.mxu1  ;;  %v1599_v60 = vadd.f32 %v1569_v45, %v1528_v26 }
 0x149   : > { %v1670_v36 = vadd.f32 %v1640_v7, %v1457_v28  ;;  %v3974_v51 = vpop.f32.mrf.mxu0 }
 0x14a   : > { %v3986_v52 = vpop.f32.mrf.mxu1  ;;  %v1602_v34 = vadd.f32 %v3974_v51, %v1531_v1 }
 0x14b   : > { %v1673_v16 = vadd.f32 %v3986_v52, %v1460_v31  ;;  %v1572_v0 = vpop.f32.mrf.mxu0 }
 0x14c   : > { %v1643_v43 = vpop.f32.mrf.mxu1  ;;  %v1600_v56 = vadd.f32 %v1572_v0, %v1529_v23 }
 0x14d   : > { %v1671_v19 = vadd.f32 %v1643_v43, %v1458_v32  ;;  %v3977_v49 = vpop.f32.mrf.mxu0 }
 0x14e   : > { %v3989_v20 = vpop.f32.mrf.mxu1  ;;  %v1605_v35 = vadd.f32 %v3977_v49, %v1534_v13 }
 0x14f   : > { %v1676_v21 = vadd.f32 %v3989_v20, %v1463_v11  ;;  %v1585_v44 = vpop.f32.mrf.mxu0 }
 0x150   : > { %v1656_v53 = vpop.f32.mrf.mxu1  ;;  %v1603_v54 = vadd.f32 %v1585_v44, %v1532_v25 }
 0x151   : > { %v1674_v58 = vadd.f32 %v1656_v53, %v1461_v42  ;;  %v3978_v5 = vpop.f32.mrf.mxu0 }
 0x152   : > { %v3990_v30 = vpop.f32.mrf.mxu1 }
 0x153   : > { %v1588_v40 = vpop.f32.mrf.mxu0 }
 0x154   : > { %v1659_v55 = vpop.f32.mrf.mxu1  ;;  %v1604_v18 = vadd.f32 %v1588_v40, %v1533_v15 }
 0x155   : > { %v1675_v62 = vadd.f32 %v1659_v55, %v1462_v14  ;;  %v3997_v22 = vpop.f32.mrf.mxu0 }
 0x156   : > { %v4009_v27 = vpop.f32.mrf.mxu1  ;;  %v1743_v6 = vadd.f32 %v3997_v22, %v1601_v4 }
 0x157   : > { %v1711_v28 = vpop.f32.mrf.mxu0 }
 0x158   : > { %v1782_v26 = vpop.f32.mrf.mxu1  ;;  %v1814_v29 = vadd.f32 %v4009_v27, %v1743_v6  ;;  %v1741_v38 = vadd.f32 %v1711_v28, %v1599_v60 }
 0x159   : > { %v3998_v31 = vpop.f32.mrf.mxu0 }
 0x15a   : > { %v4010_v1 = vpop.f32.mrf.mxu1  ;;  %v1828_v8 = vrot.slane %v1814_v29, 1  ;;  %v1812_v48 = vadd.f32 %v1782_v26, %v1741_v38  ;;  %v1744_v32 = vadd.f32 %v3998_v31, %v1602_v34 }
 0x15b   : > { %v1714_v23 = vpop.f32.mrf.mxu0 }
 0x15c   : > { %v1785_v10 = vpop.f32.mrf.mxu1  ;;  %v5088_v9 = vadd.f32 %v1828_v8, %v1672_v46  ;;  %v1826_v11 = vrot.slane %v1812_v48, 1  ;;  %v1815_v13 = vadd.f32 %v4010_v1, %v1744_v32  ;;  %v1742_v12 = vadd.f32 %v1714_v23, %v1600_v56 }
 0x15d   : > { %v4001_v3 = vpop.f32.mrf.mxu0 }
 0x15e   : > { %v4013_v42 = vpop.f32.mrf.mxu1  ;;  %v5092_v37 = vadd.f32 %v1826_v11, %v1670_v36  ;;  %v1829_v63 = vrot.slane %v1815_v13, 1  ;;  %v1813_v24 = vadd.f32 %v1785_v10, %v1742_v12  ;;  %v1747_v47 = vadd.f32 %v4001_v3, %v1605_v35 }
 0x15f   : > { %v1727_v14 = vpop.f32.mrf.mxu0 }
 0x160   : > { %5298 = vst [vmem:[#allocation8_spill] sm:$0xff] %v5092_v37  ;;  %v1798_v15 = vpop.f32.mrf.mxu1  ;;  %v5096_v17 = vadd.f32 %v1829_v63, %v1673_v16  ;;  %v1827_v4 = vrot.slane %v1813_v24, 1  ;;  %v1745_v46 = vadd.f32 %v1727_v14, %v1603_v54  ;;  %v1818_v45 = vadd.f32 %v4013_v42, %v1747_v47 }
 0x161   : > { %v4002_v7 = vpop.f32.mrf.mxu0 }
 0x162   : > { %5299 = vst [vmem:[#allocation9_spill] sm:$0xff] %v5096_v17  ;;  %v4014_v60 = vpop.f32.mrf.mxu1  ;;  %v5100_v36 = vadd.f32 %v1827_v4, %v1671_v19  ;;  %v1816_v52 = vadd.f32 %v1798_v15, %v1745_v46  ;;  %v1832_v34 = vrot.slane %v1818_v45, 1 }
 0x163   : > { %v1730_v0 = vpop.f32.mrf.mxu0 }
 0x164   : > { %5300 = vst [vmem:[#allocation10_spill] sm:$0xff] %v5100_v36  ;;  %v1801_v43 = vpop.f32.mrf.mxu1  ;;  %v1830_v49 = vrot.slane %v1816_v52, 1  ;;  %v1746_v16 = vadd.f32 %v1730_v0, %v1604_v18  ;;  %v5104_v20 = vadd.f32 %v1832_v34, %v1676_v21 }
 0x165   : > { %v4021_v35 = vpop.f32.mrf.mxu0 }
 0x166   : > { %5301 = vst [vmem:[#allocation11_spill] sm:$0xff] %v5104_v20  ;;  %v4033_v44 = vpop.f32.mrf.mxu1  ;;  %v5106_v53 = vadd.f32 %v1830_v49, %v1674_v58  ;;  %v1817_v54 = vadd.f32 %v1801_v43, %v1746_v16 }
 0x167   : > { %v1984_v5 = vadd.f32 %v4033_v44, %v4021_v35  ;;  %v1881_v30 = vpop.f32.mrf.mxu0 }
 0x168   : > { %5302 = vst [vmem:[#allocation12_spill] sm:$0xff] %v5106_v53  ;;  %v1952_v40 = vpop.f32.mrf.mxu1  ;;  %v1831_v22 = vrot.slane %v1817_v54, 1 }
 0x169   : > { %v1982_v27 = vadd.f32 %v1952_v40, %v1881_v30  ;;  %v4022_v6 = vpop.f32.mrf.mxu0 }
 0x16a   : > { %v4034_v18 = vpop.f32.mrf.mxu1  ;;  %v5112_v21 = vadd.f32 %v1831_v22, %v1675_v62 }
 0x16b   : > { %v1985_v28 = vadd.f32 %v4034_v18, %v4022_v6  ;;  %v1884_v26 = vpop.f32.mrf.mxu0 }
 0x16c   : > { %5303 = vst [vmem:[#allocation13_spill] sm:$0xff] %v5112_v21  ;;  %v1955_v58 = vpop.f32.mrf.mxu1 }
 0x16d   : > { %v1983_v38 = vadd.f32 %v1955_v58, %v1884_v26  ;;  %v4025_v31 = vpop.f32.mrf.mxu0 }
 0x16e   : > { %v4037_v1 = vpop.f32.mrf.mxu1 }
 0x16f   : > { %v1988_v8 = vadd.f32 %v4037_v1, %v4025_v31  ;;  %v1897_v48 = vpop.f32.mrf.mxu0 }
 0x170   : > { %v1968_v32 = vpop.f32.mrf.mxu1 }
 0x171   : > { %v1986_v23 = vadd.f32 %v1968_v32, %v1897_v48  ;;  %v4026_v10 = vpop.f32.mrf.mxu0 }
 0x172   : > { %v4038_v11 = vpop.f32.mrf.mxu1 }
 0x173   : > { %v1900_v13 = vpop.f32.mrf.mxu0 }
 0x174   : > { %v1971_v12 = vpop.f32.mrf.mxu1 }
 0x175   : > { %v1987_v3 = vadd.f32 %v1971_v12, %v1900_v13  ;;  %v4045_v62 = vpop.f32.mrf.mxu0 }
 0x176   : > { %v4057_v42 = vpop.f32.mrf.mxu1 }
 0x177   : > { %v2126_v63 = vadd.f32 %v4057_v42, %v1984_v5  ;;  %v2023_v24 = vpop.f32.mrf.mxu0 }
 0x178   : > { %v2094_v47 = vpop.f32.mrf.mxu1 }
 0x179   : > { %v2124_v14 = vadd.f32 %v2094_v47, %v1982_v27  ;;  %v4046_v15 = vpop.f32.mrf.mxu0 }
 0x17a   : > { %v4058_v4 = vpop.f32.mrf.mxu1 }
 0x17b   : > { %v2127_v46 = vadd.f32 %v4058_v4, %v1985_v28  ;;  %v2026_v45 = vpop.f32.mrf.mxu0 }
 0x17c   : > { %v2097_v7 = vpop.f32.mrf.mxu1 }
 0x17d   : > { %v2125_v60 = vadd.f32 %v2097_v7, %v1983_v38  ;;  %v4049_v52 = vpop.f32.mrf.mxu0 }
 0x17e   : > { %v4061_v34 = vpop.f32.mrf.mxu1 }
 0x17f   : > { %v2130_v0 = vadd.f32 %v4061_v34, %v1988_v8  ;;  %v2039_v43 = vpop.f32.mrf.mxu0 }
 0x180   : > { %v2110_v49 = vpop.f32.mrf.mxu1 }
 0x181   : > { %v2128_v16 = vadd.f32 %v2110_v49, %v1986_v23  ;;  %v4050_v35 = vpop.f32.mrf.mxu0 }
 0x182   : > { %v4062_v44 = vpop.f32.mrf.mxu1 }
 0x183   : > { %v2042_v54 = vpop.f32.mrf.mxu0 }
 0x184   : > { %v2113_v30 = vpop.f32.mrf.mxu1 }
 0x185   : > { %v2129_v5 = vadd.f32 %v2113_v30, %v1987_v3  ;;  %v4069_v40 = vpop.f32.mrf.mxu0 }
 0x186   : > { %v4081_v22 = vpop.f32.mrf.mxu1  ;;  %v2197_v27 = vadd.f32 %v4069_v40, %v2126_v63 }
 0x187   : > { %v2268_v6 = vadd.f32 %v4081_v22, %v4045_v62  ;;  %v2165_v18 = vpop.f32.mrf.mxu0 }
 0x188   : > { %v2236_v28 = vpop.f32.mrf.mxu1  ;;  %v2195_v26 = vadd.f32 %v2165_v18, %v2124_v14 }
 0x189   : > { %v2266_v58 = vadd.f32 %v2236_v28, %v2023_v24  ;;  %v4070_v38 = vpop.f32.mrf.mxu0 }
 0x18a   : > { %v4082_v31 = vpop.f32.mrf.mxu1  ;;  %v2198_v1 = vadd.f32 %v4070_v38, %v2127_v46 }
 0x18b   : > { %v2269_v8 = vadd.f32 %v4082_v31, %v4046_v15  ;;  %v2168_v48 = vpop.f32.mrf.mxu0 }
 0x18c   : > { %v2239_v32 = vpop.f32.mrf.mxu1  ;;  %v2196_v23 = vadd.f32 %v2168_v48, %v2125_v60 }
 0x18d   : > { %v2267_v10 = vadd.f32 %v2239_v32, %v2026_v45  ;;  %v4073_v11 = vpop.f32.mrf.mxu0 }
 0x18e   : > { %v4085_v13 = vpop.f32.mrf.mxu1  ;;  %v2201_v12 = vadd.f32 %v4073_v11, %v2130_v0 }
 0x18f   : > { %v2272_v3 = vadd.f32 %v4085_v13, %v4049_v52  ;;  %v2181_v42 = vpop.f32.mrf.mxu0 }
 0x190   : > { %v2252_v47 = vpop.f32.mrf.mxu1  ;;  %v2199_v63 = vadd.f32 %v2181_v42, %v2128_v16 }
 0x191   : > { %v5116_v62 = vadd.f32 %v2252_v47, %v2039_v43  ;;  %v4074_v4 = vpop.f32.mrf.mxu0 }
 0x192   : > { %v4086_v14 = vpop.f32.mrf.mxu1 }
 0x193   : > { %v2184_v24 = vpop.f32.mrf.mxu0 }
 0x194   : > { %v2255_v7 = vpop.f32.mrf.mxu1  ;;  %v2200_v34 = vadd.f32 %v2184_v24, %v2129_v5 }
 0x195   : > { %v5118_v46 = vadd.f32 %v2255_v7, %v2042_v54  ;;  %v4093_v15 = vpop.f32.mrf.mxu0 }
 0x196   : > { %v4105_v49 = vpop.f32.mrf.mxu1  ;;  %v2357_v60 = vadd.f32 %v4093_v15, %v2197_v27 }
 0x197   : > { %v2325_v45 = vpop.f32.mrf.mxu0 }
 0x198   : > { %v2414_v35 = vpop.f32.mrf.mxu1  ;;  %v2446_v44 = vadd.f32 %v4105_v49, %v2357_v60  ;;  %v2355_v0 = vadd.f32 %v2325_v45, %v2195_v26 }
 0x199   : > { %v4094_v52 = vpop.f32.mrf.mxu0 }
 0x19a   : > { %v4106_v30 = vpop.f32.mrf.mxu1  ;;  %v2444_v40 = vadd.f32 %v2414_v35, %v2355_v0  ;;  %v2358_v16 = vadd.f32 %v4094_v52, %v2198_v1 }
 0x19b   : > { %v2328_v43 = vpop.f32.mrf.mxu0 }
 0x19c   : > { %v2417_v22 = vpop.f32.mrf.mxu1  ;;  %v2447_v18 = vadd.f32 %v4106_v30, %v2358_v16  ;;  %v2356_v28 = vadd.f32 %v2328_v43, %v2196_v23 }
 0x19d   : > { %v4097_v38 = vpop.f32.mrf.mxu0 }
 0x19e   : > { %v4109_v31 = vpop.f32.mrf.mxu1  ;;  %v2445_v5 = vadd.f32 %v2417_v22, %v2356_v28  ;;  %v2361_v54 = vadd.f32 %v4097_v38, %v2201_v12 }
 0x19f   : > { %v2341_v48 = vpop.f32.mrf.mxu0 }
 0x1a0   : > { %v2430_v32 = vpop.f32.mrf.mxu1  ;;  %v2450_v11 = vadd.f32 %v4109_v31, %v2361_v54  ;;  %v2359_v27 = vadd.f32 %v2341_v48, %v2199_v63 }
 0x1a1   : > { %v4098_v13 = vpop.f32.mrf.mxu0 }
 0x1a2   : > { %v4110_v42 = vpop.f32.mrf.mxu1  ;;  %v2448_v47 = vadd.f32 %v2430_v32, %v2359_v27 }
 0x1a3   : > { %v2344_v26 = vpop.f32.mrf.mxu0 }
 0x1a4   : > { %v2433_v4 = vpop.f32.mrf.mxu1  ;;  %v2360_v14 = vadd.f32 %v2344_v26, %v2200_v34 }
 0x1a5   : > { %v4117_v24 = vpop.f32.mrf.mxu0 }
 0x1a6   : > { %v5120_v1 = vpop.f32.mrf.mxu1  ;;  %v2449_v7 = vadd.f32 %v2433_v4, %v2360_v14  ;;  %v2517_v15 = vadd.f32 %v4117_v24, %v2268_v6 }
 0x1a7   : > { %v2485_v23 = vpop.f32.mrf.mxu0 }
 0x1a8   : > { %v5122_v49 = vpop.f32.mrf.mxu1  ;;  %v2531_v60 = vrot.slane %v2517_v15, 1  ;;  %v2515_v12 = vadd.f32 %v2485_v23, %v2266_v58 }
 0x1a9   : > { %v4118_v45 = vpop.f32.mrf.mxu0 }
 0x1aa   : > { %v5124_v35 = vpop.f32.mrf.mxu1  ;;  %v5126_v63 = vadd.f32 %v2531_v60, %v2446_v44  ;;  %v2529_v0 = vrot.slane %v2515_v12, 1  ;;  %v2518_v52 = vadd.f32 %v4118_v45, %v2269_v8 }
 0x1ab   : > { %v2488_v30 = vpop.f32.mrf.mxu0 }
 0x1ac   : > { %v5128_v16 = vpop.f32.mrf.mxu1  ;;  %v5130_v34 = vadd.f32 %v2529_v0, %v2444_v40  ;;  %v2532_v43 = vrot.slane %v2518_v52, 1  ;;  %v2516_v22 = vadd.f32 %v2488_v30, %v2267_v10 }
 0x1ad   : > { %v4121_v6 = vpop.f32.mrf.mxu0 }
 0x1ae   : > { %v5132_v28 = vpop.f32.mrf.mxu1  ;;  %v5134_v38 = vadd.f32 %v2532_v43, %v2447_v18  ;;  %v2530_v58 = vrot.slane %v2516_v22, 1  ;;  %v2521_v31 = vadd.f32 %v4121_v6, %v2272_v3 }
 0x1af   : > { %v2501_v54 = vpop.f32.mrf.mxu0 }
 0x1b0   : > { %5304 = vst [vmem:[#allocation14_spill] sm:$0xff] %v5134_v38  ;;  %v5136_v48 = vpop.f32.mrf.mxu1  ;;  %v5138_v44 = vadd.f32 %v2530_v58, %v2445_v5  ;;  %v2535_v8 = vrot.slane %v2521_v31, 1  ;;  %v2519_v32 = vadd.f32 %v2501_v54, %v5116_v62 }
 0x1b1   : > { %v4122_v27 = vpop.f32.mrf.mxu0 }
 0x1b2   : > { %5305 = vst [vmem:[#allocation15_spill] sm:$0xff] %v5138_v44  ;;  %v4134_v40 = vpop.f32.mrf.mxu1  ;;  %v5141_v13 = vadd.f32 %v2535_v8, %v2450_v11  ;;  %v2533_v10 = vrot.slane %v2519_v32, 1 }
 0x1b3   : > { %v2504_v42 = vpop.f32.mrf.mxu0 }
 0x1b4   : > { %5306 = vst [vmem:[#allocation16_spill] sm:$0xff] %v5141_v13  ;;  %v5143_v26 = vpop.f32.mrf.mxu1  ;;  %v5145_v18 = vadd.f32 %v2533_v10, %v2448_v47  ;;  %v2520_v3 = vadd.f32 %v2504_v42, %v5118_v46 }
 0x1b5   : > { %5307 = vst [vmem:[#allocation17_spill] sm:$0xff] %v5143_v26  ;;  %v4141_v4 = vpop.f32.mrf.mxu0 }
 0x1b6   : > { %5308 = vst [vmem:[#allocation18_spill] sm:$0xff] %v5145_v18  ;;  %v4153_v14 = vpop.f32.mrf.mxu1  ;;  %v2534_v24 = vrot.slane %v2520_v3, 1 }
 0x1b7   : > { %v2655_v5 = vpop.f32.mrf.mxu0 }
 0x1b8   : > { %v2726_v15 = vpop.f32.mrf.mxu1  ;;  %v5148_v23 = vadd.f32 %v2534_v24, %v2449_v7 }
 0x1b9   : > { %v4142_v62 = vpop.f32.mrf.mxu0  ;;  %v2756_v2 = vadd.f32 %v2726_v15, %v2655_v5 }
 0x1ba   : > { %5309 = vst [vmem:[#allocation19_spill] sm:$0xff] %v5148_v23  ;;  %v4154_v60 = vpop.f32.mrf.mxu1 }
 0x1bb   : > { %v2658_v12 = vpop.f32.mrf.mxu0  ;;  %v2759_v36 = vadd.f32 %v4154_v60, %v4142_v62 }
 0x1bc   : > { %v2729_v11 = vpop.f32.mrf.mxu1 }
 0x1bd   : > { %v4145_v45 = vpop.f32.mrf.mxu0  ;;  %v2757_v38 = vadd.f32 %v2729_v11, %v2658_v12 }
 0x1be   : > { %v4157_v0 = vpop.f32.mrf.mxu1 }
 0x1bf   : > { %v2671_v52 = vpop.f32.mrf.mxu0 }
 0x1c0   : > { %v2742_v30 = vpop.f32.mrf.mxu1 }
 0x1c1   : > { %v4146_v43 = vpop.f32.mrf.mxu0 }
 0x1c2   : > { %v4158_v47 = vpop.f32.mrf.mxu1 }
 0x1c3   : > { %v5150_v22 = vpop.f32.mrf.mxu0 }
 0x1c4   : > { %v5152_v46 = vpop.f32.mrf.mxu1 }
 0x1c5   : > { %v4165_v6 = vpop.f32.mrf.mxu0 }
 0x1c6   : > { %v4177_v58 = vpop.f32.mrf.mxu1 }
 0x1c7   : > { %v2797_v31 = vpop.f32.mrf.mxu0 }
 0x1c8   : > { %v2868_v54 = vpop.f32.mrf.mxu1  ;;  %v2827_v62 = vadd.f32 %v2797_v31, %v5122_v49  ;;  %v5313_v31 = vmax.f32 %v5035_v59, %v5088_v9  ;;  %v5314_v9 = vld [vmem:[#allocation2_spill] sm:$0xff] }
 0x1c9   : > { %v4166_v7 = vpop.f32.mrf.mxu0  ;;  %v2898_v61 = vadd.f32 %v2868_v54, %v2756_v2 }
 0x1ca   : > { %v4178_v8 = vpop.f32.mrf.mxu1 }
 0x1cb   : > { %v5154_v32 = vpop.f32.mrf.mxu0  ;;  %v2901_v37 = vadd.f32 %v4178_v8, %v2759_v36  ;;  %v2761_v36 = vadd.f32 %v5152_v46, %v5150_v22 }
 0x1cc   : > { %v2871_v27 = vpop.f32.mrf.mxu1 }
 0x1cd   : > { %v5156_v40 = vpop.f32.mrf.mxu0 }
 0x1ce   : > { %v4181_v10 = vpop.f32.mrf.mxu1 }
 0x1cf   : > { %v5158_v42 = vpop.f32.mrf.mxu0 }
 0x1d0   : > { %v5160_v3 = vpop.f32.mrf.mxu1 }
 0x1d1   : > { %v4170_v24 = vpop.f32.mrf.mxu0 }
 0x1d2   : > { %v4182_v43 = vpop.f32.mrf.mxu1  ;;  %v2758_v24 = vadd.f32 %v4153_v14, %v4141_v4 }
 0x1d3   : > { %v5162_v47 = vpop.f32.mrf.mxu0 }
 0x1d4   : > { %5310 = vst [vmem:[#allocation20_spill] sm:$0xff] %v5162_v47  ;;  %v5164_v29 = vpop.f32.mrf.mxu1  ;;  %v2900_v13 = vadd.f32 %v4177_v58, %v2758_v24  ;;  %v2762_v24 = vadd.f32 %v4157_v0, %v4145_v45 }
 0x1d5   : > { %v4189_v55 = vpop.f32.mrf.mxu0 }
 0x1d6   : > { %v4201_v19 = vpop.f32.mrf.mxu1  ;;  %v2971_v44 = vadd.f32 %v4189_v55, %v2900_v13 }
 0x1d7   : > { %v2939_v56 = vpop.f32.mrf.mxu0 }
 0x1d8   : > { %v3010_v51 = vpop.f32.mrf.mxu1 }
 0x1d9   : > { %v4190_v33 = vpop.f32.mrf.mxu0 }
 0x1da   : > { %v4202_v25 = vpop.f32.mrf.mxu1  ;;  %v2972_v5 = vadd.f32 %v4190_v33, %v2901_v37  ;;  %v3040_v37 = vadd.f32 %v3010_v51, %v2827_v62  ;;  %v5319_v62 = vld [vmem:[#allocation3_spill] sm:$0xff] }
 0x1db   : > { %v2942_v21 = vpop.f32.mrf.mxu0 }
 0x1dc   : > { %v3013_v50 = vpop.f32.mrf.mxu1 }
 0x1dd   : > { %v4193_v23 = vpop.f32.mrf.mxu0 }
 0x1de   : > { %v5166_v53 = vpop.f32.mrf.mxu1 }
 0x1df   : > { %5311 = vst [vmem:[#allocation21_spill] sm:$0xff] %v5166_v53  ;;  %v2955_v41 = vpop.f32.mrf.mxu0  ;;  %v2969_v53 = vadd.f32 %v2939_v56, %v2898_v61 }
 0x1e0   : > { %v5168_v18 = vpop.f32.mrf.mxu1 }
 0x1e1   : > { %5312 = vst [vmem:[#allocation22_spill] sm:$0xff] %v5168_v18  ;;  %v4194_v43 = vpop.f32.mrf.mxu0  ;;  %v2829_v18 = vadd.f32 %v4165_v6, %v5120_v1 }
 0x1e2   : > { %v4206_v20 = vpop.f32.mrf.mxu1  ;;  %v2760_v43 = vadd.f32 %v2742_v30, %v2671_v52  ;;  %v2833_v30 = vadd.f32 %v5156_v40, %v5132_v28 }
 0x1e3   : > { %v5170_v47 = vpop.f32.mrf.mxu0  ;;  %v2899_v20 = vadd.f32 %v2871_v27, %v2757_v38  ;;  %v3042_v2 = vadd.f32 %v4201_v19, %v2829_v18 }
 0x1e4   : > { %v5172_v26 = vpop.f32.mrf.mxu1  ;;  %v2902_v38 = vadd.f32 %v5160_v3, %v2760_v43 }
 0x1e5   : > { %v4213_v17 = vpop.f32.mrf.mxu0  ;;  %v2970_v60 = vadd.f32 %v2942_v21, %v2899_v20  ;;  %v2828_v21 = vadd.f32 %v5154_v32, %v5128_v16  ;;  %v5189_v16 = vld [vmem:[%s5278_s2] ss:$0 sm:$0xff] }
 0x1e6   : > { %v4225_v57 = vpop.f32.mrf.mxu1  ;;  %v3113_v39 = vadd.f32 %v4213_v17, %v2971_v44  ;;  %v2973_v46 = vadd.f32 %v2955_v41, %v2902_v38  ;;  %v2903_v41 = vadd.f32 %v5164_v29, %v2761_v36  ;;  %v5318_v29 = vld [vmem:[#allocation21_spill] sm:$0xff] }
 0x1e7   : > { %v3081_v4 = vpop.f32.mrf.mxu0  ;;  %v3041_v22 = vadd.f32 %v3013_v50, %v2828_v21  ;;  %v2831_v50 = vadd.f32 %v5158_v42, %v5136_v48 }
 0x1e8   : > { %v3152_v14 = vpop.f32.mrf.mxu1  ;;  %v3184_v15 = vadd.f32 %v4225_v57, %v3113_v39  ;;  %v3111_v58 = vadd.f32 %v3081_v4, %v2969_v53  ;;  %v2830_v39 = vadd.f32 %v4166_v7, %v5124_v35  ;;  %v2904_v57 = vadd.f32 %v4181_v10, %v2762_v24  ;;  %v5317_v4 = vld [vmem:[#allocation14_spill] sm:$0xff] }
 0x1e9   : > { %v4214_v55 = vpop.f32.mrf.mxu0  ;;  %v2974_v20 = vadd.f32 %v5170_v47, %v2903_v41  ;;  %v3275_v47 = vld [vmem:[%s5201_s6 + $0x8] sm:$0xf] }
 0x1ea   : > { %v4226_v13 = vpop.f32.mrf.mxu1  ;;  %v3198_v12 = vrot.slane %v3184_v15, 1  ;;  %v3182_v61 = vadd.f32 %v3152_v14, %v3111_v58  ;;  %v3114_v17 = vadd.f32 %v4214_v55, %v2972_v5  ;;  %v3043_v44 = vadd.f32 %v4202_v25, %v2830_v39 }
 0x1eb   : > { %v3084_v33 = vpop.f32.mrf.mxu0  ;;  %v2975_v18 = vadd.f32 %v4193_v23, %v2904_v57  ;;  %v3046_v14 = vadd.f32 %v5318_v29, %v2833_v30 }
 0x1ec   : > { %v3155_v56 = vpop.f32.mrf.mxu1  ;;  %v3212_v53 = vadd.f32 %v3198_v12, %v3042_v2  ;;  %v3196_v19 = vrot.slane %v3182_v61, 1  ;;  %v3185_v1 = vadd.f32 %v4226_v13, %v3114_v17  ;;  %v3112_v49 = vadd.f32 %v3084_v33, %v2970_v60  ;;  %v5320_v2 = vld [vmem:[#allocation9_spill] sm:$0xff]  ;;  %v5322_v60 = vld [vmem:[#allocation15_spill] sm:$0xff]  ;;  %v5323_v61 = vld [vmem:[#allocation22_spill] sm:$0xff] }
 0x1ed   : > { %v4217_v11 = vpop.f32.mrf.mxu0  ;;  %v5321_v55 = vmax.f32 %v5319_v62, %v5320_v2  ;;  %v3044_v17 = vadd.f32 %v5323_v61, %v2831_v50  ;;  %v5341_v62 = vld [vmem:[#allocation13_spill] sm:$0xff] }
 0x1ee   : > { %v4229_v45 = vpop.f32.mrf.mxu1  ;;  %v3226_v35 = vmax.f32 %v5126_v63, %v3212_v53  ;;  %v3210_v0 = vadd.f32 %v3196_v19, %v3040_v37  ;;  %v3199_v51 = vrot.slane %v3185_v1, 1  ;;  %v3183_v52 = vadd.f32 %v3155_v56, %v3112_v49  ;;  %v5326_v19 = vld [vmem:[#allocation4_spill] sm:$0xff]  ;;  %v5327_v1 = vld [vmem:[#allocation10_spill] sm:$0xff] }
 0x1ef   : > { %v3117_v25 = vadd.f32 %v4217_v11, %v2975_v18  ;;  %v3097_v23 = vpop.f32.mrf.mxu0  ;;  %v5328_v49 = vmax.f32 %v5326_v19, %v5327_v1  ;;  %v5330_v18 = vld [vmem:[#allocation20_spill] sm:$0xff] }
 0x1f0   : > { %v3168_v6 = vpop.f32.mrf.mxu1  ;;  %v3233_v63 = vmax.f32 %v5313_v31, %v3226_v35  ;;  %v3224_v54 = vmax.f32 %v5130_v34, %v3210_v0  ;;  %v3213_v7 = vadd.f32 %v3199_v51, %v3043_v44  ;;  %v3197_v8 = vrot.slane %v3183_v52, 1  ;;  %v5315_v34 = vld [vmem:[#allocation8_spill] sm:$0xff]  ;;  %v5329_v44 = vld [vmem:[#allocation17_spill] sm:$0xff] }
 0x1f1   : > { %v3188_v28 = vadd.f32 %v4229_v45, %v3117_v25  ;;  %v3115_v32 = vadd.f32 %v3097_v23, %v2973_v46  ;;  %v4218_v27 = vpop.f32.mrf.mxu0  ;;  %v5316_v10 = vmax.f32 %v5314_v9, %v5315_v34  ;;  %v2832_v11 = vadd.f32 %v5330_v18, %v5329_v44  ;;  %v3269_v45 = vld [vmem:[%s5201_s6] sm:$0xf]  ;;  %v5331_v35 = vld [vmem:[#allocation16_spill] sm:$0xff]  ;;  %v5332_v31 = vld [vmem:[#allocation5_spill] sm:$0xff] }
 0x1f2   : > { %v4230_v40 = vpop.f32.mrf.mxu1  ;;  %v3247_v59 = vadd.f32 %v5189_v16, %v3233_v63  ;;  %v3227_v48 = vmax.f32 %v5317_v4, %v3213_v7  ;;  %v3211_v42 = vadd.f32 %v3197_v8, %v3041_v22  ;;  %v5333_v63 = vld [vmem:[#allocation11_spill] sm:$0xff]  ;;  %v5335_v8 = vld [vmem:[#allocation18_spill] sm:$0xff]  ;;  %v5337_v9 = vld [vmem:[#allocation12_spill] sm:$0xff] }
 0x1f3   : > { %v3231_v3 = vmax.f32 %v5316_v10, %v3224_v54  ;;  %v3202_v5 = vrot.slane %v3188_v28, 1  ;;  %v3186_v15 = vadd.f32 %v3168_v6, %v3115_v32  ;;  %v3100_v58 = vpop.f32.mrf.mxu0  ;;  %v3045_v23 = vadd.f32 %v5172_v26, %v2832_v11  ;;  %v3278_v6 = vld [vmem:[%s5201_s6 + $0xc] sm:$0xf]  ;;  %v3272_v40 = vld [vmem:[%s5201_s6 + $0x4] sm:$0xf] }
 0x1f4   : > { %v3254_v24 = vmax.f32 %v3247_v59, 0.0  ;;  %v3234_v13 = vmax.f32 %v5321_v55, %v3227_v48  ;;  %v3225_v12 = vmax.f32 %v5322_v60, %v3211_v42  ;;  %v3116_v37 = vadd.f32 %v3100_v58, %v2974_v20  ;;  %v3171_v38 = vpop.f32.mrf.mxu1  ;;  %v5336_v59 = vld [vmem:[#allocation6_spill] sm:$0xff] }
 0x1f5   : > { %v3245_v43 = vadd.f32 %v5189_v16, %v3231_v3  ;;  %v3216_v39 = vadd.f32 %v3202_v5, %v3046_v14  ;;  %v3200_v57 = vrot.slane %v3186_v15, 1  ;;  %v5334_v54 = vmax.f32 %v5332_v31, %v5333_v63  ;;  %v5339_v14 = vld [vmem:[#allocation19_spill] sm:$0xff]  ;;  %v3287_v15 = vld [vmem:[%s5201_s6 + $0x18] sm:$0xf] }
 0x1f6   : > { %v3261_v33 = vpack.c.bf16 %v3254_v24, %v3254_v24  ;;  %v3248_v53 = vadd.f32 %v5189_v16, %v3234_v13  ;;  %v3232_v21 = vmax.f32 %v5328_v49, %v3225_v12  ;;  %v3187_v52 = vadd.f32 %v3171_v38, %v3116_v37  ;;  %v3281_v13 = vld [vmem:[%s5201_s6 + $0x10] sm:$0xf] }
 0x1f7   : > { %v3252_v56 = vmax.f32 %v3245_v43, 0.0  ;;  %v3230_v0 = vmax.f32 %v5331_v35, %v3216_v39  ;;  %v3214_v51 = vadd.f32 %v3200_v57, %v3044_v17  ;;  %v5338_v34 = vmax.f32 %v5336_v59, %v5337_v9  ;;  %v5340_v43 = vld [vmem:[#allocation7_spill] sm:$0xff]  ;;  %v3284_v39 = vld [vmem:[%s5201_s6 + $0x14] sm:$0xf] }
 0x1f8   : > { %v3276_v30 = vsel %vm5218_vm3, %v3261_v33, %v3275_v47  ;;  %v3255_v46 = vmax.f32 %v3248_v53, 0.0  ;;  %v3246_v25 = vadd.f32 %v5189_v16, %v3232_v21  ;;  %v3201_v41 = vrot.slane %v3187_v52, 1 }
 0x1f9   : > { %v3259_v22 = vpack.c.bf16 %v3252_v56, %v3252_v56  ;;  %3277 = vst [vmem:[%s5201_s6 + $0x8] sm:$0xf] %v3276_v30  ;;  %v3237_v7 = vmax.f32 %v5334_v54, %v3230_v0  ;;  %v3228_v50 = vmax.f32 %v5335_v8, %v3214_v51  ;;  %v5342_v2 = vmax.f32 %v5340_v43, %v5341_v62 }
 0x1fa   : > { %v3262_v32 = vpack.c.bf16 %v3255_v46, %v3255_v46  ;;  %v3253_v27 = vmax.f32 %v3246_v25, 0.0  ;;  %v3215_v3 = vadd.f32 %v3201_v41, %v3045_v23 }
 0x1fb   : > { %v3270_v28 = vsel %vm5218_vm3, %v3259_v22, %v3269_v45  ;;  %v3251_v26 = vadd.f32 %v5189_v16, %v3237_v7  ;;  %v3235_v10 = vmax.f32 %v5338_v34, %v3228_v50 }
 0x1fc   : > { %3271 = vst [vmem:[%s5201_s6] sm:$0xf] %v3270_v28  ;;  %v3279_v4 = vsel %vm5218_vm3, %v3262_v32, %v3278_v6  ;;  %v3260_v48 = vpack.c.bf16 %v3253_v27, %v3253_v27  ;;  %v3229_v20 = vmax.f32 %v5339_v14, %v3215_v3 }
 0x1fd   : > { %3280 = vst [vmem:[%s5201_s6 + $0xc] sm:$0xf] %v3279_v4  ;;  %v3258_v42 = vmax.f32 %v3251_v26, 0.0  ;;  %v3249_v29 = vadd.f32 %v5189_v16, %v3235_v10 }
 0x1fe   : > { %v3273_v5 = vsel %vm5218_vm3, %v3260_v48, %v3272_v40  ;;  %v3236_v55 = vmax.f32 %v5342_v2, %v3229_v20 }
 0x1ff   : > { %3274 = vst [vmem:[%s5201_s6 + $0x4] sm:$0xf] %v3273_v5  ;;  %v3265_v58 = vpack.c.bf16 %v3258_v42, %v3258_v42  ;;  %v3256_v24 = vmax.f32 %v3249_v29, 0.0 }
 0x200   : > { %v3250_v61 = vadd.f32 %v5189_v16, %v3236_v55 }
 0x201   : > { %v3288_v60 = vsel %vm5218_vm3, %v3265_v58, %v3287_v15  ;;  %v3263_v12 = vpack.c.bf16 %v3256_v24, %v3256_v24 }
 0x202   : > { %3289 = vst [vmem:[%s5201_s6 + $0x18] sm:$0xf] %v3288_v60  ;;  %v3257_v47 = vmax.f32 %v3250_v61, 0.0 }
 0x203   : > { %v3282_v17 = vsel %vm5218_vm3, %v3263_v12, %v3281_v13 }
 0x204   : > { %3283 = vst [vmem:[%s5201_s6 + $0x10] sm:$0xf] %v3282_v17  ;;  %v3264_v57 = vpack.c.bf16 %v3257_v47, %v3257_v47 }
 0x206   : > { %v3285_v37 = vsel %vm5218_vm3, %v3264_v57, %v3284_v39 }
 0x207   : > { %3286 = vst [vmem:[%s5201_s6 + $0x14] sm:$0xf] %v3285_v37 }
 0x208 PF: > { %s13_s12 = sadd.s32 1, %s4296_s12  }
 0x209   : > { %p10_p4 = scmp.ge.s32.totalorder %s13_s12, 4  }
 0x20b   :  { %12 = sbr.rel (!%p10_p4) target bundleno = 1 (0x1), region = 70 }

// kernel: mnist_net_forward.3
= control target key start
LH: loop header
LB: loop body
LE: loop exit
PB: predicated region body
PF: predicated region fallthrough
CT: control target
= control target key end

     0   :  { %s5806_s12 = smov 0   ;;  %s12210_s0 = inlined_call_operand.vmem [shape: f32[2,60,15,1], index: 0, kind: input, shape index: {}]   ;;  %s12211_s1 = inlined_call_operand.vmem [shape: f32[9,32], index: 1, kind: input, shape index: {}]   ;;  %s12212_s2 = inlined_call_operand.vmem [shape: f32[1,32], index: 2, kind: input, shape index: {}]   ;;  %s12213_s3 = inlined_call_operand.vmem [shape: bf16[2,14,14,32], index: 3, kind: output, shape index: {}]  }
   0x1 LB: > { %s5271_s13 = sadd.s32 4294967295, %s5783_s12   ;;  %p5275_p0 = scmp.ge.s32.totalorder %s5783_s12, 1  ;;  %s5783_s12 = sphi %s5806_s12, %s13_s12  }
   0x2   : > { %p137_p1 = scmp.lt.s32.totalorder %s5783_s12, 3 }
   0x4   : > { %p138_p2 = pnand %p5275_p0, %p137_p1 }
   0x6   : > { %141 = sbr.rel (%p138_p2) target bundleno = 1144 (0x478), region = 32 }
   0xb   : > { %p161_p3 = scmp.lt.s32.totalorder %s5271_s13, 1  ;;  %v5785_v0 = vmov 0   ;;  %vm5188_vm0 = vcmask 256000   ;;  %vm5186_vm1 = vcmask 257024  }
   0xc   : > { %5750 = vset.pattern.permute.xlu1 %v5785_v0  ;;  %5749 = vset.pattern.permute.xlu0 %v5785_v0 }
   0xd   : > { %s14259_s13 = smov (!%p161_p3, %s5271_s13), 1 }
   0xe   : > { %s5738_s14 = smul.u32 960, %s14259_s13 }
   0xf   : > { %s5739_s8 = smul.u32 112, %s14259_s13 }
  0x10   : > { %s5820_s17 = scalar_lea.vmem %s12210_s0, %s5738_s14 }
  0x11   : > { %v173_v1 = vld [vmem:[%s5820_s17 + $0x10] sm:$0xff]  ;;  %v171_v2 = vld [vmem:[%s5820_s17] sm:$0xff]  ;;  %v174_v3 = vld [vmem:[%s5820_s17 + $0x18] sm:$0x3f]  ;;  %s11927_s10 = scalar_lea.vmem %s12213_s3, %s5739_s8 }
  0x12   : > { %647 = vperm.xlu1 %5750, %v173_v1   ;;  %637 = vperm.xlu0 %5749, %v171_v2   ;;  %v172_v4 = vld [vmem:[%s5820_s17 + $0x8] sm:$0x3f]  ;;  %v175_v6 = vld [vmem:[%s5820_s17 + $0x20] sm:$0xff]  ;;  %v178_v7 = vld [vmem:[%s5820_s17 + $0x38] sm:$0x3f] }
  0x13   : > { %v176_v5 = vld [vmem:[%s5820_s17 + $0x28] sm:$0x3f]  ;;  %v177_v8 = vld [vmem:[%s5820_s17 + $0x30] sm:$0xff]  ;;  %v179_v10 = vld [vmem:[%s5820_s17 + $0x40] sm:$0xff] }
  0x14   : > { %v180_v9 = vld [vmem:[%s5820_s17 + $0x48] sm:$0x3f]  ;;  %v182_v11 = vld [vmem:[%s5820_s17 + $0x58] sm:$0x3f]  ;;  %v181_v12 = vld [vmem:[%s5820_s17 + $0x50] sm:$0xff] }
  0x15   : > { %v184_v13 = vld [vmem:[%s5820_s17 + $0x68] sm:$0x3f]  ;;  %v183_v14 = vld [vmem:[%s5820_s17 + $0x60] sm:$0xff]  ;;  %v186_v15 = vld [vmem:[%s5820_s17 + $0x78] sm:$0x3f] }
  0x16   : > { %652 = vperm.xlu1 %5750, %v174_v3   ;;  %642 = vperm.xlu0 %5749, %v172_v4   ;;  %v185_v16 = vld [vmem:[%s5820_s17 + $0x70] sm:$0xff]  ;;  %v188_v17 = vld [vmem:[%s5820_s17 + $0x88] sm:$0x3f]  ;;  %v187_v18 = vld [vmem:[%s5820_s17 + $0x80] sm:$0xff] }
  0x17   : > { %v190_v19 = vld [vmem:[%s5820_s17 + $0x98] sm:$0x3f]  ;;  %v189_v20 = vld [vmem:[%s5820_s17 + $0x90] sm:$0xff]  ;;  %v192_v21 = vld [vmem:[%s5820_s17 + $0xa8] sm:$0x3f] }
  0x18   : > { %v191_v22 = vld [vmem:[%s5820_s17 + $0xa0] sm:$0xff]  ;;  %v194_v23 = vld [vmem:[%s5820_s17 + $0xb8] sm:$0x3f]  ;;  %v193_v24 = vld [vmem:[%s5820_s17 + $0xb0] sm:$0xff] }
  0x19   : > { %v196_v25 = vld [vmem:[%s5820_s17 + $0xc8] sm:$0x3f]  ;;  %v195_v26 = vld [vmem:[%s5820_s17 + $0xc0] sm:$0xff]  ;;  %v198_v27 = vld [vmem:[%s5820_s17 + $0xd8] sm:$0x3f] }
  0x1a   : > { %662 = vperm.xlu1 %5750, %v176_v5   ;;  %657 = vperm.xlu0 %5749, %v175_v6   ;;  %v197_v28 = vld [vmem:[%s5820_s17 + $0xd0] sm:$0xff]  ;;  %v5279_v29 = vld [vmem:[%s5820_s17 + $0xf8] sm:$0x3f]  ;;  %v5281_v31 = vld [vmem:[%s5820_s17 + $0x108] sm:$0x3f] }
  0x1b   : > { %v5278_v30 = vld [vmem:[%s5820_s17 + $0xf0] sm:$0xff]  ;;  %v5280_v32 = vld [vmem:[%s5820_s17 + $0x100] sm:$0xff]  ;;  %v5283_v33 = vld [vmem:[%s5820_s17 + $0x118] sm:$0x3f] }
  0x1c   : > { %v5282_v34 = vld [vmem:[%s5820_s17 + $0x110] sm:$0xff]  ;;  %v5285_v35 = vld [vmem:[%s5820_s17 + $0x128] sm:$0x3f]  ;;  %v5284_v36 = vld [vmem:[%s5820_s17 + $0x120] sm:$0xff] }
  0x1d   : > { %v5287_v37 = vld [vmem:[%s5820_s17 + $0x138] sm:$0x3f]  ;;  %v5286_v38 = vld [vmem:[%s5820_s17 + $0x130] sm:$0xff]  ;;  %v5289_v39 = vld [vmem:[%s5820_s17 + $0x148] sm:$0x3f] }
  0x1e   : > { %672 = vperm.xlu1 %5750, %v178_v7   ;;  %667 = vperm.xlu0 %5749, %v177_v8   ;;  %v5288_v40 = vld [vmem:[%s5820_s17 + $0x140] sm:$0xff]  ;;  %v5291_v41 = vld [vmem:[%s5820_s17 + $0x158] sm:$0x3f]  ;;  %v5290_v42 = vld [vmem:[%s5820_s17 + $0x150] sm:$0xff] }
  0x1f   : > { %v5293_v43 = vld [vmem:[%s5820_s17 + $0x168] sm:$0x3f]  ;;  %v5292_v44 = vld [vmem:[%s5820_s17 + $0x160] sm:$0xff]  ;;  %v5295_v45 = vld [vmem:[%s5820_s17 + $0x178] sm:$0x3f] }
  0x20   : > { %v5294_v46 = vld [vmem:[%s5820_s17 + $0x170] sm:$0xff]  ;;  %v5297_v47 = vld [vmem:[%s5820_s17 + $0x188] sm:$0x3f]  ;;  %v5296_v48 = vld [vmem:[%s5820_s17 + $0x180] sm:$0xff] }
  0x21   : > { %v5299_v49 = vld [vmem:[%s5820_s17 + $0x198] sm:$0x3f]  ;;  %v5298_v50 = vld [vmem:[%s5820_s17 + $0x190] sm:$0xff]  ;;  %v5301_v51 = vld [vmem:[%s5820_s17 + $0x1a8] sm:$0x3f] }
  0x22   : > { %682 = vperm.xlu1 %5750, %v180_v9   ;;  %677 = vperm.xlu0 %5749, %v179_v10   ;;  %v5300_v52 = vld [vmem:[%s5820_s17 + $0x1a0] sm:$0xff]  ;;  %v5303_v53 = vld [vmem:[%s5820_s17 + $0x1b8] sm:$0x3f]  ;;  %v5302_v54 = vld [vmem:[%s5820_s17 + $0x1b0] sm:$0xff] }
  0x23   : > { %v5305_v55 = vld [vmem:[%s5820_s17 + $0x1c8] sm:$0x3f]  ;;  %v5304_v56 = vld [vmem:[%s5820_s17 + $0x1c0] sm:$0xff]  ;;  %v231_v59 = vld [vmem:[%s5820_s17 + $0x19] sm:$0x3f] }
  0x24   : > { %v229_v57 = vld [vmem:[%s5820_s17 + $0x9] sm:$0x3f]  ;;  %v228_v58 = vld [vmem:[%s5820_s17 + $0x1] sm:$0xff]  ;;  %v230_v60 = vld [vmem:[%s5820_s17 + $0x11] sm:$0xff] }
  0x25   : > { %v233_v61 = vld [vmem:[%s5820_s17 + $0x29] sm:$0x3f]  ;;  %v232_v62 = vld [vmem:[%s5820_s17 + $0x21] sm:$0xff]  ;;  %v235_v63 = vld [vmem:[%s5820_s17 + $0x39] sm:$0x3f] }
  0x26   : > { %692 = vperm.xlu1 %5750, %v182_v11   ;;  %687 = vperm.xlu0 %5749, %v181_v12   ;;  %v234_v0 = vld [vmem:[%s5820_s17 + $0x31] sm:$0xff]  ;;  %v237_v3 = vld [vmem:[%s5820_s17 + $0x49] sm:$0x3f]  ;;  %v236_v4 = vld [vmem:[%s5820_s17 + $0x41] sm:$0xff] }
  0x27   : > { %v239_v7 = vld [vmem:[%s5820_s17 + $0x59] sm:$0x3f]  ;;  %v238_v8 = vld [vmem:[%s5820_s17 + $0x51] sm:$0xff]  ;;  %v241_v11 = vld [vmem:[%s5820_s17 + $0x69] sm:$0x3f] }
  0x28   : > { %v240_v12 = vld [vmem:[%s5820_s17 + $0x61] sm:$0xff] }
  0x2a   : > { %702 = vperm.xlu1 %5750, %v184_v13   ;;  %697 = vperm.xlu0 %5749, %v183_v14  }
  0x2e   : > { %712 = vperm.xlu1 %5750, %v186_v15   ;;  %707 = vperm.xlu0 %5749, %v185_v16   ;;  %v243_v15 = vld [vmem:[%s5820_s17 + $0x79] sm:$0x3f]  ;;  %v242_v16 = vld [vmem:[%s5820_s17 + $0x71] sm:$0xff] }
  0x32   : > { %722 = vperm.xlu1 %5750, %v188_v17   ;;  %717 = vperm.xlu0 %5749, %v187_v18  }
  0x36   : > { %732 = vperm.xlu1 %5750, %v190_v19   ;;  %727 = vperm.xlu0 %5749, %v189_v20   ;;  %v245_v19 = vld [vmem:[%s5820_s17 + $0x89] sm:$0x3f]  ;;  %v244_v20 = vld [vmem:[%s5820_s17 + $0x81] sm:$0xff] }
  0x3a   : > { %742 = vperm.xlu1 %5750, %v192_v21   ;;  %737 = vperm.xlu0 %5749, %v191_v22  }
  0x3e   : > { %752 = vperm.xlu1 %5750, %v194_v23   ;;  %747 = vperm.xlu0 %5749, %v193_v24   ;;  %v247_v23 = vld [vmem:[%s5820_s17 + $0x99] sm:$0x3f]  ;;  %v246_v24 = vld [vmem:[%s5820_s17 + $0x91] sm:$0xff] }
  0x42   : > { %762 = vperm.xlu1 %5750, %v196_v25   ;;  %757 = vperm.xlu0 %5749, %v195_v26  }
  0x46   : > { %772 = vperm.xlu1 %5750, %v198_v27   ;;  %767 = vperm.xlu0 %5749, %v197_v28   ;;  %v249_v27 = vld [vmem:[%s5820_s17 + $0xa9] sm:$0x3f]  ;;  %v248_v28 = vld [vmem:[%s5820_s17 + $0xa1] sm:$0xff] }
  0x4a   : > { %842 = vperm.xlu1 %5750, %v5279_v29   ;;  %837 = vperm.xlu0 %5749, %v5278_v30  }
  0x4e   : > { %852 = vperm.xlu1 %5750, %v5281_v31   ;;  %847 = vperm.xlu0 %5749, %v5280_v32   ;;  %v251_v31 = vld [vmem:[%s5820_s17 + $0xb9] sm:$0x3f]  ;;  %v250_v32 = vld [vmem:[%s5820_s17 + $0xb1] sm:$0xff] }
  0x52   : > { %862 = vperm.xlu1 %5750, %v5283_v33   ;;  %857 = vperm.xlu0 %5749, %v5282_v34  }
  0x56   : > { %872 = vperm.xlu1 %5750, %v5285_v35   ;;  %867 = vperm.xlu0 %5749, %v5284_v36   ;;  %v253_v35 = vld [vmem:[%s5820_s17 + $0xc9] sm:$0x3f]  ;;  %v252_v36 = vld [vmem:[%s5820_s17 + $0xc1] sm:$0xff] }
  0x5a   : > { %882 = vperm.xlu1 %5750, %v5287_v37   ;;  %877 = vperm.xlu0 %5749, %v5286_v38  }
  0x5e   : > { %892 = vperm.xlu1 %5750, %v5289_v39   ;;  %887 = vperm.xlu0 %5749, %v5288_v40   ;;  %v255_v39 = vld [vmem:[%s5820_s17 + $0xd9] sm:$0x3f]  ;;  %v254_v40 = vld [vmem:[%s5820_s17 + $0xd1] sm:$0xff] }
  0x62   : > { %902 = vperm.xlu1 %5750, %v5291_v41   ;;  %897 = vperm.xlu0 %5749, %v5290_v42  }
  0x66   : > { %912 = vperm.xlu1 %5750, %v5293_v43   ;;  %907 = vperm.xlu0 %5749, %v5292_v44   ;;  %v5335_v43 = vld [vmem:[%s5820_s17 + $0x1e8] sm:$0x3f]  ;;  %v5334_v44 = vld [vmem:[%s5820_s17 + $0x1e0] sm:$0xff] }
  0x6a   : > { %922 = vperm.xlu1 %5750, %v5295_v45   ;;  %917 = vperm.xlu0 %5749, %v5294_v46  }
  0x6e   : > { %932 = vperm.xlu1 %5750, %v5297_v47   ;;  %927 = vperm.xlu0 %5749, %v5296_v48   ;;  %v5337_v47 = vld [vmem:[%s5820_s17 + $0x1f8] sm:$0x3f]  ;;  %v5336_v48 = vld [vmem:[%s5820_s17 + $0x1f0] sm:$0xff] }
  0x72   : > { %942 = vperm.xlu1 %5750, %v5299_v49   ;;  %937 = vperm.xlu0 %5749, %v5298_v50  }
  0x76   : > { %952 = vperm.xlu1 %5750, %v5301_v51   ;;  %947 = vperm.xlu0 %5749, %v5300_v52   ;;  %v5339_v51 = vld [vmem:[%s5820_s17 + $0x208] sm:$0x3f]  ;;  %v5338_v52 = vld [vmem:[%s5820_s17 + $0x200] sm:$0xff] }
  0x7a   : > { %962 = vperm.xlu1 %5750, %v5303_v53   ;;  %957 = vperm.xlu0 %5749, %v5302_v54  }
  0x7e   : > { %972 = vperm.xlu1 %5750, %v5305_v55   ;;  %967 = vperm.xlu0 %5749, %v5304_v56   ;;  %v5341_v55 = vld [vmem:[%s5820_s17 + $0x218] sm:$0x3f]  ;;  %v5340_v56 = vld [vmem:[%s5820_s17 + $0x210] sm:$0xff] }
  0x82   : > { %1042 = vperm.xlu1 %5750, %v229_v57   ;;  %1037 = vperm.xlu0 %5749, %v228_v58  }
  0x86   : > { %1052 = vperm.xlu1 %5750, %v231_v59   ;;  %1047 = vperm.xlu0 %5749, %v230_v60   ;;  %v5343_v59 = vld [vmem:[%s5820_s17 + $0x228] sm:$0x3f]  ;;  %v5342_v60 = vld [vmem:[%s5820_s17 + $0x220] sm:$0xff] }
  0x8a   : > { %1062 = vperm.xlu1 %5750, %v233_v61   ;;  %1057 = vperm.xlu0 %5749, %v232_v62  }
  0x8d   : > { %v5886_v1 = vpop.permute.xlu1 %647  ;;  %v5888_v2 = vpop.permute.xlu0 %637 }
  0x8e   : > { %1072 = vperm.xlu1 %5750, %v235_v63   ;;  %1067 = vperm.xlu0 %5749, %v234_v0   ;;  %v5345_v63 = vld [vmem:[%s5820_s17 + $0x238] sm:$0x3f]  ;;  %v5344_v0 = vld [vmem:[%s5820_s17 + $0x230] sm:$0xff] }
  0x91   : > { %v5892_v5 = vpop.permute.xlu1 %652  ;;  %v5894_v6 = vpop.permute.xlu0 %642 }
  0x92   : > { %1082 = vperm.xlu1 %5750, %v237_v3   ;;  %1077 = vperm.xlu0 %5749, %v236_v4  }
  0x95   : > { %v5898_v9 = vpop.permute.xlu1 %662  ;;  %v5900_v10 = vpop.permute.xlu0 %657 }
  0x96   : > { %1092 = vperm.xlu1 %5750, %v239_v7   ;;  %1087 = vperm.xlu0 %5749, %v238_v8   ;;  %v5347_v7 = vld [vmem:[%s5820_s17 + $0x248] sm:$0x3f]  ;;  %v5346_v8 = vld [vmem:[%s5820_s17 + $0x240] sm:$0xff] }
  0x99   : > { %v5904_v13 = vpop.permute.xlu1 %672  ;;  %v5906_v14 = vpop.permute.xlu0 %667 }
  0x9a   : > { %1102 = vperm.xlu1 %5750, %v241_v11   ;;  %1097 = vperm.xlu0 %5749, %v240_v12  }
  0x9d   : > { %v5910_v17 = vpop.permute.xlu1 %682  ;;  %v5912_v18 = vpop.permute.xlu0 %677 }
  0x9e   : > { %1112 = vperm.xlu1 %5750, %v243_v15   ;;  %1107 = vperm.xlu0 %5749, %v242_v16   ;;  %v5349_v15 = vld [vmem:[%s5820_s17 + $0x258] sm:$0x3f]  ;;  %v5348_v16 = vld [vmem:[%s5820_s17 + $0x250] sm:$0xff] }
  0xa1   : > { %v5916_v21 = vpop.permute.xlu1 %692  ;;  %v5918_v22 = vpop.permute.xlu0 %687 }
  0xa2   : > { %1122 = vperm.xlu1 %5750, %v245_v19   ;;  %1117 = vperm.xlu0 %5749, %v244_v20  }
  0xa5   : > { %v5922_v25 = vpop.permute.xlu1 %702  ;;  %v5924_v26 = vpop.permute.xlu0 %697 }
  0xa6   : > { %1132 = vperm.xlu1 %5750, %v247_v23   ;;  %1127 = vperm.xlu0 %5749, %v246_v24   ;;  %v5351_v23 = vld [vmem:[%s5820_s17 + $0x268] sm:$0x3f]  ;;  %v5350_v24 = vld [vmem:[%s5820_s17 + $0x260] sm:$0xff] }
  0xa9   : > { %v5928_v29 = vpop.permute.xlu1 %712  ;;  %v5930_v30 = vpop.permute.xlu0 %707 }
  0xaa   : > { %1142 = vperm.xlu1 %5750, %v249_v27   ;;  %1137 = vperm.xlu0 %5749, %v248_v28  }
  0xad   : > { %v5934_v33 = vpop.permute.xlu1 %722  ;;  %v5936_v34 = vpop.permute.xlu0 %717 }
  0xae   : > { %1152 = vperm.xlu1 %5750, %v251_v31   ;;  %1147 = vperm.xlu0 %5749, %v250_v32   ;;  %v5353_v31 = vld [vmem:[%s5820_s17 + $0x278] sm:$0x3f]  ;;  %v5352_v32 = vld [vmem:[%s5820_s17 + $0x270] sm:$0xff] }
  0xb1   : > { %v5940_v37 = vpop.permute.xlu1 %732  ;;  %v5942_v38 = vpop.permute.xlu0 %727 }
  0xb2   : > { %1162 = vperm.xlu1 %5750, %v253_v35   ;;  %1157 = vperm.xlu0 %5749, %v252_v36  }
  0xb5   : > { %v5946_v41 = vpop.permute.xlu1 %742  ;;  %v5948_v42 = vpop.permute.xlu0 %737 }
  0xb6   : > { %1172 = vperm.xlu1 %5750, %v255_v39   ;;  %1167 = vperm.xlu0 %5749, %v254_v40   ;;  %v5355_v39 = vld [vmem:[%s5820_s17 + $0x288] sm:$0x3f]  ;;  %v5354_v40 = vld [vmem:[%s5820_s17 + $0x280] sm:$0xff] }
  0xb9   : > { %v5952_v45 = vpop.permute.xlu1 %752  ;;  %v5954_v46 = vpop.permute.xlu0 %747 }
  0xba   : > { %1242 = vperm.xlu1 %5750, %v5335_v43   ;;  %1237 = vperm.xlu0 %5749, %v5334_v44  }
  0xbd   : > { %v5958_v49 = vpop.permute.xlu1 %762  ;;  %v5960_v50 = vpop.permute.xlu0 %757 }
  0xbe   : > { %1252 = vperm.xlu1 %5750, %v5337_v47   ;;  %1247 = vperm.xlu0 %5749, %v5336_v48   ;;  %v5357_v47 = vld [vmem:[%s5820_s17 + $0x298] sm:$0x3f]  ;;  %v5356_v48 = vld [vmem:[%s5820_s17 + $0x290] sm:$0xff] }
  0xc1   : > { %v5964_v53 = vpop.permute.xlu1 %772  ;;  %v5966_v54 = vpop.permute.xlu0 %767 }
  0xc2   : > { %1262 = vperm.xlu1 %5750, %v5339_v51   ;;  %1257 = vperm.xlu0 %5749, %v5338_v52  }
  0xc5   : > { %v5970_v57 = vpop.permute.xlu1 %842  ;;  %v5972_v58 = vpop.permute.xlu0 %837 }
  0xc6   : > { %1272 = vperm.xlu1 %5750, %v5341_v55   ;;  %1267 = vperm.xlu0 %5749, %v5340_v56   ;;  %v5359_v55 = vld [vmem:[%s5820_s17 + $0x2a8] sm:$0x3f]  ;;  %v5358_v56 = vld [vmem:[%s5820_s17 + $0x2a0] sm:$0xff] }
  0xc9   : > { %v5976_v61 = vpop.permute.xlu1 %852  ;;  %v5978_v62 = vpop.permute.xlu0 %847 }
  0xca   : > { %1282 = vperm.xlu1 %5750, %v5343_v59   ;;  %1277 = vperm.xlu0 %5749, %v5342_v60  }
  0xcd   : > { %v5982_v3 = vpop.permute.xlu1 %862  ;;  %v5984_v4 = vpop.permute.xlu0 %857 }
  0xce   : > { %1292 = vperm.xlu1 %5750, %v5345_v63   ;;  %1287 = vperm.xlu0 %5749, %v5344_v0   ;;  %v5361_v63 = vld [vmem:[%s5820_s17 + $0x2b8] sm:$0x3f]  ;;  %v5360_v0 = vld [vmem:[%s5820_s17 + $0x2b0] sm:$0xff] }
  0xd1   : > { %v5988_v11 = vpop.permute.xlu1 %872  ;;  %v5990_v12 = vpop.permute.xlu0 %867 }
  0xd2   : > { %1302 = vperm.xlu1 %5750, %v5347_v7   ;;  %1297 = vperm.xlu0 %5749, %v5346_v8  }
  0xd5   : > { %v5994_v19 = vpop.permute.xlu1 %882  ;;  %v5996_v20 = vpop.permute.xlu0 %877 }
  0xd6   : > { %1312 = vperm.xlu1 %5750, %v5349_v15   ;;  %1307 = vperm.xlu0 %5749, %v5348_v16   ;;  %v5363_v15 = vld [vmem:[%s5820_s17 + $0x2d8] sm:$0x3f]  ;;  %v5362_v16 = vld [vmem:[%s5820_s17 + $0x2d0] sm:$0xff] }
  0xd9   : > { %v6000_v27 = vpop.permute.xlu1 %892  ;;  %v6002_v28 = vpop.permute.xlu0 %887 }
  0xda   : > { %1322 = vperm.xlu1 %5750, %v5351_v23   ;;  %1317 = vperm.xlu0 %5749, %v5350_v24  }
  0xdd   : > { %v6006_v35 = vpop.permute.xlu1 %902  ;;  %v6008_v36 = vpop.permute.xlu0 %897 }
  0xde   : > { %1332 = vperm.xlu1 %5750, %v5353_v31   ;;  %1327 = vperm.xlu0 %5749, %v5352_v32   ;;  %v5365_v31 = vld [vmem:[%s5820_s17 + $0x2e8] sm:$0x3f]  ;;  %v5364_v32 = vld [vmem:[%s5820_s17 + $0x2e0] sm:$0xff] }
  0xe1   : > { %v6012_v43 = vpop.permute.xlu1 %912  ;;  %v6014_v44 = vpop.permute.xlu0 %907 }
  0xe2   : > { %1342 = vperm.xlu1 %5750, %v5355_v39   ;;  %1337 = vperm.xlu0 %5749, %v5354_v40  }
  0xe5   : > { %v6018_v51 = vpop.permute.xlu1 %922  ;;  %v6020_v52 = vpop.permute.xlu0 %917 }
  0xe6   : > { %1352 = vperm.xlu1 %5750, %v5357_v47   ;;  %1347 = vperm.xlu0 %5749, %v5356_v48   ;;  %v5367_v47 = vld [vmem:[%s5820_s17 + $0x2f8] sm:$0x3f]  ;;  %v5366_v48 = vld [vmem:[%s5820_s17 + $0x2f0] sm:$0xff] }
  0xe9   : > { %v6024_v59 = vpop.permute.xlu1 %932  ;;  %v6026_v60 = vpop.permute.xlu0 %927 }
  0xea   : > { %1362 = vperm.xlu1 %5750, %v5359_v55   ;;  %1357 = vperm.xlu0 %5749, %v5358_v56  }
  0xed   : > { %v6030_v7 = vpop.permute.xlu1 %942  ;;  %v6032_v8 = vpop.permute.xlu0 %937 }
  0xee   : > { %1372 = vperm.xlu1 %5750, %v5361_v63   ;;  %1367 = vperm.xlu0 %5749, %v5360_v0   ;;  %v5369_v63 = vld [vmem:[%s5820_s17 + $0x308] sm:$0x3f]  ;;  %v5368_v0 = vld [vmem:[%s5820_s17 + $0x300] sm:$0xff] }
  0xf1   : > { %v6036_v23 = vpop.permute.xlu1 %952  ;;  %v6038_v24 = vpop.permute.xlu0 %947 }
  0xf2   : > { %1442 = vperm.xlu1 %5750, %v5363_v15   ;;  %1437 = vperm.xlu0 %5749, %v5362_v16  }
  0xf5   : > { %v6042_v39 = vpop.permute.xlu1 %962  ;;  %v6044_v40 = vpop.permute.xlu0 %957 }
  0xf6   : > { %12558 = vst [vmem:[#allocation2_spill] sm:$0xff] %v6044_v40  ;;  %1452 = vperm.xlu1 %5750, %v5365_v31   ;;  %1447 = vperm.xlu0 %5749, %v5364_v32   ;;  %v5371_v31 = vld [vmem:[%s5820_s17 + $0x318] sm:$0x3f]  ;;  %v5370_v32 = vld [vmem:[%s5820_s17 + $0x310] sm:$0xff] }
  0xf9   : > { %v6048_v55 = vpop.permute.xlu1 %972  ;;  %v6050_v56 = vpop.permute.xlu0 %967 }
  0xfa   : > { %12559 = vst [vmem:[#allocation3_spill] sm:$0xff] %v6048_v55  ;;  %12560 = vst [vmem:[#allocation4_spill] sm:$0xff] %v6050_v56  ;;  %1462 = vperm.xlu1 %5750, %v5367_v47   ;;  %1457 = vperm.xlu0 %5749, %v5366_v48   ;;  %v5373_v47 = vld [vmem:[%s5820_s17 + $0x328] sm:$0x3f]  ;;  %v5372_v48 = vld [vmem:[%s5820_s17 + $0x320] sm:$0xff] }
  0xfd   : > { %v6054_v15 = vpop.permute.xlu1 %1042  ;;  %v6056_v16 = vpop.permute.xlu0 %1037 }
  0xfe   : > { %12561 = vst [vmem:[#allocation5_spill] sm:$0xff] %v6054_v15  ;;  %12562 = vst [vmem:[#allocation6_spill] sm:$0xff] %v6056_v16  ;;  %1472 = vperm.xlu1 %5750, %v5369_v63   ;;  %1467 = vperm.xlu0 %5749, %v5368_v0   ;;  %v5375_v63 = vld [vmem:[%s5820_s17 + $0x338] sm:$0x3f]  ;;  %v5374_v0 = vld [vmem:[%s5820_s17 + $0x330] sm:$0xff] }
 0x101   : > { %v6060_v40 = vpop.permute.xlu1 %1052  ;;  %v6062_v55 = vpop.permute.xlu0 %1047 }
 0x102   : > { %12563 = vst [vmem:[#allocation7_spill] sm:$0xff] %v6060_v40  ;;  %12564 = vst [vmem:[#allocation8_spill] sm:$0xff] %v6062_v55  ;;  %1482 = vperm.xlu1 %5750, %v5371_v31   ;;  %1477 = vperm.xlu0 %5749, %v5370_v32   ;;  %v5377_v31 = vld [vmem:[%s5820_s17 + $0x348] sm:$0x3f]  ;;  %v5376_v32 = vld [vmem:[%s5820_s17 + $0x340] sm:$0xff] }
 0x105   : > { %v6066_v56 = vpop.permute.xlu1 %1062  ;;  %v6068_v15 = vpop.permute.xlu0 %1057 }
 0x106   : > { %12565 = vst [vmem:[#allocation9_spill] sm:$0xff] %v6066_v56  ;;  %12566 = vst [vmem:[#allocation10_spill] sm:$0xff] %v6068_v15  ;;  %1492 = vperm.xlu1 %5750, %v5373_v47   ;;  %1487 = vperm.xlu0 %5749, %v5372_v48   ;;  %v5379_v47 = vld [vmem:[%s5820_s17 + $0x358] sm:$0x3f]  ;;  %v5378_v48 = vld [vmem:[%s5820_s17 + $0x350] sm:$0xff] }
 0x109   : > { %v6072_v16 = vpop.permute.xlu1 %1072  ;;  %v6074_v40 = vpop.permute.xlu0 %1067 }
 0x10a   : > { %12567 = vst [vmem:[#allocation11_spill] sm:$0xff] %v6072_v16  ;;  %12568 = vst [vmem:[#allocation12_spill] sm:$0xff] %v6074_v40  ;;  %1502 = vperm.xlu1 %5750, %v5375_v63   ;;  %1497 = vperm.xlu0 %5749, %v5374_v0   ;;  %v5381_v63 = vld [vmem:[%s5820_s17 + $0x368] sm:$0x3f]  ;;  %v5380_v0 = vld [vmem:[%s5820_s17 + $0x360] sm:$0xff] }
 0x10d   : > { %v6078_v55 = vpop.permute.xlu1 %1082  ;;  %v6080_v56 = vpop.permute.xlu0 %1077 }
 0x10e   : > { %12569 = vst [vmem:[#allocation13_spill] sm:$0xff] %v6078_v55  ;;  %12570 = vst [vmem:[#allocation14_spill] sm:$0xff] %v6080_v56  ;;  %1512 = vperm.xlu1 %5750, %v5377_v31   ;;  %1507 = vperm.xlu0 %5749, %v5376_v32   ;;  %v5383_v31 = vld [vmem:[%s5820_s17 + $0x378] sm:$0x3f]  ;;  %v5382_v32 = vld [vmem:[%s5820_s17 + $0x370] sm:$0xff] }
 0x111   : > { %v6084_v15 = vpop.permute.xlu1 %1092  ;;  %v6086_v16 = vpop.permute.xlu0 %1087 }
 0x112   : > { %12571 = vst [vmem:[#allocation15_spill] sm:$0xff] %v6084_v15  ;;  %12572 = vst [vmem:[#allocation16_spill] sm:$0xff] %v6086_v16  ;;  %1522 = vperm.xlu1 %5750, %v5379_v47   ;;  %1517 = vperm.xlu0 %5749, %v5378_v48   ;;  %v5385_v47 = vld [vmem:[%s5820_s17 + $0x388] sm:$0x3f]  ;;  %v5384_v48 = vld [vmem:[%s5820_s17 + $0x380] sm:$0xff] }
 0x115   : > { %v6090_v40 = vpop.permute.xlu1 %1102  ;;  %v6092_v55 = vpop.permute.xlu0 %1097 }
 0x116   : > { %12573 = vst [vmem:[#allocation17_spill] sm:$0xff] %v6090_v40  ;;  %12574 = vst [vmem:[#allocation18_spill] sm:$0xff] %v6092_v55  ;;  %1532 = vperm.xlu1 %5750, %v5381_v63   ;;  %1527 = vperm.xlu0 %5749, %v5380_v0   ;;  %v5387_v63 = vld [vmem:[%s5820_s17 + $0x398] sm:$0x3f]  ;;  %v5386_v0 = vld [vmem:[%s5820_s17 + $0x390] sm:$0xff] }
 0x119   : > { %v6096_v56 = vpop.permute.xlu1 %1112  ;;  %v6098_v15 = vpop.permute.xlu0 %1107 }
 0x11a   : > { %12575 = vst [vmem:[#allocation19_spill] sm:$0xff] %v6096_v56  ;;  %12576 = vst [vmem:[#allocation20_spill] sm:$0xff] %v6098_v15  ;;  %1542 = vperm.xlu1 %5750, %v5383_v31   ;;  %1537 = vperm.xlu0 %5749, %v5382_v32   ;;  %v5389_v31 = vld [vmem:[%s5820_s17 + $0x3a8] sm:$0x3f]  ;;  %v5388_v32 = vld [vmem:[%s5820_s17 + $0x3a0] sm:$0xff] }
 0x11d   : > { %v6102_v16 = vpop.permute.xlu1 %1122  ;;  %v6104_v40 = vpop.permute.xlu0 %1117 }
 0x11e   : > { %12577 = vst [vmem:[#allocation21_spill] sm:$0xff] %v6102_v16  ;;  %12578 = vst [vmem:[#allocation22_spill] sm:$0xff] %v6104_v40  ;;  %1552 = vperm.xlu1 %5750, %v5385_v47   ;;  %1547 = vperm.xlu0 %5749, %v5384_v48   ;;  %v5391_v47 = vld [vmem:[%s5820_s17 + $0x1e9] sm:$0x3f]  ;;  %v5390_v48 = vld [vmem:[%s5820_s17 + $0x1e1] sm:$0xff] }
 0x121   : > { %v6108_v55 = vpop.permute.xlu1 %1132  ;;  %v6110_v56 = vpop.permute.xlu0 %1127 }
 0x122   : > { %12579 = vst [vmem:[#allocation23_spill] sm:$0xff] %v6108_v55  ;;  %12580 = vst [vmem:[#allocation24_spill] sm:$0xff] %v6110_v56  ;;  %1562 = vperm.xlu1 %5750, %v5387_v63   ;;  %1557 = vperm.xlu0 %5749, %v5386_v0   ;;  %v5393_v63 = vld [vmem:[%s5820_s17 + $0x1f9] sm:$0x3f]  ;;  %v5392_v0 = vld [vmem:[%s5820_s17 + $0x1f1] sm:$0xff] }
 0x125   : > { %v6114_v15 = vpop.permute.xlu1 %1142  ;;  %v6116_v16 = vpop.permute.xlu0 %1137 }
 0x126   : > { %12581 = vst [vmem:[#allocation25_spill] sm:$0xff] %v6114_v15  ;;  %12582 = vst [vmem:[#allocation26_spill] sm:$0xff] %v6116_v16  ;;  %1572 = vperm.xlu1 %5750, %v5389_v31   ;;  %1567 = vperm.xlu0 %5749, %v5388_v32   ;;  %v5395_v31 = vld [vmem:[%s5820_s17 + $0x209] sm:$0x3f]  ;;  %v5394_v32 = vld [vmem:[%s5820_s17 + $0x201] sm:$0xff] }
 0x129   : > { %v6120_v40 = vpop.permute.xlu1 %1152  ;;  %v6122_v55 = vpop.permute.xlu0 %1147 }
 0x12a   : > { %12583 = vst [vmem:[#allocation27_spill] sm:$0xff] %v6120_v40  ;;  %12584 = vst [vmem:[#allocation28_spill] sm:$0xff] %v6122_v55  ;;  %1642 = vperm.xlu1 %5750, %v5391_v47   ;;  %1637 = vperm.xlu0 %5749, %v5390_v48   ;;  %v5397_v47 = vld [vmem:[%s5820_s17 + $0x219] sm:$0x3f]  ;;  %v5396_v48 = vld [vmem:[%s5820_s17 + $0x211] sm:$0xff] }
 0x12d   : > { %v6126_v56 = vpop.permute.xlu1 %1162  ;;  %v6128_v15 = vpop.permute.xlu0 %1157 }
 0x12e   : > { %12585 = vst [vmem:[#allocation29_spill] sm:$0xff] %v6126_v56  ;;  %12586 = vst [vmem:[#allocation30_spill] sm:$0xff] %v6128_v15  ;;  %1652 = vperm.xlu1 %5750, %v5393_v63   ;;  %1647 = vperm.xlu0 %5749, %v5392_v0   ;;  %v5399_v63 = vld [vmem:[%s5820_s17 + $0x229] sm:$0x3f]  ;;  %v5398_v0 = vld [vmem:[%s5820_s17 + $0x221] sm:$0xff] }
 0x131   : > { %v6132_v16 = vpop.permute.xlu1 %1172  ;;  %v6134_v40 = vpop.permute.xlu0 %1167 }
 0x132   : > { %12587 = vst [vmem:[#allocation31_spill] sm:$0xff] %v6132_v16  ;;  %12588 = vst [vmem:[#allocation32_spill] sm:$0xff] %v6134_v40  ;;  %1662 = vperm.xlu1 %5750, %v5395_v31   ;;  %1657 = vperm.xlu0 %5749, %v5394_v32   ;;  %v5401_v31 = vld [vmem:[%s5820_s17 + $0x239] sm:$0x3f]  ;;  %v5400_v32 = vld [vmem:[%s5820_s17 + $0x231] sm:$0xff] }
 0x135   : > { %v6138_v55 = vpop.permute.xlu1 %1242  ;;  %v6140_v56 = vpop.permute.xlu0 %1237 }
 0x136   : > { %12589 = vst [vmem:[#allocation33_spill] sm:$0xff] %v6138_v55  ;;  %12590 = vst [vmem:[#allocation34_spill] sm:$0xff] %v6140_v56  ;;  %1672 = vperm.xlu1 %5750, %v5397_v47   ;;  %1667 = vperm.xlu0 %5749, %v5396_v48   ;;  %v5403_v47 = vld [vmem:[%s5820_s17 + $0x249] sm:$0x3f]  ;;  %v5402_v48 = vld [vmem:[%s5820_s17 + $0x241] sm:$0xff] }
 0x139   : > { %v6144_v15 = vpop.permute.xlu1 %1252  ;;  %v6146_v16 = vpop.permute.xlu0 %1247 }
 0x13a   : > { %12591 = vst [vmem:[#allocation35_spill] sm:$0xff] %v6144_v15  ;;  %12592 = vst [vmem:[#allocation36_spill] sm:$0xff] %v6146_v16  ;;  %1682 = vperm.xlu1 %5750, %v5399_v63   ;;  %1677 = vperm.xlu0 %5749, %v5398_v0   ;;  %v5405_v63 = vld [vmem:[%s5820_s17 + $0x259] sm:$0x3f]  ;;  %v5404_v0 = vld [vmem:[%s5820_s17 + $0x251] sm:$0xff] }
 0x13d   : > { %v6150_v40 = vpop.permute.xlu1 %1262  ;;  %v6152_v55 = vpop.permute.xlu0 %1257 }
 0x13e   : > { %12593 = vst [vmem:[#allocation37_spill] sm:$0xff] %v6150_v40  ;;  %12594 = vst [vmem:[#allocation38_spill] sm:$0xff] %v6152_v55  ;;  %1692 = vperm.xlu1 %5750, %v5401_v31   ;;  %1687 = vperm.xlu0 %5749, %v5400_v32   ;;  %v5407_v31 = vld [vmem:[%s5820_s17 + $0x269] sm:$0x3f]  ;;  %v5406_v32 = vld [vmem:[%s5820_s17 + $0x261] sm:$0xff] }
 0x141   : > { %v6156_v56 = vpop.permute.xlu1 %1272  ;;  %v6158_v15 = vpop.permute.xlu0 %1267 }
 0x142   : > { %12595 = vst [vmem:[#allocation39_spill] sm:$0xff] %v6156_v56  ;;  %12596 = vst [vmem:[#allocation40_spill] sm:$0xff] %v6158_v15  ;;  %1702 = vperm.xlu1 %5750, %v5403_v47   ;;  %1697 = vperm.xlu0 %5749, %v5402_v48   ;;  %v5409_v47 = vld [vmem:[%s5820_s17 + $0x279] sm:$0x3f]  ;;  %v5408_v48 = vld [vmem:[%s5820_s17 + $0x271] sm:$0xff] }
 0x145   : > { %v6162_v16 = vpop.permute.xlu1 %1282  ;;  %v6164_v40 = vpop.permute.xlu0 %1277 }
 0x146   : > { %12597 = vst [vmem:[#allocation41_spill] sm:$0xff] %v6162_v16  ;;  %12598 = vst [vmem:[#allocation42_spill] sm:$0xff] %v6164_v40  ;;  %1712 = vperm.xlu1 %5750, %v5405_v63   ;;  %1707 = vperm.xlu0 %5749, %v5404_v0   ;;  %v5411_v63 = vld [vmem:[%s5820_s17 + $0x289] sm:$0x3f]  ;;  %v5410_v0 = vld [vmem:[%s5820_s17 + $0x281] sm:$0xff] }
 0x149   : > { %v6168_v55 = vpop.permute.xlu1 %1292  ;;  %v6170_v56 = vpop.permute.xlu0 %1287 }
 0x14a   : > { %12599 = vst [vmem:[#allocation43_spill] sm:$0xff] %v6168_v55  ;;  %12600 = vst [vmem:[#allocation44_spill] sm:$0xff] %v6170_v56  ;;  %1722 = vperm.xlu1 %5750, %v5407_v31   ;;  %1717 = vperm.xlu0 %5749, %v5406_v32   ;;  %v5413_v31 = vld [vmem:[%s5820_s17 + $0x299] sm:$0x3f]  ;;  %v5412_v32 = vld [vmem:[%s5820_s17 + $0x291] sm:$0xff] }
 0x14d   : > { %v6174_v15 = vpop.permute.xlu1 %1302  ;;  %v6176_v16 = vpop.permute.xlu0 %1297 }
 0x14e   : > { %12601 = vst [vmem:[#allocation45_spill] sm:$0xff] %v6174_v15  ;;  %12602 = vst [vmem:[#allocation46_spill] sm:$0xff] %v6176_v16  ;;  %1732 = vperm.xlu1 %5750, %v5409_v47   ;;  %1727 = vperm.xlu0 %5749, %v5408_v48   ;;  %v5415_v47 = vld [vmem:[%s5820_s17 + $0x2a9] sm:$0x3f]  ;;  %v5414_v48 = vld [vmem:[%s5820_s17 + $0x2a1] sm:$0xff] }
 0x151   : > { %v6180_v40 = vpop.permute.xlu1 %1312  ;;  %v6182_v55 = vpop.permute.xlu0 %1307 }
 0x152   : > { %12603 = vst [vmem:[#allocation47_spill] sm:$0xff] %v6180_v40  ;;  %12604 = vst [vmem:[#allocation48_spill] sm:$0xff] %v6182_v55  ;;  %1742 = vperm.xlu1 %5750, %v5411_v63   ;;  %1737 = vperm.xlu0 %5749, %v5410_v0   ;;  %v5417_v63 = vld [vmem:[%s5820_s17 + $0x2b9] sm:$0x3f]  ;;  %v5416_v0 = vld [vmem:[%s5820_s17 + $0x2b1] sm:$0xff] }
 0x155   : > { %v6186_v56 = vpop.permute.xlu1 %1322  ;;  %v6188_v15 = vpop.permute.xlu0 %1317 }
 0x156   : > { %12605 = vst [vmem:[#allocation49_spill] sm:$0xff] %v6186_v56  ;;  %12606 = vst [vmem:[#allocation50_spill] sm:$0xff] %v6188_v15  ;;  %1752 = vperm.xlu1 %5750, %v5413_v31   ;;  %1747 = vperm.xlu0 %5749, %v5412_v32   ;;  %v5447_v31 = vld [vmem:[%s5820_s17 + $0x18] sm:$0x3f]  ;;  %v5446_v32 = vld [vmem:[%s5820_s17 + $0x10] sm:$0xff] }
 0x159   : > { %v6192_v16 = vpop.permute.xlu1 %1332  ;;  %v6194_v40 = vpop.permute.xlu0 %1327 }
 0x15a   : > { %12607 = vst [vmem:[#allocation51_spill] sm:$0xff] %v6192_v16  ;;  %12608 = vst [vmem:[#allocation52_spill] sm:$0xff] %v6194_v40  ;;  %1762 = vperm.xlu1 %5750, %v5415_v47   ;;  %1757 = vperm.xlu0 %5749, %v5414_v48   ;;  %v5449_v47 = vld [vmem:[%s5820_s17 + $0x28] sm:$0x3f]  ;;  %v5448_v48 = vld [vmem:[%s5820_s17 + $0x20] sm:$0xff] }
 0x15d   : > { %v6198_v55 = vpop.permute.xlu1 %1342  ;;  %v6200_v56 = vpop.permute.xlu0 %1337 }
 0x15e   : > { %12609 = vst [vmem:[#allocation53_spill] sm:$0xff] %v6198_v55  ;;  %12610 = vst [vmem:[#allocation54_spill] sm:$0xff] %v6200_v56  ;;  %1772 = vperm.xlu1 %5750, %v5417_v63   ;;  %1767 = vperm.xlu0 %5749, %v5416_v0   ;;  %v5451_v63 = vld [vmem:[%s5820_s17 + $0x38] sm:$0x3f]  ;;  %v5450_v0 = vld [vmem:[%s5820_s17 + $0x30] sm:$0xff] }
 0x161   : > { %v6204_v15 = vpop.permute.xlu1 %1352  ;;  %v6206_v16 = vpop.permute.xlu0 %1347 }
 0x162   : > { %12611 = vst [vmem:[#allocation55_spill] sm:$0xff] %v6204_v15  ;;  %12612 = vst [vmem:[#allocation56_spill] sm:$0xff] %v6206_v16  ;;  %1842 = vperm.xlu1 %5750, %v5447_v31   ;;  %1837 = vperm.xlu0 %5749, %v5446_v32   ;;  %v5453_v31 = vld [vmem:[%s5820_s17 + $0x48] sm:$0x3f]  ;;  %v5452_v32 = vld [vmem:[%s5820_s17 + $0x40] sm:$0xff] }
 0x165   : > { %v6210_v40 = vpop.permute.xlu1 %1362  ;;  %v6212_v55 = vpop.permute.xlu0 %1357 }
 0x166   : > { %12613 = vst [vmem:[#allocation57_spill] sm:$0xff] %v6210_v40  ;;  %12614 = vst [vmem:[#allocation58_spill] sm:$0xff] %v6212_v55  ;;  %1852 = vperm.xlu1 %5750, %v5449_v47   ;;  %1847 = vperm.xlu0 %5749, %v5448_v48   ;;  %v5455_v47 = vld [vmem:[%s5820_s17 + $0x58] sm:$0x3f]  ;;  %v5454_v48 = vld [vmem:[%s5820_s17 + $0x50] sm:$0xff] }
 0x169   : > { %v6216_v56 = vpop.permute.xlu1 %1372  ;;  %v6218_v15 = vpop.permute.xlu0 %1367 }
 0x16a   : > { %12615 = vst [vmem:[#allocation59_spill] sm:$0xff] %v6216_v56  ;;  %12616 = vst [vmem:[#allocation60_spill] sm:$0xff] %v6218_v15  ;;  %1862 = vperm.xlu1 %5750, %v5451_v63   ;;  %1857 = vperm.xlu0 %5749, %v5450_v0   ;;  %v5457_v63 = vld [vmem:[%s5820_s17 + $0x68] sm:$0x3f]  ;;  %v5456_v0 = vld [vmem:[%s5820_s17 + $0x60] sm:$0xff] }
 0x16d   : > { %v6222_v16 = vpop.permute.xlu1 %1442  ;;  %v6224_v40 = vpop.permute.xlu0 %1437 }
 0x16e   : > { %12617 = vst [vmem:[#allocation61_spill] sm:$0xff] %v6222_v16  ;;  %12618 = vst [vmem:[#allocation62_spill] sm:$0xff] %v6224_v40  ;;  %1872 = vperm.xlu1 %5750, %v5453_v31   ;;  %1867 = vperm.xlu0 %5749, %v5452_v32   ;;  %v5459_v31 = vld [vmem:[%s5820_s17 + $0x78] sm:$0x3f]  ;;  %v5458_v32 = vld [vmem:[%s5820_s17 + $0x70] sm:$0xff] }
 0x171   : > { %v6228_v55 = vpop.permute.xlu1 %1452  ;;  %v6230_v56 = vpop.permute.xlu0 %1447 }
 0x172   : > { %12619 = vst [vmem:[#allocation63_spill] sm:$0xff] %v6228_v55  ;;  %12620 = vst [vmem:[#allocation64_spill] sm:$0xff] %v6230_v56  ;;  %1882 = vperm.xlu1 %5750, %v5455_v47   ;;  %1877 = vperm.xlu0 %5749, %v5454_v48   ;;  %v5461_v47 = vld [vmem:[%s5820_s17 + $0x88] sm:$0x3f]  ;;  %v5460_v48 = vld [vmem:[%s5820_s17 + $0x80] sm:$0xff] }
 0x175   : > { %v6234_v15 = vpop.permute.xlu1 %1462  ;;  %v6236_v16 = vpop.permute.xlu0 %1457 }
 0x176   : > { %12621 = vst [vmem:[#allocation65_spill] sm:$0xff] %v6234_v15  ;;  %12622 = vst [vmem:[#allocation66_spill] sm:$0xff] %v6236_v16  ;;  %1892 = vperm.xlu1 %5750, %v5457_v63   ;;  %1887 = vperm.xlu0 %5749, %v5456_v0   ;;  %v5463_v63 = vld [vmem:[%s5820_s17 + $0x98] sm:$0x3f]  ;;  %v5462_v0 = vld [vmem:[%s5820_s17 + $0x90] sm:$0xff] }
 0x179   : > { %v6240_v40 = vpop.permute.xlu1 %1472  ;;  %v6242_v55 = vpop.permute.xlu0 %1467 }
 0x17a   : > { %12623 = vst [vmem:[#allocation67_spill] sm:$0xff] %v6240_v40  ;;  %12624 = vst [vmem:[#allocation68_spill] sm:$0xff] %v6242_v55  ;;  %1902 = vperm.xlu1 %5750, %v5459_v31   ;;  %1897 = vperm.xlu0 %5749, %v5458_v32   ;;  %v5465_v31 = vld [vmem:[%s5820_s17 + $0xa8] sm:$0x3f]  ;;  %v5464_v32 = vld [vmem:[%s5820_s17 + $0xa0] sm:$0xff] }
 0x17d   : > { %v6246_v56 = vpop.permute.xlu1 %1482  ;;  %v6248_v15 = vpop.permute.xlu0 %1477 }
 0x17e   : > { %12625 = vst [vmem:[#allocation69_spill] sm:$0xff] %v6246_v56  ;;  %12626 = vst [vmem:[#allocation70_spill] sm:$0xff] %v6248_v15  ;;  %1912 = vperm.xlu1 %5750, %v5461_v47   ;;  %1907 = vperm.xlu0 %5749, %v5460_v48   ;;  %v5467_v47 = vld [vmem:[%s5820_s17 + $0xb8] sm:$0x3f]  ;;  %v5466_v48 = vld [vmem:[%s5820_s17 + $0xb0] sm:$0xff] }
 0x181   : > { %v6252_v16 = vpop.permute.xlu1 %1492  ;;  %v6254_v40 = vpop.permute.xlu0 %1487 }
 0x182   : > { %12627 = vst [vmem:[#allocation71_spill] sm:$0xff] %v6252_v16  ;;  %12628 = vst [vmem:[#allocation72_spill] sm:$0xff] %v6254_v40  ;;  %1922 = vperm.xlu1 %5750, %v5463_v63   ;;  %1917 = vperm.xlu0 %5749, %v5462_v0   ;;  %v5469_v63 = vld [vmem:[%s5820_s17 + $0xc8] sm:$0x3f]  ;;  %v5468_v0 = vld [vmem:[%s5820_s17 + $0xc0] sm:$0xff] }
 0x185   : > { %v6258_v55 = vpop.permute.xlu1 %1502  ;;  %v6260_v56 = vpop.permute.xlu0 %1497 }
 0x186   : > { %12629 = vst [vmem:[#allocation73_spill] sm:$0xff] %v6258_v55  ;;  %12630 = vst [vmem:[#allocation74_spill] sm:$0xff] %v6260_v56  ;;  %1932 = vperm.xlu1 %5750, %v5465_v31   ;;  %1927 = vperm.xlu0 %5749, %v5464_v32   ;;  %v5471_v31 = vld [vmem:[%s5820_s17 + $0xd8] sm:$0x3f]  ;;  %v5470_v32 = vld [vmem:[%s5820_s17 + $0xd0] sm:$0xff] }
 0x189   : > { %v6264_v15 = vpop.permute.xlu1 %1512  ;;  %v6266_v16 = vpop.permute.xlu0 %1507 }
 0x18a   : > { %12631 = vst [vmem:[#allocation75_spill] sm:$0xff] %v6264_v15  ;;  %12632 = vst [vmem:[#allocation76_spill] sm:$0xff] %v6266_v16  ;;  %1942 = vperm.xlu1 %5750, %v5467_v47   ;;  %1937 = vperm.xlu0 %5749, %v5466_v48   ;;  %v5473_v47 = vld [vmem:[%s5820_s17 + $0xe8] sm:$0x3f]  ;;  %v5472_v48 = vld [vmem:[%s5820_s17 + $0xe0] sm:$0xff] }
 0x18d   : > { %v6270_v40 = vpop.permute.xlu1 %1522  ;;  %v6272_v55 = vpop.permute.xlu0 %1517 }
 0x18e   : > { %12633 = vst [vmem:[#allocation77_spill] sm:$0xff] %v6270_v40  ;;  %12634 = vst [vmem:[#allocation78_spill] sm:$0xff] %v6272_v55  ;;  %1952 = vperm.xlu1 %5750, %v5469_v63   ;;  %1947 = vperm.xlu0 %5749, %v5468_v0   ;;  %v5475_v63 = vld [vmem:[%s5820_s17 + $0x108] sm:$0x3f]  ;;  %v5474_v0 = vld [vmem:[%s5820_s17 + $0x100] sm:$0xff] }
 0x191   : > { %v6276_v56 = vpop.permute.xlu1 %1532  ;;  %v6278_v15 = vpop.permute.xlu0 %1527 }
 0x192   : > { %12635 = vst [vmem:[#allocation79_spill] sm:$0xff] %v6276_v56  ;;  %12636 = vst [vmem:[#allocation80_spill] sm:$0xff] %v6278_v15  ;;  %1962 = vperm.xlu1 %5750, %v5471_v31   ;;  %1957 = vperm.xlu0 %5749, %v5470_v32   ;;  %v5477_v31 = vld [vmem:[%s5820_s17 + $0x118] sm:$0x3f]  ;;  %v5476_v32 = vld [vmem:[%s5820_s17 + $0x110] sm:$0xff] }
 0x195   : > { %v6282_v16 = vpop.permute.xlu1 %1542  ;;  %v6284_v40 = vpop.permute.xlu0 %1537 }
 0x196   : > { %12637 = vst [vmem:[#allocation81_spill] sm:$0xff] %v6282_v16  ;;  %12638 = vst [vmem:[#allocation82_spill] sm:$0xff] %v6284_v40  ;;  %1972 = vperm.xlu1 %5750, %v5473_v47   ;;  %1967 = vperm.xlu0 %5749, %v5472_v48   ;;  %v5479_v47 = vld [vmem:[%s5820_s17 + $0x128] sm:$0x3f]  ;;  %v5478_v48 = vld [vmem:[%s5820_s17 + $0x120] sm:$0xff] }
 0x199   : > { %v6288_v55 = vpop.permute.xlu1 %1552  ;;  %v6290_v56 = vpop.permute.xlu0 %1547 }
 0x19a   : > { %12639 = vst [vmem:[#allocation83_spill] sm:$0xff] %v6288_v55  ;;  %12640 = vst [vmem:[#allocation84_spill] sm:$0xff] %v6290_v56  ;;  %2042 = vperm.xlu1 %5750, %v5475_v63   ;;  %2037 = vperm.xlu0 %5749, %v5474_v0   ;;  %v5481_v63 = vld [vmem:[%s5820_s17 + $0x138] sm:$0x3f]  ;;  %v5480_v0 = vld [vmem:[%s5820_s17 + $0x130] sm:$0xff] }
 0x19d   : > { %v6294_v15 = vpop.permute.xlu1 %1562  ;;  %v6296_v16 = vpop.permute.xlu0 %1557 }
 0x19e   : > { %12641 = vst [vmem:[#allocation85_spill] sm:$0xff] %v6294_v15  ;;  %12642 = vst [vmem:[#allocation86_spill] sm:$0xff] %v6296_v16  ;;  %2052 = vperm.xlu1 %5750, %v5477_v31   ;;  %2047 = vperm.xlu0 %5749, %v5476_v32   ;;  %v5483_v31 = vld [vmem:[%s5820_s17 + $0x148] sm:$0x3f]  ;;  %v5482_v32 = vld [vmem:[%s5820_s17 + $0x140] sm:$0xff] }
 0x1a1   : > { %v6300_v40 = vpop.permute.xlu1 %1572  ;;  %v6302_v55 = vpop.permute.xlu0 %1567 }
 0x1a2   : > { %12643 = vst [vmem:[#allocation87_spill] sm:$0xff] %v6300_v40  ;;  %12644 = vst [vmem:[#allocation88_spill] sm:$0xff] %v6302_v55  ;;  %2062 = vperm.xlu1 %5750, %v5479_v47   ;;  %2057 = vperm.xlu0 %5749, %v5478_v48   ;;  %v5485_v47 = vld [vmem:[%s5820_s17 + $0x158] sm:$0x3f]  ;;  %v5484_v48 = vld [vmem:[%s5820_s17 + $0x150] sm:$0xff] }
 0x1a5   : > { %v6306_v56 = vpop.permute.xlu1 %1642  ;;  %v6308_v15 = vpop.permute.xlu0 %1637 }
 0x1a6   : > { %12645 = vst [vmem:[#allocation89_spill] sm:$0xff] %v6306_v56  ;;  %12646 = vst [vmem:[#allocation90_spill] sm:$0xff] %v6308_v15  ;;  %2072 = vperm.xlu1 %5750, %v5481_v63   ;;  %2067 = vperm.xlu0 %5749, %v5480_v0   ;;  %v5487_v63 = vld [vmem:[%s5820_s17 + $0x168] sm:$0x3f]  ;;  %v5486_v0 = vld [vmem:[%s5820_s17 + $0x160] sm:$0xff] }
 0x1a9   : > { %v6312_v16 = vpop.permute.xlu1 %1652  ;;  %v6314_v40 = vpop.permute.xlu0 %1647 }
 0x1aa   : > { %12647 = vst [vmem:[#allocation91_spill] sm:$0xff] %v6312_v16  ;;  %12648 = vst [vmem:[#allocation92_spill] sm:$0xff] %v6314_v40  ;;  %2082 = vperm.xlu1 %5750, %v5483_v31   ;;  %2077 = vperm.xlu0 %5749, %v5482_v32   ;;  %v5489_v31 = vld [vmem:[%s5820_s17 + $0x178] sm:$0x3f]  ;;  %v5488_v32 = vld [vmem:[%s5820_s17 + $0x170] sm:$0xff] }
 0x1ad   : > { %v6318_v55 = vpop.permute.xlu1 %1662  ;;  %v6320_v56 = vpop.permute.xlu0 %1657 }
 0x1ae   : > { %12649 = vst [vmem:[#allocation93_spill] sm:$0xff] %v6318_v55  ;;  %12650 = vst [vmem:[#allocation94_spill] sm:$0xff] %v6320_v56  ;;  %2092 = vperm.xlu1 %5750, %v5485_v47   ;;  %2087 = vperm.xlu0 %5749, %v5484_v48   ;;  %v5491_v47 = vld [vmem:[%s5820_s17 + $0x188] sm:$0x3f]  ;;  %v5490_v48 = vld [vmem:[%s5820_s17 + $0x180] sm:$0xff] }
 0x1b1   : > { %v6324_v15 = vpop.permute.xlu1 %1672  ;;  %v6326_v16 = vpop.permute.xlu0 %1667 }
 0x1b2   : > { %12651 = vst [vmem:[#allocation95_spill] sm:$0xff] %v6324_v15  ;;  %12652 = vst [vmem:[#allocation96_spill] sm:$0xff] %v6326_v16  ;;  %2102 = vperm.xlu1 %5750, %v5487_v63   ;;  %2097 = vperm.xlu0 %5749, %v5486_v0   ;;  %v5493_v63 = vld [vmem:[%s5820_s17 + $0x198] sm:$0x3f]  ;;  %v5492_v0 = vld [vmem:[%s5820_s17 + $0x190] sm:$0xff] }
 0x1b5   : > { %v6330_v40 = vpop.permute.xlu1 %1682  ;;  %v6332_v55 = vpop.permute.xlu0 %1677 }
 0x1b6   : > { %12653 = vst [vmem:[#allocation97_spill] sm:$0xff] %v6330_v40  ;;  %12654 = vst [vmem:[#allocation98_spill] sm:$0xff] %v6332_v55  ;;  %2112 = vperm.xlu1 %5750, %v5489_v31   ;;  %2107 = vperm.xlu0 %5749, %v5488_v32   ;;  %v5495_v31 = vld [vmem:[%s5820_s17 + $0x1a8] sm:$0x3f]  ;;  %v5494_v32 = vld [vmem:[%s5820_s17 + $0x1a0] sm:$0xff] }
 0x1b9   : > { %v6336_v56 = vpop.permute.xlu1 %1692  ;;  %v6338_v15 = vpop.permute.xlu0 %1687 }
 0x1ba   : > { %12655 = vst [vmem:[#allocation99_spill] sm:$0xff] %v6336_v56  ;;  %12656 = vst [vmem:[#allocation100_spill] sm:$0xff] %v6338_v15  ;;  %2122 = vperm.xlu1 %5750, %v5491_v47   ;;  %2117 = vperm.xlu0 %5749, %v5490_v48   ;;  %v5497_v47 = vld [vmem:[%s5820_s17 + $0x1b8] sm:$0x3f]  ;;  %v5496_v48 = vld [vmem:[%s5820_s17 + $0x1b0] sm:$0xff] }
 0x1bd   : > { %v6342_v16 = vpop.permute.xlu1 %1702  ;;  %v6344_v40 = vpop.permute.xlu0 %1697 }
 0x1be   : > { %12657 = vst [vmem:[#allocation101_spill] sm:$0xff] %v6342_v16  ;;  %12658 = vst [vmem:[#allocation102_spill] sm:$0xff] %v6344_v40  ;;  %2132 = vperm.xlu1 %5750, %v5493_v63   ;;  %2127 = vperm.xlu0 %5749, %v5492_v0   ;;  %v5499_v63 = vld [vmem:[%s5820_s17 + $0x1c8] sm:$0x3f]  ;;  %v5498_v0 = vld [vmem:[%s5820_s17 + $0x1c0] sm:$0xff] }
 0x1c1   : > { %v6348_v55 = vpop.permute.xlu1 %1712  ;;  %v6350_v56 = vpop.permute.xlu0 %1707 }
 0x1c2   : > { %12659 = vst [vmem:[#allocation103_spill] sm:$0xff] %v6348_v55  ;;  %12660 = vst [vmem:[#allocation104_spill] sm:$0xff] %v6350_v56  ;;  %2142 = vperm.xlu1 %5750, %v5495_v31   ;;  %2137 = vperm.xlu0 %5749, %v5494_v32   ;;  %v5501_v31 = vld [vmem:[%s5820_s17 + $0x1d8] sm:$0x3f]  ;;  %v5500_v32 = vld [vmem:[%s5820_s17 + $0x1d0] sm:$0xff] }
 0x1c5   : > { %v6354_v15 = vpop.permute.xlu1 %1722  ;;  %v6356_v16 = vpop.permute.xlu0 %1717 }
 0x1c6   : > { %12661 = vst [vmem:[#allocation105_spill] sm:$0xff] %v6354_v15  ;;  %12662 = vst [vmem:[#allocation106_spill] sm:$0xff] %v6356_v16  ;;  %2152 = vperm.xlu1 %5750, %v5497_v47   ;;  %2147 = vperm.xlu0 %5749, %v5496_v48   ;;  %v5503_v47 = vld [vmem:[%s5820_s17 + $0x19] sm:$0x3f]  ;;  %v5502_v48 = vld [vmem:[%s5820_s17 + $0x11] sm:$0xff] }
 0x1c9   : > { %v6360_v40 = vpop.permute.xlu1 %1732  ;;  %v6362_v55 = vpop.permute.xlu0 %1727 }
 0x1ca   : > { %12663 = vst [vmem:[#allocation107_spill] sm:$0xff] %v6360_v40  ;;  %12664 = vst [vmem:[#allocation108_spill] sm:$0xff] %v6362_v55  ;;  %2162 = vperm.xlu1 %5750, %v5499_v63   ;;  %2157 = vperm.xlu0 %5749, %v5498_v0   ;;  %v5505_v63 = vld [vmem:[%s5820_s17 + $0x29] sm:$0x3f]  ;;  %v5504_v0 = vld [vmem:[%s5820_s17 + $0x21] sm:$0xff] }
 0x1cd   : > { %v6366_v56 = vpop.permute.xlu1 %1742  ;;  %v6368_v15 = vpop.permute.xlu0 %1737 }
 0x1ce   : > { %12665 = vst [vmem:[#allocation109_spill] sm:$0xff] %v6366_v56  ;;  %12666 = vst [vmem:[#allocation110_spill] sm:$0xff] %v6368_v15  ;;  %2172 = vperm.xlu1 %5750, %v5501_v31   ;;  %2167 = vperm.xlu0 %5749, %v5500_v32   ;;  %v5507_v31 = vld [vmem:[%s5820_s17 + $0x39] sm:$0x3f]  ;;  %v5506_v32 = vld [vmem:[%s5820_s17 + $0x31] sm:$0xff] }
 0x1d1   : > { %v6372_v16 = vpop.permute.xlu1 %1752  ;;  %v6374_v40 = vpop.permute.xlu0 %1747 }
 0x1d2   : > { %12667 = vst [vmem:[#allocation111_spill] sm:$0xff] %v6372_v16  ;;  %12668 = vst [vmem:[#allocation112_spill] sm:$0xff] %v6374_v40  ;;  %2242 = vperm.xlu1 %5750, %v5503_v47   ;;  %2237 = vperm.xlu0 %5749, %v5502_v48   ;;  %v5509_v47 = vld [vmem:[%s5820_s17 + $0x49] sm:$0x3f]  ;;  %v5508_v48 = vld [vmem:[%s5820_s17 + $0x41] sm:$0xff] }
 0x1d5   : > { %v6378_v55 = vpop.permute.xlu1 %1762  ;;  %v6380_v56 = vpop.permute.xlu0 %1757 }
 0x1d6   : > { %12669 = vst [vmem:[#allocation113_spill] sm:$0xff] %v6378_v55  ;;  %12670 = vst [vmem:[#allocation114_spill] sm:$0xff] %v6380_v56  ;;  %2252 = vperm.xlu1 %5750, %v5505_v63   ;;  %2247 = vperm.xlu0 %5749, %v5504_v0   ;;  %v5511_v63 = vld [vmem:[%s5820_s17 + $0x59] sm:$0x3f]  ;;  %v5510_v0 = vld [vmem:[%s5820_s17 + $0x51] sm:$0xff] }
 0x1d9   : > { %v6384_v15 = vpop.permute.xlu1 %1772  ;;  %v6386_v16 = vpop.permute.xlu0 %1767 }
 0x1da   : > { %12671 = vst [vmem:[#allocation115_spill] sm:$0xff] %v6384_v15  ;;  %12672 = vst [vmem:[#allocation116_spill] sm:$0xff] %v6386_v16  ;;  %2262 = vperm.xlu1 %5750, %v5507_v31   ;;  %2257 = vperm.xlu0 %5749, %v5506_v32   ;;  %v5513_v31 = vld [vmem:[%s5820_s17 + $0x69] sm:$0x3f]  ;;  %v5512_v32 = vld [vmem:[%s5820_s17 + $0x61] sm:$0xff] }
 0x1dd   : > { %v6390_v40 = vpop.permute.xlu1 %1842  ;;  %v6392_v55 = vpop.permute.xlu0 %1837 }
 0x1de   : > { %12673 = vst [vmem:[#allocation117_spill] sm:$0xff] %v6390_v40  ;;  %12674 = vst [vmem:[#allocation118_spill] sm:$0xff] %v6392_v55  ;;  %2272 = vperm.xlu1 %5750, %v5509_v47   ;;  %2267 = vperm.xlu0 %5749, %v5508_v48   ;;  %v5515_v47 = vld [vmem:[%s5820_s17 + $0x79] sm:$0x3f]  ;;  %v5514_v48 = vld [vmem:[%s5820_s17 + $0x71] sm:$0xff] }
 0x1e1   : > { %v6396_v56 = vpop.permute.xlu1 %1852  ;;  %v6398_v15 = vpop.permute.xlu0 %1847 }
 0x1e2   : > { %12675 = vst [vmem:[#allocation119_spill] sm:$0xff] %v6396_v56  ;;  %12676 = vst [vmem:[#allocation120_spill] sm:$0xff] %v6398_v15  ;;  %2282 = vperm.xlu1 %5750, %v5511_v63   ;;  %2277 = vperm.xlu0 %5749, %v5510_v0   ;;  %v5517_v63 = vld [vmem:[%s5820_s17 + $0x89] sm:$0x3f]  ;;  %v5516_v0 = vld [vmem:[%s5820_s17 + $0x81] sm:$0xff] }
 0x1e5   : > { %v6402_v16 = vpop.permute.xlu1 %1862  ;;  %v6404_v40 = vpop.permute.xlu0 %1857 }
 0x1e6   : > { %12677 = vst [vmem:[#allocation121_spill] sm:$0xff] %v6402_v16  ;;  %12678 = vst [vmem:[#allocation122_spill] sm:$0xff] %v6404_v40  ;;  %2292 = vperm.xlu1 %5750, %v5513_v31   ;;  %2287 = vperm.xlu0 %5749, %v5512_v32   ;;  %v5519_v31 = vld [vmem:[%s5820_s17 + $0x99] sm:$0x3f]  ;;  %v5518_v32 = vld [vmem:[%s5820_s17 + $0x91] sm:$0xff] }
 0x1e9   : > { %v6408_v55 = vpop.permute.xlu1 %1872  ;;  %v6410_v56 = vpop.permute.xlu0 %1867 }
 0x1ea   : > { %12679 = vst [vmem:[#allocation123_spill] sm:$0xff] %v6408_v55  ;;  %12680 = vst [vmem:[#allocation124_spill] sm:$0xff] %v6410_v56  ;;  %2302 = vperm.xlu1 %5750, %v5515_v47   ;;  %2297 = vperm.xlu0 %5749, %v5514_v48   ;;  %v5521_v47 = vld [vmem:[%s5820_s17 + $0xa9] sm:$0x3f]  ;;  %v5520_v48 = vld [vmem:[%s5820_s17 + $0xa1] sm:$0xff] }
 0x1ed   : > { %v6414_v15 = vpop.permute.xlu1 %1882  ;;  %v6416_v16 = vpop.permute.xlu0 %1877 }
 0x1ee   : > { %12681 = vst [vmem:[#allocation125_spill] sm:$0xff] %v6414_v15  ;;  %12682 = vst [vmem:[#allocation126_spill] sm:$0xff] %v6416_v16  ;;  %2312 = vperm.xlu1 %5750, %v5517_v63   ;;  %2307 = vperm.xlu0 %5749, %v5516_v0   ;;  %v5523_v63 = vld [vmem:[%s5820_s17 + $0xb9] sm:$0x3f]  ;;  %v5522_v0 = vld [vmem:[%s5820_s17 + $0xb1] sm:$0xff] }
 0x1f1   : > { %v6420_v40 = vpop.permute.xlu1 %1892  ;;  %v6422_v55 = vpop.permute.xlu0 %1887 }
 0x1f2   : > { %12683 = vst [vmem:[#allocation127_spill] sm:$0xff] %v6420_v40  ;;  %12684 = vst [vmem:[#allocation128_spill] sm:$0xff] %v6422_v55  ;;  %2322 = vperm.xlu1 %5750, %v5519_v31   ;;  %2317 = vperm.xlu0 %5749, %v5518_v32   ;;  %v5525_v31 = vld [vmem:[%s5820_s17 + $0xc9] sm:$0x3f]  ;;  %v5524_v32 = vld [vmem:[%s5820_s17 + $0xc1] sm:$0xff] }
 0x1f5   : > { %v6426_v56 = vpop.permute.xlu1 %1902  ;;  %v6428_v15 = vpop.permute.xlu0 %1897 }
 0x1f6   : > { %12685 = vst [vmem:[#allocation129_spill] sm:$0xff] %v6426_v56  ;;  %12686 = vst [vmem:[#allocation130_spill] sm:$0xff] %v6428_v15  ;;  %2332 = vperm.xlu1 %5750, %v5521_v47   ;;  %2327 = vperm.xlu0 %5749, %v5520_v48   ;;  %v5527_v47 = vld [vmem:[%s5820_s17 + $0xd9] sm:$0x3f]  ;;  %v5526_v48 = vld [vmem:[%s5820_s17 + $0xd1] sm:$0xff] }
 0x1f9   : > { %v6432_v16 = vpop.permute.xlu1 %1912  ;;  %v6434_v40 = vpop.permute.xlu0 %1907 }
 0x1fa   : > { %12687 = vst [vmem:[#allocation131_spill] sm:$0xff] %v6432_v16  ;;  %12688 = vst [vmem:[#allocation132_spill] sm:$0xff] %v6434_v40  ;;  %2342 = vperm.xlu1 %5750, %v5523_v63   ;;  %2337 = vperm.xlu0 %5749, %v5522_v0   ;;  %v5529_v63 = vld [vmem:[%s5820_s17 + $0xe9] sm:$0x3f]  ;;  %v5528_v0 = vld [vmem:[%s5820_s17 + $0xe1] sm:$0xff] }
 0x1fd   : > { %v6438_v55 = vpop.permute.xlu1 %1922  ;;  %v6440_v56 = vpop.permute.xlu0 %1917 }
 0x1fe   : > { %12689 = vst [vmem:[#allocation133_spill] sm:$0xff] %v6438_v55  ;;  %12690 = vst [vmem:[#allocation134_spill] sm:$0xff] %v6440_v56  ;;  %2352 = vperm.xlu1 %5750, %v5525_v31   ;;  %2347 = vperm.xlu0 %5749, %v5524_v32   ;;  %v5307_v31 = vld [vmem:[%s5820_s17 + $0xf9] sm:$0x3f]  ;;  %v5306_v32 = vld [vmem:[%s5820_s17 + $0xf1] sm:$0xff] }
 0x201   : > { %v6444_v15 = vpop.permute.xlu1 %1932  ;;  %v6446_v16 = vpop.permute.xlu0 %1927 }
 0x202   : > { %12691 = vst [vmem:[#allocation135_spill] sm:$0xff] %v6444_v15  ;;  %12692 = vst [vmem:[#allocation136_spill] sm:$0xff] %v6446_v16  ;;  %2362 = vperm.xlu1 %5750, %v5527_v47   ;;  %2357 = vperm.xlu0 %5749, %v5526_v48   ;;  %v6461_v16 = vld [vmem:[%s12211_s1] ss:$0 sm:$0xff]  ;;  %v5309_v48 = vld [vmem:[%s5820_s17 + $0x109] sm:$0x3f] }
 0x203   : > { %12696 = vst [vmem:[#allocation140_spill] sm:$0xff] %v6461_v16  ;;  %v5308_v15 = vld [vmem:[%s5820_s17 + $0x101] sm:$0xff] }
 0x205   : > { %v6450_v40 = vpop.permute.xlu1 %1942  ;;  %v6452_v55 = vpop.permute.xlu0 %1937 }
 0x206   : > { %12693 = vst [vmem:[#allocation137_spill] sm:$0xff] %v6450_v40  ;;  %12694 = vst [vmem:[#allocation138_spill] sm:$0xff] %v6452_v55  ;;  %2372 = vperm.xlu1 %5750, %v5529_v63   ;;  %2367 = vperm.xlu0 %5749, %v5528_v0   ;;  %v781_v55 = vmul.f32 %v6461_v16, %v5886_v1  ;;  %v779_v63 = vmul.f32 %v6461_v16, %v5888_v2 }
 0x207   : > { %v782_v0 = vmul.f32 %v6461_v16, %v5892_v5  ;;  %v6483_v1 = vmul.f32 %v6461_v16, %v5904_v13  ;;  %v6487_v2 = vmul.f32 %v6461_v16, %v5906_v14  ;;  %v6505_v13 = vmul.f32 %v6461_v16, %v5918_v22  ;;  %v6510_v14 = vld [vmem:[%s12211_s1 + $0x1] ss:$0 sm:$0xff] }
 0x208   : > { %v6527_v22 = vmul.f32 %v6461_v16, %v5930_v30 }
 0x209   : > { %v6456_v56 = vpop.permute.xlu1 %1952  ;;  %v6463_v47 = vpop.permute.xlu0 %1947 }
 0x20a   : > { %12695 = vst [vmem:[#allocation139_spill] sm:$0xff] %v6456_v56  ;;  %12697 = vst [vmem:[#allocation141_spill] sm:$0xff] %v6463_v47  ;;  %2554 = vperm.xlu1 %5750, %v5307_v31   ;;  %2549 = vperm.xlu0 %5749, %v5306_v32   ;;  %v780_v56 = vmul.f32 %v6461_v16, %v5894_v6  ;;  %v784_v31 = vmul.f32 %v6461_v16, %v5898_v9 }
 0x20b   : > { %v783_v32 = vmul.f32 %v6461_v16, %v5900_v10  ;;  %v6493_v6 = vmul.f32 %v6461_v16, %v5910_v17  ;;  %v6497_v9 = vmul.f32 %v6461_v16, %v5912_v18  ;;  %v6501_v10 = vmul.f32 %v6461_v16, %v5916_v21  ;;  %v5311_v17 = vld [vmem:[%s5820_s17 + $0x119] sm:$0x3f] }
 0x20c   : > { %v6519_v18 = vmul.f32 %v6461_v16, %v5924_v26  ;;  %v6523_v21 = vmul.f32 %v6461_v16, %v5928_v29  ;;  %v6540_v26 = vmul.f32 %v6461_v16, %v5940_v37  ;;  %v6544_v29 = vmul.f32 %v6461_v16, %v5942_v38 }
 0x20d   : > { %v6475_v40 = vpop.permute.xlu1 %1962  ;;  %v6489_v5 = vpop.permute.xlu0 %1957  ;;  %v979_v37 = vmul.f32 %v6510_v14, %v5972_v58  ;;  %v6564_v38 = vmul.f32 %v6461_v16, %v5952_v45  ;;  %v6581_v45 = vmul.f32 %v6461_v16, %v5960_v50  ;;  %v984_v50 = vmul.f32 %v6510_v14, %v5982_v3 }
 0x20e   : > { %12698 = vst [vmem:[#allocation142_spill] sm:$0xff] %v6475_v40  ;;  %12699 = vst [vmem:[#allocation143_spill] sm:$0xff] %v6489_v5  ;;  %2564 = vperm.xlu1 %5750, %v5309_v48   ;;  %2559 = vperm.xlu0 %5749, %v5308_v15   ;;  %v6515_v48 = vmul.f32 %v6461_v16, %v5922_v25  ;;  %v5310_v5 = vld [vmem:[%s5820_s17 + $0x111] sm:$0xff]  ;;  %v6532_v15 = vmul.f32 %v6461_v16, %v5934_v33 }
 0x20f   : > { %v6536_v25 = vmul.f32 %v6461_v16, %v5936_v34  ;;  %v6550_v40 = vmul.f32 %v6461_v16, %v5946_v41  ;;  %v6554_v33 = vmul.f32 %v6461_v16, %v5948_v42  ;;  %v980_v34 = vmul.f32 %v6510_v14, %v5970_v57  ;;  %12704 = vst [vmem:[#allocation148_spill] sm:$0xff] %v6581_v45 }
 0x210   : > { %v6568_v41 = vmul.f32 %v6461_v16, %v5954_v46  ;;  %v982_v42 = vmul.f32 %v6510_v14, %v5976_v61  ;;  %v6585_v46 = vmul.f32 %v6461_v16, %v5964_v53  ;;  %v983_v53 = vmul.f32 %v6510_v14, %v5984_v4 }
 0x211   : > { %v6546_v30 = vpop.permute.xlu1 %1972  ;;  %12701 = vst [vmem:[#allocation145_spill] sm:$0xff] %v6554_v33  ;;  %v6560_v47 = vpop.permute.xlu0 %1967  ;;  %v5313_v33 = vld [vmem:[%s5820_s17 + $0x129] sm:$0x3f]  ;;  %v6620_v45 = vmul.f32 %v6461_v16, %v5976_v61  ;;  %v988_v61 = vmul.f32 %v6510_v14, %v5994_v19 }
 0x212   : > { %12700 = vst [vmem:[#allocation144_spill] sm:$0xff] %v6546_v30  ;;  %12702 = vst [vmem:[#allocation146_spill] sm:$0xff] %v6560_v47  ;;  %2574 = vperm.xlu1 %5750, %v5311_v17   ;;  %v981_v30 = vmul.f32 %v6510_v14, %v5978_v62  ;;  %2569 = vperm.xlu0 %5749, %v5310_v5   ;;  %v6577_v47 = vmul.f32 %v6461_v16, %v5958_v49 }
 0x213   : > { %12703 = vst [vmem:[#allocation147_spill] sm:$0xff] %v6568_v41  ;;  %12705 = vst [vmem:[#allocation149_spill] sm:$0xff] %v6585_v46  ;;  %v6589_v17 = vmul.f32 %v6461_v16, %v5966_v54  ;;  %v5312_v41 = vld [vmem:[%s5820_s17 + $0x121] sm:$0xff]  ;;  %v6594_v5 = vmul.f32 %v6461_v16, %v5970_v57  ;;  %v6598_v49 = vmul.f32 %v6461_v16, %v5972_v58 }
 0x214   : > { %v6606_v54 = vadd.f32 %v980_v34, %v780_v56  ;;  %v986_v57 = vmul.f32 %v6510_v14, %v5988_v11  ;;  %v985_v58 = vmul.f32 %v6510_v14, %v5990_v12  ;;  %v6622_v56 = vadd.f32 %v981_v30, %v781_v55  ;;  %v5315_v34 = vld [vmem:[%s5820_s17 + $0x139] sm:$0x3f]  ;;  %v5314_v30 = vld [vmem:[%s5820_s17 + $0x131] sm:$0xff] }
 0x215   : > { %12706 = vst [vmem:[#allocation150_spill] sm:$0xff] %v6589_v17  ;;  %12707 = vst [vmem:[#allocation151_spill] sm:$0xff] %v6594_v5  ;;  %v6604_v46 = vpop.permute.xlu1 %2042  ;;  %v6608_v17 = vadd.f32 %v979_v37, %v779_v63  ;;  %v6616_v5 = vadd.f32 %v982_v42, %v782_v0  ;;  %v6626_v63 = vmul.f32 %v6461_v16, %v5978_v62 }
 0x216   : > { %12708 = vst [vmem:[#allocation152_spill] sm:$0xff] %v6598_v49  ;;  %12709 = vst [vmem:[#allocation153_spill] sm:$0xff] %v6604_v46  ;;  %v6614_v49 = vpop.permute.xlu0 %2037  ;;  %2584 = vperm.xlu1 %5750, %v5313_v33   ;;  %2579 = vperm.xlu0 %5749, %v5312_v41   ;;  %v6631_v37 = vmul.f32 %v6461_v16, %v5982_v3  ;;  %v6635_v0 = vmul.f32 %v6461_v16, %v5984_v4 }
 0x217   : > { %12710 = vst [vmem:[#allocation154_spill] sm:$0xff] %v6614_v49  ;;  %v987_v55 = vmul.f32 %v6510_v14, %v5996_v20  ;;  %v6642_v33 = vadd.f32 %v984_v50, %v784_v31  ;;  %v6644_v62 = vadd.f32 %v983_v53, %v783_v32  ;;  %v990_v3 = vmul.f32 %v6510_v14, %v6000_v27 }
 0x218   : > { %v989_v41 = vmul.f32 %v6510_v14, %v6002_v28  ;;  %v6653_v42 = vadd.f32 %v986_v57, %v6483_v1  ;;  %v6657_v49 = vmul.f32 %v6461_v16, %v5988_v11  ;;  %v6660_v31 = vadd.f32 %v985_v58, %v6487_v2 }
 0x219   : > { %v6650_v4 = vpop.permute.xlu1 %2052  ;;  %v6664_v32 = vmul.f32 %v6461_v16, %v5990_v12  ;;  %v6670_v53 = vmul.f32 %v6461_v16, %v5994_v19  ;;  %v6674_v1 = vmul.f32 %v6461_v16, %v5996_v20  ;;  %v992_v11 = vmul.f32 %v6510_v14, %v6006_v35  ;;  %v5317_v12 = vld [vmem:[%s5820_s17 + $0x149] sm:$0x3f] }
 0x21a   : > { %12711 = vst [vmem:[#allocation155_spill] sm:$0xff] %v6650_v4  ;;  %v6666_v50 = vpop.permute.xlu0 %2047  ;;  %2594 = vperm.xlu1 %5750, %v5315_v34   ;;  %v991_v2 = vmul.f32 %v6510_v14, %v6008_v36  ;;  %2589 = vperm.xlu0 %5749, %v5314_v30   ;;  %v6682_v57 = vadd.f32 %v988_v61, %v6493_v6  ;;  %v5316_v34 = vld [vmem:[%s5820_s17 + $0x141] sm:$0xff] }
 0x21b   : > { %12712 = vst [vmem:[#allocation156_spill] sm:$0xff] %v6666_v50  ;;  %v6685_v58 = vadd.f32 %v987_v55, %v6497_v9  ;;  %v994_v19 = vmul.f32 %v6510_v14, %v6012_v43  ;;  %v993_v20 = vmul.f32 %v6510_v14, %v6014_v44  ;;  %v6693_v50 = vadd.f32 %v990_v3, %v6501_v10 }
 0x21c   : > { %v6697_v30 = vmul.f32 %v6461_v16, %v6000_v27  ;;  %v6700_v6 = vadd.f32 %v989_v41, %v6505_v13  ;;  %v6704_v9 = vmul.f32 %v6461_v16, %v6002_v28  ;;  %v6710_v55 = vmul.f32 %v6461_v16, %v6006_v35 }
 0x21d   : > { %v6706_v61 = vpop.permute.xlu1 %2062  ;;  %v6714_v10 = vmul.f32 %v6461_v16, %v6008_v36  ;;  %v996_v27 = vmul.f32 %v6510_v14, %v6018_v51  ;;  %v995_v13 = vmul.f32 %v6510_v14, %v6020_v52  ;;  %v6723_v28 = vadd.f32 %v992_v11, %v6515_v48  ;;  %v5318_v11 = vld [vmem:[%s5820_s17 + $0x151] sm:$0xff] }
 0x21e   : > { %12713 = vst [vmem:[#allocation157_spill] sm:$0xff] %v6706_v61  ;;  %v6720_v3 = vpop.permute.xlu0 %2057  ;;  %2604 = vperm.xlu1 %5750, %v5317_v12   ;;  %v6726_v35 = vadd.f32 %v991_v2, %v6519_v18  ;;  %v998_v41 = vmul.f32 %v6510_v14, %v6024_v59  ;;  %v997_v36 = vmul.f32 %v6510_v14, %v6026_v60  ;;  %v5319_v61 = vld [vmem:[%s5820_s17 + $0x159] sm:$0x3f] }
 0x21f   : > { %12714 = vst [vmem:[#allocation158_spill] sm:$0xff] %v6720_v3  ;;  %2599 = vperm.xlu0 %5749, %v5316_v34   ;;  %v6734_v4 = vadd.f32 %v994_v19, %v6523_v21  ;;  %v6738_v12 = vmul.f32 %v6461_v16, %v6012_v43  ;;  %v6741_v48 = vadd.f32 %v993_v20, %v6527_v22 }
 0x220   : > { %v6745_v18 = vmul.f32 %v6461_v16, %v6014_v44  ;;  %v6750_v2 = vmul.f32 %v6461_v16, %v6018_v51  ;;  %v6754_v21 = vmul.f32 %v6461_v16, %v6020_v52  ;;  %v1000_v43 = vmul.f32 %v6510_v14, %v6030_v7 }
 0x221   : > { %v999_v22 = vmul.f32 %v6510_v14, %v6032_v8  ;;  %v6760_v19 = vpop.permute.xlu1 %2072  ;;  %v6763_v44 = vadd.f32 %v996_v27, %v6532_v15  ;;  %v6766_v20 = vadd.f32 %v995_v13, %v6536_v25  ;;  %v1002_v51 = vmul.f32 %v6510_v14, %v6036_v23  ;;  %v5321_v13 = vld [vmem:[%s5820_s17 + $0x169] sm:$0x3f] }
 0x222   : > { %12715 = vst [vmem:[#allocation159_spill] sm:$0xff] %v6760_v19  ;;  %v1001_v52 = vmul.f32 %v6510_v14, %v6038_v24  ;;  %v6772_v34 = vpop.permute.xlu0 %2067  ;;  %2614 = vperm.xlu1 %5750, %v5319_v61   ;;  %v6775_v3 = vadd.f32 %v998_v41, %v6540_v26  ;;  %v6779_v15 = vmul.f32 %v6461_v16, %v6024_v59  ;;  %v12719_v61 = vld [vmem:[#allocation2_spill] sm:$0xff] }
 0x223   : > { %12716 = vst [vmem:[#allocation160_spill] sm:$0xff] %v6772_v34  ;;  %v6782_v25 = vadd.f32 %v997_v36, %v6544_v29  ;;  %v6786_v27 = vmul.f32 %v6461_v16, %v6026_v60  ;;  %2609 = vperm.xlu0 %5749, %v5318_v11   ;;  %v6791_v34 = vmul.f32 %v6461_v16, %v6030_v7  ;;  %v6804_v60 = vld [vmem:[%s12211_s1 + $0x2] ss:$0 sm:$0xff]  ;;  %v12721_v7 = vld [vmem:[#allocation145_spill] sm:$0xff] }
 0x224   : > { %v6795_v26 = vmul.f32 %v6461_v16, %v6032_v8  ;;  %v1004_v59 = vmul.f32 %v6510_v14, %v6042_v39  ;;  %v1003_v29 = vmul.f32 %v6510_v14, %v12719_v61  ;;  %v5320_v41 = vld [vmem:[%s5820_s17 + $0x161] sm:$0xff]  ;;  %v6808_v36 = vadd.f32 %v1000_v43, %v6550_v40 }
 0x225   : > { %12717 = vst [vmem:[#allocation161_spill] sm:$0xff] %v6791_v34  ;;  %v6811_v11 = vadd.f32 %v999_v22, %v12721_v7  ;;  %v6815_v8 = vmul.f32 %v6461_v16, %v6036_v23  ;;  %v6819_v19 = vmul.f32 %v6461_v16, %v6038_v24  ;;  %v6821_v46 = vpop.permute.xlu1 %2082  ;;  %v12727_v34 = vld [vmem:[#allocation147_spill] sm:$0xff]  ;;  %v12730_v7 = vld [vmem:[#allocation4_spill] sm:$0xff]  ;;  %v6837_v24 = vmul.f32 %v6461_v16, %v6042_v39  ;;  %v12738_v39 = vld [vmem:[#allocation6_spill] sm:$0xff] }
 0x226   : > { %12718 = vst [vmem:[#allocation162_spill] sm:$0xff] %v6795_v26  ;;  %12720 = vst [vmem:[#allocation2_spill] sm:$0xff] %v6808_v36  ;;  %v6824_v26 = vadd.f32 %v1002_v51, %v6564_v38  ;;  %v6827_v40 = vadd.f32 %v1001_v52, %v12727_v34  ;;  %v12729_v43 = vld [vmem:[#allocation3_spill] sm:$0xff]  ;;  %v1005_v23 = vmul.f32 %v6510_v14, %v12730_v7  ;;  %2624 = vperm.xlu1 %5750, %v5321_v13   ;;  %v12734_v51 = vld [vmem:[#allocation5_spill] sm:$0xff] }
 0x227   : > { %12722 = vst [vmem:[#allocation145_spill] sm:$0xff] %v6811_v11  ;;  %12723 = vst [vmem:[#allocation163_spill] sm:$0xff] %v6815_v8  ;;  %v1006_v22 = vmul.f32 %v6510_v14, %v12729_v43  ;;  %v6833_v8 = vpop.permute.xlu0 %2077  ;;  %v6841_v38 = vmul.f32 %v6461_v16, %v12719_v61  ;;  %v1180_v52 = vmul.f32 %v6804_v60, %v12734_v51  ;;  %2619 = vperm.xlu0 %5749, %v5320_v41   ;;  %v12736_v13 = vld [vmem:[#allocation148_spill] sm:$0xff] }
 0x228   : > { %12724 = vst [vmem:[#allocation164_spill] sm:$0xff] %v6819_v19  ;;  %12725 = vst [vmem:[#allocation165_spill] sm:$0xff] %v6821_v46  ;;  %v2492_v34 = vmul.f32 %v6510_v14, %v12734_v51  ;;  %v5323_v46 = vld [vmem:[%s5820_s17 + $0x179] sm:$0x3f]  ;;  %v6849_v19 = vadd.f32 %v1004_v59, %v6577_v47  ;;  %v2491_v61 = vmul.f32 %v6510_v14, %v12738_v39  ;;  %v12740_v51 = vld [vmem:[#allocation8_spill] sm:$0xff] }
 0x229   : > { %12726 = vst [vmem:[#allocation166_spill] sm:$0xff] %v6824_v26  ;;  %12728 = vst [vmem:[#allocation147_spill] sm:$0xff] %v6827_v40  ;;  %v12739_v40 = vld [vmem:[#allocation7_spill] sm:$0xff]  ;;  %v1181_v47 = vmul.f32 %v6804_v60, %v12740_v51  ;;  %v2493_v59 = vmul.f32 %v6510_v14, %v12740_v51  ;;  %v6886_v51 = vadd.f32 %v1180_v52, %v6606_v54 }
 0x22a   : > { %12731 = vst [vmem:[#allocation3_spill] sm:$0xff] %v6833_v8  ;;  %12732 = vst [vmem:[#allocation4_spill] sm:$0xff] %v6837_v24  ;;  %v6852_v8 = vadd.f32 %v1003_v29, %v12736_v13  ;;  %v1179_v24 = vmul.f32 %v6804_v60, %v12738_v39  ;;  %v1182_v26 = vmul.f32 %v6804_v60, %v12739_v40  ;;  %v6867_v29 = vpop.permute.xlu1 %2092  ;;  %v12742_v13 = vld [vmem:[#allocation149_spill] sm:$0xff]  ;;  %2634 = vperm.xlu1 %5750, %v5323_v46   ;;  %v12750_v46 = vld [vmem:[#allocation10_spill] sm:$0xff] }
 0x22b   : > { %12733 = vst [vmem:[#allocation167_spill] sm:$0xff] %v6841_v38  ;;  %12735 = vst [vmem:[#allocation5_spill] sm:$0xff] %v6849_v19  ;;  %v5322_v38 = vld [vmem:[%s5820_s17 + $0x171] sm:$0xff]  ;;  %v2494_v41 = vmul.f32 %v6510_v14, %v12739_v40  ;;  %v6874_v39 = vmul.f32 %v6461_v16, %v12729_v43  ;;  %v12743_v19 = vld [vmem:[#allocation150_spill] sm:$0xff]  ;;  %v6881_v40 = vmul.f32 %v6461_v16, %v12730_v7  ;;  %v6883_v36 = vpop.permute.xlu0 %2087 }
 0x22c   : > { %12737 = vst [vmem:[#allocation148_spill] sm:$0xff] %v6852_v8  ;;  %12741 = vst [vmem:[#allocation6_spill] sm:$0xff] %v6867_v29  ;;  %v6870_v8 = vadd.f32 %v1006_v22, %v12742_v13  ;;  %v6877_v11 = vadd.f32 %v1005_v23, %v12743_v19  ;;  %v12745_v22 = vld [vmem:[#allocation151_spill] sm:$0xff]  ;;  %v12747_v29 = vld [vmem:[#allocation9_spill] sm:$0xff]  ;;  %2629 = vperm.xlu0 %5749, %v5322_v38   ;;  %v6897_v7 = vadd.f32 %v1179_v24, %v6608_v17 }
 0x22d   : > { %12744 = vst [vmem:[#allocation7_spill] sm:$0xff] %v6883_v36  ;;  %v6889_v13 = vadd.f32 %v2492_v34, %v12745_v22  ;;  %v1184_v43 = vmul.f32 %v6804_v60, %v12747_v29  ;;  %v2496_v19 = vmul.f32 %v6510_v14, %v12747_v29  ;;  %v5325_v23 = vld [vmem:[%s5820_s17 + $0x189] sm:$0x3f]  ;;  %v12748_v16 = vld [vmem:[#allocation152_spill] sm:$0xff]  ;;  %v1183_v54 = vmul.f32 %v6804_v60, %v12750_v46  ;;  %v5324_v34 = vld [vmem:[%s5820_s17 + $0x181] sm:$0xff] }
 0x22e   : > { %v6900_v36 = vadd.f32 %v2491_v61, %v12748_v16  ;;  %v2495_v52 = vmul.f32 %v6510_v14, %v12750_v46  ;;  %v6908_v22 = vadd.f32 %v1182_v26, %v6616_v5  ;;  %v6911_v38 = vadd.f32 %v2494_v41, %v6620_v45  ;;  %v6919_v24 = vpop.permute.xlu1 %2102  ;;  %v12754_v61 = vld [vmem:[#allocation11_spill] sm:$0xff]  ;;  %v12755_v26 = vld [vmem:[#allocation12_spill] sm:$0xff]  ;;  %2644 = vperm.xlu1 %5750, %v5325_v23   ;;  %v12760_v23 = vld [vmem:[#allocation14_spill] sm:$0xff] }
 0x22f   : > { %12746 = vst [vmem:[#allocation8_spill] sm:$0xff] %v6889_v13  ;;  %v6914_v17 = vadd.f32 %v1181_v47, %v6622_v56  ;;  %v6917_v16 = vadd.f32 %v2493_v59, %v6626_v63  ;;  %12753 = vst [vmem:[#allocation9_spill] sm:$0xff] %v6919_v24  ;;  %v1186_v29 = vmul.f32 %v6804_v60, %v12754_v61  ;;  %v6929_v56 = vpop.permute.xlu0 %2097  ;;  %v12758_v47 = vld [vmem:[#allocation13_spill] sm:$0xff] }
 0x230   : > { %12749 = vst [vmem:[#allocation149_spill] sm:$0xff] %v6900_v36  ;;  %12751 = vst [vmem:[#allocation150_spill] sm:$0xff] %v6911_v38  ;;  %v2498_v5 = vmul.f32 %v6510_v14, %v12754_v61  ;;  %v1185_v46 = vmul.f32 %v6804_v60, %v12755_v26  ;;  %v2497_v45 = vmul.f32 %v6510_v14, %v12755_v26  ;;  %2639 = vperm.xlu0 %5749, %v5324_v34  }
 0x231   : > { %12752 = vst [vmem:[#allocation151_spill] sm:$0xff] %v6917_v16  ;;  %12756 = vst [vmem:[#allocation152_spill] sm:$0xff] %v6929_v56  ;;  %v6932_v63 = vadd.f32 %v1184_v43, %v6642_v33  ;;  %v6935_v41 = vadd.f32 %v2496_v19, %v6631_v37  ;;  %v1188_v59 = vmul.f32 %v6804_v60, %v12758_v47  ;;  %v5327_v16 = vld [vmem:[%s5820_s17 + $0x199] sm:$0x3f]  ;;  %v5326_v43 = vld [vmem:[%s5820_s17 + $0x191] sm:$0xff] }
 0x232   : > { %v2500_v61 = vmul.f32 %v6510_v14, %v12758_v47  ;;  %v6943_v38 = vadd.f32 %v1183_v54, %v6644_v62  ;;  %v6946_v26 = vadd.f32 %v2495_v52, %v6635_v0  ;;  %v1187_v33 = vmul.f32 %v6804_v60, %v12760_v23  ;;  %v12761_v19 = vld [vmem:[#allocation15_spill] sm:$0xff]  ;;  %v12762_v47 = vld [vmem:[#allocation16_spill] sm:$0xff]  ;;  %v6961_v54 = vpop.permute.xlu1 %2112  ;;  %2654 = vperm.xlu1 %5750, %v5327_v16   ;;  %v12770_v16 = vld [vmem:[#allocation18_spill] sm:$0xff] }
 0x233   : > { %12757 = vst [vmem:[#allocation10_spill] sm:$0xff] %v6935_v41  ;;  %v2499_v37 = vmul.f32 %v6510_v14, %v12760_v23  ;;  %v1190_v41 = vmul.f32 %v6804_v60, %v12761_v19  ;;  %v2502_v34 = vmul.f32 %v6510_v14, %v12761_v19  ;;  %v1189_v62 = vmul.f32 %v6804_v60, %v12762_v47  ;;  %v6975_v36 = vpop.permute.xlu0 %2107 }
 0x234   : > { %12759 = vst [vmem:[#allocation11_spill] sm:$0xff] %v6946_v26  ;;  %v2501_v0 = vmul.f32 %v6510_v14, %v12762_v47  ;;  %12763 = vst [vmem:[#allocation12_spill] sm:$0xff] %v6961_v54  ;;  %v6964_v52 = vadd.f32 %v1186_v29, %v6653_v42  ;;  %v6967_v23 = vadd.f32 %v2498_v5, %v6657_v49  ;;  %v12768_v42 = vld [vmem:[#allocation17_spill] sm:$0xff]  ;;  %2649 = vperm.xlu0 %5749, %v5326_v43  }
 0x235   : > { %v6970_v26 = vadd.f32 %v1185_v46, %v6660_v31  ;;  %v6973_v19 = vadd.f32 %v2497_v45, %v6664_v32  ;;  %12766 = vst [vmem:[#allocation15_spill] sm:$0xff] %v6975_v36  ;;  %v6978_v47 = vadd.f32 %v1188_v59, %v6682_v57  ;;  %v6981_v13 = vadd.f32 %v2500_v61, %v6670_v53  ;;  %v5329_v31 = vld [vmem:[%s5820_s17 + $0x1a9] sm:$0x3f]  ;;  %v5328_v46 = vld [vmem:[%s5820_s17 + $0x1a1] sm:$0xff] }
 0x236   : > { %12764 = vst [vmem:[#allocation13_spill] sm:$0xff] %v6967_v23  ;;  %v1192_v29 = vmul.f32 %v6804_v60, %v12768_v42  ;;  %v2504_v49 = vmul.f32 %v6510_v14, %v12768_v42  ;;  %v6989_v32 = vadd.f32 %v1187_v33, %v6685_v58  ;;  %v6992_v5 = vadd.f32 %v2499_v37, %v6674_v1  ;;  %v7011_v61 = vpop.permute.xlu1 %2122  ;;  %v12774_v33 = vld [vmem:[#allocation19_spill] sm:$0xff] }
 0x237   : > { %12765 = vst [vmem:[#allocation14_spill] sm:$0xff] %v6973_v19  ;;  %12767 = vst [vmem:[#allocation16_spill] sm:$0xff] %v6981_v13  ;;  %v1191_v57 = vmul.f32 %v6804_v60, %v12770_v16  ;;  %v2503_v53 = vmul.f32 %v6510_v14, %v12770_v16  ;;  %v7000_v45 = vadd.f32 %v1190_v41, %v6693_v50  ;;  %v12775_v41 = vld [vmem:[#allocation20_spill] sm:$0xff]  ;;  %2664 = vperm.xlu1 %5750, %v5329_v31   ;;  %v5331_v16 = vld [vmem:[%s5820_s17 + $0x1b9] sm:$0x3f] }
 0x238   : > { %12769 = vst [vmem:[#allocation17_spill] sm:$0xff] %v6992_v5  ;;  %v7003_v59 = vadd.f32 %v2502_v34, %v6697_v30  ;;  %v7006_v58 = vadd.f32 %v1189_v62, %v6700_v6  ;;  %v7009_v1 = vadd.f32 %v2501_v0, %v6704_v9  ;;  %12773 = vst [vmem:[#allocation169_spill] sm:$0xff] %v7011_v61  ;;  %v7021_v6 = vpop.permute.xlu0 %2117  ;;  %v12778_v62 = vld [vmem:[#allocation21_spill] sm:$0xff]  ;;  %2659 = vperm.xlu0 %5749, %v5328_v46   ;;  %v12780_v31 = vld [vmem:[#allocation22_spill] sm:$0xff] }
 0x239   : > { %v1194_v37 = vmul.f32 %v6804_v60, %v12774_v33  ;;  %v2506_v50 = vmul.f32 %v6510_v14, %v12774_v33  ;;  %v1193_v43 = vmul.f32 %v6804_v60, %v12775_v41  ;;  %v2505_v30 = vmul.f32 %v6510_v14, %v12775_v41  ;;  %12776 = vst [vmem:[#allocation19_spill] sm:$0xff] %v7021_v6  ;;  %v12811_v5 = vld [vmem:[#allocation147_spill] sm:$0xff]  ;;  %v12812_v19 = vld [vmem:[#allocation164_spill] sm:$0xff] }
 0x23a   : > { %12771 = vst [vmem:[#allocation18_spill] sm:$0xff] %v7003_v59  ;;  %12772 = vst [vmem:[#allocation168_spill] sm:$0xff] %v7009_v1  ;;  %v7024_v9 = vadd.f32 %v1192_v29, %v6723_v28  ;;  %v7027_v34 = vadd.f32 %v2504_v49, %v6710_v55  ;;  %v1196_v0 = vmul.f32 %v6804_v60, %v12778_v62  ;;  %v5330_v29 = vld [vmem:[%s5820_s17 + $0x1b1] sm:$0xff]  ;;  %v12781_v49 = vld [vmem:[#allocation23_spill] sm:$0xff] }
 0x23b   : > { %v2508_v42 = vmul.f32 %v6510_v14, %v12778_v62  ;;  %v7035_v33 = vadd.f32 %v1191_v57, %v6726_v35  ;;  %v7038_v41 = vadd.f32 %v2503_v53, %v6714_v10  ;;  %v1195_v28 = vmul.f32 %v6804_v60, %v12780_v31  ;;  %v12782_v62 = vld [vmem:[#allocation24_spill] sm:$0xff]  ;;  %v7053_v57 = vpop.permute.xlu1 %2132  ;;  %2674 = vperm.xlu1 %5750, %v5331_v16  }
 0x23c   : > { %12777 = vst [vmem:[#allocation20_spill] sm:$0xff] %v7027_v34  ;;  %v2507_v55 = vmul.f32 %v6510_v14, %v12780_v31  ;;  %v1198_v34 = vmul.f32 %v6804_v60, %v12781_v49  ;;  %v2510_v46 = vmul.f32 %v6510_v14, %v12781_v49  ;;  %v1197_v35 = vmul.f32 %v6804_v60, %v12782_v62  ;;  %v7067_v1 = vpop.permute.xlu0 %2127  ;;  %v12843_v6 = vld [vmem:[#allocation48_spill] sm:$0xff] }
 0x23d   : > { %12779 = vst [vmem:[#allocation21_spill] sm:$0xff] %v7038_v41  ;;  %v2509_v10 = vmul.f32 %v6510_v14, %v12782_v62  ;;  %12783 = vst [vmem:[#allocation22_spill] sm:$0xff] %v7053_v57  ;;  %v7056_v53 = vadd.f32 %v1194_v37, %v6734_v4  ;;  %v7059_v31 = vadd.f32 %v2506_v50, %v6738_v12  ;;  %v12788_v4 = vld [vmem:[#allocation25_spill] sm:$0xff]  ;;  %2669 = vperm.xlu0 %5749, %v5330_v29  }
 0x23e   : > { %v7062_v41 = vadd.f32 %v1193_v43, %v6741_v48  ;;  %v7065_v49 = vadd.f32 %v2505_v30, %v6745_v18  ;;  %12786 = vst [vmem:[#allocation170_spill] sm:$0xff] %v7067_v1  ;;  %v7070_v62 = vadd.f32 %v1196_v0, %v6763_v44  ;;  %v7073_v59 = vadd.f32 %v2508_v42, %v6750_v2  ;;  %v5333_v48 = vld [vmem:[%s5820_s17 + $0x1c9] sm:$0x3f]  ;;  %v12790_v43 = vld [vmem:[#allocation26_spill] sm:$0xff] }
 0x23f   : > { %12784 = vst [vmem:[#allocation23_spill] sm:$0xff] %v7059_v31  ;;  %v1200_v37 = vmul.f32 %v6804_v60, %v12788_v4  ;;  %v2512_v12 = vmul.f32 %v6510_v14, %v12788_v4  ;;  %v7081_v18 = vadd.f32 %v1195_v28, %v6766_v20  ;;  %v7084_v50 = vadd.f32 %v2507_v55, %v6754_v21  ;;  %v5332_v30 = vld [vmem:[%s5820_s17 + $0x1c1] sm:$0xff]  ;;  %v7103_v16 = vpop.permute.xlu1 %2142  ;;  %v12800_v4 = vld [vmem:[#allocation29_spill] sm:$0xff] }
 0x240   : > { %12785 = vst [vmem:[#allocation24_spill] sm:$0xff] %v7065_v49  ;;  %12787 = vst [vmem:[#allocation171_spill] sm:$0xff] %v7073_v59  ;;  %v1199_v44 = vmul.f32 %v6804_v60, %v12790_v43  ;;  %v2511_v2 = vmul.f32 %v6510_v14, %v12790_v43  ;;  %v7092_v0 = vadd.f32 %v1198_v34, %v6775_v3  ;;  %v12794_v28 = vld [vmem:[#allocation27_spill] sm:$0xff]  ;;  %v12795_v3 = vld [vmem:[#allocation28_spill] sm:$0xff]  ;;  %2684 = vperm.xlu1 %5750, %v5333_v48  }
 0x241   : > { %12789 = vst [vmem:[#allocation25_spill] sm:$0xff] %v7084_v50  ;;  %v7095_v42 = vadd.f32 %v2510_v46, %v6779_v15  ;;  %v7098_v20 = vadd.f32 %v1197_v35, %v6782_v25  ;;  %v7101_v21 = vadd.f32 %v2509_v10, %v6786_v27  ;;  %12793 = vst [vmem:[#allocation173_spill] sm:$0xff] %v7103_v16  ;;  %v7113_v25 = vpop.permute.xlu0 %2137  ;;  %v12797_v27 = vld [vmem:[#allocation2_spill] sm:$0xff]  ;;  %v12798_v35 = vld [vmem:[#allocation161_spill] sm:$0xff]  ;;  %2679 = vperm.xlu0 %5749, %v5332_v30  }
 0x242   : > { %v1202_v55 = vmul.f32 %v6804_v60, %v12794_v28  ;;  %v2514_v29 = vmul.f32 %v6510_v14, %v12794_v28  ;;  %v1201_v34 = vmul.f32 %v6804_v60, %v12795_v3  ;;  %v2513_v15 = vmul.f32 %v6510_v14, %v12795_v3  ;;  %12796 = vst [vmem:[#allocation27_spill] sm:$0xff] %v7113_v25  ;;  %v12802_v3 = vld [vmem:[#allocation162_spill] sm:$0xff]  ;;  %v12805_v30 = vld [vmem:[#allocation31_spill] sm:$0xff] }
 0x243   : > { %12791 = vst [vmem:[#allocation26_spill] sm:$0xff] %v7095_v42  ;;  %12792 = vst [vmem:[#allocation172_spill] sm:$0xff] %v7101_v21  ;;  %v7116_v46 = vadd.f32 %v1200_v37, %v12797_v27  ;;  %v7119_v10 = vadd.f32 %v2512_v12, %v12798_v35  ;;  %v1204_v43 = vmul.f32 %v6804_v60, %v12800_v4  ;;  %v5419_v21 = vld [vmem:[%s5820_s17 + $0x2d9] sm:$0x3f]  ;;  %v12804_v48 = vld [vmem:[#allocation30_spill] sm:$0xff] }
 0x244   : > { %v2516_v28 = vmul.f32 %v6510_v14, %v12800_v4  ;;  %v12801_v42 = vld [vmem:[#allocation145_spill] sm:$0xff]  ;;  %v7130_v59 = vadd.f32 %v2511_v2, %v12802_v3  ;;  %v1203_v37 = vmul.f32 %v6804_v60, %v12804_v48  ;;  %v2515_v12 = vmul.f32 %v6510_v14, %v12804_v48  ;;  %v7139_v27 = vld [vmem:[%s12211_s1 + $0x3] ss:$0 sm:$0xff]  ;;  %v12806_v2 = vld [vmem:[#allocation32_spill] sm:$0xff]  ;;  %v7150_v48 = vpop.permute.xlu1 %2152  ;;  %2862 = vperm.xlu1 %5750, %v5419_v21  }
 0x245   : > { %12799 = vst [vmem:[#allocation28_spill] sm:$0xff] %v7119_v10  ;;  %v7127_v50 = vadd.f32 %v1199_v44, %v12801_v42  ;;  %v5418_v35 = vld [vmem:[%s5820_s17 + $0x2d1] sm:$0xff]  ;;  %v1206_v4 = vmul.f32 %v6804_v60, %v12805_v30  ;;  %v2518_v44 = vmul.f32 %v6510_v14, %v12805_v30  ;;  %v1205_v42 = vmul.f32 %v6804_v60, %v12806_v2  ;;  %v12809_v49 = vld [vmem:[#allocation163_spill] sm:$0xff]  ;;  %v7164_v23 = vpop.permute.xlu0 %2147 }
 0x246   : > { %12803 = vst [vmem:[#allocation2_spill] sm:$0xff] %v7130_v59  ;;  %v2517_v3 = vmul.f32 %v6510_v14, %v12806_v2  ;;  %12807 = vst [vmem:[#allocation161_spill] sm:$0xff] %v7150_v48  ;;  %v12808_v59 = vld [vmem:[#allocation166_spill] sm:$0xff]  ;;  %v7156_v31 = vadd.f32 %v2514_v29, %v12809_v49  ;;  %v7159_v13 = vadd.f32 %v1201_v34, %v12811_v5  ;;  %v12815_v60 = vld [vmem:[#allocation5_spill] sm:$0xff]  ;;  %2857 = vperm.xlu0 %5749, %v5418_v35  }
 0x247   : > { %v7153_v10 = vadd.f32 %v1202_v55, %v12808_v59  ;;  %v7162_v30 = vadd.f32 %v2513_v15, %v12812_v19  ;;  %12814 = vst [vmem:[#allocation162_spill] sm:$0xff] %v7164_v23  ;;  %v7167_v2 = vadd.f32 %v1204_v43, %v12815_v60  ;;  %v12816_v48 = vld [vmem:[#allocation4_spill] sm:$0xff]  ;;  %v12818_v59 = vld [vmem:[#allocation33_spill] sm:$0xff]  ;;  %v12819_v49 = vld [vmem:[#allocation34_spill] sm:$0xff]  ;;  %v7192_v35 = vadd.f32 %v2518_v44, %v6874_v39 }
 0x248   : > { %12810 = vst [vmem:[#allocation29_spill] sm:$0xff] %v7156_v31  ;;  %v7170_v25 = vadd.f32 %v2516_v28, %v12816_v48  ;;  %v1380_v55 = vmul.f32 %v7139_v27, %v12818_v59  ;;  %v1379_v29 = vmul.f32 %v7139_v27, %v12819_v49  ;;  %v5421_v5 = vld [vmem:[%s5820_s17 + $0x2e9] sm:$0x3f]  ;;  %v12820_v34 = vld [vmem:[#allocation148_spill] sm:$0xff]  ;;  %v5420_v48 = vld [vmem:[%s5820_s17 + $0x2e1] sm:$0xff] }
 0x249   : > { %12813 = vst [vmem:[#allocation145_spill] sm:$0xff] %v7162_v30  ;;  %v7178_v19 = vadd.f32 %v1203_v37, %v12820_v34  ;;  %v12821_v15 = vld [vmem:[#allocation167_spill] sm:$0xff]  ;;  %v12824_v60 = vld [vmem:[#allocation36_spill] sm:$0xff]  ;;  %12825 = vst [vmem:[#allocation32_spill] sm:$0xff] %v7192_v35  ;;  %v7195_v37 = vadd.f32 %v1205_v42, %v6877_v11  ;;  %v7200_v34 = vpop.permute.xlu1 %2162  ;;  %v7214_v42 = vpop.permute.xlu0 %2157  ;;  %2872 = vperm.xlu1 %5750, %v5421_v5  }
 0x24a   : > { %12817 = vst [vmem:[#allocation30_spill] sm:$0xff] %v7170_v25  ;;  %v7181_v30 = vadd.f32 %v2515_v12, %v12821_v15  ;;  %v12823_v21 = vld [vmem:[#allocation35_spill] sm:$0xff]  ;;  %v1381_v28 = vmul.f32 %v7139_v27, %v12824_v60  ;;  %v7189_v25 = vadd.f32 %v1206_v4, %v6870_v8  ;;  %v7198_v12 = vadd.f32 %v2517_v3, %v6881_v40  ;;  %v12828_v15 = vld [vmem:[#allocation140_spill] sm:$0xff]  ;;  %v12829_v4 = vld [vmem:[#allocation37_spill] sm:$0xff] }
 0x24b   : > { %v1382_v43 = vmul.f32 %v7139_v27, %v12823_v21  ;;  %12827 = vst [vmem:[#allocation163_spill] sm:$0xff] %v7200_v34  ;;  %v7208_v8 = vmul.f32 %v12828_v15, %v12819_v49  ;;  %v1384_v39 = vmul.f32 %v7139_v27, %v12829_v4  ;;  %v12830_v44 = vld [vmem:[#allocation38_spill] sm:$0xff]  ;;  %12831 = vst [vmem:[#allocation147_spill] sm:$0xff] %v7214_v42  ;;  %v12833_v49 = vld [vmem:[#allocation40_spill] sm:$0xff]  ;;  %2867 = vperm.xlu0 %5749, %v5420_v48  }
 0x24c   : > { %12822 = vst [vmem:[#allocation31_spill] sm:$0xff] %v7181_v30  ;;  %12826 = vst [vmem:[#allocation166_spill] sm:$0xff] %v7198_v12  ;;  %v7204_v30 = vmul.f32 %v12828_v15, %v12818_v59  ;;  %v1383_v11 = vmul.f32 %v7139_v27, %v12830_v44  ;;  %v7217_v40 = vadd.f32 %v1380_v55, %v6886_v51  ;;  %v12832_v59 = vld [vmem:[#allocation39_spill] sm:$0xff]  ;;  %v5423_v31 = vld [vmem:[%s5820_s17 + $0x2f9] sm:$0x3f] }
 0x24d   : > { %v7220_v3 = vadd.f32 %v1379_v29, %v6897_v7  ;;  %v1386_v12 = vmul.f32 %v7139_v27, %v12832_v59  ;;  %v1385_v35 = vmul.f32 %v7139_v27, %v12833_v49  ;;  %v7228_v34 = vadd.f32 %v1382_v43, %v6908_v22  ;;  %v5422_v55 = vld [vmem:[%s5820_s17 + $0x2f1] sm:$0xff]  ;;  %v12835_v48 = vld [vmem:[#allocation42_spill] sm:$0xff]  ;;  %v12837_v42 = vld [vmem:[#allocation43_spill] sm:$0xff]  ;;  %v7266_v1 = vpop.permute.xlu0 %2167  ;;  %2882 = vperm.xlu1 %5750, %v5423_v31  }
 0x24e   : > { %v7232_v5 = vmul.f32 %v12828_v15, %v12823_v21  ;;  %v7235_v51 = vadd.f32 %v1381_v28, %v6914_v17  ;;  %v7239_v7 = vmul.f32 %v12828_v15, %v12824_v60  ;;  %v7244_v29 = vmul.f32 %v12828_v15, %v12829_v4  ;;  %v12834_v43 = vld [vmem:[#allocation41_spill] sm:$0xff]  ;;  %v7254_v28 = vpop.permute.xlu1 %2172  ;;  %12839 = vst [vmem:[#allocation5_spill] sm:$0xff] %v7266_v1 }
 0x24f   : > { %v7248_v22 = vmul.f32 %v12828_v15, %v12830_v44  ;;  %v1388_v21 = vmul.f32 %v7139_v27, %v12834_v43  ;;  %v1387_v17 = vmul.f32 %v7139_v27, %v12835_v48  ;;  %12836 = vst [vmem:[#allocation164_spill] sm:$0xff] %v7254_v28  ;;  %v7257_v60 = vadd.f32 %v1384_v39, %v6932_v63  ;;  %v12838_v44 = vld [vmem:[#allocation44_spill] sm:$0xff]  ;;  %v12840_v31 = vld [vmem:[#allocation45_spill] sm:$0xff] }
 0x250   : > { %v7260_v4 = vadd.f32 %v1383_v11, %v6943_v38  ;;  %v1390_v23 = vmul.f32 %v7139_v27, %v12837_v42  ;;  %v1389_v16 = vmul.f32 %v7139_v27, %v12838_v44  ;;  %v7269_v57 = vadd.f32 %v1386_v12, %v6964_v52  ;;  %2877 = vperm.xlu0 %5749, %v5422_v55   ;;  %v5425_v11 = vld [vmem:[%s5820_s17 + $0x309] sm:$0x3f] }
 0x251   : > { %v7273_v63 = vmul.f32 %v12828_v15, %v12832_v59  ;;  %v7276_v39 = vadd.f32 %v1385_v35, %v6970_v26  ;;  %v7280_v38 = vmul.f32 %v12828_v15, %v12833_v49  ;;  %v7285_v1 = vmul.f32 %v12828_v15, %v12834_v43  ;;  %v12841_v59 = vld [vmem:[#allocation46_spill] sm:$0xff]  ;;  %v12842_v43 = vld [vmem:[#allocation47_spill] sm:$0xff]  ;;  %2892 = vperm.xlu1 %5750, %v5425_v11  }
 0x252   : > { %v7289_v52 = vmul.f32 %v12828_v15, %v12835_v48  ;;  %v1392_v12 = vmul.f32 %v7139_v27, %v12840_v31  ;;  %v1391_v26 = vmul.f32 %v7139_v27, %v12841_v59  ;;  %v5424_v35 = vld [vmem:[%s5820_s17 + $0x301] sm:$0xff]  ;;  %v7297_v49 = vadd.f32 %v1388_v21, %v6978_v47  ;;  %v7306_v61 = vpop.permute.xlu1 %2242 }
 0x253   : > { %v7300_v55 = vadd.f32 %v1387_v17, %v6989_v32  ;;  %v1394_v28 = vmul.f32 %v7139_v27, %v12842_v43  ;;  %v1393_v48 = vmul.f32 %v7139_v27, %v12843_v6  ;;  %12844 = vst [vmem:[#allocation4_spill] sm:$0xff] %v7306_v61  ;;  %v7309_v36 = vadd.f32 %v1390_v23, %v7000_v45  ;;  %v7322_v17 = vpop.permute.xlu0 %2237  ;;  %v12846_v45 = vld [vmem:[#allocation49_spill] sm:$0xff] }
 0x254   : > { %v7313_v47 = vmul.f32 %v12828_v15, %v12837_v42  ;;  %v7316_v21 = vadd.f32 %v1389_v16, %v7006_v58  ;;  %v7320_v32 = vmul.f32 %v12828_v15, %v12838_v44  ;;  %12845 = vst [vmem:[#allocation33_spill] sm:$0xff] %v7322_v17  ;;  %v7326_v61 = vmul.f32 %v12828_v15, %v12840_v31  ;;  %v12847_v58 = vld [vmem:[#allocation50_spill] sm:$0xff]  ;;  %v5427_v44 = vld [vmem:[%s5820_s17 + $0x319] sm:$0x3f]  ;;  %v5426_v17 = vld [vmem:[%s5820_s17 + $0x311] sm:$0xff] }
 0x255   : > { %v7330_v23 = vmul.f32 %v12828_v15, %v12841_v59  ;;  %v1396_v42 = vmul.f32 %v7139_v27, %v12846_v45  ;;  %v1395_v16 = vmul.f32 %v7139_v27, %v12847_v58  ;;  %2887 = vperm.xlu0 %5749, %v5424_v35   ;;  %v7338_v54 = vadd.f32 %v1392_v12, %v7024_v9  ;;  %v12852_v9 = vld [vmem:[#allocation51_spill] sm:$0xff]  ;;  %v12853_v12 = vld [vmem:[#allocation52_spill] sm:$0xff] }
 0x256   : > { %v7341_v11 = vadd.f32 %v1391_v26, %v7035_v33  ;;  %v7345_v31 = vmul.f32 %v12828_v15, %v12842_v43  ;;  %v7349_v59 = vmul.f32 %v12828_v15, %v12843_v6  ;;  %v7353_v56 = vadd.f32 %v1394_v28, %v7056_v53  ;;  %v7362_v43 = vpop.permute.xlu1 %2252  ;;  %v12857_v28 = vld [vmem:[#allocation53_spill] sm:$0xff]  ;;  %2902 = vperm.xlu1 %5750, %v5427_v44  }
 0x257   : > { %v7356_v35 = vadd.f32 %v1393_v48, %v7062_v41  ;;  %v1398_v33 = vmul.f32 %v7139_v27, %v12852_v9  ;;  %v1397_v26 = vmul.f32 %v7139_v27, %v12853_v12  ;;  %12854 = vst [vmem:[#allocation36_spill] sm:$0xff] %v7362_v43  ;;  %v7366_v6 = vmul.f32 %v12828_v15, %v12846_v45  ;;  %v12858_v48 = vld [vmem:[#allocation54_spill] sm:$0xff] }
 0x258   : > { %12848 = vst [vmem:[#allocation34_spill] sm:$0xff] %v7345_v31  ;;  %12849 = vst [vmem:[#allocation148_spill] sm:$0xff] %v7349_v59  ;;  %v7370_v53 = vmul.f32 %v12828_v15, %v12847_v58  ;;  %v1400_v41 = vmul.f32 %v7139_v27, %v12857_v28  ;;  %v1399_v24 = vmul.f32 %v7139_v27, %v12858_v48  ;;  %v7376_v59 = vpop.permute.xlu0 %2247  ;;  %v12862_v58 = vld [vmem:[#allocation56_spill] sm:$0xff]  ;;  %v5429_v31 = vld [vmem:[%s5820_s17 + $0x329] sm:$0x3f] }
 0x259   : > { %12850 = vst [vmem:[#allocation167_spill] sm:$0xff] %v7353_v56  ;;  %12851 = vst [vmem:[#allocation35_spill] sm:$0xff] %v7356_v35  ;;  %v7379_v43 = vadd.f32 %v1396_v42, %v7070_v62  ;;  %v7382_v45 = vadd.f32 %v1395_v16, %v7081_v18  ;;  %2897 = vperm.xlu0 %5749, %v5426_v17   ;;  %v7391_v56 = vmul.f32 %v12828_v15, %v12852_v9  ;;  %v12865_v62 = vld [vmem:[#allocation57_spill] sm:$0xff]  ;;  %v12866_v42 = vld [vmem:[#allocation58_spill] sm:$0xff] }
 0x25a   : > { %12855 = vst [vmem:[#allocation140_spill] sm:$0xff] %v7366_v6  ;;  %12856 = vst [vmem:[#allocation37_spill] sm:$0xff] %v7370_v53  ;;  %v12861_v6 = vld [vmem:[#allocation55_spill] sm:$0xff]  ;;  %v1401_v53 = vmul.f32 %v7139_v27, %v12862_v58  ;;  %v7395_v44 = vmul.f32 %v12828_v15, %v12853_v12  ;;  %v1404_v18 = vmul.f32 %v7139_v27, %v12865_v62  ;;  %2912 = vperm.xlu1 %5750, %v5429_v31  }
 0x25b   : > { %12859 = vst [vmem:[#allocation38_spill] sm:$0xff] %v7376_v59  ;;  %12860 = vst [vmem:[#allocation39_spill] sm:$0xff] %v7382_v45  ;;  %v1402_v35 = vmul.f32 %v7139_v27, %v12861_v6  ;;  %v1403_v16 = vmul.f32 %v7139_v27, %v12866_v42  ;;  %v5428_v59 = vld [vmem:[%s5820_s17 + $0x321] sm:$0xff]  ;;  %v7403_v45 = vadd.f32 %v1398_v33, %v7092_v0 }
 0x25c   : > { %12863 = vst [vmem:[#allocation40_spill] sm:$0xff] %v7391_v56  ;;  %12864 = vst [vmem:[#allocation41_spill] sm:$0xff] %v7395_v44  ;;  %v7406_v17 = vadd.f32 %v1397_v26, %v7098_v20  ;;  %v7410_v9 = vmul.f32 %v12828_v15, %v12857_v28  ;;  %v7414_v12 = vmul.f32 %v12828_v15, %v12858_v48  ;;  %v7416_v44 = vpop.permute.xlu1 %2262  ;;  %v12870_v33 = vld [vmem:[#allocation59_spill] sm:$0xff]  ;;  %v12871_v26 = vld [vmem:[#allocation60_spill] sm:$0xff] }
 0x25d   : > { %12868 = vst [vmem:[#allocation43_spill] sm:$0xff] %v7416_v44  ;;  %v7419_v56 = vadd.f32 %v1400_v41, %v7116_v46  ;;  %v7422_v0 = vadd.f32 %v1399_v24, %v7127_v50  ;;  %v1406_v20 = vmul.f32 %v7139_v27, %v12870_v33  ;;  %v1405_v28 = vmul.f32 %v7139_v27, %v12871_v26  ;;  %v7431_v48 = vld [vmem:[%s12211_s1 + $0x4] ss:$0 sm:$0xff]  ;;  %v5431_v44 = vld [vmem:[%s5820_s17 + $0x339] sm:$0x3f] }
 0x25e   : > { %12867 = vst [vmem:[#allocation42_spill] sm:$0xff] %v7414_v12  ;;  %v7433_v12 = vpop.permute.xlu0 %2257  ;;  %v7436_v46 = vadd.f32 %v1402_v35, %v7153_v10  ;;  %v7440_v24 = vmul.f32 %v12828_v15, %v12861_v6  ;;  %v7443_v50 = vadd.f32 %v1401_v53, %v7159_v13  ;;  %v7447_v41 = vmul.f32 %v12828_v15, %v12862_v58  ;;  %v5430_v35 = vld [vmem:[%s5820_s17 + $0x331] sm:$0xff]  ;;  %v12875_v53 = vld [vmem:[#allocation62_spill] sm:$0xff] }
 0x25f   : > { %12869 = vst [vmem:[#allocation44_spill] sm:$0xff] %v7422_v0  ;;  %12872 = vst [vmem:[#allocation45_spill] sm:$0xff] %v7433_v12  ;;  %2907 = vperm.xlu0 %5749, %v5428_v59   ;;  %v7451_v0 = vadd.f32 %v1404_v18, %v7167_v2  ;;  %v7455_v10 = vmul.f32 %v12828_v15, %v12865_v62  ;;  %v7458_v31 = vadd.f32 %v1403_v16, %v7178_v19  ;;  %v12874_v6 = vld [vmem:[#allocation61_spill] sm:$0xff] }
 0x260   : > { %v7462_v13 = vmul.f32 %v12828_v15, %v12866_v42  ;;  %v1580_v59 = vmul.f32 %v7431_v48, %v12874_v6  ;;  %v3416_v2 = vmul.f32 %v6510_v14, %v12874_v6  ;;  %v1579_v58 = vmul.f32 %v7431_v48, %v12875_v53  ;;  %v7473_v19 = vpop.permute.xlu1 %2272  ;;  %2922 = vperm.xlu1 %5750, %v5431_v44  }
 0x261   : > { %v3415_v62 = vmul.f32 %v6510_v14, %v12875_v53  ;;  %12876 = vst [vmem:[#allocation47_spill] sm:$0xff] %v7473_v19  ;;  %v7476_v18 = vadd.f32 %v1406_v20, %v7189_v25  ;;  %v7480_v42 = vmul.f32 %v12828_v15, %v12870_v33  ;;  %v7483_v16 = vadd.f32 %v1405_v28, %v7195_v37  ;;  %v5433_v33 = vld [vmem:[%s5820_s17 + $0x349] sm:$0x3f] }
 0x262   : > { %12873 = vst [vmem:[#allocation46_spill] sm:$0xff] %v7462_v13  ;;  %v7487_v12 = vmul.f32 %v12828_v15, %v12871_v26  ;;  %v7489_v13 = vpop.permute.xlu0 %2267  ;;  %v7493_v19 = vmul.f32 %v12828_v15, %v12874_v6  ;;  %v7497_v25 = vmul.f32 %v12828_v15, %v12875_v53  ;;  %v7502_v37 = vmul.f32 %v7139_v27, %v12874_v6  ;;  %v12884_v26 = vld [vmem:[#allocation63_spill] sm:$0xff] }
 0x263   : > { %12877 = vst [vmem:[#allocation48_spill] sm:$0xff] %v7483_v16  ;;  %12879 = vst [vmem:[#allocation50_spill] sm:$0xff] %v7489_v13  ;;  %2917 = vperm.xlu0 %5749, %v5430_v35   ;;  %v7506_v20 = vmul.f32 %v7139_v27, %v12875_v53  ;;  %v1582_v44 = vmul.f32 %v7431_v48, %v12884_v26  ;;  %v3418_v28 = vmul.f32 %v6510_v14, %v12884_v26  ;;  %v12885_v13 = vld [vmem:[#allocation64_spill] sm:$0xff] }
 0x264   : > { %12878 = vst [vmem:[#allocation49_spill] sm:$0xff] %v7487_v12  ;;  %12880 = vst [vmem:[#allocation51_spill] sm:$0xff] %v7493_v19  ;;  %v1581_v19 = vmul.f32 %v7431_v48, %v12885_v13  ;;  %v3417_v35 = vmul.f32 %v6510_v14, %v12885_v13  ;;  %v7518_v6 = vadd.f32 %v3416_v2, %v7204_v30  ;;  %v7529_v12 = vpop.permute.xlu1 %2282  ;;  %2932 = vperm.xlu1 %5750, %v5433_v33  }
 0x265   : > { %12881 = vst [vmem:[#allocation52_spill] sm:$0xff] %v7497_v25  ;;  %12882 = vst [vmem:[#allocation53_spill] sm:$0xff] %v7502_v37  ;;  %v5432_v25 = vld [vmem:[%s5820_s17 + $0x341] sm:$0xff]  ;;  %v7521_v53 = vadd.f32 %v1580_v59, %v7217_v40  ;;  %v7527_v37 = vadd.f32 %v3415_v62, %v7208_v8  ;;  %v7533_v16 = vmul.f32 %v12828_v15, %v12884_v26 }
 0x266   : > { %12883 = vst [vmem:[#allocation54_spill] sm:$0xff] %v7506_v20  ;;  %v7524_v20 = vadd.f32 %v1579_v58, %v7220_v3  ;;  %12886 = vst [vmem:[#allocation55_spill] sm:$0xff] %v7529_v12  ;;  %v7537_v30 = vmul.f32 %v12828_v15, %v12885_v13  ;;  %v7539_v2 = vpop.permute.xlu0 %2277  ;;  %v7543_v40 = vmul.f32 %v7139_v27, %v12884_v26  ;;  %v12892_v3 = vld [vmem:[#allocation65_spill] sm:$0xff]  ;;  %v12893_v62 = vld [vmem:[#allocation66_spill] sm:$0xff] }
 0x267   : > { %12887 = vst [vmem:[#allocation56_spill] sm:$0xff] %v7533_v16  ;;  %12889 = vst [vmem:[#allocation58_spill] sm:$0xff] %v7539_v2  ;;  %v7547_v8 = vmul.f32 %v7139_v27, %v12885_v13  ;;  %v1584_v59 = vmul.f32 %v7431_v48, %v12892_v3  ;;  %v3420_v58 = vmul.f32 %v6510_v14, %v12892_v3  ;;  %2927 = vperm.xlu0 %5749, %v5432_v25   ;;  %v5435_v2 = vld [vmem:[%s5820_s17 + $0x359] sm:$0x3f] }
 0x268   : > { %12888 = vst [vmem:[#allocation57_spill] sm:$0xff] %v7537_v30  ;;  %12890 = vst [vmem:[#allocation59_spill] sm:$0xff] %v7543_v40  ;;  %v1583_v12 = vmul.f32 %v7431_v48, %v12893_v62  ;;  %v3419_v33 = vmul.f32 %v6510_v14, %v12893_v62  ;;  %v7559_v26 = vadd.f32 %v1582_v44, %v7228_v34  ;;  %v5434_v30 = vld [vmem:[%s5820_s17 + $0x351] sm:$0xff]  ;;  %v7579_v34 = vpop.permute.xlu1 %2292  ;;  %2942 = vperm.xlu1 %5750, %v5435_v2  }
 0x269   : > { %12891 = vst [vmem:[#allocation60_spill] sm:$0xff] %v7547_v8  ;;  %v7562_v13 = vadd.f32 %v3418_v28, %v7232_v5  ;;  %v7565_v8 = vadd.f32 %v1581_v19, %v7235_v51  ;;  %v7568_v40 = vadd.f32 %v3417_v35, %v7239_v7  ;;  %v7573_v16 = vmul.f32 %v12828_v15, %v12892_v3  ;;  %v12900_v7 = vld [vmem:[#allocation67_spill] sm:$0xff]  ;;  %v12901_v28 = vld [vmem:[#allocation68_spill] sm:$0xff] }
 0x26a   : > { %v7577_v25 = vmul.f32 %v12828_v15, %v12893_v62  ;;  %12897 = vst [vmem:[#allocation64_spill] sm:$0xff] %v7579_v34  ;;  %v7583_v5 = vmul.f32 %v7139_v27, %v12892_v3  ;;  %v7587_v51 = vmul.f32 %v7139_v27, %v12893_v62  ;;  %v1586_v19 = vmul.f32 %v7431_v48, %v12900_v7 }
 0x26b   : > { %12894 = vst [vmem:[#allocation61_spill] sm:$0xff] %v7568_v40  ;;  %12895 = vst [vmem:[#allocation62_spill] sm:$0xff] %v7573_v16  ;;  %v3422_v44 = vmul.f32 %v6510_v14, %v12900_v7  ;;  %v1585_v35 = vmul.f32 %v7431_v48, %v12901_v28  ;;  %v3421_v34 = vmul.f32 %v6510_v14, %v12901_v28  ;;  %2937 = vperm.xlu0 %5749, %v5434_v30   ;;  %v5437_v16 = vld [vmem:[%s5820_s17 + $0x369] sm:$0x3f] }
 0x26c   : > { %12896 = vst [vmem:[#allocation63_spill] sm:$0xff] %v7577_v25  ;;  %12898 = vst [vmem:[#allocation65_spill] sm:$0xff] %v7583_v5  ;;  %v7597_v25 = vpop.permute.xlu0 %2287  ;;  %v7600_v3 = vadd.f32 %v1584_v59, %v7257_v60  ;;  %v7603_v62 = vadd.f32 %v3420_v58, %v7244_v29  ;;  %v7609_v5 = vadd.f32 %v3419_v33, %v7248_v22  ;;  %v5436_v60 = vld [vmem:[%s5820_s17 + $0x361] sm:$0xff]  ;;  %2952 = vperm.xlu1 %5750, %v5437_v16  }
 0x26d   : > { %12899 = vst [vmem:[#allocation66_spill] sm:$0xff] %v7587_v51  ;;  %12902 = vst [vmem:[#allocation67_spill] sm:$0xff] %v7597_v25  ;;  %v7606_v51 = vadd.f32 %v1583_v12, %v7260_v4  ;;  %v7614_v40 = vmul.f32 %v12828_v15, %v12900_v7  ;;  %v7618_v2 = vmul.f32 %v12828_v15, %v12901_v28  ;;  %v12907_v4 = vld [vmem:[#allocation69_spill] sm:$0xff]  ;;  %v12908_v59 = vld [vmem:[#allocation70_spill] sm:$0xff]  ;;  %v7637_v25 = vpop.permute.xlu1 %2302 }
 0x26e   : > { %v7623_v29 = vmul.f32 %v7139_v27, %v12900_v7  ;;  %v7627_v22 = vmul.f32 %v7139_v27, %v12901_v28  ;;  %v1588_v12 = vmul.f32 %v7431_v48, %v12907_v4  ;;  %v3424_v30 = vmul.f32 %v6510_v14, %v12907_v4  ;;  %12909 = vst [vmem:[#allocation69_spill] sm:$0xff] %v7637_v25  ;;  %v7696_v25 = vld [vmem:[%s12211_s1] ss:$0 sm:$0xff] }
 0x26f   : > { %12903 = vst [vmem:[#allocation68_spill] sm:$0xff] %v7614_v40  ;;  %12904 = vst [vmem:[#allocation174_spill] sm:$0xff] %v7618_v2  ;;  %v1587_v58 = vmul.f32 %v7431_v48, %v12908_v59  ;;  %v3423_v33 = vmul.f32 %v6510_v14, %v12908_v59  ;;  %v7640_v7 = vadd.f32 %v1586_v19, %v7269_v57  ;;  %2947 = vperm.xlu0 %5749, %v5436_v60   ;;  %v5438_v60 = vld [vmem:[%s5820_s17 + $0x371] sm:$0xff] }
 0x270   : > { %12905 = vst [vmem:[#allocation175_spill] sm:$0xff] %v7623_v29  ;;  %12906 = vst [vmem:[#allocation176_spill] sm:$0xff] %v7627_v22  ;;  %v7643_v28 = vadd.f32 %v3422_v44, %v7273_v63  ;;  %v7646_v22 = vadd.f32 %v1585_v35, %v7276_v39  ;;  %v7649_v29 = vadd.f32 %v3421_v34, %v7280_v38  ;;  %v7651_v2 = vpop.permute.xlu0 %2297  ;;  %v5439_v63 = vld [vmem:[%s5820_s17 + $0x379] sm:$0x3f]  ;;  %v12914_v34 = vld [vmem:[#allocation71_spill] sm:$0xff] }
 0x271   : > { %12910 = vst [vmem:[#allocation70_spill] sm:$0xff] %v7651_v2  ;;  %v7655_v40 = vmul.f32 %v12828_v15, %v12907_v4  ;;  %v7659_v57 = vmul.f32 %v12828_v15, %v12908_v59  ;;  %v7664_v39 = vmul.f32 %v7139_v27, %v12907_v4  ;;  %v7668_v38 = vmul.f32 %v7139_v27, %v12908_v59  ;;  %v12915_v44 = vld [vmem:[#allocation72_spill] sm:$0xff]  ;;  %v7691_v2 = vpop.permute.xlu1 %2312 }
 0x272   : > { %v1590_v16 = vmul.f32 %v7431_v48, %v12914_v34  ;;  %v3426_v19 = vmul.f32 %v6510_v14, %v12914_v34  ;;  %v1589_v15 = vmul.f32 %v7431_v48, %v12915_v44  ;;  %v3425_v35 = vmul.f32 %v6510_v14, %v12915_v44  ;;  %12916 = vst [vmem:[#allocation71_spill] sm:$0xff] %v7691_v2  ;;  %v12923_v2 = vld [vmem:[#allocation74_spill] sm:$0xff] }
 0x273   : > { %12911 = vst [vmem:[#allocation177_spill] sm:$0xff] %v7659_v57  ;;  %12912 = vst [vmem:[#allocation178_spill] sm:$0xff] %v7664_v39  ;;  %v7680_v4 = vadd.f32 %v1588_v12, %v7297_v49  ;;  %v7683_v39 = vadd.f32 %v3424_v30, %v7285_v1  ;;  %v7686_v59 = vadd.f32 %v1587_v58, %v7300_v55  ;;  %2962 = vperm.xlu1 %5750, %v5439_v63   ;;  %v12922_v30 = vld [vmem:[#allocation73_spill] sm:$0xff] }
 0x274   : > { %12913 = vst [vmem:[#allocation179_spill] sm:$0xff] %v7668_v38  ;;  %v7689_v38 = vadd.f32 %v3423_v33, %v7289_v52  ;;  %v7700_v49 = vmul.f32 %v7696_v25, %v12914_v34  ;;  %v7704_v1 = vmul.f32 %v7696_v25, %v12915_v44  ;;  %v7706_v55 = vpop.permute.xlu0 %2307  ;;  %v7710_v52 = vmul.f32 %v7139_v27, %v12914_v34 }
 0x275   : > { %12919 = vst [vmem:[#allocation181_spill] sm:$0xff] %v7706_v55  ;;  %v7714_v12 = vmul.f32 %v7139_v27, %v12915_v44  ;;  %v1592_v58 = vmul.f32 %v7431_v48, %v12922_v30  ;;  %v3428_v33 = vmul.f32 %v6510_v14, %v12922_v30  ;;  %v3427_v63 = vmul.f32 %v6510_v14, %v12923_v2  ;;  %v5441_v55 = vld [vmem:[%s5820_s17 + $0x389] sm:$0x3f] }
 0x276   : > { %12917 = vst [vmem:[#allocation72_spill] sm:$0xff] %v7700_v49  ;;  %12918 = vst [vmem:[#allocation180_spill] sm:$0xff] %v7704_v1  ;;  %v1591_v1 = vmul.f32 %v7431_v48, %v12923_v2  ;;  %2957 = vperm.xlu0 %5749, %v5438_v60   ;;  %v7726_v34 = vadd.f32 %v1590_v16, %v7309_v36  ;;  %v7729_v44 = vadd.f32 %v3426_v19, %v7313_v47  ;;  %v5440_v49 = vld [vmem:[%s5820_s17 + $0x381] sm:$0xff]  ;;  %v7746_v36 = vpop.permute.xlu1 %2322 }
 0x277   : > { %12920 = vst [vmem:[#allocation182_spill] sm:$0xff] %v7710_v52  ;;  %12921 = vst [vmem:[#allocation183_spill] sm:$0xff] %v7714_v12  ;;  %v7732_v12 = vadd.f32 %v1589_v15, %v7316_v21  ;;  %v7735_v52 = vadd.f32 %v3425_v35, %v7320_v32  ;;  %v7740_v57 = vmul.f32 %v7696_v25, %v12922_v30  ;;  %v12930_v32 = vld [vmem:[#allocation75_spill] sm:$0xff]  ;;  %v7761_v19 = vld [vmem:[%s12211_s1 + $0x1] ss:$0 sm:$0xff]  ;;  %2972 = vperm.xlu1 %5750, %v5441_v55  }
 0x278   : > { %v7744_v14 = vmul.f32 %v7696_v25, %v12923_v2  ;;  %12927 = vst [vmem:[#allocation185_spill] sm:$0xff] %v7746_v36  ;;  %v7750_v47 = vmul.f32 %v7139_v27, %v12922_v30  ;;  %v7754_v21 = vmul.f32 %v7139_v27, %v12923_v2  ;;  %v1594_v16 = vmul.f32 %v7431_v48, %v12930_v32  ;;  %v12931_v35 = vld [vmem:[#allocation76_spill] sm:$0xff]  ;;  %v7769_v2 = vpop.permute.xlu0 %2317 }
 0x279   : > { %12924 = vst [vmem:[#allocation73_spill] sm:$0xff] %v7735_v52  ;;  %12925 = vst [vmem:[#allocation74_spill] sm:$0xff] %v7740_v57  ;;  %v3430_v15 = vmul.f32 %v7761_v19, %v12930_v32  ;;  %v1593_v60 = vmul.f32 %v7431_v48, %v12931_v35  ;;  %v3429_v30 = vmul.f32 %v7761_v19, %v12931_v35  ;;  %v5443_v57 = vld [vmem:[%s5820_s17 + $0x399] sm:$0x3f] }
 0x27a   : > { %12926 = vst [vmem:[#allocation184_spill] sm:$0xff] %v7744_v14  ;;  %12928 = vst [vmem:[#allocation186_spill] sm:$0xff] %v7750_v47  ;;  %v7775_v47 = vadd.f32 %v3428_v33, %v7326_v61  ;;  %v7778_v36 = vadd.f32 %v1591_v1, %v7341_v11  ;;  %v7781_v14 = vadd.f32 %v3427_v63, %v7330_v23  ;;  %2967 = vperm.xlu0 %5749, %v5440_v49   ;;  %v12941_v11 = vld [vmem:[#allocation77_spill] sm:$0xff] }
 0x27b   : > { %12929 = vst [vmem:[#allocation187_spill] sm:$0xff] %v7754_v21  ;;  %12932 = vst [vmem:[#allocation75_spill] sm:$0xff] %v7769_v2  ;;  %v7772_v21 = vadd.f32 %v1592_v58, %v7338_v54  ;;  %v7786_v52 = vmul.f32 %v7696_v25, %v12930_v32  ;;  %v7790_v55 = vmul.f32 %v7696_v25, %v12931_v35  ;;  %v5442_v54 = vld [vmem:[%s5820_s17 + $0x391] sm:$0xff]  ;;  %v12942_v58 = vld [vmem:[#allocation78_spill] sm:$0xff]  ;;  %v7809_v2 = vpop.permute.xlu1 %2332  ;;  %2982 = vperm.xlu1 %5750, %v5443_v57  }
 0x27c   : > { %12934 = vst [vmem:[#allocation188_spill] sm:$0xff] %v7775_v47  ;;  %12935 = vst [vmem:[#allocation189_spill] sm:$0xff] %v7778_v36  ;;  %v7795_v61 = vmul.f32 %v7139_v27, %v12930_v32  ;;  %v7799_v23 = vmul.f32 %v7139_v27, %v12931_v35  ;;  %v1596_v49 = vmul.f32 %v7431_v48, %v12941_v11  ;;  %v12944_v32 = vld [vmem:[#allocation167_spill] sm:$0xff]  ;;  %v7823_v47 = vpop.permute.xlu0 %2327 }
 0x27d   : > { %12933 = vst [vmem:[#allocation76_spill] sm:$0xff] %v7772_v21  ;;  %12936 = vst [vmem:[#allocation190_spill] sm:$0xff] %v7781_v14  ;;  %v3432_v1 = vmul.f32 %v7761_v19, %v12941_v11  ;;  %v1595_v33 = vmul.f32 %v7431_v48, %v12942_v58  ;;  %v3431_v63 = vmul.f32 %v7761_v19, %v12942_v58  ;;  %v12948_v14 = vld [vmem:[#allocation148_spill] sm:$0xff] }
 0x27e   : > { %12937 = vst [vmem:[#allocation191_spill] sm:$0xff] %v7786_v52  ;;  %12938 = vst [vmem:[#allocation192_spill] sm:$0xff] %v7790_v55  ;;  %v12945_v55 = vld [vmem:[#allocation34_spill] sm:$0xff]  ;;  %v7821_v36 = vadd.f32 %v3429_v30, %v12948_v14  ;;  %v7827_v21 = vmul.f32 %v7696_v25, %v12941_v11  ;;  %2977 = vperm.xlu0 %5749, %v5442_v54   ;;  %v7840_v14 = vmul.f32 %v7139_v27, %v12942_v58  ;;  %v12955_v30 = vld [vmem:[#allocation79_spill] sm:$0xff] }
 0x27f   : > { %12939 = vst [vmem:[#allocation193_spill] sm:$0xff] %v7795_v61  ;;  %12940 = vst [vmem:[#allocation194_spill] sm:$0xff] %v7799_v23  ;;  %v7812_v61 = vadd.f32 %v1594_v16, %v12944_v32  ;;  %v7815_v35 = vadd.f32 %v3430_v15, %v12945_v55  ;;  %v12946_v23 = vld [vmem:[#allocation35_spill] sm:$0xff]  ;;  %v7831_v16 = vmul.f32 %v7696_v25, %v12942_v58 }
 0x280   : > { %12943 = vst [vmem:[#allocation77_spill] sm:$0xff] %v7809_v2  ;;  %v7818_v52 = vadd.f32 %v1593_v60, %v12946_v23  ;;  %12949 = vst [vmem:[#allocation167_spill] sm:$0xff] %v7821_v36  ;;  %v5445_v15 = vld [vmem:[%s5820_s17 + $0x3a9] sm:$0x3f]  ;;  %v7836_v60 = vmul.f32 %v7139_v27, %v12941_v11  ;;  %v1598_v57 = vmul.f32 %v7431_v48, %v12955_v30  ;;  %v12956_v23 = vld [vmem:[#allocation80_spill] sm:$0xff]  ;;  %v7863_v36 = vpop.permute.xlu1 %2342 }
 0x281   : > { %12950 = vst [vmem:[#allocation34_spill] sm:$0xff] %v7823_v47  ;;  %12951 = vst [vmem:[#allocation35_spill] sm:$0xff] %v7827_v21  ;;  %v3434_v55 = vmul.f32 %v7761_v19, %v12955_v30  ;;  %v1597_v32 = vmul.f32 %v7431_v48, %v12956_v23  ;;  %v3433_v54 = vmul.f32 %v7761_v19, %v12956_v23  ;;  %v5444_v47 = vld [vmem:[%s5820_s17 + $0x3a1] sm:$0xff]  ;;  %2992 = vperm.xlu1 %5750, %v5445_v15  }
 0x282   : > { %12947 = vst [vmem:[#allocation78_spill] sm:$0xff] %v7818_v52  ;;  %12952 = vst [vmem:[#allocation148_spill] sm:$0xff] %v7831_v16  ;;  %v7852_v11 = vadd.f32 %v1596_v49, %v7379_v43  ;;  %v12959_v16 = vld [vmem:[#allocation37_spill] sm:$0xff]  ;;  %v7867_v52 = vmul.f32 %v7696_v25, %v12955_v30  ;;  %v7871_v43 = vmul.f32 %v7696_v25, %v12956_v23  ;;  %v7873_v49 = vpop.permute.xlu0 %2337  ;;  %2987 = vperm.xlu0 %5749, %v5444_v47  }
 0x283   : > { %12953 = vst [vmem:[#allocation195_spill] sm:$0xff] %v7836_v60  ;;  %12954 = vst [vmem:[#allocation196_spill] sm:$0xff] %v7840_v14  ;;  %v12957_v60 = vld [vmem:[#allocation140_spill] sm:$0xff]  ;;  %v12958_v14 = vld [vmem:[#allocation39_spill] sm:$0xff]  ;;  %v7861_v21 = vadd.f32 %v3431_v63, %v12959_v16 }
 0x284   : > { %v7855_v58 = vadd.f32 %v3432_v1, %v12957_v60  ;;  %v7858_v2 = vadd.f32 %v1595_v33, %v12958_v14  ;;  %12961 = vst [vmem:[#allocation80_spill] sm:$0xff] %v7863_v36  ;;  %12962 = vst [vmem:[#allocation140_spill] sm:$0xff] %v7867_v52  ;;  %v7877_v1 = vmul.f32 %v7139_v27, %v12955_v30  ;;  %v12967_v63 = vld [vmem:[#allocation81_spill] sm:$0xff]  ;;  %v12968_v14 = vld [vmem:[#allocation82_spill] sm:$0xff] }
 0x285   : > { %12960 = vst [vmem:[#allocation79_spill] sm:$0xff] %v7861_v21  ;;  %12963 = vst [vmem:[#allocation39_spill] sm:$0xff] %v7871_v43  ;;  %v7881_v33 = vmul.f32 %v7139_v27, %v12956_v23  ;;  %v1600_v16 = vmul.f32 %v7431_v48, %v12967_v63  ;;  %v3436_v60 = vmul.f32 %v7761_v19, %v12967_v63  ;;  %v12973_v43 = vld [vmem:[#allocation41_spill] sm:$0xff] }
 0x286   : > { %12964 = vst [vmem:[#allocation37_spill] sm:$0xff] %v7873_v49  ;;  %12965 = vst [vmem:[#allocation197_spill] sm:$0xff] %v7877_v1  ;;  %v1599_v36 = vmul.f32 %v7431_v48, %v12968_v14  ;;  %v3435_v15 = vmul.f32 %v7761_v19, %v12968_v14  ;;  %v5531_v49 = vld [vmem:[%s5820_s17 + $0x109] sm:$0x3f]  ;;  %v7893_v30 = vadd.f32 %v1598_v57, %v7403_v45  ;;  %v12970_v1 = vld [vmem:[#allocation40_spill] sm:$0xff]  ;;  %v7912_v45 = vpop.permute.xlu1 %2352 }
 0x287   : > { %12966 = vst [vmem:[#allocation198_spill] sm:$0xff] %v7881_v33  ;;  %v7896_v23 = vadd.f32 %v3434_v55, %v12970_v1  ;;  %v7899_v33 = vadd.f32 %v1597_v32, %v7406_v17  ;;  %v7902_v52 = vadd.f32 %v3433_v54, %v12973_v43  ;;  %v7906_v21 = vmul.f32 %v7696_v25, %v12967_v63  ;;  %v12980_v55 = vld [vmem:[#allocation83_spill] sm:$0xff]  ;;  %v12981_v43 = vld [vmem:[#allocation84_spill] sm:$0xff] }
 0x288   : > { %12969 = vst [vmem:[#allocation81_spill] sm:$0xff] %v7893_v30  ;;  %v7910_v47 = vmul.f32 %v7696_v25, %v12968_v14  ;;  %12977 = vst [vmem:[#allocation201_spill] sm:$0xff] %v7912_v45  ;;  %v7916_v57 = vmul.f32 %v7139_v27, %v12967_v63  ;;  %v7920_v17 = vmul.f32 %v7139_v27, %v12968_v14  ;;  %3170 = vperm.xlu1 %5750, %v5531_v49   ;;  %v12986_v49 = vld [vmem:[#allocation85_spill] sm:$0xff] }
 0x289   : > { %12971 = vst [vmem:[#allocation82_spill] sm:$0xff] %v7896_v23  ;;  %12972 = vst [vmem:[#allocation40_spill] sm:$0xff] %v7899_v33  ;;  %v1602_v32 = vmul.f32 %v7431_v48, %v12980_v55  ;;  %v3438_v54 = vmul.f32 %v7761_v19, %v12980_v55  ;;  %v1601_v1 = vmul.f32 %v7431_v48, %v12981_v43  ;;  %v5753_v33 = vld [vmem:[%s5820_s17 + $0x101] sm:$0xff]  ;;  %v5533_v23 = vld [vmem:[%s5820_s17 + $0x119] sm:$0x3f] }
 0x28a   : > { %12974 = vst [vmem:[#allocation41_spill] sm:$0xff] %v7902_v52  ;;  %12975 = vst [vmem:[#allocation199_spill] sm:$0xff] %v7906_v21  ;;  %v3437_v45 = vmul.f32 %v7761_v19, %v12981_v43  ;;  %v7933_v63 = vadd.f32 %v1600_v16, %v7419_v56  ;;  %v7936_v14 = vadd.f32 %v3436_v60, %v7410_v9  ;;  %v12984_v21 = vld [vmem:[#allocation42_spill] sm:$0xff]  ;;  %3165 = vperm.xlu0 %5749, %v5753_v33  }
 0x28b   : > { %12976 = vst [vmem:[#allocation200_spill] sm:$0xff] %v7910_v47  ;;  %12978 = vst [vmem:[#allocation202_spill] sm:$0xff] %v7916_v57  ;;  %v7930_v47 = vpop.permute.xlu0 %2347  ;;  %v7942_v52 = vadd.f32 %v3435_v15, %v12984_v21  ;;  %v7948_v30 = vmul.f32 %v7696_v25, %v12980_v55  ;;  %v1604_v56 = vmul.f32 %v7431_v48, %v12986_v49  ;;  %v12989_v33 = vld [vmem:[#allocation86_spill] sm:$0xff]  ;;  %v7966_v15 = vpop.permute.xlu1 %2362 }
 0x28c   : > { %12979 = vst [vmem:[#allocation203_spill] sm:$0xff] %v7920_v17  ;;  %12982 = vst [vmem:[#allocation83_spill] sm:$0xff] %v7930_v47  ;;  %v12983_v17 = vld [vmem:[#allocation44_spill] sm:$0xff]  ;;  %v3440_v9 = vmul.f32 %v7761_v19, %v12986_v49  ;;  %v7960_v21 = vmul.f32 %v7696_v25, %v12981_v43  ;;  %v1603_v16 = vmul.f32 %v7431_v48, %v12989_v33  ;;  %3180 = vperm.xlu1 %5750, %v5533_v23  }
 0x28d   : > { %v7939_v57 = vadd.f32 %v1599_v36, %v12983_v17  ;;  %12985 = vst [vmem:[#allocation84_spill] sm:$0xff] %v7948_v30  ;;  %v7956_v36 = vmul.f32 %v7139_v27, %v12980_v55  ;;  %v3439_v60 = vmul.f32 %v7761_v19, %v12989_v33  ;;  %12990 = vst [vmem:[#allocation85_spill] sm:$0xff] %v7966_v15 }
 0x28e   : > { %12988 = vst [vmem:[#allocation42_spill] sm:$0xff] %v7960_v21  ;;  %v7970_v17 = vmul.f32 %v7139_v27, %v12981_v43  ;;  %v7973_v55 = vadd.f32 %v1602_v32, %v7436_v46  ;;  %v7979_v47 = vadd.f32 %v1601_v1, %v7443_v50  ;;  %v7982_v21 = vadd.f32 %v3437_v45, %v7447_v41  ;;  %v5754_v50 = vld [vmem:[%s5820_s17 + $0x111] sm:$0xff]  ;;  %v5535_v41 = vld [vmem:[%s5820_s17 + $0x129] sm:$0x3f] }
 0x28f   : > { %12987 = vst [vmem:[#allocation44_spill] sm:$0xff] %v7956_v36  ;;  %v7976_v36 = vadd.f32 %v3438_v54, %v7440_v24  ;;  %v7984_v30 = vpop.permute.xlu0 %2357  ;;  %v7988_v15 = vmul.f32 %v7696_v25, %v12986_v49  ;;  %v7992_v46 = vmul.f32 %v7696_v25, %v12989_v33  ;;  %v7997_v24 = vld [vmem:[%s12211_s1 + $0x5] ss:$0 sm:$0xff]  ;;  %3175 = vperm.xlu0 %5749, %v5754_v50   ;;  %v12997_v32 = vld [vmem:[#allocation87_spill] sm:$0xff] }
 0x290   : > { %12991 = vst [vmem:[#allocation86_spill] sm:$0xff] %v7970_v17  ;;  %12992 = vst [vmem:[#allocation204_spill] sm:$0xff] %v7984_v30  ;;  %v8003_v45 = vmul.f32 %v7139_v27, %v12986_v49  ;;  %v8007_v23 = vmul.f32 %v7139_v27, %v12989_v33  ;;  %v1606_v54 = vmul.f32 %v7431_v48, %v12997_v32  ;;  %v12999_v17 = vld [vmem:[#allocation88_spill] sm:$0xff]  ;;  %3190 = vperm.xlu1 %5750, %v5535_v41  }
 0x291   : > { %12993 = vst [vmem:[#allocation205_spill] sm:$0xff] %v7988_v15  ;;  %12994 = vst [vmem:[#allocation206_spill] sm:$0xff] %v7992_v46  ;;  %v3442_v43 = vmul.f32 %v7761_v19, %v12997_v32  ;;  %v8014_v1 = vadd.f32 %v1604_v56, %v7451_v0  ;;  %v8017_v50 = vadd.f32 %v3440_v9, %v7455_v10  ;;  %v8029_v46 = vpop.permute.xlu1 %2372  ;;  %v13005_v10 = vld [vmem:[#allocation89_spill] sm:$0xff]  ;;  %v8040_v9 = vld [vmem:[%s12211_s1 + $0x2] ss:$0 sm:$0xff] }
 0x292   : > { %12995 = vst [vmem:[#allocation207_spill] sm:$0xff] %v8003_v45  ;;  %12996 = vst [vmem:[#allocation208_spill] sm:$0xff] %v8007_v23  ;;  %v1605_v49 = vmul.f32 %v7431_v48, %v12999_v17  ;;  %v3441_v33 = vmul.f32 %v7761_v19, %v12999_v17  ;;  %v8024_v23 = vadd.f32 %v1603_v16, %v7458_v31  ;;  %v13001_v45 = vld [vmem:[#allocation46_spill] sm:$0xff] }
 0x293   : > { %12998 = vst [vmem:[#allocation87_spill] sm:$0xff] %v8017_v50  ;;  %v8027_v30 = vadd.f32 %v3439_v60, %v13001_v45  ;;  %13003 = vst [vmem:[#allocation209_spill] sm:$0xff] %v8029_v46  ;;  %v8033_v0 = vmul.f32 %v7696_v25, %v12997_v32  ;;  %v1780_v56 = vmul.f32 %v7997_v24, %v13005_v10  ;;  %v8044_v16 = vpop.permute.xlu0 %2367 }
 0x294   : > { %13000 = vst [vmem:[#allocation88_spill] sm:$0xff] %v8024_v23  ;;  %v3472_v31 = vmul.f32 %v8040_v9, %v13005_v10  ;;  %13006 = vst [vmem:[#allocation89_spill] sm:$0xff] %v8044_v16  ;;  %v8048_v60 = vmul.f32 %v7139_v27, %v12997_v32  ;;  %v8052_v45 = vmul.f32 %v7696_v25, %v12999_v17  ;;  %v5537_v23 = vld [vmem:[%s5820_s17 + $0x139] sm:$0x3f] }
 0x295   : > { %13002 = vst [vmem:[#allocation46_spill] sm:$0xff] %v8027_v30  ;;  %13004 = vst [vmem:[#allocation210_spill] sm:$0xff] %v8033_v0  ;;  %v4340_v46 = vmul.f32 %v7761_v19, %v13005_v10  ;;  %v13009_v0 = vld [vmem:[#allocation90_spill] sm:$0xff]  ;;  %v8062_v41 = vmul.f32 %v7139_v27, %v12999_v17  ;;  %v8072_v16 = vadd.f32 %v3442_v43, %v7480_v42  ;;  %v13013_v17 = vld [vmem:[#allocation48_spill] sm:$0xff]  ;;  %3200 = vperm.xlu1 %5750, %v5537_v23  }
 0x296   : > { %13007 = vst [vmem:[#allocation211_spill] sm:$0xff] %v8048_v60  ;;  %13008 = vst [vmem:[#allocation212_spill] sm:$0xff] %v8052_v45  ;;  %v1779_v15 = vmul.f32 %v7997_v24, %v13009_v0  ;;  %v5756_v30 = vld [vmem:[%s5820_s17 + $0x121] sm:$0xff]  ;;  %v3471_v32 = vmul.f32 %v8040_v9, %v13009_v0  ;;  %v4339_v25 = vmul.f32 %v7761_v19, %v13009_v0  ;;  %v13014_v45 = vld [vmem:[#allocation49_spill] sm:$0xff] }
 0x297   : > { %3185 = vperm.xlu0 %5749, %v5756_v30   ;;  %13010 = vst [vmem:[#allocation90_spill] sm:$0xff] %v8062_v41  ;;  %v8069_v60 = vadd.f32 %v1606_v54, %v7476_v18  ;;  %v8076_v30 = vmul.f32 %v7431_v48, %v13005_v10  ;;  %v8080_v27 = vmul.f32 %v7431_v48, %v13009_v0  ;;  %v8088_v18 = vpop.permute.xlu1 %2554  ;;  %v13016_v54 = vld [vmem:[#allocation91_spill] sm:$0xff] }
 0x298   : > { %v8083_v41 = vadd.f32 %v1605_v49, %v13013_v17  ;;  %v8086_v50 = vadd.f32 %v3441_v33, %v13014_v45  ;;  %13015 = vst [vmem:[#allocation48_spill] sm:$0xff] %v8088_v18  ;;  %v1782_v42 = vmul.f32 %v7997_v24, %v13016_v54  ;;  %v3474_v43 = vmul.f32 %v8040_v9, %v13016_v54  ;;  %v13019_v33 = vld [vmem:[#allocation92_spill] sm:$0xff]  ;;  %v5539_v18 = vld [vmem:[%s5820_s17 + $0x149] sm:$0x3f] }
 0x299   : > { %13011 = vst [vmem:[#allocation213_spill] sm:$0xff] %v8076_v30  ;;  %13012 = vst [vmem:[#allocation214_spill] sm:$0xff] %v8080_v27  ;;  %v8095_v10 = vadd.f32 %v3472_v31, %v7518_v6  ;;  %v8098_v0 = vadd.f32 %v1780_v56, %v7521_v53  ;;  %v8100_v27 = vpop.permute.xlu0 %2549  ;;  %v4342_v49 = vmul.f32 %v7761_v19, %v13016_v54  ;;  %v5757_v30 = vld [vmem:[%s5820_s17 + $0x131] sm:$0xff]  ;;  %v13020_v6 = vld [vmem:[#allocation51_spill] sm:$0xff]  ;;  %3210 = vperm.xlu1 %5750, %v5539_v18  }
 0x29a   : > { %13018 = vst [vmem:[#allocation91_spill] sm:$0xff] %v8100_v27  ;;  %v1781_v45 = vmul.f32 %v7997_v24, %v13019_v33  ;;  %v8107_v17 = vadd.f32 %v1779_v15, %v7524_v20  ;;  %v8112_v31 = vadd.f32 %v4340_v46, %v13020_v6  ;;  %v3473_v53 = vmul.f32 %v8040_v9, %v13019_v33  ;;  %v13023_v27 = vld [vmem:[#allocation52_spill] sm:$0xff]  ;;  %v13027_v46 = vld [vmem:[#allocation93_spill] sm:$0xff] }
 0x29b   : > { %13017 = vst [vmem:[#allocation49_spill] sm:$0xff] %v8095_v10  ;;  %3195 = vperm.xlu0 %5749, %v5757_v30   ;;  %v4341_v23 = vmul.f32 %v7761_v19, %v13019_v33  ;;  %v8119_v56 = vadd.f32 %v3471_v32, %v7527_v37  ;;  %v8122_v10 = vadd.f32 %v4339_v25, %v13023_v27  ;;  %v8136_v32 = vpop.permute.xlu1 %2564  ;;  %v13029_v27 = vld [vmem:[#allocation94_spill] sm:$0xff] }
 0x29c   : > { %13021 = vst [vmem:[#allocation92_spill] sm:$0xff] %v8112_v31  ;;  %v8126_v20 = vmul.f32 %v7431_v48, %v13016_v54  ;;  %v8130_v15 = vmul.f32 %v7431_v48, %v13019_v33  ;;  %v1784_v30 = vmul.f32 %v7997_v24, %v13027_v46  ;;  %v3476_v37 = vmul.f32 %v8040_v9, %v13027_v46 }
 0x29d   : > { %13022 = vst [vmem:[#allocation51_spill] sm:$0xff] %v8119_v56  ;;  %13024 = vst [vmem:[#allocation52_spill] sm:$0xff] %v8122_v10  ;;  %v4344_v25 = vmul.f32 %v7761_v19, %v13027_v46  ;;  %v1783_v54 = vmul.f32 %v7997_v24, %v13029_v27  ;;  %v8143_v6 = vadd.f32 %v1782_v42, %v7559_v26  ;;  %v8148_v10 = vpop.permute.xlu0 %2559  ;;  %v5541_v56 = vld [vmem:[%s5820_s17 + $0x159] sm:$0x3f]  ;;  %v13032_v26 = vld [vmem:[#allocation56_spill] sm:$0xff] }
 0x29e   : > { %13025 = vst [vmem:[#allocation215_spill] sm:$0xff] %v8126_v20  ;;  %13026 = vst [vmem:[#allocation216_spill] sm:$0xff] %v8130_v15  ;;  %v8146_v33 = vadd.f32 %v3474_v43, %v7562_v13  ;;  %v3475_v31 = vmul.f32 %v8040_v9, %v13029_v27  ;;  %v4343_v15 = vmul.f32 %v7761_v19, %v13029_v27  ;;  %v13036_v43 = vld [vmem:[#allocation61_spill] sm:$0xff]  ;;  %3220 = vperm.xlu1 %5750, %v5541_v56  }
 0x29f   : > { %13028 = vst [vmem:[#allocation93_spill] sm:$0xff] %v8136_v32  ;;  %13031 = vst [vmem:[#allocation217_spill] sm:$0xff] %v8148_v10  ;;  %v8155_v20 = vadd.f32 %v1781_v45, %v7565_v8  ;;  %v5758_v32 = vld [vmem:[%s5820_s17 + $0x141] sm:$0xff]  ;;  %v8160_v42 = vadd.f32 %v4342_v49, %v13032_v26  ;;  %v8164_v13 = vmul.f32 %v7431_v48, %v13027_v46  ;;  %v8186_v26 = vpop.permute.xlu1 %2574 }
 0x2a0   : > { %13030 = vst [vmem:[#allocation94_spill] sm:$0xff] %v8146_v33  ;;  %3205 = vperm.xlu0 %5749, %v5758_v32   ;;  %v8168_v18 = vmul.f32 %v7431_v48, %v13029_v27  ;;  %v8171_v10 = vadd.f32 %v3473_v53, %v13036_v43  ;;  %v13037_v33 = vld [vmem:[#allocation57_spill] sm:$0xff]  ;;  %v13039_v45 = vld [vmem:[#allocation95_spill] sm:$0xff]  ;;  %v8181_v46 = vadd.f32 %v1784_v30, %v7600_v3 }
 0x2a1   : > { %13033 = vst [vmem:[#allocation56_spill] sm:$0xff] %v8160_v42  ;;  %13034 = vst [vmem:[#allocation218_spill] sm:$0xff] %v8164_v13  ;;  %v8174_v8 = vadd.f32 %v4341_v23, %v13037_v33  ;;  %v1786_v32 = vmul.f32 %v7997_v24, %v13039_v45  ;;  %v3478_v49 = vmul.f32 %v8040_v9, %v13039_v45  ;;  %v13041_v23 = vld [vmem:[#allocation96_spill] sm:$0xff]  ;;  %v13043_v42 = vld [vmem:[#allocation62_spill] sm:$0xff] }
 0x2a2   : > { %13035 = vst [vmem:[#allocation219_spill] sm:$0xff] %v8168_v18  ;;  %v8184_v27 = vadd.f32 %v3476_v37, %v7603_v62  ;;  %13040 = vst [vmem:[#allocation57_spill] sm:$0xff] %v8186_v26  ;;  %v4346_v53 = vmul.f32 %v7761_v19, %v13039_v45  ;;  %v1785_v33 = vmul.f32 %v7997_v24, %v13041_v23  ;;  %v5759_v18 = vld [vmem:[%s5820_s17 + $0x151] sm:$0xff]  ;;  %v5543_v13 = vld [vmem:[%s5820_s17 + $0x169] sm:$0x3f] }
 0x2a3   : > { %13038 = vst [vmem:[#allocation61_spill] sm:$0xff] %v8174_v8  ;;  %v8193_v43 = vadd.f32 %v1783_v54, %v7606_v51  ;;  %v8195_v8 = vpop.permute.xlu0 %2569  ;;  %v8198_v3 = vadd.f32 %v4344_v25, %v13043_v42  ;;  %v3477_v62 = vmul.f32 %v8040_v9, %v13041_v23  ;;  %v4345_v30 = vmul.f32 %v7761_v19, %v13041_v23  ;;  %v13045_v51 = vld [vmem:[#allocation63_spill] sm:$0xff]  ;;  %v13049_v42 = vld [vmem:[#allocation97_spill] sm:$0xff]  ;;  %v13053_v26 = vld [vmem:[#allocation68_spill] sm:$0xff] }
 0x2a4   : > { %13042 = vst [vmem:[#allocation95_spill] sm:$0xff] %v8195_v8  ;;  %v8205_v37 = vadd.f32 %v3475_v31, %v7609_v5  ;;  %3215 = vperm.xlu0 %5749, %v5759_v18   ;;  %v8210_v54 = vadd.f32 %v4343_v15, %v13045_v51  ;;  %v8214_v56 = vmul.f32 %v7431_v48, %v13039_v45  ;;  %v13050_v15 = vld [vmem:[#allocation98_spill] sm:$0xff]  ;;  %v8234_v51 = vpop.permute.xlu1 %2584 }
 0x2a5   : > { %13044 = vst [vmem:[#allocation96_spill] sm:$0xff] %v8198_v3  ;;  %v8218_v25 = vmul.f32 %v7431_v48, %v13041_v23  ;;  %v1788_v3 = vmul.f32 %v7997_v24, %v13049_v42  ;;  %v3480_v5 = vmul.f32 %v8040_v9, %v13049_v42  ;;  %v4348_v31 = vmul.f32 %v7761_v19, %v13049_v42 }
 0x2a6   : > { %13046 = vst [vmem:[#allocation62_spill] sm:$0xff] %v8210_v54  ;;  %13047 = vst [vmem:[#allocation63_spill] sm:$0xff] %v8214_v56  ;;  %v1787_v18 = vmul.f32 %v7997_v24, %v13050_v15  ;;  %v8229_v45 = vadd.f32 %v1786_v32, %v7640_v7  ;;  %v8232_v23 = vadd.f32 %v3478_v49, %v7643_v28  ;;  %3230 = vperm.xlu1 %5750, %v5543_v13   ;;  %v13059_v13 = vld [vmem:[#allocation99_spill] sm:$0xff] }
 0x2a7   : > { %13048 = vst [vmem:[#allocation220_spill] sm:$0xff] %v8218_v25  ;;  %13051 = vst [vmem:[#allocation97_spill] sm:$0xff] %v8234_v51  ;;  %v3479_v54 = vmul.f32 %v8040_v9, %v13050_v15  ;;  %v4347_v25 = vmul.f32 %v7761_v19, %v13050_v15  ;;  %v8241_v56 = vadd.f32 %v1785_v33, %v7646_v22  ;;  %v8243_v8 = vpop.permute.xlu0 %2579  ;;  %v5760_v51 = vld [vmem:[%s5820_s17 + $0x161] sm:$0xff]  ;;  %v5545_v22 = vld [vmem:[%s5820_s17 + $0x179] sm:$0x3f] }
 0x2a8   : > { %13052 = vst [vmem:[#allocation98_spill] sm:$0xff] %v8243_v8  ;;  %v8246_v7 = vadd.f32 %v4346_v53, %v13053_v26  ;;  %v8250_v28 = vmul.f32 %v7431_v48, %v13049_v42  ;;  %v8254_v32 = vmul.f32 %v7431_v48, %v13050_v15  ;;  %v8257_v49 = vadd.f32 %v3477_v62, %v7649_v29  ;;  %v13057_v33 = vld [vmem:[#allocation174_spill] sm:$0xff]  ;;  %v13060_v62 = vld [vmem:[#allocation100_spill] sm:$0xff] }
 0x2a9   : > { %3225 = vperm.xlu0 %5749, %v5760_v51   ;;  %v8262_v8 = vadd.f32 %v4345_v30, %v13057_v33  ;;  %v1790_v26 = vmul.f32 %v7997_v24, %v13059_v13  ;;  %v3482_v53 = vmul.f32 %v8040_v9, %v13059_v13  ;;  %v8269_v42 = vadd.f32 %v1788_v3, %v7680_v4  ;;  %v8281_v33 = vpop.permute.xlu1 %2594 }
 0x2aa   : > { %13054 = vst [vmem:[#allocation68_spill] sm:$0xff] %v8246_v7  ;;  %13055 = vst [vmem:[#allocation221_spill] sm:$0xff] %v8250_v28  ;;  %v8272_v15 = vadd.f32 %v3480_v5, %v7683_v39  ;;  %v4350_v29 = vmul.f32 %v7761_v19, %v13059_v13  ;;  %v1789_v30 = vmul.f32 %v7997_v24, %v13060_v62  ;;  %3240 = vperm.xlu1 %5750, %v5545_v22   ;;  %v13064_v7 = vld [vmem:[#allocation177_spill] sm:$0xff]  ;;  %v5547_v22 = vld [vmem:[%s5820_s17 + $0x189] sm:$0x3f] }
 0x2ab   : > { %13056 = vst [vmem:[#allocation222_spill] sm:$0xff] %v8254_v32  ;;  %13058 = vst [vmem:[#allocation174_spill] sm:$0xff] %v8262_v8  ;;  %v8279_v51 = vadd.f32 %v1787_v18, %v7686_v59  ;;  %v8284_v8 = vadd.f32 %v4348_v31, %v7655_v40  ;;  %v3481_v39 = vmul.f32 %v8040_v9, %v13060_v62  ;;  %v8293_v5 = vpop.permute.xlu0 %2589  ;;  %v13068_v31 = vld [vmem:[#allocation101_spill] sm:$0xff]  ;;  %v13071_v28 = vld [vmem:[#allocation72_spill] sm:$0xff] }
 0x2ac   : > { %13061 = vst [vmem:[#allocation99_spill] sm:$0xff] %v8281_v33  ;;  %v4349_v4 = vmul.f32 %v7761_v19, %v13060_v62  ;;  %v8291_v3 = vadd.f32 %v3479_v54, %v7689_v38  ;;  %13063 = vst [vmem:[#allocation223_spill] sm:$0xff] %v8293_v5  ;;  %v8296_v59 = vadd.f32 %v4347_v25, %v13064_v7  ;;  %v5761_v54 = vld [vmem:[%s5820_s17 + $0x171] sm:$0xff]  ;;  %v13069_v7 = vld [vmem:[#allocation102_spill] sm:$0xff] }
 0x2ad   : > { %13062 = vst [vmem:[#allocation100_spill] sm:$0xff] %v8284_v8  ;;  %v8300_v18 = vmul.f32 %v7431_v48, %v13059_v13  ;;  %v8304_v40 = vmul.f32 %v7431_v48, %v13060_v62  ;;  %v1792_v8 = vmul.f32 %v7997_v24, %v13068_v31  ;;  %v3484_v38 = vmul.f32 %v8040_v9, %v13068_v31  ;;  %v8329_v32 = vpop.permute.xlu1 %2604 }
 0x2ae   : > { %13065 = vst [vmem:[#allocation177_spill] sm:$0xff] %v8296_v59  ;;  %3235 = vperm.xlu0 %5749, %v5761_v54   ;;  %v4352_v25 = vmul.f32 %v7761_v19, %v13068_v31  ;;  %v1791_v13 = vmul.f32 %v7997_v24, %v13069_v7  ;;  %v8317_v59 = vadd.f32 %v1790_v26, %v7726_v34  ;;  %13070 = vst [vmem:[#allocation101_spill] sm:$0xff] %v8329_v32  ;;  %v13075_v26 = vld [vmem:[#allocation73_spill] sm:$0xff]  ;;  %v13080_v32 = vld [vmem:[#allocation103_spill] sm:$0xff] }
 0x2af   : > { %13066 = vst [vmem:[#allocation224_spill] sm:$0xff] %v8300_v18  ;;  %13067 = vst [vmem:[#allocation225_spill] sm:$0xff] %v8304_v40  ;;  %v8320_v62 = vadd.f32 %v3482_v53, %v7729_v44  ;;  %v3483_v40 = vmul.f32 %v8040_v9, %v13069_v7  ;;  %v4351_v54 = vmul.f32 %v7761_v19, %v13069_v7  ;;  %v8345_v33 = vpop.permute.xlu0 %2599  ;;  %3250 = vperm.xlu1 %5750, %v5547_v22  }
 0x2b0   : > { %v8327_v18 = vadd.f32 %v1789_v30, %v7732_v12  ;;  %v8332_v5 = vadd.f32 %v4350_v29, %v13071_v28  ;;  %v8336_v34 = vmul.f32 %v7431_v48, %v13068_v31  ;;  %v8340_v44 = vmul.f32 %v7431_v48, %v13069_v7  ;;  %13077 = vst [vmem:[#allocation227_spill] sm:$0xff] %v8345_v33  ;;  %v13078_v12 = vld [vmem:[#allocation180_spill] sm:$0xff]  ;;  %v13088_v33 = vld [vmem:[#allocation74_spill] sm:$0xff] }
 0x2b1   : > { %v8343_v53 = vadd.f32 %v3481_v39, %v13075_v26  ;;  %v8348_v30 = vadd.f32 %v4349_v4, %v13078_v12  ;;  %v1794_v28 = vmul.f32 %v7997_v24, %v13080_v32  ;;  %v3486_v29 = vmul.f32 %v8040_v9, %v13080_v32  ;;  %v13081_v31 = vld [vmem:[#allocation76_spill] sm:$0xff]  ;;  %v5762_v39 = vld [vmem:[%s5820_s17 + $0x181] sm:$0xff]  ;;  %v5549_v26 = vld [vmem:[%s5820_s17 + $0x199] sm:$0x3f] }
 0x2b2   : > { %13072 = vst [vmem:[#allocation102_spill] sm:$0xff] %v8332_v5  ;;  %13073 = vst [vmem:[#allocation72_spill] sm:$0xff] %v8336_v34  ;;  %v8355_v5 = vadd.f32 %v1792_v8, %v13081_v31  ;;  %v13083_v7 = vld [vmem:[#allocation188_spill] sm:$0xff]  ;;  %3245 = vperm.xlu0 %5749, %v5762_v39   ;;  %v4354_v22 = vmul.f32 %v7761_v19, %v13080_v32  ;;  %v13090_v31 = vld [vmem:[#allocation190_spill] sm:$0xff]  ;;  %v8379_v39 = vpop.permute.xlu1 %2614 }
 0x2b3   : > { %13074 = vst [vmem:[#allocation226_spill] sm:$0xff] %v8340_v44  ;;  %13076 = vst [vmem:[#allocation73_spill] sm:$0xff] %v8343_v53  ;;  %v8358_v44 = vadd.f32 %v3484_v38, %v13083_v7  ;;  %v13085_v4 = vld [vmem:[#allocation104_spill] sm:$0xff]  ;;  %v8370_v53 = vadd.f32 %v4352_v25, %v13088_v33  ;;  %v8377_v7 = vadd.f32 %v3483_v40, %v13090_v31  ;;  %v8396_v31 = vpop.permute.xlu0 %2609  ;;  %3260 = vperm.xlu1 %5750, %v5549_v26  }
 0x2b4   : > { %13079 = vst [vmem:[#allocation180_spill] sm:$0xff] %v8348_v30  ;;  %13082 = vst [vmem:[#allocation103_spill] sm:$0xff] %v8355_v5  ;;  %v1793_v12 = vmul.f32 %v7997_v24, %v13085_v4  ;;  %v13086_v30 = vld [vmem:[#allocation189_spill] sm:$0xff]  ;;  %v3485_v8 = vmul.f32 %v8040_v9, %v13085_v4  ;;  %v4353_v38 = vmul.f32 %v7761_v19, %v13085_v4 }
 0x2b5   : > { %13084 = vst [vmem:[#allocation76_spill] sm:$0xff] %v8358_v44  ;;  %v8367_v34 = vadd.f32 %v1791_v13, %v13086_v30  ;;  %13089 = vst [vmem:[#allocation104_spill] sm:$0xff] %v8370_v53  ;;  %v13093_v44 = vld [vmem:[#allocation184_spill] sm:$0xff]  ;;  %v8386_v33 = vmul.f32 %v7431_v48, %v13080_v32  ;;  %v8390_v25 = vmul.f32 %v7431_v48, %v13085_v4  ;;  %v13097_v13 = vld [vmem:[#allocation105_spill] sm:$0xff] }
 0x2b6   : > { %13091 = vst [vmem:[#allocation189_spill] sm:$0xff] %v8377_v7  ;;  %13092 = vst [vmem:[#allocation74_spill] sm:$0xff] %v8379_v39  ;;  %v8382_v5 = vadd.f32 %v4351_v54, %v13093_v44  ;;  %v1796_v30 = vmul.f32 %v7997_v24, %v13097_v13  ;;  %v3488_v40 = vmul.f32 %v8040_v9, %v13097_v13  ;;  %v13099_v44 = vld [vmem:[#allocation106_spill] sm:$0xff]  ;;  %v5763_v53 = vld [vmem:[%s5820_s17 + $0x191] sm:$0xff] }
 0x2b7   : > { %13087 = vst [vmem:[#allocation188_spill] sm:$0xff] %v8367_v34  ;;  %13095 = vst [vmem:[#allocation184_spill] sm:$0xff] %v8386_v33  ;;  %v4356_v54 = vmul.f32 %v7761_v19, %v13097_v13  ;;  %v1795_v32 = vmul.f32 %v7997_v24, %v13099_v44  ;;  %v8406_v4 = vadd.f32 %v3486_v29, %v7815_v35  ;;  %3255 = vperm.xlu0 %5749, %v5763_v53   ;;  %v13102_v7 = vld [vmem:[#allocation191_spill] sm:$0xff]  ;;  %v8431_v29 = vpop.permute.xlu1 %2624 }
 0x2b8   : > { %13094 = vst [vmem:[#allocation190_spill] sm:$0xff] %v8382_v5  ;;  %13096 = vst [vmem:[#allocation228_spill] sm:$0xff] %v8390_v25  ;;  %v8403_v5 = vadd.f32 %v1794_v28, %v7812_v61  ;;  %v5551_v25 = vld [vmem:[%s5820_s17 + $0x1a9] sm:$0x3f]  ;;  %v3487_v33 = vmul.f32 %v8040_v9, %v13099_v44  ;;  %v4355_v26 = vmul.f32 %v7761_v19, %v13099_v44 }
 0x2b9   : > { %13098 = vst [vmem:[#allocation105_spill] sm:$0xff] %v8396_v31  ;;  %v13100_v31 = vld [vmem:[#allocation78_spill] sm:$0xff]  ;;  %v8418_v34 = vadd.f32 %v4354_v22, %v13102_v7  ;;  %v8422_v61 = vmul.f32 %v7431_v48, %v13097_v13  ;;  %v8426_v35 = vmul.f32 %v7431_v48, %v13099_v44  ;;  %v13106_v53 = vld [vmem:[#allocation167_spill] sm:$0xff]  ;;  %v8441_v13 = vadd.f32 %v1796_v30, %v7852_v11 }
 0x2ba   : > { %v8415_v39 = vadd.f32 %v1793_v12, %v13100_v31  ;;  %v8429_v28 = vadd.f32 %v3485_v8, %v13106_v53  ;;  %13107 = vst [vmem:[#allocation167_spill] sm:$0xff] %v8431_v29  ;;  %v13108_v12 = vld [vmem:[#allocation192_spill] sm:$0xff]  ;;  %v8444_v44 = vadd.f32 %v3488_v40, %v7855_v58  ;;  %3270 = vperm.xlu1 %5750, %v5551_v25   ;;  %v13116_v11 = vld [vmem:[#allocation35_spill] sm:$0xff] }
 0x2bb   : > { %13103 = vst [vmem:[#allocation78_spill] sm:$0xff] %v8418_v34  ;;  %13104 = vst [vmem:[#allocation191_spill] sm:$0xff] %v8422_v61  ;;  %v8434_v31 = vadd.f32 %v4353_v38, %v13108_v12  ;;  %v8446_v34 = vpop.permute.xlu0 %2619  ;;  %v13114_v38 = vld [vmem:[#allocation108_spill] sm:$0xff]  ;;  %v8453_v12 = vadd.f32 %v1795_v32, %v7858_v2  ;;  %v8458_v30 = vadd.f32 %v4356_v54, %v13116_v11  ;;  %v13118_v40 = vld [vmem:[#allocation79_spill] sm:$0xff] }
 0x2bc   : > { %13101 = vst [vmem:[#allocation106_spill] sm:$0xff] %v8415_v39  ;;  %13105 = vst [vmem:[#allocation229_spill] sm:$0xff] %v8426_v35  ;;  %v13110_v39 = vld [vmem:[#allocation107_spill] sm:$0xff]  ;;  %v1797_v53 = vmul.f32 %v7997_v24, %v13114_v38  ;;  %v5553_v35 = vld [vmem:[%s5820_s17 + $0x1b9] sm:$0x3f]  ;;  %v3489_v58 = vmul.f32 %v8040_v9, %v13114_v38  ;;  %v4357_v25 = vmul.f32 %v7761_v19, %v13114_v38 }
 0x2bd   : > { %13109 = vst [vmem:[#allocation192_spill] sm:$0xff] %v8434_v31  ;;  %v1798_v22 = vmul.f32 %v7997_v24, %v13110_v39  ;;  %v3490_v7 = vmul.f32 %v8040_v9, %v13110_v39  ;;  %13111 = vst [vmem:[#allocation107_spill] sm:$0xff] %v8441_v13  ;;  %v4358_v8 = vmul.f32 %v7761_v19, %v13110_v39  ;;  %v5764_v31 = vld [vmem:[%s5820_s17 + $0x1a1] sm:$0xff]  ;;  %v13122_v2 = vld [vmem:[#allocation109_spill] sm:$0xff] }
 0x2be   : > { %13112 = vst [vmem:[#allocation230_spill] sm:$0xff] %v8444_v44  ;;  %13113 = vst [vmem:[#allocation231_spill] sm:$0xff] %v8446_v34  ;;  %3265 = vperm.xlu0 %5749, %v5764_v31   ;;  %v8465_v61 = vadd.f32 %v3487_v33, %v13118_v40  ;;  %v13120_v34 = vld [vmem:[#allocation148_spill] sm:$0xff]  ;;  %v1800_v32 = vmul.f32 %v7997_v24, %v13122_v2  ;;  %v3492_v54 = vmul.f32 %v8040_v9, %v13122_v2  ;;  %v13123_v11 = vld [vmem:[#allocation110_spill] sm:$0xff] }
 0x2bf   : > { %13115 = vst [vmem:[#allocation108_spill] sm:$0xff] %v8453_v12  ;;  %13117 = vst [vmem:[#allocation35_spill] sm:$0xff] %v8458_v30  ;;  %v8468_v29 = vadd.f32 %v4355_v26, %v13120_v34  ;;  %v4360_v31 = vmul.f32 %v7761_v19, %v13122_v2  ;;  %v1799_v30 = vmul.f32 %v7997_v24, %v13123_v11  ;;  %v8478_v12 = vpop.permute.xlu1 %2634  ;;  %v13127_v26 = vld [vmem:[#allocation81_spill] sm:$0xff]  ;;  %v8494_v44 = vpop.permute.xlu0 %2629  ;;  %3280 = vperm.xlu1 %5750, %v5553_v35  }
 0x2c0   : > { %13119 = vst [vmem:[#allocation79_spill] sm:$0xff] %v8465_v61  ;;  %13124 = vst [vmem:[#allocation109_spill] sm:$0xff] %v8478_v12  ;;  %v8482_v33 = vmul.f32 %v7431_v48, %v13110_v39  ;;  %v8486_v34 = vmul.f32 %v7431_v48, %v13114_v38  ;;  %v8489_v40 = vadd.f32 %v1798_v22, %v13127_v26  ;;  %v5765_v38 = vld [vmem:[%s5820_s17 + $0x1b1] sm:$0xff] }
 0x2c1   : > { %13121 = vst [vmem:[#allocation148_spill] sm:$0xff] %v8468_v29  ;;  %v13128_v29 = vld [vmem:[#allocation82_spill] sm:$0xff]  ;;  %v3491_v12 = vmul.f32 %v8040_v9, %v13123_v11  ;;  %v4359_v39 = vmul.f32 %v7761_v19, %v13123_v11  ;;  %v13132_v22 = vld [vmem:[#allocation140_spill] sm:$0xff]  ;;  %v8514_v35 = vmul.f32 %v7431_v48, %v13123_v11  ;;  %v13142_v11 = vld [vmem:[#allocation199_spill] sm:$0xff] }
 0x2c2   : > { %13125 = vst [vmem:[#allocation110_spill] sm:$0xff] %v8482_v33  ;;  %13126 = vst [vmem:[#allocation232_spill] sm:$0xff] %v8486_v34  ;;  %v8492_v61 = vadd.f32 %v3490_v7, %v13128_v29  ;;  %v13131_v33 = vld [vmem:[#allocation40_spill] sm:$0xff]  ;;  %3275 = vperm.xlu0 %5749, %v5765_v38   ;;  %v5555_v34 = vld [vmem:[%s5820_s17 + $0x1c9] sm:$0x3f]  ;;  %v8506_v26 = vadd.f32 %v4358_v8, %v13132_v22  ;;  %v8510_v29 = vmul.f32 %v7431_v48, %v13122_v2 }
 0x2c3   : > { %13130 = vst [vmem:[#allocation82_spill] sm:$0xff] %v8494_v44  ;;  %v8501_v13 = vadd.f32 %v1797_v53, %v13131_v33  ;;  %13135 = vst [vmem:[#allocation233_spill] sm:$0xff] %v8514_v35  ;;  %v13136_v7 = vld [vmem:[#allocation41_spill] sm:$0xff]  ;;  %v8523_v33 = vadd.f32 %v1800_v32, %v7933_v63  ;;  %v8526_v8 = vadd.f32 %v3492_v54, %v7936_v14  ;;  %v8531_v38 = vpop.permute.xlu1 %2644  ;;  %v13145_v14 = vld [vmem:[#allocation112_spill] sm:$0xff]  ;;  %3290 = vperm.xlu1 %5750, %v5555_v34  }
 0x2c4   : > { %13129 = vst [vmem:[#allocation81_spill] sm:$0xff] %v8492_v61  ;;  %13133 = vst [vmem:[#allocation40_spill] sm:$0xff] %v8506_v26  ;;  %v8517_v44 = vadd.f32 %v3489_v58, %v13136_v7  ;;  %v13137_v61 = vld [vmem:[#allocation39_spill] sm:$0xff]  ;;  %v8529_v2 = vadd.f32 %v1799_v30, %v7939_v57  ;;  %v8534_v22 = vadd.f32 %v4360_v31, %v13142_v11  ;;  %v8544_v57 = vpop.permute.xlu0 %2639  ;;  %v5557_v11 = vld [vmem:[%s5820_s17 + $0x1d9] sm:$0x3f] }
 0x2c5   : > { %13134 = vst [vmem:[#allocation140_spill] sm:$0xff] %v8510_v29  ;;  %v8520_v53 = vadd.f32 %v4357_v25, %v13137_v61  ;;  %13139 = vst [vmem:[#allocation39_spill] sm:$0xff] %v8526_v8  ;;  %v13144_v58 = vld [vmem:[#allocation111_spill] sm:$0xff]  ;;  %v1801_v25 = vmul.f32 %v7997_v24, %v13145_v14  ;;  %v3493_v30 = vmul.f32 %v8040_v9, %v13145_v14  ;;  %v13152_v35 = vld [vmem:[#allocation113_spill] sm:$0xff] }
 0x2c6   : > { %13140 = vst [vmem:[#allocation234_spill] sm:$0xff] %v8529_v2  ;;  %13141 = vst [vmem:[#allocation235_spill] sm:$0xff] %v8531_v38  ;;  %v1802_v7 = vmul.f32 %v7997_v24, %v13144_v58  ;;  %v3494_v61 = vmul.f32 %v8040_v9, %v13144_v58  ;;  %v4362_v63 = vmul.f32 %v7761_v19, %v13144_v58  ;;  %v5766_v31 = vld [vmem:[%s5820_s17 + $0x1c1] sm:$0xff] }
 0x2c7   : > { %13138 = vst [vmem:[#allocation41_spill] sm:$0xff] %v8520_v53  ;;  %13143 = vst [vmem:[#allocation199_spill] sm:$0xff] %v8534_v22  ;;  %v4361_v32 = vmul.f32 %v7761_v19, %v13145_v14  ;;  %v8551_v54 = vadd.f32 %v3491_v12, %v7942_v52  ;;  %3285 = vperm.xlu0 %5749, %v5766_v31   ;;  %v13148_v22 = vld [vmem:[#allocation200_spill] sm:$0xff]  ;;  %v8560_v26 = vmul.f32 %v7431_v48, %v13144_v58 }
 0x2c8   : > { %13146 = vst [vmem:[#allocation111_spill] sm:$0xff] %v8544_v57  ;;  %v8556_v53 = vadd.f32 %v4359_v39, %v13148_v22  ;;  %v8564_v34 = vmul.f32 %v7431_v48, %v13145_v14  ;;  %v1804_v29 = vmul.f32 %v7997_v24, %v13152_v35  ;;  %v3496_v52 = vmul.f32 %v8040_v9, %v13152_v35  ;;  %v5556_v12 = vld [vmem:[%s5820_s17 + $0x1d1] sm:$0xff]  ;;  %v13153_v22 = vld [vmem:[#allocation114_spill] sm:$0xff]  ;;  %v8590_v38 = vpop.permute.xlu0 %2649 }
 0x2c9   : > { %13147 = vst [vmem:[#allocation112_spill] sm:$0xff] %v8551_v54  ;;  %13150 = vst [vmem:[#allocation236_spill] sm:$0xff] %v8560_v26  ;;  %v4364_v39 = vmul.f32 %v7761_v19, %v13152_v35  ;;  %v1803_v31 = vmul.f32 %v7997_v24, %v13153_v22  ;;  %v3495_v58 = vmul.f32 %v8040_v9, %v13153_v22  ;;  %3300 = vperm.xlu1 %5750, %v5557_v11   ;;  %v13156_v54 = vld [vmem:[#allocation84_spill] sm:$0xff] }
 0x2ca   : > { %13149 = vst [vmem:[#allocation200_spill] sm:$0xff] %v8556_v53  ;;  %13151 = vst [vmem:[#allocation237_spill] sm:$0xff] %v8564_v34  ;;  %v4363_v14 = vmul.f32 %v7761_v19, %v13153_v22  ;;  %v8579_v53 = vpop.permute.xlu1 %2654  ;;  %v8582_v34 = vadd.f32 %v1802_v7, %v7973_v55  ;;  %v8585_v26 = vadd.f32 %v3494_v61, %v7976_v36  ;;  %v13160_v7 = vld [vmem:[#allocation42_spill] sm:$0xff] }
 0x2cb   : > { %13154 = vst [vmem:[#allocation113_spill] sm:$0xff] %v8579_v53  ;;  %v8588_v57 = vadd.f32 %v1801_v25, %v7979_v47  ;;  %13155 = vst [vmem:[#allocation114_spill] sm:$0xff] %v8590_v38  ;;  %v8593_v2 = vadd.f32 %v4362_v63, %v13156_v54  ;;  %v8597_v8 = vmul.f32 %v7431_v48, %v13152_v35  ;;  %3295 = vperm.xlu0 %5749, %v5556_v12   ;;  %v5559_v47 = vld [vmem:[%s5820_s17 + $0x1f8] sm:$0x3f]  ;;  %v13162_v25 = vld [vmem:[#allocation115_spill] sm:$0xff] }
 0x2cc   : > { %v8601_v55 = vmul.f32 %v7431_v48, %v13153_v22  ;;  %v8604_v36 = vadd.f32 %v3493_v30, %v7982_v21  ;;  %v8608_v61 = vadd.f32 %v4361_v32, %v13160_v7  ;;  %v1806_v63 = vmul.f32 %v7997_v24, %v13162_v25  ;;  %v8617_v35 = vld [vmem:[%s12211_s1 + $0x6] ss:$0 sm:$0xff]  ;;  %v13163_v21 = vld [vmem:[#allocation87_spill] sm:$0xff]  ;;  %v5558_v12 = vld [vmem:[%s5820_s17 + $0x1f0] sm:$0xff] }
 0x2cd   : > { %13157 = vst [vmem:[#allocation84_spill] sm:$0xff] %v8593_v2  ;;  %13158 = vst [vmem:[#allocation238_spill] sm:$0xff] %v8597_v8  ;;  %v3498_v54 = vmul.f32 %v8040_v9, %v13162_v25  ;;  %v8620_v11 = vadd.f32 %v1804_v29, %v8014_v1  ;;  %v8623_v30 = vadd.f32 %v3496_v52, %v13163_v21  ;;  %v13164_v32 = vld [vmem:[#allocation88_spill] sm:$0xff]  ;;  %v13165_v7 = vld [vmem:[#allocation46_spill] sm:$0xff]  ;;  %v8648_v21 = vpop.permute.xlu0 %2659  ;;  %3702 = vperm.xlu1 %5750, %v5559_v47  }
 0x2ce   : > { %13159 = vst [vmem:[#allocation239_spill] sm:$0xff] %v8601_v55  ;;  %13161 = vst [vmem:[#allocation42_spill] sm:$0xff] %v8608_v61  ;;  %v8627_v22 = vadd.f32 %v1803_v31, %v13164_v32  ;;  %v8630_v61 = vadd.f32 %v3495_v58, %v13165_v7  ;;  %v8632_v2 = vpop.permute.xlu1 %2664  ;;  %v13167_v55 = vld [vmem:[#allocation205_spill] sm:$0xff]  ;;  %v13169_v38 = vld [vmem:[#allocation206_spill] sm:$0xff]  ;;  %v4366_v1 = vmul.f32 %v7761_v19, %v13162_v25 }
 0x2cf   : > { %13166 = vst [vmem:[#allocation115_spill] sm:$0xff] %v8632_v2  ;;  %v8635_v8 = vadd.f32 %v4364_v39, %v13167_v55  ;;  %v8638_v53 = vadd.f32 %v4363_v14, %v13169_v38  ;;  %v13171_v29 = vld [vmem:[#allocation116_spill] sm:$0xff]  ;;  %13172 = vst [vmem:[#allocation46_spill] sm:$0xff] %v8648_v21  ;;  %v13173_v39 = vld [vmem:[#allocation117_spill] sm:$0xff]  ;;  %3697 = vperm.xlu0 %5749, %v5558_v12   ;;  %v8666_v47 = vmul.f32 %v7431_v48, %v13162_v25 }
 0x2d0   : > { %v1805_v52 = vmul.f32 %v7997_v24, %v13171_v29  ;;  %v3497_v31 = vmul.f32 %v8040_v9, %v13171_v29  ;;  %v4365_v58 = vmul.f32 %v7761_v19, %v13171_v29  ;;  %v1980_v38 = vmul.f32 %v8617_v35, %v13173_v39  ;;  %v8655_v14 = vld [vmem:[%s12211_s1 + $0x3] ss:$0 sm:$0xff]  ;;  %v5561_v32 = vld [vmem:[%s5820_s17 + $0x208] sm:$0x3f]  ;;  %v13179_v25 = vld [vmem:[#allocation120_spill] sm:$0xff] }
 0x2d1   : > { %13168 = vst [vmem:[#allocation87_spill] sm:$0xff] %v8635_v8  ;;  %13170 = vst [vmem:[#allocation88_spill] sm:$0xff] %v8638_v53  ;;  %v3528_v24 = vmul.f32 %v8655_v14, %v13173_v39  ;;  %v13174_v55 = vld [vmem:[#allocation118_spill] sm:$0xff]  ;;  %v8670_v7 = vmul.f32 %v7431_v48, %v13171_v29  ;;  %v8673_v53 = vadd.f32 %v1806_v63, %v8069_v60  ;;  %v13178_v21 = vld [vmem:[#allocation119_spill] sm:$0xff]  ;;  %v8695_v63 = vpop.permute.xlu0 %2669  ;;  %3712 = vperm.xlu1 %5750, %v5561_v32  }
 0x2d2   : > { %v1979_v9 = vmul.f32 %v8617_v35, %v13174_v55  ;;  %v3527_v19 = vmul.f32 %v8655_v14, %v13174_v55  ;;  %13175 = vst [vmem:[#allocation205_spill] sm:$0xff] %v8666_v47  ;;  %v8676_v39 = vadd.f32 %v3498_v54, %v8072_v16  ;;  %v5560_v8 = vld [vmem:[%s5820_s17 + $0x200] sm:$0xff]  ;;  %v1982_v55 = vmul.f32 %v8617_v35, %v13178_v21  ;;  %v8687_v29 = vpop.permute.xlu1 %2674  ;;  %v13188_v32 = vld [vmem:[#allocation121_spill] sm:$0xff] }
 0x2d3   : > { %13176 = vst [vmem:[#allocation206_spill] sm:$0xff] %v8670_v7  ;;  %v3530_v12 = vmul.f32 %v8655_v14, %v13178_v21  ;;  %v1981_v47 = vmul.f32 %v8617_v35, %v13179_v25  ;;  %v3529_v48 = vmul.f32 %v8655_v14, %v13179_v25  ;;  %13180 = vst [vmem:[#allocation117_spill] sm:$0xff] %v8687_v29  ;;  %v13182_v54 = vld [vmem:[#allocation210_spill] sm:$0xff]  ;;  %v13184_v7 = vld [vmem:[#allocation212_spill] sm:$0xff]  ;;  %3707 = vperm.xlu0 %5749, %v5560_v8  }
 0x2d4   : > { %13177 = vst [vmem:[#allocation116_spill] sm:$0xff] %v8676_v39  ;;  %v8690_v60 = vadd.f32 %v1805_v52, %v8083_v41  ;;  %v8693_v16 = vadd.f32 %v3497_v31, %v8086_v50  ;;  %13181 = vst [vmem:[#allocation118_spill] sm:$0xff] %v8695_v63  ;;  %v8698_v21 = vadd.f32 %v4366_v1, %v13182_v54  ;;  %v13186_v29 = vld [vmem:[#allocation49_spill] sm:$0xff]  ;;  %v13187_v50 = vld [vmem:[#allocation51_spill] sm:$0xff] }
 0x2d5   : > { %v8701_v2 = vadd.f32 %v4365_v58, %v13184_v7  ;;  %v8704_v25 = vadd.f32 %v1980_v38, %v8098_v0  ;;  %v8707_v39 = vadd.f32 %v3528_v24, %v13186_v29  ;;  %v8710_v41 = vadd.f32 %v1979_v9, %v8107_v17  ;;  %v5563_v31 = vld [vmem:[%s5820_s17 + $0x218] sm:$0x3f]  ;;  %v13189_v7 = vld [vmem:[#allocation122_spill] sm:$0xff]  ;;  %v5562_v24 = vld [vmem:[%s5820_s17 + $0x210] sm:$0xff] }
 0x2d6   : > { %13183 = vst [vmem:[#allocation119_spill] sm:$0xff] %v8698_v21  ;;  %v8713_v52 = vadd.f32 %v3527_v19, %v13187_v50  ;;  %v1984_v1 = vmul.f32 %v8617_v35, %v13188_v32  ;;  %v3532_v58 = vmul.f32 %v8655_v14, %v13188_v32  ;;  %v1983_v0 = vmul.f32 %v8617_v35, %v13189_v7  ;;  %v13190_v9 = vld [vmem:[#allocation94_spill] sm:$0xff]  ;;  %v8737_v54 = vpop.permute.xlu1 %2684  ;;  %v13193_v50 = vld [vmem:[#allocation123_spill] sm:$0xff] }
 0x2d7   : > { %13185 = vst [vmem:[#allocation120_spill] sm:$0xff] %v8701_v2  ;;  %v3531_v38 = vmul.f32 %v8655_v14, %v13189_v7  ;;  %v8726_v17 = vadd.f32 %v1982_v55, %v8143_v6  ;;  %v8729_v8 = vadd.f32 %v3530_v12, %v13190_v9  ;;  %v8732_v19 = vadd.f32 %v1981_v47, %v8155_v20  ;;  %v13194_v55 = vld [vmem:[#allocation124_spill] sm:$0xff]  ;;  %v8747_v20 = vpop.permute.xlu0 %2679  ;;  %v13197_v9 = vld [vmem:[#allocation126_spill] sm:$0xff]  ;;  %v5565_v21 = vld [vmem:[%s5820_s17 + $0x228] sm:$0x3f] }
 0x2d8   : > { %v8735_v29 = vadd.f32 %v3529_v48, %v8171_v10  ;;  %13192 = vst [vmem:[#allocation212_spill] sm:$0xff] %v8737_v54  ;;  %v1986_v32 = vmul.f32 %v8617_v35, %v13193_v50  ;;  %v3534_v6 = vmul.f32 %v8655_v14, %v13193_v50  ;;  %v1985_v7 = vmul.f32 %v8617_v35, %v13194_v55  ;;  %v13196_v10 = vld [vmem:[#allocation125_spill] sm:$0xff]  ;;  %v13198_v63 = vld [vmem:[#allocation127_spill] sm:$0xff] }
 0x2d9   : > { %v3533_v12 = vmul.f32 %v8655_v14, %v13194_v55  ;;  %13195 = vst [vmem:[#allocation49_spill] sm:$0xff] %v8747_v20  ;;  %3722 = vperm.xlu1 %5750, %v5563_v31   ;;  %v1988_v47 = vmul.f32 %v8617_v35, %v13196_v10  ;;  %v3536_v48 = vmul.f32 %v8655_v14, %v13196_v10  ;;  %v5564_v10 = vld [vmem:[%s5820_s17 + $0x220] sm:$0xff] }
 0x2da   : > { %13191 = vst [vmem:[#allocation210_spill] sm:$0xff] %v8735_v29  ;;  %v1987_v2 = vmul.f32 %v8617_v35, %v13197_v9  ;;  %v3535_v50 = vmul.f32 %v8655_v14, %v13197_v9  ;;  %3717 = vperm.xlu0 %5749, %v5562_v24   ;;  %v8759_v54 = vadd.f32 %v1984_v1, %v8181_v46  ;;  %v13199_v9 = vld [vmem:[#allocation128_spill] sm:$0xff]  ;;  %v8779_v1 = vpop.permute.xlu1 %2862 }
 0x2db   : > { %v8762_v55 = vadd.f32 %v3532_v58, %v8184_v27  ;;  %v8765_v31 = vadd.f32 %v1983_v0, %v8193_v43  ;;  %v8768_v20 = vadd.f32 %v3531_v38, %v8205_v37  ;;  %v1990_v29 = vmul.f32 %v8617_v35, %v13198_v63  ;;  %13200 = vst [vmem:[#allocation51_spill] sm:$0xff] %v8779_v1  ;;  %v8793_v0 = vpop.permute.xlu0 %2857 }
 0x2dc   : > { %v3538_v24 = vmul.f32 %v8655_v14, %v13198_v63  ;;  %v1989_v46 = vmul.f32 %v8617_v35, %v13199_v9  ;;  %v3537_v27 = vmul.f32 %v8655_v14, %v13199_v9  ;;  %v8782_v43 = vadd.f32 %v1986_v32, %v8229_v45  ;;  %13201 = vst [vmem:[#allocation121_spill] sm:$0xff] %v8793_v0  ;;  %v13203_v32 = vld [vmem:[#allocation129_spill] sm:$0xff]  ;;  %v13216_v0 = vld [vmem:[#allocation103_spill] sm:$0xff] }
 0x2dd   : > { %v8785_v37 = vadd.f32 %v3534_v6, %v8232_v23  ;;  %v8788_v58 = vadd.f32 %v1985_v7, %v8241_v56  ;;  %v8791_v63 = vadd.f32 %v3533_v12, %v8257_v49  ;;  %3732 = vperm.xlu1 %5750, %v5565_v21   ;;  %v8796_v38 = vadd.f32 %v1988_v47, %v8269_v42  ;;  %v5567_v56 = vld [vmem:[%s5820_s17 + $0x238] sm:$0x3f]  ;;  %v13204_v6 = vld [vmem:[#allocation130_spill] sm:$0xff]  ;;  %v5566_v7 = vld [vmem:[%s5820_s17 + $0x230] sm:$0xff] }
 0x2de   : > { %v8799_v9 = vadd.f32 %v3536_v48, %v8272_v15  ;;  %v8802_v45 = vadd.f32 %v1987_v2, %v8279_v51  ;;  %v8805_v23 = vadd.f32 %v3535_v50, %v8291_v3  ;;  %3727 = vperm.xlu0 %5749, %v5564_v10   ;;  %v1992_v49 = vmul.f32 %v8617_v35, %v13203_v32  ;;  %v13208_v12 = vld [vmem:[#allocation73_spill] sm:$0xff]  ;;  %v8829_v48 = vpop.permute.xlu1 %2872  ;;  %v13211_v50 = vld [vmem:[#allocation131_spill] sm:$0xff] }
 0x2df   : > { %v3540_v21 = vmul.f32 %v8655_v14, %v13203_v32  ;;  %v1991_v42 = vmul.f32 %v8617_v35, %v13204_v6  ;;  %v3539_v15 = vmul.f32 %v8655_v14, %v13204_v6  ;;  %v8818_v51 = vadd.f32 %v1990_v29, %v8317_v59  ;;  %13210 = vst [vmem:[#allocation126_spill] sm:$0xff] %v8829_v48  ;;  %v13212_v29 = vld [vmem:[#allocation132_spill] sm:$0xff]  ;;  %v13215_v6 = vld [vmem:[#allocation134_spill] sm:$0xff]  ;;  %v5569_v48 = vld [vmem:[%s5820_s17 + $0x248] sm:$0x3f] }
 0x2e0   : > { %13202 = vst [vmem:[#allocation122_spill] sm:$0xff] %v8805_v23  ;;  %v8821_v3 = vadd.f32 %v3538_v24, %v8320_v62  ;;  %v8824_v2 = vadd.f32 %v1989_v46, %v8327_v18  ;;  %v8827_v47 = vadd.f32 %v3537_v27, %v13208_v12  ;;  %v1994_v10 = vmul.f32 %v8617_v35, %v13211_v50  ;;  %v8839_v18 = vpop.permute.xlu0 %2867  ;;  %v13214_v24 = vld [vmem:[#allocation133_spill] sm:$0xff] }
 0x2e1   : > { %13205 = vst [vmem:[#allocation94_spill] sm:$0xff] %v8818_v51  ;;  %v3542_v59 = vmul.f32 %v8655_v14, %v13211_v50  ;;  %v1993_v32 = vmul.f32 %v8617_v35, %v13212_v29  ;;  %v3541_v62 = vmul.f32 %v8655_v14, %v13212_v29  ;;  %13213 = vst [vmem:[#allocation127_spill] sm:$0xff] %v8839_v18  ;;  %3742 = vperm.xlu1 %5750, %v5567_v56   ;;  %v13217_v29 = vld [vmem:[#allocation76_spill] sm:$0xff]  ;;  %v13222_v51 = vld [vmem:[#allocation135_spill] sm:$0xff] }
 0x2e2   : > { %13206 = vst [vmem:[#allocation123_spill] sm:$0xff] %v8821_v3  ;;  %13207 = vst [vmem:[#allocation124_spill] sm:$0xff] %v8824_v2  ;;  %v1996_v46 = vmul.f32 %v8617_v35, %v13214_v24  ;;  %v3544_v27 = vmul.f32 %v8655_v14, %v13214_v24  ;;  %v1995_v12 = vmul.f32 %v8617_v35, %v13215_v6  ;;  %3737 = vperm.xlu0 %5749, %v5566_v7   ;;  %v13219_v56 = vld [vmem:[#allocation188_spill] sm:$0xff]  ;;  %v13220_v3 = vld [vmem:[#allocation189_spill] sm:$0xff] }
 0x2e3   : > { %13209 = vst [vmem:[#allocation125_spill] sm:$0xff] %v8827_v47  ;;  %v3543_v50 = vmul.f32 %v8655_v14, %v13215_v6  ;;  %v8851_v1 = vadd.f32 %v1992_v49, %v13216_v0  ;;  %v8854_v18 = vadd.f32 %v3540_v21, %v13217_v29  ;;  %v8857_v47 = vadd.f32 %v1991_v42, %v13219_v56  ;;  %v5568_v24 = vld [vmem:[%s5820_s17 + $0x240] sm:$0xff]  ;;  %v13223_v6 = vld [vmem:[#allocation136_spill] sm:$0xff]  ;;  %v8871_v21 = vpop.permute.xlu1 %2882 }
 0x2e4   : > { %v8860_v2 = vadd.f32 %v3539_v15, %v13220_v3  ;;  %v1998_v23 = vmul.f32 %v8617_v35, %v13222_v51  ;;  %v3546_v7 = vmul.f32 %v8655_v14, %v13222_v51  ;;  %v1997_v0 = vmul.f32 %v8617_v35, %v13223_v6  ;;  %13224 = vst [vmem:[#allocation130_spill] sm:$0xff] %v8871_v21  ;;  %v13225_v3 = vld [vmem:[#allocation106_spill] sm:$0xff]  ;;  %v8885_v56 = vpop.permute.xlu0 %2877 }
 0x2e5   : > { %13218 = vst [vmem:[#allocation128_spill] sm:$0xff] %v8854_v18  ;;  %v3545_v49 = vmul.f32 %v8655_v14, %v13223_v6  ;;  %v8874_v42 = vadd.f32 %v1994_v10, %v8403_v5  ;;  %v8877_v15 = vadd.f32 %v3542_v59, %v8406_v4  ;;  %v8880_v29 = vadd.f32 %v1993_v32, %v13225_v3  ;;  %v13228_v21 = vld [vmem:[#allocation230_spill] sm:$0xff]  ;;  %v13230_v5 = vld [vmem:[#allocation108_spill] sm:$0xff]  ;;  %v13232_v4 = vld [vmem:[#allocation79_spill] sm:$0xff] }
 0x2e6   : > { %13221 = vst [vmem:[#allocation129_spill] sm:$0xff] %v8860_v2  ;;  %v8883_v51 = vadd.f32 %v3541_v62, %v8429_v28  ;;  %13226 = vst [vmem:[#allocation73_spill] sm:$0xff] %v8885_v56  ;;  %3752 = vperm.xlu1 %5750, %v5569_v48   ;;  %v13227_v2 = vld [vmem:[#allocation107_spill] sm:$0xff]  ;;  %v8891_v18 = vadd.f32 %v3544_v27, %v13228_v21  ;;  %v8894_v10 = vadd.f32 %v1995_v12, %v13230_v5  ;;  %v5571_v32 = vld [vmem:[%s5820_s17 + $0x258] sm:$0x3f] }
 0x2e7   : > { %v8888_v6 = vadd.f32 %v1996_v46, %v13227_v2  ;;  %v8897_v59 = vadd.f32 %v3543_v50, %v13232_v4  ;;  %3747 = vperm.xlu0 %5749, %v5568_v24   ;;  %v13234_v3 = vld [vmem:[#allocation137_spill] sm:$0xff]  ;;  %v13235_v62 = vld [vmem:[#allocation138_spill] sm:$0xff]  ;;  %v5570_v27 = vld [vmem:[%s5820_s17 + $0x250] sm:$0xff]  ;;  %v8910_v12 = vadd.f32 %v1998_v23, %v8489_v40  ;;  %v8916_v21 = vadd.f32 %v1997_v0, %v8501_v13  ;;  %v8921_v4 = vpop.permute.xlu1 %2892 }
 0x2e8   : > { %13229 = vst [vmem:[#allocation131_spill] sm:$0xff] %v8891_v18  ;;  %13231 = vst [vmem:[#allocation132_spill] sm:$0xff] %v8894_v10  ;;  %v2000_v28 = vmul.f32 %v8617_v35, %v13234_v3  ;;  %v3548_v48 = vmul.f32 %v8655_v14, %v13234_v3  ;;  %v1999_v2 = vmul.f32 %v8617_v35, %v13235_v62  ;;  %v13237_v50 = vld [vmem:[#allocation81_spill] sm:$0xff]  ;;  %v13242_v3 = vld [vmem:[#allocation139_spill] sm:$0xff]  ;;  %v8931_v13 = vpop.permute.xlu0 %2887 }
 0x2e9   : > { %13233 = vst [vmem:[#allocation133_spill] sm:$0xff] %v8897_v59  ;;  %v3547_v46 = vmul.f32 %v8655_v14, %v13235_v62  ;;  %13236 = vst [vmem:[#allocation134_spill] sm:$0xff] %v8910_v12  ;;  %v8913_v24 = vadd.f32 %v3546_v7, %v13237_v50  ;;  %v8919_v5 = vadd.f32 %v3545_v49, %v8517_v44  ;;  %v13243_v23 = vld [vmem:[#allocation141_spill] sm:$0xff]  ;;  %v13245_v44 = vld [vmem:[#allocation142_spill] sm:$0xff] }
 0x2ea   : > { %13239 = vst [vmem:[#allocation76_spill] sm:$0xff] %v8916_v21  ;;  %13241 = vst [vmem:[#allocation189_spill] sm:$0xff] %v8921_v4  ;;  %v2002_v56 = vmul.f32 %v8617_v35, %v13242_v3  ;;  %v3550_v40 = vmul.f32 %v8655_v14, %v13242_v3  ;;  %v2001_v62 = vmul.f32 %v8617_v35, %v13243_v23  ;;  %3762 = vperm.xlu1 %5750, %v5571_v32   ;;  %v13246_v50 = vld [vmem:[#allocation143_spill] sm:$0xff]  ;;  %v13248_v32 = vld [vmem:[#allocation234_spill] sm:$0xff] }
 0x2eb   : > { %13238 = vst [vmem:[#allocation103_spill] sm:$0xff] %v8913_v24  ;;  %13240 = vst [vmem:[#allocation188_spill] sm:$0xff] %v8919_v5  ;;  %v3549_v7 = vmul.f32 %v8655_v14, %v13243_v23  ;;  %v2004_v0 = vmul.f32 %v8617_v35, %v13245_v44  ;;  %v3552_v49 = vmul.f32 %v8655_v14, %v13245_v44  ;;  %3757 = vperm.xlu0 %5749, %v5570_v27   ;;  %v5573_v5 = vld [vmem:[%s5820_s17 + $0x268] sm:$0x3f]  ;;  %v13249_v12 = vld [vmem:[#allocation112_spill] sm:$0xff] }
 0x2ec   : > { %13244 = vst [vmem:[#allocation135_spill] sm:$0xff] %v8931_v13  ;;  %v2003_v4 = vmul.f32 %v8617_v35, %v13246_v50  ;;  %v3551_v3 = vmul.f32 %v8655_v14, %v13246_v50  ;;  %v8943_v24 = vadd.f32 %v2000_v28, %v8523_v33  ;;  %v13247_v23 = vld [vmem:[#allocation39_spill] sm:$0xff]  ;;  %v8949_v21 = vadd.f32 %v1999_v2, %v13248_v32  ;;  %v5572_v44 = vld [vmem:[%s5820_s17 + $0x260] sm:$0xff]  ;;  %v13250_v18 = vld [vmem:[#allocation144_spill] sm:$0xff]  ;;  %v8968_v2 = vpop.permute.xlu1 %2902  ;;  %v8982_v32 = vpop.permute.xlu0 %2897 }
 0x2ed   : > { %v8946_v13 = vadd.f32 %v3548_v48, %v13247_v23  ;;  %v8952_v59 = vadd.f32 %v3547_v46, %v13249_v12  ;;  %v2006_v10 = vmul.f32 %v8617_v35, %v13250_v18  ;;  %v3554_v27 = vmul.f32 %v8655_v14, %v13250_v18  ;;  %v13251_v50 = vld [vmem:[#allocation146_spill] sm:$0xff]  ;;  %13252 = vst [vmem:[#allocation136_spill] sm:$0xff] %v8968_v2 }
 0x2ee   : > { %v2005_v33 = vmul.f32 %v8617_v35, %v13251_v50  ;;  %v3553_v28 = vmul.f32 %v8655_v14, %v13251_v50  ;;  %v8966_v48 = vld [vmem:[%s12211_s1 + $0x7] ss:$0 sm:$0xff]  ;;  %v8971_v46 = vadd.f32 %v2002_v56, %v8582_v34  ;;  %v8974_v12 = vadd.f32 %v3550_v40, %v8585_v26  ;;  %13253 = vst [vmem:[#allocation106_spill] sm:$0xff] %v8982_v32  ;;  %v13254_v56 = vld [vmem:[#allocation153_spill] sm:$0xff]  ;;  %v5577_v32 = vld [vmem:[%s5820_s17 + $0x288] sm:$0x3f] }
 0x2ef   : > { %v8977_v18 = vadd.f32 %v2001_v62, %v8588_v57  ;;  %v8980_v23 = vadd.f32 %v3549_v7, %v8604_v36  ;;  %3772 = vperm.xlu1 %5750, %v5573_v5   ;;  %v8985_v50 = vadd.f32 %v2004_v0, %v8620_v11  ;;  %v8988_v2 = vadd.f32 %v3552_v49, %v8623_v30  ;;  %v5575_v57 = vld [vmem:[%s5820_s17 + $0x278] sm:$0x3f]  ;;  %v9002_v5 = vld [vmem:[%s12211_s1 + $0x4] ss:$0 sm:$0xff]  ;;  %v13256_v62 = vld [vmem:[#allocation116_spill] sm:$0xff] }
 0x2f0   : > { %v8991_v34 = vadd.f32 %v2003_v4, %v8627_v22  ;;  %v8994_v26 = vadd.f32 %v3551_v3, %v8630_v61  ;;  %3767 = vperm.xlu0 %5749, %v5572_v44   ;;  %v2180_v36 = vmul.f32 %v8966_v48, %v13254_v56  ;;  %v3584_v11 = vmul.f32 %v9002_v5, %v13254_v56  ;;  %v13255_v30 = vld [vmem:[#allocation154_spill] sm:$0xff]  ;;  %v5574_v4 = vld [vmem:[%s5820_s17 + $0x270] sm:$0xff]  ;;  %v9023_v3 = vpop.permute.xlu1 %2912 }
 0x2f1   : > { %v2179_v22 = vmul.f32 %v8966_v48, %v13255_v30  ;;  %v3583_v61 = vmul.f32 %v9002_v5, %v13255_v30  ;;  %v9012_v40 = vadd.f32 %v2006_v10, %v8673_v53  ;;  %v9015_v7 = vadd.f32 %v3554_v27, %v13256_v62  ;;  %13257 = vst [vmem:[#allocation107_spill] sm:$0xff] %v9023_v3  ;;  %v13263_v27 = vld [vmem:[#allocation155_spill] sm:$0xff]  ;;  %v13264_v62 = vld [vmem:[#allocation156_spill] sm:$0xff] }
 0x2f2   : > { %v9018_v0 = vadd.f32 %v2005_v33, %v8690_v60  ;;  %v9021_v49 = vadd.f32 %v3553_v28, %v8693_v16  ;;  %v9027_v44 = vmul.f32 %v8617_v35, %v13254_v56  ;;  %v9031_v53 = vmul.f32 %v8655_v14, %v13254_v56  ;;  %v9041_v16 = vpop.permute.xlu0 %2907 }
 0x2f3   : > { %v9035_v10 = vmul.f32 %v8617_v35, %v13255_v30  ;;  %v9039_v60 = vmul.f32 %v8655_v14, %v13255_v30  ;;  %13262 = vst [vmem:[#allocation138_spill] sm:$0xff] %v9041_v16  ;;  %3782 = vperm.xlu1 %5750, %v5575_v57   ;;  %v2182_v33 = vmul.f32 %v8966_v48, %v13263_v27  ;;  %v5576_v57 = vld [vmem:[%s5820_s17 + $0x280] sm:$0xff] }
 0x2f4   : > { %13258 = vst [vmem:[#allocation230_spill] sm:$0xff] %v9027_v44  ;;  %13259 = vst [vmem:[#allocation108_spill] sm:$0xff] %v9031_v53  ;;  %v3586_v28 = vmul.f32 %v9002_v5, %v13263_v27  ;;  %v2181_v56 = vmul.f32 %v8966_v48, %v13264_v62  ;;  %v3585_v3 = vmul.f32 %v9002_v5, %v13264_v62  ;;  %3777 = vperm.xlu0 %5749, %v5574_v4  }
 0x2f5   : > { %13260 = vst [vmem:[#allocation79_spill] sm:$0xff] %v9035_v10  ;;  %13261 = vst [vmem:[#allocation137_spill] sm:$0xff] %v9039_v60  ;;  %v9053_v30 = vadd.f32 %v2180_v36, %v8704_v25  ;;  %v9056_v16 = vadd.f32 %v2179_v22, %v8710_v41  ;;  %v9060_v60 = vadd.f32 %v3584_v11, %v8707_v39  ;;  %v9081_v41 = vpop.permute.xlu1 %2922  ;;  %v13272_v22 = vld [vmem:[#allocation158_spill] sm:$0xff] }
 0x2f6   : > { %v9063_v10 = vadd.f32 %v3583_v61, %v8713_v52  ;;  %v9067_v53 = vmul.f32 %v8617_v35, %v13263_v27  ;;  %v9071_v4 = vmul.f32 %v8655_v14, %v13263_v27  ;;  %v9075_v25 = vmul.f32 %v8617_v35, %v13264_v62  ;;  %13270 = vst [vmem:[#allocation39_spill] sm:$0xff] %v9081_v41  ;;  %v13271_v52 = vld [vmem:[#allocation157_spill] sm:$0xff] }
 0x2f7   : > { %v9079_v39 = vmul.f32 %v8655_v14, %v13264_v62  ;;  %v2184_v36 = vmul.f32 %v8966_v48, %v13271_v52  ;;  %v3588_v11 = vmul.f32 %v9002_v5, %v13271_v52  ;;  %v2183_v61 = vmul.f32 %v8966_v48, %v13272_v22  ;;  %3792 = vperm.xlu1 %5750, %v5577_v32  }
 0x2f8   : > { %13265 = vst [vmem:[#allocation81_spill] sm:$0xff] %v9063_v10  ;;  %13266 = vst [vmem:[#allocation139_spill] sm:$0xff] %v9067_v53  ;;  %v3587_v27 = vmul.f32 %v9002_v5, %v13272_v22  ;;  %v9094_v62 = vadd.f32 %v2182_v33, %v8726_v17  ;;  %v9097_v41 = vadd.f32 %v2181_v56, %v8732_v19  ;;  %3787 = vperm.xlu0 %5749, %v5576_v57   ;;  %v13274_v53 = vld [vmem:[#allocation210_spill] sm:$0xff]  ;;  %v13279_v33 = vld [vmem:[#allocation159_spill] sm:$0xff] }
 0x2f9   : > { %13267 = vst [vmem:[#allocation141_spill] sm:$0xff] %v9071_v4  ;;  %13268 = vst [vmem:[#allocation142_spill] sm:$0xff] %v9075_v25  ;;  %v9091_v25 = vpop.permute.xlu0 %2917  ;;  %v9101_v4 = vadd.f32 %v3586_v28, %v8729_v8  ;;  %v9104_v44 = vadd.f32 %v3585_v3, %v13274_v53  ;;  %v9108_v10 = vmul.f32 %v8617_v35, %v13271_v52  ;;  %v5578_v8 = vld [vmem:[%s5820_s17 + $0x290] sm:$0xff] }
 0x2fa   : > { %13269 = vst [vmem:[#allocation143_spill] sm:$0xff] %v9079_v39  ;;  %13273 = vst [vmem:[#allocation234_spill] sm:$0xff] %v9091_v25  ;;  %v5579_v39 = vld [vmem:[%s5820_s17 + $0x298] sm:$0x3f]  ;;  %v9112_v32 = vmul.f32 %v8655_v14, %v13271_v52  ;;  %v9116_v17 = vmul.f32 %v8617_v35, %v13272_v22  ;;  %v9120_v19 = vmul.f32 %v8655_v14, %v13272_v22  ;;  %v13280_v28 = vld [vmem:[#allocation160_spill] sm:$0xff]  ;;  %v9131_v52 = vpop.permute.xlu1 %2932 }
 0x2fb   : > { %13275 = vst [vmem:[#allocation112_spill] sm:$0xff] %v9108_v10  ;;  %v2186_v3 = vmul.f32 %v8966_v48, %v13279_v33  ;;  %v3590_v53 = vmul.f32 %v9002_v5, %v13279_v33  ;;  %v2185_v56 = vmul.f32 %v8966_v48, %v13280_v28  ;;  %v3589_v57 = vmul.f32 %v9002_v5, %v13280_v28 }
 0x2fc   : > { %13276 = vst [vmem:[#allocation144_spill] sm:$0xff] %v9112_v32  ;;  %13277 = vst [vmem:[#allocation146_spill] sm:$0xff] %v9116_v17  ;;  %v9134_v25 = vadd.f32 %v2184_v36, %v8759_v54  ;;  %v9137_v22 = vadd.f32 %v2183_v61, %v8765_v31  ;;  %3802 = vperm.xlu1 %5750, %v5579_v39   ;;  %v9142_v17 = vadd.f32 %v3588_v11, %v8762_v55  ;;  %v5581_v55 = vld [vmem:[%s5820_s17 + $0x2a8] sm:$0x3f] }
 0x2fd   : > { %13278 = vst [vmem:[#allocation153_spill] sm:$0xff] %v9120_v19  ;;  %13281 = vst [vmem:[#allocation154_spill] sm:$0xff] %v9131_v52  ;;  %v9139_v19 = vpop.permute.xlu0 %2927  ;;  %v9145_v32 = vadd.f32 %v3587_v27, %v8768_v20  ;;  %v9149_v10 = vmul.f32 %v8617_v35, %v13279_v33  ;;  %v9153_v54 = vmul.f32 %v8655_v14, %v13279_v33  ;;  %3797 = vperm.xlu0 %5749, %v5578_v8   ;;  %v13287_v20 = vld [vmem:[#allocation165_spill] sm:$0xff]  ;;  %v13288_v61 = vld [vmem:[#allocation3_spill] sm:$0xff] }
 0x2fe   : > { %13282 = vst [vmem:[#allocation116_spill] sm:$0xff] %v9139_v19  ;;  %v9157_v31 = vmul.f32 %v8617_v35, %v13280_v28  ;;  %v9161_v39 = vmul.f32 %v8655_v14, %v13280_v28  ;;  %v2188_v36 = vmul.f32 %v8966_v48, %v13287_v20  ;;  %v3592_v11 = vmul.f32 %v9002_v5, %v13287_v20  ;;  %v5580_v19 = vld [vmem:[%s5820_s17 + $0x2a0] sm:$0xff]  ;;  %v9179_v28 = vpop.permute.xlu1 %2942 }
 0x2ff   : > { %13283 = vst [vmem:[#allocation155_spill] sm:$0xff] %v9149_v10  ;;  %13284 = vst [vmem:[#allocation156_spill] sm:$0xff] %v9153_v54  ;;  %v2187_v27 = vmul.f32 %v8966_v48, %v13288_v61  ;;  %v3591_v33 = vmul.f32 %v9002_v5, %v13288_v61  ;;  %v9174_v52 = vadd.f32 %v2186_v3, %v8782_v43 }
 0x300   : > { %13285 = vst [vmem:[#allocation157_spill] sm:$0xff] %v9157_v31  ;;  %13286 = vst [vmem:[#allocation158_spill] sm:$0xff] %v9161_v39  ;;  %v9177_v8 = vadd.f32 %v2185_v56, %v8788_v58  ;;  %v9182_v39 = vadd.f32 %v3590_v53, %v8785_v37  ;;  %v9185_v31 = vadd.f32 %v3589_v57, %v8791_v63  ;;  %3812 = vperm.xlu1 %5750, %v5581_v55   ;;  %v13296_v63 = vld [vmem:[#allocation6_spill] sm:$0xff]  ;;  %v13297_v57 = vld [vmem:[#allocation7_spill] sm:$0xff] }
 0x301   : > { %13289 = vst [vmem:[#allocation210_spill] sm:$0xff] %v9179_v28  ;;  %v9189_v54 = vmul.f32 %v8617_v35, %v13287_v20  ;;  %v9193_v43 = vmul.f32 %v8655_v14, %v13287_v20  ;;  %v9197_v58 = vmul.f32 %v8617_v35, %v13288_v61  ;;  %v9201_v37 = vmul.f32 %v8655_v14, %v13288_v61  ;;  %v9203_v3 = vpop.permute.xlu0 %2937  ;;  %v5582_v55 = vld [vmem:[%s5820_s17 + $0x2b0] sm:$0xff] }
 0x302   : > { %13290 = vst [vmem:[#allocation159_spill] sm:$0xff] %v9185_v31  ;;  %13295 = vst [vmem:[#allocation241_spill] sm:$0xff] %v9203_v3  ;;  %v2190_v53 = vmul.f32 %v8966_v48, %v13296_v63  ;;  %v3594_v56 = vmul.f32 %v9002_v5, %v13296_v63  ;;  %v2189_v20 = vmul.f32 %v8966_v48, %v13297_v57  ;;  %3807 = vperm.xlu0 %5749, %v5580_v19  }
 0x303   : > { %13291 = vst [vmem:[#allocation160_spill] sm:$0xff] %v9189_v54  ;;  %13292 = vst [vmem:[#allocation165_spill] sm:$0xff] %v9193_v43  ;;  %v3593_v28 = vmul.f32 %v9002_v5, %v13297_v57  ;;  %v9215_v61 = vadd.f32 %v2188_v36, %v8796_v38  ;;  %v9218_v3 = vadd.f32 %v2187_v27, %v8802_v45  ;;  %v13301_v43 = vld [vmem:[#allocation122_spill] sm:$0xff]  ;;  %v9243_v45 = vpop.permute.xlu1 %2952  ;;  %v13308_v36 = vld [vmem:[#allocation9_spill] sm:$0xff] }
 0x304   : > { %13293 = vst [vmem:[#allocation3_spill] sm:$0xff] %v9197_v58  ;;  %13294 = vst [vmem:[#allocation240_spill] sm:$0xff] %v9201_v37  ;;  %v5583_v58 = vld [vmem:[%s5820_s17 + $0x2b8] sm:$0x3f]  ;;  %v9222_v37 = vadd.f32 %v3592_v11, %v8799_v9  ;;  %v9225_v54 = vadd.f32 %v3591_v33, %v13301_v43  ;;  %v9229_v10 = vmul.f32 %v8617_v35, %v13296_v63  ;;  %v13309_v33 = vld [vmem:[#allocation152_spill] sm:$0xff] }
 0x305   : > { %13298 = vst [vmem:[#allocation6_spill] sm:$0xff] %v9215_v61  ;;  %13299 = vst [vmem:[#allocation7_spill] sm:$0xff] %v9218_v3  ;;  %v9233_v19 = vmul.f32 %v8655_v14, %v13296_v63  ;;  %v9237_v38 = vmul.f32 %v8617_v35, %v13297_v57  ;;  %v9241_v9 = vmul.f32 %v8655_v14, %v13297_v57  ;;  %3822 = vperm.xlu1 %5750, %v5583_v58   ;;  %v13311_v57 = vld [vmem:[#allocation94_spill] sm:$0xff]  ;;  %v13314_v3 = vld [vmem:[#allocation125_spill] sm:$0xff] }
 0x306   : > { %13300 = vst [vmem:[#allocation242_spill] sm:$0xff] %v9222_v37  ;;  %13302 = vst [vmem:[#allocation122_spill] sm:$0xff] %v9225_v54  ;;  %v2192_v11 = vmul.f32 %v8966_v48, %v13308_v36  ;;  %v3596_v27 = vmul.f32 %v9002_v5, %v13308_v36  ;;  %v2191_v43 = vmul.f32 %v8966_v48, %v13309_v33  ;;  %3817 = vperm.xlu0 %5749, %v5582_v55   ;;  %v13313_v54 = vld [vmem:[#allocation123_spill] sm:$0xff] }
 0x307   : > { %13303 = vst [vmem:[#allocation243_spill] sm:$0xff] %v9229_v10  ;;  %13304 = vst [vmem:[#allocation244_spill] sm:$0xff] %v9233_v19  ;;  %v3595_v63 = vmul.f32 %v9002_v5, %v13309_v33  ;;  %v5585_v10 = vld [vmem:[%s5820_s17 + $0x2c8] sm:$0x3f]  ;;  %v9263_v37 = vadd.f32 %v3594_v56, %v13313_v54  ;;  %v9266_v61 = vadd.f32 %v3593_v28, %v13314_v3  ;;  %v5584_v54 = vld [vmem:[%s5820_s17 + $0x2c0] sm:$0xff] }
 0x308   : > { %13305 = vst [vmem:[#allocation245_spill] sm:$0xff] %v9237_v38  ;;  %13306 = vst [vmem:[#allocation246_spill] sm:$0xff] %v9241_v9  ;;  %v9253_v38 = vpop.permute.xlu0 %2947  ;;  %v9256_v9 = vadd.f32 %v2190_v53, %v13311_v57  ;;  %v9270_v31 = vmul.f32 %v8617_v35, %v13308_v36  ;;  %v9274_v58 = vmul.f32 %v8655_v14, %v13308_v36  ;;  %v13320_v56 = vld [vmem:[#allocation12_spill] sm:$0xff]  ;;  %v13321_v3 = vld [vmem:[#allocation15_spill] sm:$0xff] }
 0x309   : > { %13307 = vst [vmem:[#allocation247_spill] sm:$0xff] %v9243_v45  ;;  %13310 = vst [vmem:[#allocation9_spill] sm:$0xff] %v9253_v38  ;;  %v13312_v45 = vld [vmem:[#allocation124_spill] sm:$0xff]  ;;  %v9278_v53 = vmul.f32 %v8617_v35, %v13309_v33  ;;  %v2194_v28 = vmul.f32 %v8966_v48, %v13320_v56  ;;  %v2193_v55 = vmul.f32 %v8966_v48, %v13321_v3  ;;  %3832 = vperm.xlu1 %5750, %v5585_v10  }
 0x30a   : > { %v9259_v19 = vadd.f32 %v2189_v20, %v13312_v45  ;;  %13315 = vst [vmem:[#allocation152_spill] sm:$0xff] %v9266_v61  ;;  %13316 = vst [vmem:[#allocation94_spill] sm:$0xff] %v9270_v31  ;;  %v9282_v20 = vmul.f32 %v8655_v14, %v13309_v33  ;;  %v9289_v45 = vpop.permute.xlu1 %2962  ;;  %v3598_v36 = vmul.f32 %v9002_v5, %v13320_v56  ;;  %3827 = vperm.xlu0 %5749, %v5584_v54  }
 0x30b   : > { %13317 = vst [vmem:[#allocation124_spill] sm:$0xff] %v9274_v58  ;;  %13318 = vst [vmem:[#allocation123_spill] sm:$0xff] %v9278_v53  ;;  %v3597_v57 = vmul.f32 %v9002_v5, %v13321_v3  ;;  %v9296_v33 = vadd.f32 %v2192_v11, %v8851_v1  ;;  %v9299_v38 = vadd.f32 %v2191_v43, %v8857_v47  ;;  %v13324_v53 = vld [vmem:[#allocation128_spill] sm:$0xff]  ;;  %v5587_v11 = vld [vmem:[%s5820_s17 + $0x2e8] sm:$0x3f] }
 0x30c   : > { %13319 = vst [vmem:[#allocation125_spill] sm:$0xff] %v9282_v20  ;;  %13322 = vst [vmem:[#allocation12_spill] sm:$0xff] %v9289_v45  ;;  %v9301_v20 = vpop.permute.xlu0 %2957  ;;  %v9304_v58 = vadd.f32 %v3596_v27, %v13324_v53  ;;  %v13325_v45 = vld [vmem:[#allocation129_spill] sm:$0xff]  ;;  %v9311_v61 = vmul.f32 %v8617_v35, %v13320_v56  ;;  %v9315_v1 = vmul.f32 %v8655_v14, %v13320_v56 }
 0x30d   : > { %13323 = vst [vmem:[#allocation15_spill] sm:$0xff] %v9301_v20  ;;  %v9307_v31 = vadd.f32 %v3595_v63, %v13325_v45  ;;  %v9319_v47 = vmul.f32 %v8617_v35, %v13321_v3  ;;  %v9323_v10 = vmul.f32 %v8655_v14, %v13321_v3  ;;  %v13330_v27 = vld [vmem:[#allocation169_spill] sm:$0xff]  ;;  %v13331_v63 = vld [vmem:[#allocation19_spill] sm:$0xff]  ;;  %v5586_v45 = vld [vmem:[%s5820_s17 + $0x2e0] sm:$0xff]  ;;  %v9339_v54 = vadd.f32 %v2193_v55, %v8880_v29 }
 0x30e   : > { %13326 = vst [vmem:[#allocation128_spill] sm:$0xff] %v9311_v61  ;;  %13327 = vst [vmem:[#allocation129_spill] sm:$0xff] %v9315_v1  ;;  %v2196_v43 = vmul.f32 %v8966_v48, %v13330_v27  ;;  %v2195_v53 = vmul.f32 %v8966_v48, %v13331_v63  ;;  %v3600_v56 = vmul.f32 %v9002_v5, %v13330_v27  ;;  %v9341_v3 = vpop.permute.xlu1 %2972  ;;  %3898 = vperm.xlu1 %5750, %v5587_v11   ;;  %v5588_v11 = vld [vmem:[%s5820_s17 + $0x2f0] sm:$0xff] }
 0x30f   : > { %13328 = vst [vmem:[#allocation248_spill] sm:$0xff] %v9319_v47  ;;  %13329 = vst [vmem:[#allocation249_spill] sm:$0xff] %v9323_v10  ;;  %v3599_v20 = vmul.f32 %v9002_v5, %v13331_v63  ;;  %v9336_v47 = vadd.f32 %v2194_v28, %v8874_v42  ;;  %v9344_v10 = vadd.f32 %v3598_v36, %v8877_v15  ;;  %v13342_v36 = vld [vmem:[#allocation170_spill] sm:$0xff]  ;;  %3893 = vperm.xlu0 %5749, %v5586_v45  }
 0x310   : > { %13332 = vst [vmem:[#allocation169_spill] sm:$0xff] %v9339_v54  ;;  %13333 = vst [vmem:[#allocation19_spill] sm:$0xff] %v9341_v3  ;;  %v9347_v1 = vadd.f32 %v3597_v57, %v8883_v51  ;;  %v9351_v61 = vmul.f32 %v8617_v35, %v13330_v27  ;;  %v9355_v42 = vmul.f32 %v8655_v14, %v13330_v27  ;;  %v9365_v28 = vpop.permute.xlu0 %2967  ;;  %v13341_v51 = vld [vmem:[#allocation22_spill] sm:$0xff]  ;;  %v5589_v27 = vld [vmem:[%s5820_s17 + $0x2f8] sm:$0x3f] }
 0x311   : > { %13334 = vst [vmem:[#allocation250_spill] sm:$0xff] %v9344_v10  ;;  %v9359_v29 = vmul.f32 %v8617_v35, %v13331_v63  ;;  %v9363_v15 = vmul.f32 %v8655_v14, %v13331_v63  ;;  %13340 = vst [vmem:[#allocation256_spill] sm:$0xff] %v9365_v28  ;;  %v2198_v55 = vmul.f32 %v8966_v48, %v13341_v51 }
 0x312   : > { %13335 = vst [vmem:[#allocation251_spill] sm:$0xff] %v9347_v1  ;;  %13336 = vst [vmem:[#allocation252_spill] sm:$0xff] %v9351_v61  ;;  %v2197_v57 = vmul.f32 %v8966_v48, %v13342_v36  ;;  %v3602_v3 = vmul.f32 %v9002_v5, %v13341_v51  ;;  %v9377_v63 = vadd.f32 %v2196_v43, %v8888_v6  ;;  %v13348_v1 = vld [vmem:[#allocation133_spill] sm:$0xff]  ;;  %3908 = vperm.xlu1 %5750, %v5589_v27  }
 0x313   : > { %13337 = vst [vmem:[#allocation253_spill] sm:$0xff] %v9355_v42  ;;  %13338 = vst [vmem:[#allocation254_spill] sm:$0xff] %v9359_v29  ;;  %v3601_v29 = vmul.f32 %v9002_v5, %v13342_v36  ;;  %v13346_v42 = vld [vmem:[#allocation131_spill] sm:$0xff]  ;;  %v9387_v45 = vadd.f32 %v3599_v20, %v13348_v1  ;;  %v9391_v10 = vmul.f32 %v8617_v35, %v13341_v51  ;;  %v13355_v20 = vld [vmem:[#allocation173_spill] sm:$0xff]  ;;  %3903 = vperm.xlu0 %5749, %v5588_v11  }
 0x314   : > { %13339 = vst [vmem:[#allocation255_spill] sm:$0xff] %v9363_v15  ;;  %13343 = vst [vmem:[#allocation22_spill] sm:$0xff] %v9377_v63  ;;  %v13344_v15 = vld [vmem:[#allocation132_spill] sm:$0xff]  ;;  %v9384_v61 = vadd.f32 %v3600_v56, %v13346_v42  ;;  %v9395_v54 = vmul.f32 %v8655_v14, %v13341_v51  ;;  %v9399_v6 = vmul.f32 %v8617_v35, %v13342_v36  ;;  %v13356_v56 = vld [vmem:[#allocation27_spill] sm:$0xff] }
 0x315   : > { %v9380_v28 = vadd.f32 %v2195_v53, %v13344_v15  ;;  %13349 = vst [vmem:[#allocation131_spill] sm:$0xff] %v9387_v45  ;;  %13350 = vst [vmem:[#allocation133_spill] sm:$0xff] %v9391_v10  ;;  %v9403_v43 = vmul.f32 %v8655_v14, %v13342_v36  ;;  %v9405_v53 = vpop.permute.xlu1 %2982  ;;  %v2200_v1 = vmul.f32 %v8966_v48, %v13355_v20  ;;  %v9411_v15 = vpop.permute.xlu0 %2977  ;;  %v13358_v36 = vld [vmem:[#allocation134_spill] sm:$0xff]  ;;  %v5591_v10 = vld [vmem:[%s5820_s17 + $0x308] sm:$0x3f] }
 0x316   : > { %13347 = vst [vmem:[#allocation132_spill] sm:$0xff] %v9384_v61  ;;  %13351 = vst [vmem:[#allocation257_spill] sm:$0xff] %v9395_v54  ;;  %v2199_v42 = vmul.f32 %v8966_v48, %v13356_v56  ;;  %v3604_v51 = vmul.f32 %v9002_v5, %v13355_v20  ;;  %v13360_v45 = vld [vmem:[#allocation103_spill] sm:$0xff]  ;;  %v9432_v27 = vmul.f32 %v8617_v35, %v13355_v20  ;;  %v13366_v11 = vld [vmem:[#allocation161_spill] sm:$0xff]  ;;  %3918 = vperm.xlu1 %5750, %v5591_v10  }
 0x317   : > { %13345 = vst [vmem:[#allocation170_spill] sm:$0xff] %v9380_v28  ;;  %13352 = vst [vmem:[#allocation258_spill] sm:$0xff] %v9399_v6  ;;  %v3603_v6 = vmul.f32 %v9002_v5, %v13356_v56  ;;  %v9425_v61 = vadd.f32 %v3602_v3, %v13360_v45  ;;  %v13361_v28 = vld [vmem:[#allocation188_spill] sm:$0xff]  ;;  %v9436_v63 = vmul.f32 %v8655_v14, %v13355_v20  ;;  %v5590_v3 = vld [vmem:[%s5820_s17 + $0x300] sm:$0xff] }
 0x318   : > { %13353 = vst [vmem:[#allocation259_spill] sm:$0xff] %v9403_v43  ;;  %13354 = vst [vmem:[#allocation260_spill] sm:$0xff] %v9405_v53  ;;  %v9418_v43 = vadd.f32 %v2198_v55, %v13358_v36  ;;  %v13359_v53 = vld [vmem:[#allocation76_spill] sm:$0xff]  ;;  %v9440_v55 = vmul.f32 %v8617_v35, %v13356_v56  ;;  %v3606_v20 = vmul.f32 %v9002_v5, %v13366_v11  ;;  %3913 = vperm.xlu0 %5749, %v5590_v3  }
 0x319   : > { %13357 = vst [vmem:[#allocation173_spill] sm:$0xff] %v9411_v15  ;;  %v9421_v54 = vadd.f32 %v2197_v57, %v13359_v53  ;;  %v9428_v15 = vadd.f32 %v3601_v29, %v13361_v28  ;;  %13362 = vst [vmem:[#allocation27_spill] sm:$0xff] %v9432_v27  ;;  %v9444_v57 = vmul.f32 %v8655_v14, %v13356_v56  ;;  %v13367_v28 = vld [vmem:[#allocation162_spill] sm:$0xff]  ;;  %v9451_v53 = vpop.permute.xlu1 %2992 }
 0x31a   : > { %13363 = vst [vmem:[#allocation134_spill] sm:$0xff] %v9436_v63  ;;  %13364 = vst [vmem:[#allocation76_spill] sm:$0xff] %v9440_v55  ;;  %v2202_v29 = vmul.f32 %v8966_v48, %v13366_v11  ;;  %v2201_v45 = vmul.f32 %v8966_v48, %v13367_v28  ;;  %v3605_v36 = vmul.f32 %v9002_v5, %v13367_v28  ;;  %v9463_v55 = vpop.permute.xlu0 %2987 }
 0x31b   : > { %13365 = vst [vmem:[#allocation103_spill] sm:$0xff] %v9444_v57  ;;  %13368 = vst [vmem:[#allocation188_spill] sm:$0xff] %v9451_v53  ;;  %v9458_v56 = vadd.f32 %v2200_v1, %v8943_v24  ;;  %v9461_v57 = vadd.f32 %v2199_v42, %v8949_v21  ;;  %v9466_v63 = vadd.f32 %v3604_v51, %v8946_v13  ;;  %v5593_v13 = vld [vmem:[%s5820_s17 + $0x318] sm:$0x3f]  ;;  %v13375_v1 = vld [vmem:[#allocation147_spill] sm:$0xff] }
 0x31c   : > { %13369 = vst [vmem:[#allocation161_spill] sm:$0xff] %v9463_v55  ;;  %v9469_v53 = vadd.f32 %v3603_v6, %v8952_v59  ;;  %v9473_v27 = vmul.f32 %v8617_v35, %v13366_v11  ;;  %v9477_v24 = vmul.f32 %v8655_v14, %v13366_v11  ;;  %v9481_v21 = vmul.f32 %v8617_v35, %v13367_v28  ;;  %v13374_v59 = vld [vmem:[#allocation163_spill] sm:$0xff]  ;;  %v5592_v51 = vld [vmem:[%s5820_s17 + $0x310] sm:$0xff] }
 0x31d   : > { %v9485_v10 = vmul.f32 %v8655_v14, %v13367_v28  ;;  %v2204_v6 = vmul.f32 %v8966_v48, %v13374_v59  ;;  %v2203_v42 = vmul.f32 %v8966_v48, %v13375_v1  ;;  %v3608_v11 = vmul.f32 %v9002_v5, %v13374_v59  ;;  %v9503_v28 = vpop.permute.xlu1 %3170  ;;  %3928 = vperm.xlu1 %5750, %v5593_v13  }
 0x31e   : > { %13370 = vst [vmem:[#allocation162_spill] sm:$0xff] %v9473_v27  ;;  %13371 = vst [vmem:[#allocation261_spill] sm:$0xff] %v9477_v24  ;;  %v3607_v55 = vmul.f32 %v9002_v5, %v13375_v1  ;;  %v9501_v3 = vadd.f32 %v2201_v45, %v8977_v18  ;;  %v9509_v24 = vadd.f32 %v3605_v36, %v8980_v23  ;;  %v13383_v23 = vld [vmem:[#allocation164_spill] sm:$0xff]  ;;  %3923 = vperm.xlu0 %5749, %v5592_v51  }
 0x31f   : > { %13372 = vst [vmem:[#allocation262_spill] sm:$0xff] %v9481_v21  ;;  %13373 = vst [vmem:[#allocation263_spill] sm:$0xff] %v9485_v10  ;;  %v9498_v21 = vadd.f32 %v2202_v29, %v8971_v46  ;;  %v9506_v10 = vadd.f32 %v3606_v20, %v8974_v12  ;;  %v9513_v27 = vmul.f32 %v8617_v35, %v13374_v59  ;;  %v9527_v29 = vpop.permute.xlu0 %3165  ;;  %v13384_v20 = vld [vmem:[#allocation5_spill] sm:$0xff] }
 0x320   : > { %13376 = vst [vmem:[#allocation163_spill] sm:$0xff] %v9503_v28  ;;  %13377 = vst [vmem:[#allocation147_spill] sm:$0xff] %v9509_v24  ;;  %v9517_v46 = vmul.f32 %v8655_v14, %v13374_v59  ;;  %v9521_v18 = vmul.f32 %v8617_v35, %v13375_v1  ;;  %v9525_v12 = vmul.f32 %v8655_v14, %v13375_v1  ;;  %v9536_v59 = vld [vmem:[%s12211_s1 + $0x8] ss:$0 sm:$0xff] }
 0x321   : > { %13378 = vst [vmem:[#allocation264_spill] sm:$0xff] %v9513_v27  ;;  %13382 = vst [vmem:[#allocation268_spill] sm:$0xff] %v9527_v29  ;;  %v2206_v45 = vmul.f32 %v8966_v48, %v13383_v23  ;;  %v2205_v36 = vmul.f32 %v8966_v48, %v13384_v20  ;;  %v5595_v28 = vld [vmem:[%s5820_s17 + $0x328] sm:$0x3f]  ;;  %v3610_v1 = vmul.f32 %v9002_v5, %v13383_v23 }
 0x322   : > { %13379 = vst [vmem:[#allocation265_spill] sm:$0xff] %v9517_v46  ;;  %13380 = vst [vmem:[#allocation266_spill] sm:$0xff] %v9521_v18  ;;  %v3609_v29 = vmul.f32 %v9002_v5, %v13384_v20  ;;  %v9544_v13 = vadd.f32 %v2204_v6, %v8985_v50  ;;  %v5594_v18 = vld [vmem:[%s5820_s17 + $0x320] sm:$0xff]  ;;  %v9551_v46 = vadd.f32 %v3608_v11, %v8988_v2  ;;  %v13391_v6 = vld [vmem:[#allocation33_spill] sm:$0xff]  ;;  %3938 = vperm.xlu1 %5750, %v5595_v28  }
 0x323   : > { %13381 = vst [vmem:[#allocation267_spill] sm:$0xff] %v9525_v12  ;;  %v9547_v12 = vadd.f32 %v2203_v42, %v8991_v34  ;;  %v9554_v27 = vadd.f32 %v3607_v55, %v8994_v26  ;;  %v9558_v51 = vmul.f32 %v8617_v35, %v13383_v23  ;;  %v9562_v24 = vmul.f32 %v8655_v14, %v13383_v23  ;;  %v9572_v34 = vpop.permute.xlu1 %3180  ;;  %v13390_v26 = vld [vmem:[#allocation4_spill] sm:$0xff]  ;;  %v9578_v11 = vpop.permute.xlu0 %3175 }
 0x324   : > { %v9566_v50 = vmul.f32 %v8617_v35, %v13384_v20  ;;  %v9570_v2 = vmul.f32 %v8655_v14, %v13384_v20  ;;  %13389 = vst [vmem:[#allocation271_spill] sm:$0xff] %v9572_v34  ;;  %v2380_v55 = vmul.f32 %v9536_v59, %v13390_v26  ;;  %v2379_v42 = vmul.f32 %v9536_v59, %v13391_v6  ;;  %v9583_v35 = vld [vmem:[%s12211_s1 + $0x5] ss:$0 sm:$0xff] }
 0x325   : > { %13385 = vst [vmem:[#allocation164_spill] sm:$0xff] %v9558_v51  ;;  %13386 = vst [vmem:[#allocation5_spill] sm:$0xff] %v9562_v24  ;;  %v3640_v14 = vmul.f32 %v9583_v35, %v13390_v26  ;;  %v3639_v23 = vmul.f32 %v9583_v35, %v13391_v6  ;;  %v9590_v20 = vadd.f32 %v2206_v45, %v9012_v40  ;;  %3933 = vperm.xlu0 %5749, %v5594_v18   ;;  %v13397_v18 = vld [vmem:[#allocation36_spill] sm:$0xff] }
 0x326   : > { %13387 = vst [vmem:[#allocation269_spill] sm:$0xff] %v9566_v50  ;;  %13388 = vst [vmem:[#allocation270_spill] sm:$0xff] %v9570_v2  ;;  %v9593_v2 = vadd.f32 %v2205_v36, %v9018_v0  ;;  %v9597_v28 = vadd.f32 %v3610_v1, %v9015_v7  ;;  %v9600_v50 = vadd.f32 %v3609_v29, %v9021_v49  ;;  %v5596_v7 = vld [vmem:[%s5820_s17 + $0x330] sm:$0xff]  ;;  %v13398_v29 = vld [vmem:[#allocation38_spill] sm:$0xff] }
 0x327   : > { %13392 = vst [vmem:[#allocation4_spill] sm:$0xff] %v9578_v11  ;;  %v5597_v11 = vld [vmem:[%s5820_s17 + $0x338] sm:$0x3f]  ;;  %v9604_v34 = vmul.f32 %v8966_v48, %v13390_v26  ;;  %v9608_v24 = vmul.f32 %v9002_v5, %v13390_v26  ;;  %v9612_v40 = vmul.f32 %v8966_v48, %v13391_v6  ;;  %v9616_v0 = vmul.f32 %v9002_v5, %v13391_v6  ;;  %v9623_v36 = vpop.permute.xlu1 %3190 }
 0x328   : > { %v2382_v49 = vmul.f32 %v9536_v59, %v13397_v18  ;;  %v2381_v45 = vmul.f32 %v9536_v59, %v13398_v29  ;;  %13399 = vst [vmem:[#allocation36_spill] sm:$0xff] %v9623_v36  ;;  %v3642_v1 = vmul.f32 %v9583_v35, %v13397_v18  ;;  %v3641_v26 = vmul.f32 %v9583_v35, %v13398_v29  ;;  %v13404_v36 = vld [vmem:[#allocation81_spill] sm:$0xff] }
 0x329   : > { %13393 = vst [vmem:[#allocation33_spill] sm:$0xff] %v9604_v34  ;;  %13394 = vst [vmem:[#allocation272_spill] sm:$0xff] %v9608_v24  ;;  %v9630_v6 = vadd.f32 %v2380_v55, %v9053_v30  ;;  %v9633_v51 = vadd.f32 %v2379_v42, %v9056_v16  ;;  %3948 = vperm.xlu1 %5750, %v5597_v11   ;;  %v9641_v24 = vadd.f32 %v3639_v23, %v13404_v36  ;;  %v13406_v42 = vld [vmem:[#allocation43_spill] sm:$0xff]  ;;  %v5598_v36 = vld [vmem:[%s5820_s17 + $0x340] sm:$0xff] }
 0x32a   : > { %13395 = vst [vmem:[#allocation273_spill] sm:$0xff] %v9612_v40  ;;  %13396 = vst [vmem:[#allocation274_spill] sm:$0xff] %v9616_v0  ;;  %v9635_v0 = vpop.permute.xlu0 %3185  ;;  %v9638_v40 = vadd.f32 %v3640_v14, %v9060_v60  ;;  %v9645_v34 = vmul.f32 %v8966_v48, %v13397_v18  ;;  %v9649_v30 = vmul.f32 %v9002_v5, %v13397_v18  ;;  %3943 = vperm.xlu0 %5749, %v5596_v7   ;;  %v5599_v60 = vld [vmem:[%s5820_s17 + $0x348] sm:$0x3f]  ;;  %v13407_v14 = vld [vmem:[#allocation45_spill] sm:$0xff] }
 0x32b   : > { %13400 = vst [vmem:[#allocation38_spill] sm:$0xff] %v9630_v6  ;;  %13401 = vst [vmem:[#allocation275_spill] sm:$0xff] %v9633_v51  ;;  %v9653_v16 = vmul.f32 %v8966_v48, %v13398_v29  ;;  %v9657_v55 = vmul.f32 %v9002_v5, %v13398_v29  ;;  %v2384_v11 = vmul.f32 %v9536_v59, %v13406_v42  ;;  %v9675_v29 = vpop.permute.xlu1 %3200 }
 0x32c   : > { %13402 = vst [vmem:[#allocation276_spill] sm:$0xff] %v9635_v0  ;;  %13403 = vst [vmem:[#allocation277_spill] sm:$0xff] %v9638_v40  ;;  %v2383_v23 = vmul.f32 %v9536_v59, %v13407_v14  ;;  %v3644_v18 = vmul.f32 %v9583_v35, %v13406_v42  ;;  %v9670_v40 = vadd.f32 %v2382_v49, %v9094_v62 }
 0x32d   : > { %13405 = vst [vmem:[#allocation81_spill] sm:$0xff] %v9641_v24  ;;  %v3643_v24 = vmul.f32 %v9583_v35, %v13407_v14  ;;  %v9673_v7 = vadd.f32 %v2381_v45, %v9097_v41  ;;  %13410 = vst [vmem:[#allocation278_spill] sm:$0xff] %v9675_v29  ;;  %v9678_v51 = vadd.f32 %v3642_v1, %v9101_v4  ;;  %3958 = vperm.xlu1 %5750, %v5599_v60   ;;  %v13415_v1 = vld [vmem:[#allocation50_spill] sm:$0xff]  ;;  %v5600_v60 = vld [vmem:[%s5820_s17 + $0x350] sm:$0xff] }
 0x32e   : > { %13408 = vst [vmem:[#allocation43_spill] sm:$0xff] %v9670_v40  ;;  %v9681_v6 = vadd.f32 %v3641_v26, %v9104_v44  ;;  %v9685_v0 = vmul.f32 %v8966_v48, %v13406_v42  ;;  %v9689_v62 = vmul.f32 %v9002_v5, %v13406_v42  ;;  %v9693_v41 = vmul.f32 %v8966_v48, %v13407_v14  ;;  %v9699_v49 = vpop.permute.xlu0 %3195  ;;  %v13414_v44 = vld [vmem:[#allocation47_spill] sm:$0xff]  ;;  %v5601_v42 = vld [vmem:[%s5820_s17 + $0x358] sm:$0x3f] }
 0x32f   : > { %13409 = vst [vmem:[#allocation45_spill] sm:$0xff] %v9673_v7  ;;  %13411 = vst [vmem:[#allocation279_spill] sm:$0xff] %v9678_v51  ;;  %v9697_v4 = vmul.f32 %v9002_v5, %v13407_v14  ;;  %v2386_v45 = vmul.f32 %v9536_v59, %v13414_v44  ;;  %v2385_v26 = vmul.f32 %v9536_v59, %v13415_v1  ;;  %3953 = vperm.xlu0 %5749, %v5598_v36  }
 0x330   : > { %13412 = vst [vmem:[#allocation280_spill] sm:$0xff] %v9681_v6  ;;  %13413 = vst [vmem:[#allocation281_spill] sm:$0xff] %v9699_v49  ;;  %v3646_v6 = vmul.f32 %v9583_v35, %v13414_v44  ;;  %v3645_v51 = vmul.f32 %v9583_v35, %v13415_v1  ;;  %v9711_v14 = vadd.f32 %v2384_v11, %v9134_v25  ;;  %v13423_v11 = vld [vmem:[#allocation58_spill] sm:$0xff] }
 0x331   : > { %v9714_v49 = vadd.f32 %v2383_v23, %v9137_v22  ;;  %v9718_v7 = vadd.f32 %v3644_v18, %v9142_v17  ;;  %v9721_v36 = vadd.f32 %v3643_v24, %v9145_v32  ;;  %v9725_v29 = vmul.f32 %v8966_v48, %v13414_v44  ;;  %v9739_v22 = vpop.permute.xlu1 %3210  ;;  %v13422_v32 = vld [vmem:[#allocation55_spill] sm:$0xff]  ;;  %3968 = vperm.xlu1 %5750, %v5601_v42  }
 0x332   : > { %13416 = vst [vmem:[#allocation47_spill] sm:$0xff] %v9711_v14  ;;  %v9729_v40 = vmul.f32 %v9002_v5, %v13414_v44  ;;  %v9733_v25 = vmul.f32 %v8966_v48, %v13415_v1  ;;  %v9737_v17 = vmul.f32 %v9002_v5, %v13415_v1  ;;  %13421 = vst [vmem:[#allocation285_spill] sm:$0xff] %v9739_v22  ;;  %v9745_v18 = vpop.permute.xlu0 %3205  ;;  %v5603_v22 = vld [vmem:[%s5820_s17 + $0x368] sm:$0x3f] }
 0x333   : > { %13417 = vst [vmem:[#allocation50_spill] sm:$0xff] %v9714_v49  ;;  %13418 = vst [vmem:[#allocation282_spill] sm:$0xff] %v9718_v7  ;;  %v2388_v24 = vmul.f32 %v9536_v59, %v13422_v32  ;;  %v2387_v23 = vmul.f32 %v9536_v59, %v13423_v11  ;;  %v3648_v44 = vmul.f32 %v9583_v35, %v13422_v32  ;;  %3963 = vperm.xlu0 %5749, %v5600_v60   ;;  %v13428_v14 = vld [vmem:[#allocation159_spill] sm:$0xff] }
 0x334   : > { %13419 = vst [vmem:[#allocation283_spill] sm:$0xff] %v9721_v36  ;;  %13420 = vst [vmem:[#allocation284_spill] sm:$0xff] %v9737_v17  ;;  %v3647_v36 = vmul.f32 %v9583_v35, %v13423_v11  ;;  %v9752_v1 = vadd.f32 %v2386_v45, %v9174_v52  ;;  %v9755_v7 = vadd.f32 %v2385_v26, %v9177_v8  ;;  %v13435_v45 = vld [vmem:[#allocation67_spill] sm:$0xff] }
 0x335   : > { %13424 = vst [vmem:[#allocation55_spill] sm:$0xff] %v9745_v18  ;;  %v9759_v49 = vadd.f32 %v3646_v6, %v9182_v39  ;;  %v9762_v18 = vadd.f32 %v3645_v51, %v13428_v14  ;;  %v9766_v42 = vmul.f32 %v8966_v48, %v13422_v32  ;;  %v9770_v17 = vmul.f32 %v9002_v5, %v13422_v32  ;;  %v5602_v39 = vld [vmem:[%s5820_s17 + $0x360] sm:$0xff]  ;;  %v13434_v6 = vld [vmem:[#allocation64_spill] sm:$0xff]  ;;  %v9785_v14 = vpop.permute.xlu1 %3220 }
 0x336   : > { %13425 = vst [vmem:[#allocation58_spill] sm:$0xff] %v9752_v1  ;;  %13426 = vst [vmem:[#allocation286_spill] sm:$0xff] %v9755_v7  ;;  %v9774_v52 = vmul.f32 %v8966_v48, %v13423_v11  ;;  %v9778_v8 = vmul.f32 %v9002_v5, %v13423_v11  ;;  %v2390_v51 = vmul.f32 %v9536_v59, %v13434_v6  ;;  %v9797_v1 = vpop.permute.xlu0 %3215  ;;  %3978 = vperm.xlu1 %5750, %v5603_v22  }
 0x337   : > { %13427 = vst [vmem:[#allocation287_spill] sm:$0xff] %v9759_v49  ;;  %13429 = vst [vmem:[#allocation159_spill] sm:$0xff] %v9762_v18  ;;  %v2389_v26 = vmul.f32 %v9536_v59, %v13435_v45  ;;  %v3650_v60 = vmul.f32 %v9583_v35, %v13434_v6  ;;  %v3649_v32 = vmul.f32 %v9583_v35, %v13435_v45  ;;  %v13437_v18 = vld [vmem:[#allocation6_spill] sm:$0xff]  ;;  %v13439_v49 = vld [vmem:[#allocation7_spill] sm:$0xff]  ;;  %3973 = vperm.xlu0 %5749, %v5602_v39  }
 0x338   : > { %13430 = vst [vmem:[#allocation288_spill] sm:$0xff] %v9766_v42  ;;  %13431 = vst [vmem:[#allocation289_spill] sm:$0xff] %v9770_v17  ;;  %v9792_v11 = vadd.f32 %v2388_v24, %v13437_v18  ;;  %v9795_v7 = vadd.f32 %v2387_v23, %v13439_v49  ;;  %v9807_v42 = vmul.f32 %v8966_v48, %v13434_v6  ;;  %v5605_v23 = vld [vmem:[%s5820_s17 + $0x378] sm:$0x3f] }
 0x339   : > { %13432 = vst [vmem:[#allocation290_spill] sm:$0xff] %v9774_v52  ;;  %13433 = vst [vmem:[#allocation291_spill] sm:$0xff] %v9778_v8  ;;  %v13442_v8 = vld [vmem:[#allocation242_spill] sm:$0xff]  ;;  %v9811_v24 = vmul.f32 %v9002_v5, %v13434_v6  ;;  %v9815_v49 = vmul.f32 %v8966_v48, %v13435_v45  ;;  %v9819_v22 = vmul.f32 %v9002_v5, %v13435_v45  ;;  %v9837_v45 = vpop.permute.xlu1 %3230 }
 0x33a   : > { %13436 = vst [vmem:[#allocation64_spill] sm:$0xff] %v9785_v14  ;;  %13438 = vst [vmem:[#allocation67_spill] sm:$0xff] %v9792_v11  ;;  %v9800_v52 = vadd.f32 %v3648_v44, %v13442_v8  ;;  %v13444_v14 = vld [vmem:[#allocation122_spill] sm:$0xff]  ;;  %v9835_v39 = vadd.f32 %v2389_v26, %v9259_v19  ;;  %v13453_v11 = vld [vmem:[#allocation152_spill] sm:$0xff]  ;;  %3988 = vperm.xlu1 %5750, %v5605_v23  }
 0x33b   : > { %13440 = vst [vmem:[#allocation6_spill] sm:$0xff] %v9795_v7  ;;  %13441 = vst [vmem:[#allocation7_spill] sm:$0xff] %v9797_v1  ;;  %v9803_v17 = vadd.f32 %v3647_v36, %v13444_v14  ;;  %v13447_v36 = vld [vmem:[#allocation69_spill] sm:$0xff]  ;;  %v13448_v44 = vld [vmem:[#allocation70_spill] sm:$0xff]  ;;  %v9840_v7 = vadd.f32 %v3650_v60, %v9263_v37  ;;  %v9843_v1 = vadd.f32 %v3649_v32, %v13453_v11 }
 0x33c   : > { %13443 = vst [vmem:[#allocation242_spill] sm:$0xff] %v9800_v52  ;;  %13446 = vst [vmem:[#allocation292_spill] sm:$0xff] %v9819_v22  ;;  %v2392_v18 = vmul.f32 %v9536_v59, %v13447_v36  ;;  %v2391_v8 = vmul.f32 %v9536_v59, %v13448_v44  ;;  %v5604_v14 = vld [vmem:[%s5820_s17 + $0x370] sm:$0xff]  ;;  %v3652_v6 = vmul.f32 %v9583_v35, %v13447_v36  ;;  %v13460_v26 = vld [vmem:[#allocation71_spill] sm:$0xff] }
 0x33d   : > { %13445 = vst [vmem:[#allocation122_spill] sm:$0xff] %v9803_v17  ;;  %v3651_v17 = vmul.f32 %v9583_v35, %v13448_v44  ;;  %v9832_v52 = vadd.f32 %v2390_v51, %v9256_v9  ;;  %13450 = vst [vmem:[#allocation70_spill] sm:$0xff] %v9835_v39  ;;  %v9847_v22 = vmul.f32 %v8966_v48, %v13447_v36  ;;  %v9861_v51 = vpop.permute.xlu0 %3225  ;;  %v13461_v32 = vld [vmem:[#allocation181_spill] sm:$0xff]  ;;  %3983 = vperm.xlu0 %5749, %v5604_v14   ;;  %v5606_v23 = vld [vmem:[%s5820_s17 + $0x380] sm:$0xff] }
 0x33e   : > { %13451 = vst [vmem:[#allocation293_spill] sm:$0xff] %v9837_v45  ;;  %13452 = vst [vmem:[#allocation294_spill] sm:$0xff] %v9840_v7  ;;  %v9851_v9 = vmul.f32 %v9002_v5, %v13447_v36  ;;  %v9855_v19 = vmul.f32 %v8966_v48, %v13448_v44  ;;  %v9859_v37 = vmul.f32 %v9002_v5, %v13448_v44  ;;  %v5607_v36 = vld [vmem:[%s5820_s17 + $0x388] sm:$0x3f] }
 0x33f   : > { %13449 = vst [vmem:[#allocation69_spill] sm:$0xff] %v9832_v52  ;;  %13454 = vst [vmem:[#allocation152_spill] sm:$0xff] %v9843_v1  ;;  %v2394_v60 = vmul.f32 %v9536_v59, %v13460_v26  ;;  %v2393_v11 = vmul.f32 %v9536_v59, %v13461_v32  ;;  %v3654_v1 = vmul.f32 %v9583_v35, %v13460_v26  ;;  %3998 = vperm.xlu1 %5750, %v5607_v36  }
 0x340   : > { %13455 = vst [vmem:[#allocation295_spill] sm:$0xff] %v9847_v22  ;;  %13456 = vst [vmem:[#allocation296_spill] sm:$0xff] %v9851_v9  ;;  %v3653_v7 = vmul.f32 %v9583_v35, %v13461_v32  ;;  %v9873_v44 = vadd.f32 %v2392_v18, %v9296_v33  ;;  %v9876_v39 = vadd.f32 %v2391_v8, %v9299_v38  ;;  %v9901_v33 = vpop.permute.xlu1 %3240  ;;  %v13472_v18 = vld [vmem:[#allocation75_spill] sm:$0xff] }
 0x341   : > { %13457 = vst [vmem:[#allocation297_spill] sm:$0xff] %v9855_v19  ;;  %13458 = vst [vmem:[#allocation298_spill] sm:$0xff] %v9859_v37  ;;  %v9880_v52 = vadd.f32 %v3652_v6, %v9304_v58  ;;  %v9883_v14 = vadd.f32 %v3651_v17, %v9307_v31  ;;  %v9891_v45 = vmul.f32 %v9002_v5, %v13460_v26  ;;  %v13471_v31 = vld [vmem:[#allocation185_spill] sm:$0xff]  ;;  %v9907_v6 = vpop.permute.xlu0 %3235  ;;  %3993 = vperm.xlu0 %5749, %v5606_v23  }
 0x342   : > { %13459 = vst [vmem:[#allocation299_spill] sm:$0xff] %v9861_v51  ;;  %13462 = vst [vmem:[#allocation71_spill] sm:$0xff] %v9873_v44  ;;  %v9887_v51 = vmul.f32 %v8966_v48, %v13460_v26  ;;  %v9895_v38 = vmul.f32 %v8966_v48, %v13461_v32  ;;  %v9899_v58 = vmul.f32 %v9002_v5, %v13461_v32  ;;  %v5609_v44 = vld [vmem:[%s5820_s17 + $0x398] sm:$0x3f] }
 0x343   : > { %13463 = vst [vmem:[#allocation181_spill] sm:$0xff] %v9876_v39  ;;  %13464 = vst [vmem:[#allocation300_spill] sm:$0xff] %v9880_v52  ;;  %v2396_v17 = vmul.f32 %v9536_v59, %v13471_v31  ;;  %v2395_v8 = vmul.f32 %v9536_v59, %v13472_v18  ;;  %v3656_v26 = vmul.f32 %v9583_v35, %v13471_v31  ;;  %v13475_v52 = vld [vmem:[#allocation169_spill] sm:$0xff]  ;;  %4008 = vperm.xlu1 %5750, %v5609_v44  }
 0x344   : > { %13465 = vst [vmem:[#allocation301_spill] sm:$0xff] %v9883_v14  ;;  %13466 = vst [vmem:[#allocation302_spill] sm:$0xff] %v9887_v51  ;;  %v3655_v14 = vmul.f32 %v9583_v35, %v13472_v18  ;;  %v9914_v32 = vadd.f32 %v2394_v60, %v9336_v47  ;;  %v9917_v39 = vadd.f32 %v2393_v11, %v13475_v52  ;;  %v13485_v60 = vld [vmem:[#allocation77_spill] sm:$0xff]  ;;  %v13486_v11 = vld [vmem:[#allocation34_spill] sm:$0xff] }
 0x345   : > { %13467 = vst [vmem:[#allocation303_spill] sm:$0xff] %v9891_v45  ;;  %13468 = vst [vmem:[#allocation304_spill] sm:$0xff] %v9895_v38  ;;  %v13479_v38 = vld [vmem:[#allocation251_spill] sm:$0xff]  ;;  %v9928_v36 = vmul.f32 %v8966_v48, %v13471_v31  ;;  %v9932_v45 = vmul.f32 %v9002_v5, %v13471_v31  ;;  %v9936_v47 = vmul.f32 %v8966_v48, %v13472_v18  ;;  %v13657_v19 = vld [vmem:[#allocation121_spill] sm:$0xff] }
 0x346   : > { %13469 = vst [vmem:[#allocation305_spill] sm:$0xff] %v9899_v58  ;;  %13470 = vst [vmem:[#allocation306_spill] sm:$0xff] %v9901_v33  ;;  %v13477_v33 = vld [vmem:[#allocation250_spill] sm:$0xff]  ;;  %v9940_v52 = vmul.f32 %v9002_v5, %v13472_v18  ;;  %v2397_v23 = vmul.f32 %v9536_v59, %v13486_v11  ;;  %v3657_v31 = vmul.f32 %v9583_v35, %v13486_v11 }
 0x347   : > { %13473 = vst [vmem:[#allocation185_spill] sm:$0xff] %v9907_v6  ;;  %13474 = vst [vmem:[#allocation75_spill] sm:$0xff] %v9914_v32  ;;  %v9921_v58 = vadd.f32 %v3654_v1, %v13477_v33  ;;  %v9924_v6 = vadd.f32 %v3653_v7, %v13479_v38  ;;  %v5608_v1 = vld [vmem:[%s5820_s17 + $0x390] sm:$0xff]  ;;  %v2398_v7 = vmul.f32 %v9536_v59, %v13485_v60  ;;  %v9947_v38 = vpop.permute.xlu1 %3250  ;;  %v13490_v32 = vld [vmem:[#allocation170_spill] sm:$0xff] }
 0x348   : > { %13476 = vst [vmem:[#allocation169_spill] sm:$0xff] %v9917_v39  ;;  %13481 = vst [vmem:[#allocation307_spill] sm:$0xff] %v9928_v36  ;;  %v3658_v33 = vmul.f32 %v9583_v35, %v13485_v60  ;;  %v13488_v39 = vld [vmem:[#allocation22_spill] sm:$0xff]  ;;  %v9969_v36 = vmul.f32 %v8966_v48, %v13485_v60  ;;  %4003 = vperm.xlu0 %5749, %v5608_v1  }
 0x349   : > { %13478 = vst [vmem:[#allocation250_spill] sm:$0xff] %v9921_v58  ;;  %13480 = vst [vmem:[#allocation251_spill] sm:$0xff] %v9924_v6  ;;  %v9954_v18 = vadd.f32 %v2396_v17, %v13488_v39  ;;  %v9957_v6 = vadd.f32 %v2395_v8, %v13490_v32  ;;  %v9959_v58 = vpop.permute.xlu0 %3245  ;;  %v9973_v39 = vmul.f32 %v9002_v5, %v13485_v60  ;;  %v13499_v17 = vld [vmem:[#allocation80_spill] sm:$0xff]  ;;  %v5611_v32 = vld [vmem:[%s5820_s17 + $0x3a8] sm:$0x3f] }
 0x34a   : > { %13482 = vst [vmem:[#allocation308_spill] sm:$0xff] %v9932_v45  ;;  %13483 = vst [vmem:[#allocation309_spill] sm:$0xff] %v9936_v47  ;;  %v2400_v8 = vmul.f32 %v9536_v59, %v13499_v17  ;;  %v3660_v44 = vmul.f32 %v9583_v35, %v13499_v17  ;;  %4018 = vperm.xlu1 %5750, %v5611_v32  }
 0x34b   : > { %13484 = vst [vmem:[#allocation310_spill] sm:$0xff] %v9940_v52  ;;  %13487 = vst [vmem:[#allocation77_spill] sm:$0xff] %v9947_v38  ;;  %v13493_v52 = vld [vmem:[#allocation132_spill] sm:$0xff]  ;;  %v13495_v38 = vld [vmem:[#allocation131_spill] sm:$0xff] }
 0x34c   : > { %13489 = vst [vmem:[#allocation34_spill] sm:$0xff] %v9954_v18  ;;  %13491 = vst [vmem:[#allocation22_spill] sm:$0xff] %v9957_v6  ;;  %v9962_v47 = vadd.f32 %v3656_v26, %v13493_v52  ;;  %v9965_v45 = vadd.f32 %v3655_v14, %v13495_v38  ;;  %v9982_v14 = vmul.f32 %v8966_v48, %v13486_v11  ;;  %v13502_v52 = vld [vmem:[#allocation37_spill] sm:$0xff]  ;;  %v5610_v38 = vld [vmem:[%s5820_s17 + $0x3a0] sm:$0xff]  ;;  %v9996_v18 = vpop.permute.xlu1 %3260 }
 0x34d   : > { %13492 = vst [vmem:[#allocation170_spill] sm:$0xff] %v9959_v58  ;;  %13497 = vst [vmem:[#allocation311_spill] sm:$0xff] %v9969_v36  ;;  %v9986_v26 = vmul.f32 %v9002_v5, %v13486_v11  ;;  %v2399_v60 = vmul.f32 %v9536_v59, %v13502_v52  ;;  %v3659_v1 = vmul.f32 %v9583_v35, %v13502_v52  ;;  %4013 = vperm.xlu0 %5749, %v5610_v38  }
 0x34e   : > { %13494 = vst [vmem:[#allocation132_spill] sm:$0xff] %v9962_v47  ;;  %13496 = vst [vmem:[#allocation131_spill] sm:$0xff] %v9965_v45  ;;  %v9994_v6 = vadd.f32 %v2398_v7, %v9418_v43  ;;  %v9999_v58 = vadd.f32 %v2397_v23, %v9421_v54  ;;  %v10002_v45 = vadd.f32 %v3658_v33, %v9425_v61  ;;  %v13511_v54 = vld [vmem:[#allocation201_spill] sm:$0xff]  ;;  %v10021_v23 = vpop.permute.xlu0 %3255 }
 0x34f   : > { %13498 = vst [vmem:[#allocation312_spill] sm:$0xff] %v9973_v39  ;;  %13500 = vst [vmem:[#allocation80_spill] sm:$0xff] %v9982_v14  ;;  %v10005_v11 = vadd.f32 %v3657_v31, %v9428_v15  ;;  %v10009_v47 = vmul.f32 %v8966_v48, %v13499_v17  ;;  %v10013_v43 = vmul.f32 %v9002_v5, %v13499_v17  ;;  %v5613_v31 = vld [vmem:[%s5820_s17 + $0x3b8] sm:$0x3f]  ;;  %v13647_v14 = vld [vmem:[#allocation28_spill] sm:$0xff] }
 0x350   : > { %13501 = vst [vmem:[#allocation313_spill] sm:$0xff] %v9986_v26  ;;  %13503 = vst [vmem:[#allocation37_spill] sm:$0xff] %v9994_v6  ;;  %v10017_v7 = vmul.f32 %v8966_v48, %v13502_v52  ;;  %v2402_v61 = vmul.f32 %v9536_v59, %v13511_v54  ;;  %v10025_v15 = vmul.f32 %v9002_v5, %v13502_v52  ;;  %v13516_v6 = vld [vmem:[#allocation83_spill] sm:$0xff]  ;;  %4028 = vperm.xlu1 %5750, %v5613_v31   ;;  %v13639_v26 = vld [vmem:[#allocation117_spill] sm:$0xff] }
 0x351   : > { %13504 = vst [vmem:[#allocation314_spill] sm:$0xff] %v9996_v18  ;;  %13505 = vst [vmem:[#allocation315_spill] sm:$0xff] %v9999_v58  ;;  %v10028_v33 = vadd.f32 %v2400_v8, %v9458_v56  ;;  %v10032_v17 = vadd.f32 %v3660_v44, %v9466_v63  ;;  %v3662_v58 = vmul.f32 %v9583_v35, %v13511_v54  ;;  %v10063_v44 = vpop.permute.xlu1 %3270  ;;  %v13648_v39 = vld [vmem:[#allocation2_spill] sm:$0xff] }
 0x352   : > { %13506 = vst [vmem:[#allocation316_spill] sm:$0xff] %v10002_v45  ;;  %13507 = vst [vmem:[#allocation317_spill] sm:$0xff] %v10005_v11  ;;  %v2401_v18 = vmul.f32 %v9536_v59, %v13516_v6  ;;  %v10039_v32 = vadd.f32 %v2399_v60, %v9461_v57  ;;  %v10043_v52 = vadd.f32 %v3659_v1, %v9469_v53  ;;  %v13524_v60 = vld [vmem:[#allocation85_spill] sm:$0xff]  ;;  %v13525_v1 = vld [vmem:[#allocation204_spill] sm:$0xff] }
 0x353   : > { %13508 = vst [vmem:[#allocation318_spill] sm:$0xff] %v10009_v47  ;;  %13509 = vst [vmem:[#allocation319_spill] sm:$0xff] %v10013_v43  ;;  %v3661_v56 = vmul.f32 %v9583_v35, %v13516_v6  ;;  %v10049_v63 = vmul.f32 %v8966_v48, %v13511_v54  ;;  %v10053_v8 = vmul.f32 %v9002_v5, %v13511_v54  ;;  %v13529_v11 = vld [vmem:[#allocation91_spill] sm:$0xff]  ;;  %v13638_v47 = vld [vmem:[#allocation197_spill] sm:$0xff] }
 0x354   : > { %13510 = vst [vmem:[#allocation320_spill] sm:$0xff] %v10017_v7  ;;  %13512 = vst [vmem:[#allocation201_spill] sm:$0xff] %v10021_v23  ;;  %v5612_v23 = vld [vmem:[%s5820_s17 + $0x3b0] sm:$0xff]  ;;  %v10057_v57 = vmul.f32 %v8966_v48, %v13516_v6  ;;  %v10061_v53 = vmul.f32 %v9002_v5, %v13516_v6  ;;  %v2404_v38 = vmul.f32 %v9536_v59, %v13524_v60  ;;  %v10079_v6 = vld [vmem:[%s12211_s1 + $0x2] ss:$0 sm:$0xff] }
 0x355   : > { %13513 = vst [vmem:[#allocation321_spill] sm:$0xff] %v10025_v15  ;;  %13514 = vst [vmem:[#allocation322_spill] sm:$0xff] %v10028_v33  ;;  %v10069_v33 = vpop.permute.xlu0 %3265  ;;  %v10072_v54 = vadd.f32 %v2402_v61, %v9498_v21  ;;  %v2687_v45 = vmul.f32 %v10079_v6, %v13529_v11  ;;  %4023 = vperm.xlu0 %5749, %v5612_v23   ;;  %v10087_v31 = vadd.f32 %v3662_v58, %v9506_v10  ;;  %v13534_v11 = vld [vmem:[#allocation147_spill] sm:$0xff] }
 0x356   : > { %13515 = vst [vmem:[#allocation323_spill] sm:$0xff] %v10032_v17  ;;  %13517 = vst [vmem:[#allocation83_spill] sm:$0xff] %v10039_v32  ;;  %v2403_v32 = vmul.f32 %v9536_v59, %v13525_v1  ;;  %v3663_v21 = vmul.f32 %v9583_v35, %v13525_v1  ;;  %v10093_v61 = vmul.f32 %v8966_v48, %v13524_v60 }
 0x357   : > { %13518 = vst [vmem:[#allocation324_spill] sm:$0xff] %v10043_v52  ;;  %13519 = vst [vmem:[#allocation325_spill] sm:$0xff] %v10049_v63  ;;  %v3664_v52 = vmul.f32 %v9583_v35, %v13524_v60  ;;  %v10102_v23 = vadd.f32 %v3661_v56, %v13534_v11  ;;  %v10106_v10 = vmul.f32 %v9002_v5, %v13524_v60  ;;  %v13608_v63 = vld [vmem:[#allocation24_spill] sm:$0xff] }
 0x358   : > { %13520 = vst [vmem:[#allocation326_spill] sm:$0xff] %v10053_v8  ;;  %13521 = vst [vmem:[#allocation327_spill] sm:$0xff] %v10057_v57  ;;  %v5614_v57 = vld [vmem:[%s5820_s17 + $0x1f1] sm:$0xff]  ;;  %v10110_v58 = vmul.f32 %v8966_v48, %v13525_v1  ;;  %v10125_v60 = vadd.f32 %v2404_v38, %v9544_v13  ;;  %v13555_v38 = vld [vmem:[#allocation151_spill] sm:$0xff] }
 0x359   : > { %13522 = vst [vmem:[#allocation328_spill] sm:$0xff] %v10061_v53  ;;  %13523 = vst [vmem:[#allocation329_spill] sm:$0xff] %v10063_v44  ;;  %v13528_v44 = vld [vmem:[#allocation48_spill] sm:$0xff]  ;;  %v10122_v11 = vpop.permute.xlu0 %3275  ;;  %4089 = vperm.xlu0 %5749, %v5614_v57  }
 0x35a   : > { %13526 = vst [vmem:[#allocation85_spill] sm:$0xff] %v10069_v33  ;;  %13527 = vst [vmem:[#allocation204_spill] sm:$0xff] %v10072_v54  ;;  %v2688_v17 = vmul.f32 %v10079_v6, %v13528_v44  ;;  %v5615_v33 = vld [vmem:[%s5820_s17 + $0x1f9] sm:$0x3f]  ;;  %v10098_v44 = vadd.f32 %v2401_v18, %v9501_v3  ;;  %v10118_v18 = vpop.permute.xlu1 %3280 }
 0x35b   : > { %13530 = vst [vmem:[#allocation48_spill] sm:$0xff] %v10087_v31  ;;  %13531 = vst [vmem:[#allocation91_spill] sm:$0xff] %v10093_v61  ;;  %v13532_v54 = vld [vmem:[#allocation93_spill] sm:$0xff]  ;;  %v10114_v31 = vmul.f32 %v9002_v5, %v13525_v1  ;;  %4094 = vperm.xlu1 %5750, %v5615_v33   ;;  %v10131_v1 = vadd.f32 %v3664_v52, %v9551_v46  ;;  %v10137_v61 = vadd.f32 %v3663_v21, %v9554_v27  ;;  %v5616_v52 = vld [vmem:[%s5820_s17 + $0x201] sm:$0xff] }
 0x35c   : > { %v2690_v53 = vmul.f32 %v10079_v6, %v13532_v54  ;;  %13533 = vst [vmem:[#allocation93_spill] sm:$0xff] %v10098_v44  ;;  %13535 = vst [vmem:[#allocation147_spill] sm:$0xff] %v10102_v23  ;;  %v13539_v54 = vld [vmem:[#allocation217_spill] sm:$0xff]  ;;  %v10128_v23 = vadd.f32 %v2403_v32, %v9547_v12 }
 0x35d   : > { %13536 = vst [vmem:[#allocation330_spill] sm:$0xff] %v10106_v10  ;;  %13537 = vst [vmem:[#allocation331_spill] sm:$0xff] %v10110_v58  ;;  %v2689_v3 = vmul.f32 %v10079_v6, %v13539_v54  ;;  %v13541_v44 = vld [vmem:[#allocation209_spill] sm:$0xff]  ;;  %v5617_v10 = vld [vmem:[%s5820_s17 + $0x209] sm:$0x3f]  ;;  %4099 = vperm.xlu0 %5749, %v5616_v52  }
 0x35e   : > { %13538 = vst [vmem:[#allocation332_spill] sm:$0xff] %v10114_v31  ;;  %13540 = vst [vmem:[#allocation217_spill] sm:$0xff] %v10118_v18  ;;  %v2406_v56 = vmul.f32 %v9536_v59, %v13541_v44  ;;  %v13546_v31 = vld [vmem:[#allocation8_spill] sm:$0xff]  ;;  %v13547_v58 = vld [vmem:[#allocation149_spill] sm:$0xff]  ;;  %v3666_v33 = vmul.f32 %v9583_v35, %v13541_v44  ;;  %v10143_v13 = vmul.f32 %v8966_v48, %v13541_v44  ;;  %v10162_v21 = vpop.permute.xlu1 %3290 }
 0x35f   : > { %13542 = vst [vmem:[#allocation209_spill] sm:$0xff] %v10122_v11  ;;  %13543 = vst [vmem:[#allocation333_spill] sm:$0xff] %v10125_v60  ;;  %v2716_v54 = vadd.f32 %v2688_v17, %v13546_v31  ;;  %v2715_v18 = vadd.f32 %v2687_v45, %v13547_v58  ;;  %v10147_v46 = vmul.f32 %v9002_v5, %v13541_v44  ;;  %v13551_v12 = vld [vmem:[#allocation89_spill] sm:$0xff]  ;;  %v13552_v45 = vld [vmem:[#allocation150_spill] sm:$0xff]  ;;  %v10172_v60 = vpop.permute.xlu0 %3285  ;;  %4104 = vperm.xlu1 %5750, %v5617_v10  }
 0x360   : > { %13544 = vst [vmem:[#allocation334_spill] sm:$0xff] %v10128_v23  ;;  %13545 = vst [vmem:[#allocation335_spill] sm:$0xff] %v10131_v1  ;;  %v2405_v17 = vmul.f32 %v9536_v59, %v13551_v12  ;;  %v2718_v32 = vadd.f32 %v2690_v53, %v13552_v45  ;;  %v10155_v27 = vmul.f32 %v8966_v48, %v13551_v12  ;;  %v13557_v59 = vld [vmem:[#allocation57_spill] sm:$0xff]  ;;  %v13558_v58 = vld [vmem:[#allocation95_spill] sm:$0xff] }
 0x361   : > { %13548 = vst [vmem:[#allocation8_spill] sm:$0xff] %v10137_v61  ;;  %13549 = vst [vmem:[#allocation149_spill] sm:$0xff] %v10143_v13  ;;  %v10159_v57 = vmul.f32 %v9002_v5, %v13551_v12  ;;  %v2717_v31 = vadd.f32 %v2689_v3, %v13555_v38  ;;  %v3665_v44 = vmul.f32 %v9583_v35, %v13551_v12  ;;  %v13559_v48 = vld [vmem:[#allocation97_spill] sm:$0xff]  ;;  %v13564_v11 = vld [vmem:[#allocation98_spill] sm:$0xff] }
 0x362   : > { %13550 = vst [vmem:[#allocation336_spill] sm:$0xff] %v10147_v46  ;;  %13553 = vst [vmem:[#allocation89_spill] sm:$0xff] %v10155_v27  ;;  %v2692_v53 = vmul.f32 %v10079_v6, %v13557_v59  ;;  %v2691_v45 = vmul.f32 %v10079_v6, %v13558_v58  ;;  %v2694_v23 = vmul.f32 %v10079_v6, %v13559_v48  ;;  %v13562_v3 = vld [vmem:[#allocation53_spill] sm:$0xff]  ;;  %v13566_v1 = vld [vmem:[#allocation59_spill] sm:$0xff] }
 0x363   : > { %13554 = vst [vmem:[#allocation150_spill] sm:$0xff] %v10159_v57  ;;  %13556 = vst [vmem:[#allocation151_spill] sm:$0xff] %v10162_v21  ;;  %v10175_v5 = vadd.f32 %v2406_v56, %v9590_v20  ;;  %v2772_v38 = vadd.f32 %v13562_v3, %v2716_v54  ;;  %v13563_v21 = vld [vmem:[#allocation54_spill] sm:$0xff]  ;;  %v2693_v59 = vmul.f32 %v10079_v6, %v13564_v11  ;;  %v5619_v61 = vld [vmem:[%s5820_s17 + $0x219] sm:$0x3f] }
 0x364   : > { %13560 = vst [vmem:[#allocation57_spill] sm:$0xff] %v10172_v60  ;;  %v2771_v12 = vadd.f32 %v13563_v21, %v2715_v18  ;;  %v10183_v58 = vadd.f32 %v3666_v33, %v9597_v28  ;;  %v2774_v48 = vadd.f32 %v13566_v1, %v2718_v32  ;;  %v13567_v57 = vld [vmem:[#allocation99_spill] sm:$0xff]  ;;  %v10191_v56 = vadd.f32 %v2405_v17, %v9593_v2  ;;  %v5618_v18 = vld [vmem:[%s5820_s17 + $0x211] sm:$0xff]  ;;  %v10199_v1 = vpop.permute.xlu1 %3300 }
 0x365   : > { %13561 = vst [vmem:[#allocation95_spill] sm:$0xff] %v10175_v5  ;;  %v2696_v10 = vmul.f32 %v10079_v6, %v13567_v57  ;;  %v13568_v60 = vld [vmem:[#allocation223_spill] sm:$0xff]  ;;  %v13570_v54 = vld [vmem:[#allocation60_spill] sm:$0xff]  ;;  %v13571_v11 = vld [vmem:[#allocation101_spill] sm:$0xff]  ;;  %v10202_v32 = vadd.f32 %v3665_v44, %v9600_v50  ;;  %v10209_v5 = vpop.permute.xlu0 %3295  ;;  %4114 = vperm.xlu1 %5750, %v5619_v61   ;;  %4109 = vperm.xlu0 %5749, %v5618_v18  }
 0x366   : > { %13565 = vst [vmem:[#allocation97_spill] sm:$0xff] %v10183_v58  ;;  %v2695_v20 = vmul.f32 %v10079_v6, %v13568_v60  ;;  %13569 = vst [vmem:[#allocation53_spill] sm:$0xff] %v10191_v56  ;;  %v2773_v21 = vadd.f32 %v13570_v54, %v2717_v31  ;;  %v2698_v52 = vmul.f32 %v10079_v6, %v13571_v11  ;;  %v13572_v28 = vld [vmem:[#allocation227_spill] sm:$0xff]  ;;  %v13575_v57 = vld [vmem:[#allocation10_spill] sm:$0xff] }
 0x367   : > { %v2697_v33 = vmul.f32 %v10079_v6, %v13572_v28  ;;  %13573 = vst [vmem:[#allocation54_spill] sm:$0xff] %v10199_v1  ;;  %13574 = vst [vmem:[#allocation98_spill] sm:$0xff] %v10202_v32  ;;  %v2720_v60 = vadd.f32 %v2692_v53, %v13575_v57  ;;  %v13576_v3 = vld [vmem:[#allocation11_spill] sm:$0xff]  ;;  %v13577_v17 = vld [vmem:[#allocation13_spill] sm:$0xff] }
 0x368   : > { %v2719_v2 = vadd.f32 %v2691_v45, %v13576_v3  ;;  %v2722_v56 = vadd.f32 %v2694_v23, %v13577_v17  ;;  %v13578_v31 = vld [vmem:[#allocation74_spill] sm:$0xff]  ;;  %13579 = vst [vmem:[#allocation59_spill] sm:$0xff] %v10209_v5  ;;  %v13581_v58 = vld [vmem:[#allocation105_spill] sm:$0xff]  ;;  %v5621_v45 = vld [vmem:[%s5820_s17 + $0x229] sm:$0x3f] }
 0x369   : > { %v2700_v54 = vmul.f32 %v10079_v6, %v13578_v31  ;;  %v13580_v11 = vld [vmem:[#allocation14_spill] sm:$0xff]  ;;  %v2699_v1 = vmul.f32 %v10079_v6, %v13581_v58  ;;  %v13582_v50 = vld [vmem:[#allocation213_spill] sm:$0xff]  ;;  %v13584_v23 = vld [vmem:[#allocation16_spill] sm:$0xff]  ;;  %4124 = vperm.xlu1 %5750, %v5621_v45  }
 0x36a   : > { %v2721_v28 = vadd.f32 %v2693_v59, %v13580_v11  ;;  %v10215_v44 = vadd.f32 %v13582_v50, %v2772_v38  ;;  %v13583_v53 = vld [vmem:[#allocation214_spill] sm:$0xff]  ;;  %v2724_v3 = vadd.f32 %v2696_v10, %v13584_v23  ;;  %v13585_v17 = vld [vmem:[#allocation17_spill] sm:$0xff]  ;;  %v13586_v32 = vld [vmem:[#allocation167_spill] sm:$0xff]  ;;  %v10236_v10 = vpop.permute.xlu1 %3702 }
 0x36b   : > { %v10218_v57 = vadd.f32 %v13583_v53, %v2771_v12  ;;  %v2723_v31 = vadd.f32 %v2695_v20, %v13585_v17  ;;  %v2702_v61 = vmul.f32 %v10079_v6, %v13586_v32  ;;  %v13587_v5 = vld [vmem:[#allocation215_spill] sm:$0xff]  ;;  %v13588_v58 = vld [vmem:[#allocation18_spill] sm:$0xff]  ;;  %v13589_v38 = vld [vmem:[#allocation168_spill] sm:$0xff]  ;;  %13592 = vst [vmem:[#allocation99_spill] sm:$0xff] %v10236_v10 }
 0x36c   : > { %v10226_v59 = vadd.f32 %v13587_v5, %v2774_v48  ;;  %v5620_v11 = vld [vmem:[%s5820_s17 + $0x221] sm:$0xff]  ;;  %v2726_v27 = vadd.f32 %v2698_v52, %v13588_v58  ;;  %v2725_v50 = vadd.f32 %v2697_v33, %v13589_v38  ;;  %v13591_v53 = vld [vmem:[#allocation216_spill] sm:$0xff]  ;;  %v13593_v20 = vld [vmem:[#allocation65_spill] sm:$0xff]  ;;  %v10242_v58 = vpop.permute.xlu0 %3697 }
 0x36d   : > { %v13590_v12 = vld [vmem:[#allocation231_spill] sm:$0xff]  ;;  %v10234_v46 = vadd.f32 %v13591_v53, %v2773_v21  ;;  %v2776_v23 = vadd.f32 %v13593_v20, %v2720_v60  ;;  %v13594_v32 = vld [vmem:[#allocation66_spill] sm:$0xff]  ;;  %v13596_v13 = vld [vmem:[#allocation20_spill] sm:$0xff]  ;;  %13597 = vst [vmem:[#allocation223_spill] sm:$0xff] %v10242_v58  ;;  %4119 = vperm.xlu0 %5749, %v5620_v11  }
 0x36e   : > { %v2701_v18 = vmul.f32 %v10079_v6, %v13590_v12  ;;  %v2775_v5 = vadd.f32 %v13594_v32, %v2719_v2  ;;  %v13595_v48 = vld [vmem:[#allocation175_spill] sm:$0xff]  ;;  %v2728_v52 = vadd.f32 %v2700_v54, %v13596_v13  ;;  %v13598_v33 = vld [vmem:[#allocation176_spill] sm:$0xff]  ;;  %v13599_v12 = vld [vmem:[#allocation21_spill] sm:$0xff]  ;;  %v10262_v7 = vpop.permute.xlu1 %3712 }
 0x36f   : > { %v2778_v17 = vadd.f32 %v13595_v48, %v2722_v56  ;;  %v2777_v38 = vadd.f32 %v13598_v33, %v2721_v28  ;;  %v2727_v8 = vadd.f32 %v2699_v1, %v13599_v12  ;;  %v13600_v21 = vld [vmem:[#allocation109_spill] sm:$0xff]  ;;  %v13601_v10 = vld [vmem:[#allocation82_spill] sm:$0xff]  ;;  %v13603_v56 = vld [vmem:[#allocation179_spill] sm:$0xff]  ;;  %13610 = vst [vmem:[#allocation60_spill] sm:$0xff] %v10262_v7 }
 0x370   : > { %v2704_v53 = vmul.f32 %v10079_v6, %v13600_v21  ;;  %v2703_v60 = vmul.f32 %v10079_v6, %v13601_v10  ;;  %v5623_v20 = vld [vmem:[%s5820_s17 + $0x239] sm:$0x3f]  ;;  %v13602_v2 = vld [vmem:[#allocation178_spill] sm:$0xff]  ;;  %v2779_v48 = vadd.f32 %v13603_v56, %v2723_v31  ;;  %v13604_v13 = vld [vmem:[#allocation23_spill] sm:$0xff]  ;;  %v2729_v15 = vadd.f32 %v2701_v18, %v13608_v63 }
 0x371   : > { %v2780_v32 = vadd.f32 %v13602_v2, %v2724_v3  ;;  %v2730_v54 = vadd.f32 %v2702_v61, %v13604_v13  ;;  %v13605_v58 = vld [vmem:[#allocation235_spill] sm:$0xff]  ;;  %v5622_v28 = vld [vmem:[%s5820_s17 + $0x231] sm:$0xff]  ;;  %v13606_v33 = vld [vmem:[#allocation182_spill] sm:$0xff]  ;;  %4134 = vperm.xlu1 %5750, %v5623_v20  }
 0x372   : > { %v2706_v45 = vmul.f32 %v10079_v6, %v13605_v58  ;;  %v2782_v1 = vadd.f32 %v13606_v33, %v2726_v27  ;;  %v13607_v12 = vld [vmem:[#allocation183_spill] sm:$0xff]  ;;  %v13611_v3 = vld [vmem:[#allocation186_spill] sm:$0xff]  ;;  %4129 = vperm.xlu0 %5749, %v5622_v28   ;;  %v13627_v28 = vld [vmem:[#allocation225_spill] sm:$0xff] }
 0x373   : > { %v2781_v21 = vadd.f32 %v13607_v12, %v2725_v50  ;;  %v13609_v10 = vld [vmem:[#allocation111_spill] sm:$0xff]  ;;  %v2784_v31 = vadd.f32 %v13611_v3, %v2728_v52  ;;  %v13612_v2 = vld [vmem:[#allocation218_spill] sm:$0xff]  ;;  %v10274_v50 = vpop.permute.xlu0 %3707  ;;  %v13619_v52 = vld [vmem:[#allocation220_spill] sm:$0xff] }
 0x374   : > { %v2705_v11 = vmul.f32 %v10079_v6, %v13609_v10  ;;  %v10266_v61 = vadd.f32 %v13612_v2, %v2776_v23  ;;  %v13613_v58 = vld [vmem:[#allocation219_spill] sm:$0xff]  ;;  %13615 = vst [vmem:[#allocation101_spill] sm:$0xff] %v10274_v50  ;;  %v13618_v10 = vld [vmem:[#allocation25_spill] sm:$0xff]  ;;  %v10280_v3 = vadd.f32 %v13619_v52, %v2777_v38  ;;  %v13623_v50 = vld [vmem:[#allocation222_spill] sm:$0xff] }
 0x375   : > { %v10269_v56 = vadd.f32 %v13613_v58, %v2775_v5  ;;  %v13614_v27 = vld [vmem:[#allocation63_spill] sm:$0xff]  ;;  %v2731_v7 = vadd.f32 %v2703_v60, %v13618_v10  ;;  %v13620_v2 = vld [vmem:[#allocation193_spill] sm:$0xff]  ;;  %v13621_v58 = vld [vmem:[#allocation26_spill] sm:$0xff]  ;;  %v10289_v20 = vadd.f32 %v13623_v50, %v2779_v48  ;;  %v10298_v52 = vadd.f32 %v13627_v28, %v2781_v21 }
 0x376   : > { %v10272_v13 = vadd.f32 %v13614_v27, %v2778_v17  ;;  %v13616_v63 = vld [vmem:[#allocation187_spill] sm:$0xff]  ;;  %v2786_v5 = vadd.f32 %v13620_v2, %v2730_v54  ;;  %v2734_v43 = vadd.f32 %v2706_v45, %v13621_v58  ;;  %v13622_v17 = vld [vmem:[#allocation221_spill] sm:$0xff]  ;;  %v13626_v38 = vld [vmem:[#allocation224_spill] sm:$0xff]  ;;  %v10300_v54 = vpop.permute.xlu1 %3722 }
 0x377   : > { %v2783_v18 = vadd.f32 %v13616_v63, %v2727_v8  ;;  %v13617_v33 = vld [vmem:[#allocation171_spill] sm:$0xff]  ;;  %v10286_v27 = vadd.f32 %v13622_v17, %v2780_v32  ;;  %v13624_v63 = vld [vmem:[#allocation194_spill] sm:$0xff]  ;;  %v10295_v10 = vadd.f32 %v13626_v38, %v2782_v1  ;;  %13628 = vst [vmem:[#allocation227_spill] sm:$0xff] %v10300_v54  ;;  %v13629_v45 = vld [vmem:[#allocation113_spill] sm:$0xff]  ;;  %v10311_v1 = vpop.permute.xlu0 %3717 }
 0x378   : > { %v2732_v12 = vadd.f32 %v2704_v53, %v13617_v33  ;;  %v5625_v23 = vld [vmem:[%s5820_s17 + $0x249] sm:$0x3f]  ;;  %v5624_v8 = vld [vmem:[%s5820_s17 + $0x241] sm:$0xff]  ;;  %v2785_v53 = vadd.f32 %v13624_v63, %v2729_v15  ;;  %v13625_v33 = vld [vmem:[#allocation172_spill] sm:$0xff]  ;;  %v2708_v32 = vmul.f32 %v10079_v6, %v13629_v45  ;;  %13633 = vst [vmem:[#allocation10_spill] sm:$0xff] %v10311_v1 }
 0x379   : > { %v2733_v60 = vadd.f32 %v2705_v11, %v13625_v33  ;;  %v13630_v2 = vld [vmem:[#allocation114_spill] sm:$0xff]  ;;  %v13631_v50 = vld [vmem:[#allocation115_spill] sm:$0xff]  ;;  %v13632_v58 = vld [vmem:[#allocation72_spill] sm:$0xff]  ;;  %4144 = vperm.xlu1 %5750, %v5625_v23   ;;  %4139 = vperm.xlu0 %5749, %v5624_v8  }
 0x37a   : > { %v2707_v48 = vmul.f32 %v10079_v6, %v13630_v2  ;;  %v2710_v15 = vmul.f32 %v10079_v6, %v13631_v50  ;;  %v10309_v11 = vadd.f32 %v13632_v58, %v2784_v31  ;;  %v13634_v21 = vld [vmem:[#allocation195_spill] sm:$0xff]  ;;  %v13635_v63 = vld [vmem:[#allocation196_spill] sm:$0xff]  ;;  %v13636_v38 = vld [vmem:[#allocation46_spill] sm:$0xff]  ;;  %v2790_v50 = vadd.f32 %v13638_v47, %v2734_v43 }
 0x37b   : > { %v2788_v17 = vadd.f32 %v13634_v21, %v2732_v12  ;;  %v2787_v33 = vadd.f32 %v13635_v63, %v2731_v7  ;;  %v2709_v28 = vmul.f32 %v10079_v6, %v13636_v38  ;;  %v13637_v45 = vld [vmem:[#allocation226_spill] sm:$0xff]  ;;  %v5627_v2 = vld [vmem:[%s5820_s17 + $0x259] sm:$0x3f]  ;;  %v2712_v31 = vmul.f32 %v10079_v6, %v13639_v26  ;;  %v13641_v1 = vld [vmem:[#allocation184_spill] sm:$0xff]  ;;  %v10338_v26 = vpop.permute.xlu1 %3732  ;;  %v10345_v51 = vpop.permute.xlu0 %3727 }
 0x37c   : > { %v10318_v54 = vadd.f32 %v13637_v45, %v2783_v18  ;;  %v13640_v58 = vld [vmem:[#allocation118_spill] sm:$0xff]  ;;  %v10327_v12 = vadd.f32 %v13641_v1, %v2786_v5  ;;  %v5626_v7 = vld [vmem:[%s5820_s17 + $0x251] sm:$0xff]  ;;  %13646 = vst [vmem:[#allocation11_spill] sm:$0xff] %v10338_v26  ;;  %v2735_v5 = vadd.f32 %v2707_v48, %v13648_v39  ;;  %13651 = vst [vmem:[#allocation13_spill] sm:$0xff] %v10345_v51 }
 0x37d   : > { %v2711_v23 = vmul.f32 %v10079_v6, %v13640_v58  ;;  %v13642_v21 = vld [vmem:[#allocation198_spill] sm:$0xff]  ;;  %v13643_v38 = vld [vmem:[#allocation212_spill] sm:$0xff]  ;;  %v13644_v8 = vld [vmem:[#allocation49_spill] sm:$0xff]  ;;  %v2736_v58 = vadd.f32 %v2708_v32, %v13647_v14  ;;  %4154 = vperm.xlu1 %5750, %v5627_v2   ;;  %4149 = vperm.xlu0 %5749, %v5626_v7   ;;  %v2995_v2 = vmul.f32 %v9583_v35, %v13657_v19 }
 0x37e   : > { %v2789_v63 = vadd.f32 %v13642_v21, %v2733_v60  ;;  %v2714_v18 = vmul.f32 %v10079_v6, %v13643_v38  ;;  %v2713_v45 = vmul.f32 %v10079_v6, %v13644_v8  ;;  %v13645_v47 = vld [vmem:[#allocation228_spill] sm:$0xff]  ;;  %v13649_v1 = vld [vmem:[#allocation29_spill] sm:$0xff]  ;;  %v13650_v60 = vld [vmem:[#allocation51_spill] sm:$0xff] }
 0x37f   : > { %v10336_v43 = vadd.f32 %v13645_v47, %v2785_v53  ;;  %v2738_v36 = vadd.f32 %v2710_v15, %v13649_v1  ;;  %v2996_v21 = vmul.f32 %v9583_v35, %v13650_v60  ;;  %v13652_v38 = vld [vmem:[#allocation145_spill] sm:$0xff]  ;;  %v4396_v53 = vmul.f32 %v10079_v6, %v13650_v60  ;;  %v13653_v47 = vld [vmem:[#allocation191_spill] sm:$0xff]  ;;  %v13655_v48 = vld [vmem:[#allocation30_spill] sm:$0xff] }
 0x380   : > { %v2737_v8 = vadd.f32 %v2709_v28, %v13652_v38  ;;  %v10351_v26 = vadd.f32 %v13653_v47, %v2788_v17  ;;  %v13654_v14 = vld [vmem:[#allocation229_spill] sm:$0xff]  ;;  %v5629_v39 = vld [vmem:[%s5820_s17 + $0x269] sm:$0x3f]  ;;  %v2740_v15 = vadd.f32 %v2712_v31, %v13655_v48  ;;  %v13658_v51 = vld [vmem:[#allocation110_spill] sm:$0xff]  ;;  %v10372_v31 = vpop.permute.xlu1 %3742 }
 0x381   : > { %v10354_v32 = vadd.f32 %v13654_v14, %v2787_v33  ;;  %v13656_v1 = vld [vmem:[#allocation31_spill] sm:$0xff]  ;;  %v10362_v28 = vadd.f32 %v13658_v51, %v2790_v50  ;;  %v13660_v60 = vld [vmem:[#allocation32_spill] sm:$0xff]  ;;  %v13661_v17 = vld [vmem:[#allocation166_spill] sm:$0xff]  ;;  %v4395_v33 = vmul.f32 %v10079_v6, %v13657_v19  ;;  %13664 = vst [vmem:[#allocation105_spill] sm:$0xff] %v10372_v31  ;;  %4164 = vperm.xlu1 %5750, %v5629_v39  }
 0x382   : > { %v2739_v37 = vadd.f32 %v2711_v23, %v13656_v1  ;;  %v5628_v38 = vld [vmem:[%s5820_s17 + $0x261] sm:$0xff]  ;;  %v2742_v9 = vadd.f32 %v2714_v18, %v13660_v60  ;;  %v2741_v47 = vadd.f32 %v2713_v45, %v13661_v17  ;;  %v13662_v7 = vld [vmem:[#allocation232_spill] sm:$0xff]  ;;  %v3024_v18 = vadd.f32 %v2996_v21, %v10215_v44  ;;  %v10378_v60 = vpop.permute.xlu0 %3737 }
 0x383   : > { %13659 = vst [vmem:[#allocation74_spill] sm:$0xff] %v10362_v28  ;;  %v10370_v14 = vadd.f32 %v13662_v7, %v2789_v63  ;;  %v13665_v23 = vld [vmem:[#allocation202_spill] sm:$0xff]  ;;  %v13666_v1 = vld [vmem:[#allocation203_spill] sm:$0xff]  ;;  %v13667_v50 = vld [vmem:[#allocation44_spill] sm:$0xff]  ;;  %4159 = vperm.xlu0 %5749, %v5628_v38   ;;  %v3023_v44 = vadd.f32 %v2995_v2, %v10218_v57 }
 0x384   : > { %v2792_v48 = vadd.f32 %v13665_v23, %v2736_v58  ;;  %v2791_v51 = vadd.f32 %v13666_v1, %v2735_v5  ;;  %v2794_v28 = vadd.f32 %v13667_v50, %v2738_v36  ;;  %13668 = vst [vmem:[#allocation213_spill] sm:$0xff] %v10378_v60  ;;  %v13669_v45 = vld [vmem:[#allocation86_spill] sm:$0xff]  ;;  %v13670_v19 = vld [vmem:[#allocation92_spill] sm:$0xff]  ;;  %v5631_v23 = vld [vmem:[%s5820_s17 + $0x279] sm:$0x3f] }
 0x385   : > { %13663 = vst [vmem:[#allocation14_spill] sm:$0xff] %v10370_v14  ;;  %v2793_v17 = vadd.f32 %v13669_v45, %v2737_v8  ;;  %v4424_v22 = vadd.f32 %v4396_v53, %v13670_v19  ;;  %v13671_v63 = vld [vmem:[#allocation126_spill] sm:$0xff]  ;;  %v13672_v5 = vld [vmem:[#allocation207_spill] sm:$0xff]  ;;  %v13673_v36 = vld [vmem:[#allocation208_spill] sm:$0xff]  ;;  %4174 = vperm.xlu1 %5750, %v5631_v23  }
 0x386   : > { %v2998_v7 = vmul.f32 %v9583_v35, %v13671_v63  ;;  %v4398_v58 = vmul.f32 %v10079_v6, %v13671_v63  ;;  %v2796_v1 = vadd.f32 %v13672_v5, %v2740_v15  ;;  %v2795_v50 = vadd.f32 %v13673_v36, %v2739_v37  ;;  %v13674_v21 = vld [vmem:[#allocation127_spill] sm:$0xff]  ;;  %v5630_v8 = vld [vmem:[%s5820_s17 + $0x271] sm:$0xff]  ;;  %v13676_v19 = vld [vmem:[#allocation90_spill] sm:$0xff]  ;;  %v10398_v63 = vpop.permute.xlu1 %3752 }
 0x387   : > { %v2997_v39 = vmul.f32 %v9583_v35, %v13674_v21  ;;  %v13675_v45 = vld [vmem:[#allocation211_spill] sm:$0xff]  ;;  %v2797_v60 = vadd.f32 %v13676_v19, %v2741_v47  ;;  %v13677_v31 = vld [vmem:[#allocation52_spill] sm:$0xff]  ;;  %v4397_v38 = vmul.f32 %v10079_v6, %v13674_v21  ;;  %13678 = vst [vmem:[#allocation214_spill] sm:$0xff] %v10398_v63  ;;  %v13679_v15 = vld [vmem:[#allocation230_spill] sm:$0xff]  ;;  %v10410_v47 = vpop.permute.xlu0 %3747  ;;  %4169 = vperm.xlu0 %5749, %v5630_v8  }
 0x388   : > { %v2798_v53 = vadd.f32 %v13675_v45, %v2742_v9  ;;  %v4423_v14 = vadd.f32 %v4395_v33, %v13677_v31  ;;  %v3080_v37 = vadd.f32 %v13679_v15, %v3024_v18  ;;  %v13680_v5 = vld [vmem:[#allocation140_spill] sm:$0xff]  ;;  %v13681_v2 = vld [vmem:[#allocation233_spill] sm:$0xff]  ;;  %13683 = vst [vmem:[#allocation16_spill] sm:$0xff] %v10410_v47  ;;  %v3026_v21 = vadd.f32 %v2998_v7, %v10226_v59  ;;  %v13689_v47 = vld [vmem:[#allocation239_spill] sm:$0xff] }
 0x389   : > { %v10402_v57 = vadd.f32 %v13680_v5, %v2792_v48  ;;  %v10405_v36 = vadd.f32 %v13681_v2, %v2791_v51  ;;  %v13682_v9 = vld [vmem:[#allocation236_spill] sm:$0xff]  ;;  %v13686_v18 = vld [vmem:[#allocation237_spill] sm:$0xff]  ;;  %v5633_v48 = vld [vmem:[%s5820_s17 + $0x289] sm:$0x3f]  ;;  %v3025_v2 = vadd.f32 %v2997_v39, %v10234_v46  ;;  %v10425_v23 = vadd.f32 %v13689_v47, %v2795_v50 }
 0x38a   : > { %v10408_v45 = vadd.f32 %v13682_v9, %v2794_v28  ;;  %v13684_v33 = vld [vmem:[#allocation108_spill] sm:$0xff]  ;;  %v10416_v15 = vadd.f32 %v13686_v18, %v2793_v17  ;;  %v13687_v5 = vld [vmem:[#allocation79_spill] sm:$0xff]  ;;  %v13688_v28 = vld [vmem:[#allocation238_spill] sm:$0xff]  ;;  %4184 = vperm.xlu1 %5750, %v5633_v48  }
 0x38b   : > { %v4480_v31 = vadd.f32 %v13684_v33, %v4424_v22  ;;  %v13685_v19 = vld [vmem:[#allocation56_spill] sm:$0xff]  ;;  %v3079_v51 = vadd.f32 %v13687_v5, %v3023_v44  ;;  %v10422_v9 = vadd.f32 %v13688_v28, %v2796_v1  ;;  %v5632_v22 = vld [vmem:[%s5820_s17 + $0x281] sm:$0xff]  ;;  %v13690_v33 = vld [vmem:[#allocation137_spill] sm:$0xff]  ;;  %v10436_v44 = vpop.permute.xlu1 %3762 }
 0x38c   : > { %v4426_v63 = vadd.f32 %v4398_v58, %v13685_v19  ;;  %v4479_v59 = vadd.f32 %v13690_v33, %v4423_v14  ;;  %v13691_v7 = vld [vmem:[#allocation61_spill] sm:$0xff]  ;;  %v13694_v8 = vld [vmem:[#allocation206_spill] sm:$0xff]  ;;  %13696 = vst [vmem:[#allocation215_spill] sm:$0xff] %v10436_v44  ;;  %4179 = vperm.xlu0 %5749, %v5632_v22  }
 0x38d   : > { %v4425_v58 = vadd.f32 %v4397_v38, %v13691_v7  ;;  %v13692_v17 = vld [vmem:[#allocation205_spill] sm:$0xff]  ;;  %v10434_v18 = vadd.f32 %v13694_v8, %v2797_v60  ;;  %v13697_v46 = vld [vmem:[#allocation130_spill] sm:$0xff]  ;;  %v13701_v60 = vld [vmem:[#allocation139_spill] sm:$0xff] }
 0x38e   : > { %v10431_v19 = vadd.f32 %v13692_v17, %v2798_v53  ;;  %v3000_v1 = vmul.f32 %v9583_v35, %v13697_v46  ;;  %v4400_v50 = vmul.f32 %v10079_v6, %v13697_v46  ;;  %v13698_v39 = vld [vmem:[#allocation73_spill] sm:$0xff]  ;;  %v10447_v53 = vpop.permute.xlu0 %3757  ;;  %v3082_v5 = vadd.f32 %v13701_v60, %v3026_v21  ;;  %v13703_v17 = vld [vmem:[#allocation272_spill] sm:$0xff]  ;;  %v13705_v44 = vld [vmem:[#allocation142_spill] sm:$0xff] }
 0x38f   : > { %13695 = vst [vmem:[#allocation167_spill] sm:$0xff] %v10434_v18  ;;  %v2999_v14 = vmul.f32 %v9583_v35, %v13698_v39  ;;  %v13699_v47 = vld [vmem:[#allocation33_spill] sm:$0xff]  ;;  %13700 = vst [vmem:[#allocation18_spill] sm:$0xff] %v10447_v53  ;;  %v4399_v7 = vmul.f32 %v10079_v6, %v13698_v39  ;;  %v10454_v8 = vadd.f32 %v13703_v17, %v4480_v31  ;;  %v13709_v60 = vld [vmem:[#allocation143_spill] sm:$0xff]  ;;  %v10474_v17 = vpop.permute.xlu1 %3772 }
 0x390   : > { %13693 = vst [vmem:[#allocation17_spill] sm:$0xff] %v10431_v19  ;;  %v10445_v38 = vadd.f32 %v13699_v47, %v3080_v37  ;;  %v13702_v28 = vld [vmem:[#allocation141_spill] sm:$0xff]  ;;  %v3081_v18 = vadd.f32 %v13705_v44, %v3025_v2  ;;  %v13710_v39 = vld [vmem:[#allocation135_spill] sm:$0xff]  ;;  %v13711_v2 = vld [vmem:[#allocation274_spill] sm:$0xff] }
 0x391   : > { %v4482_v33 = vadd.f32 %v13702_v28, %v4426_v63  ;;  %13704 = vst [vmem:[#allocation168_spill] sm:$0xff] %v10454_v8  ;;  %v5635_v46 = vld [vmem:[%s5820_s17 + $0x299] sm:$0x3f]  ;;  %v5634_v63 = vld [vmem:[%s5820_s17 + $0x291] sm:$0xff]  ;;  %v4481_v28 = vadd.f32 %v13709_v60, %v4425_v58  ;;  %v3001_v31 = vmul.f32 %v9583_v35, %v13710_v39  ;;  %v4401_v22 = vmul.f32 %v10079_v6, %v13710_v39  ;;  %v13715_v8 = vld [vmem:[#allocation62_spill] sm:$0xff] }
 0x392   : > { %v13706_v19 = vld [vmem:[#allocation189_spill] sm:$0xff]  ;;  %v10472_v44 = vadd.f32 %v13711_v2, %v4479_v59  ;;  %v13712_v53 = vld [vmem:[#allocation96_spill] sm:$0xff]  ;;  %4194 = vperm.xlu1 %5750, %v5635_v46   ;;  %v4427_v39 = vadd.f32 %v4399_v7, %v13715_v8  ;;  %v10487_v2 = vadd.f32 %v9645_v34, %v3082_v5  ;;  %4189 = vperm.xlu0 %5749, %v5634_v63   ;;  %v5636_v8 = vld [vmem:[%s5820_s17 + $0x2a1] sm:$0xff] }
 0x393   : > { %v3002_v37 = vmul.f32 %v9583_v35, %v13706_v19  ;;  %v4402_v48 = vmul.f32 %v10079_v6, %v13706_v19  ;;  %v13707_v47 = vld [vmem:[#allocation273_spill] sm:$0xff]  ;;  %v3028_v19 = vadd.f32 %v3000_v1, %v10266_v61  ;;  %v13713_v58 = vld [vmem:[#allocation136_spill] sm:$0xff]  ;;  %v10490_v61 = vadd.f32 %v9649_v30, %v4482_v33  ;;  %v5637_v1 = vld [vmem:[%s5820_s17 + $0x2a9] sm:$0x3f] }
 0x394   : > { %v10463_v21 = vadd.f32 %v13707_v47, %v3079_v51  ;;  %v4428_v51 = vadd.f32 %v4400_v50, %v13712_v53  ;;  %v3027_v47 = vadd.f32 %v2999_v14, %v10269_v56  ;;  %v3004_v60 = vmul.f32 %v9583_v35, %v13713_v58  ;;  %v13716_v50 = vld [vmem:[#allocation68_spill] sm:$0xff]  ;;  %v13717_v53 = vld [vmem:[#allocation106_spill] sm:$0xff] }
 0x395   : > { %v4404_v59 = vmul.f32 %v10079_v6, %v13713_v58  ;;  %v3030_v56 = vadd.f32 %v3002_v37, %v10272_v13  ;;  %v4430_v14 = vadd.f32 %v4402_v48, %v13716_v50  ;;  %v3003_v46 = vmul.f32 %v9583_v35, %v13717_v53  ;;  %v13718_v34 = vld [vmem:[#allocation174_spill] sm:$0xff]  ;;  %v10508_v13 = vpop.permute.xlu1 %3782  ;;  %v13721_v37 = vld [vmem:[#allocation112_spill] sm:$0xff] }
 0x396   : > { %13708 = vst [vmem:[#allocation231_spill] sm:$0xff] %v10463_v21  ;;  %v10481_v21 = vpop.permute.xlu0 %3767  ;;  %v10498_v7 = vadd.f32 %v9653_v16, %v3081_v18  ;;  %v3029_v58 = vadd.f32 %v3001_v31, %v10280_v3  ;;  %v4429_v5 = vadd.f32 %v4401_v22, %v13718_v34  ;;  %v4403_v30 = vmul.f32 %v10079_v6, %v13717_v53  ;;  %v13722_v63 = vld [vmem:[#allocation144_spill] sm:$0xff]  ;;  %v13723_v18 = vld [vmem:[#allocation146_spill] sm:$0xff]  ;;  %v13725_v22 = vld [vmem:[#allocation153_spill] sm:$0xff] }
 0x397   : > { %13714 = vst [vmem:[#allocation216_spill] sm:$0xff] %v10481_v21  ;;  %v10506_v33 = vadd.f32 %v9657_v55, %v4481_v28  ;;  %13720 = vst [vmem:[#allocation66_spill] sm:$0xff] %v10508_v13  ;;  %v3084_v48 = vadd.f32 %v13721_v37, %v3028_v19  ;;  %v4484_v16 = vadd.f32 %v13722_v63, %v4428_v51  ;;  %4204 = vperm.xlu1 %5750, %v5637_v1   ;;  %v13726_v53 = vld [vmem:[#allocation100_spill] sm:$0xff]  ;;  %v13727_v55 = vld [vmem:[#allocation107_spill] sm:$0xff] }
 0x398   : > { %v3083_v50 = vadd.f32 %v13723_v18, %v3027_v47  ;;  %v3032_v3 = vadd.f32 %v3004_v60, %v10286_v27  ;;  %v4483_v34 = vadd.f32 %v13725_v22, %v4427_v39  ;;  %v4432_v21 = vadd.f32 %v4404_v59, %v13726_v53  ;;  %4199 = vperm.xlu0 %5749, %v5636_v8   ;;  %v5639_v37 = vld [vmem:[%s5820_s17 + $0x2b9] sm:$0x3f]  ;;  %v13728_v51 = vld [vmem:[#allocation155_spill] sm:$0xff]  ;;  %v13729_v47 = vld [vmem:[#allocation156_spill] sm:$0xff] }
 0x399   : > { %13719 = vst [vmem:[#allocation65_spill] sm:$0xff] %v10506_v33  ;;  %v3006_v28 = vmul.f32 %v9583_v35, %v13727_v55  ;;  %v4406_v19 = vmul.f32 %v10079_v6, %v13727_v55  ;;  %v3086_v63 = vadd.f32 %v13728_v51, %v3030_v56  ;;  %v4486_v18 = vadd.f32 %v13729_v47, %v4430_v14  ;;  %v13730_v60 = vld [vmem:[#allocation138_spill] sm:$0xff]  ;;  %v5638_v39 = vld [vmem:[%s5820_s17 + $0x2b1] sm:$0xff]  ;;  %v10534_v55 = vpop.permute.xlu1 %3792 }
 0x39a   : > { %v10514_v31 = vpop.permute.xlu0 %3777  ;;  %v3031_v27 = vadd.f32 %v3003_v46, %v10289_v20  ;;  %v3005_v1 = vmul.f32 %v9583_v35, %v13730_v60  ;;  %v13731_v22 = vld [vmem:[#allocation157_spill] sm:$0xff]  ;;  %v13732_v53 = vld [vmem:[#allocation158_spill] sm:$0xff]  ;;  %v4405_v8 = vmul.f32 %v10079_v6, %v13730_v60  ;;  %v13734_v56 = vld [vmem:[#allocation160_spill] sm:$0xff]  ;;  %v10538_v20 = vadd.f32 %v9685_v0, %v3084_v48 }
 0x39b   : > { %13724 = vst [vmem:[#allocation175_spill] sm:$0xff] %v10514_v31  ;;  %v3085_v59 = vadd.f32 %v13731_v22, %v3029_v58  ;;  %v4485_v31 = vadd.f32 %v13732_v53, %v4429_v5  ;;  %v13733_v13 = vld [vmem:[#allocation177_spill] sm:$0xff]  ;;  %v3088_v14 = vadd.f32 %v13734_v56, %v3032_v3  ;;  %v10541_v46 = vadd.f32 %v9689_v62, %v4484_v16  ;;  %v13736_v47 = vld [vmem:[#allocation102_spill] sm:$0xff]  ;;  %v5641_v0 = vld [vmem:[%s5820_s17 + $0x2c9] sm:$0x3f] }
 0x39c   : > { %v4431_v33 = vadd.f32 %v4403_v30, %v13733_v13  ;;  %v10544_v58 = vadd.f32 %v9693_v41, %v3083_v50  ;;  %4214 = vperm.xlu1 %5750, %v5639_v37   ;;  %v13735_v30 = vld [vmem:[#allocation165_spill] sm:$0xff]  ;;  %v3034_v51 = vadd.f32 %v3006_v28, %v10295_v10  ;;  %v4434_v60 = vadd.f32 %v4406_v19, %v13736_v47  ;;  %v13737_v48 = vld [vmem:[#allocation3_spill] sm:$0xff]  ;;  %v13738_v37 = vld [vmem:[#allocation240_spill] sm:$0xff] }
 0x39d   : > { %v4488_v13 = vadd.f32 %v13735_v30, %v4432_v21  ;;  %v10552_v3 = vadd.f32 %v9697_v4, %v4483_v34  ;;  %4209 = vperm.xlu0 %5749, %v5638_v39   ;;  %v3087_v62 = vadd.f32 %v13737_v48, %v3031_v27  ;;  %v3033_v16 = vadd.f32 %v3005_v1, %v10298_v52  ;;  %v5640_v21 = vld [vmem:[%s5820_s17 + $0x2c1] sm:$0xff]  ;;  %v13739_v28 = vld [vmem:[#allocation180_spill] sm:$0xff]  ;;  %v10572_v27 = vpop.permute.xlu1 %3802  ;;  %v13747_v56 = vld [vmem:[#allocation289_spill] sm:$0xff] }
 0x39e   : > { %v10546_v5 = vpop.permute.xlu0 %3787  ;;  %v10558_v41 = vadd.f32 %v9725_v29, %v3086_v63  ;;  %v10561_v50 = vadd.f32 %v9729_v40, %v4486_v18  ;;  %v4487_v10 = vadd.f32 %v13738_v37, %v4431_v33  ;;  %v4433_v19 = vadd.f32 %v4405_v8, %v13739_v28  ;;  %v13740_v34 = vld [vmem:[#allocation284_spill] sm:$0xff]  ;;  %v13741_v52 = vld [vmem:[#allocation39_spill] sm:$0xff]  ;;  %v13742_v63 = vld [vmem:[#allocation234_spill] sm:$0xff] }
 0x39f   : > { %v10567_v4 = vadd.f32 %v9733_v25, %v3085_v59  ;;  %v10570_v39 = vadd.f32 %v13740_v34, %v4485_v31  ;;  %v3008_v29 = vmul.f32 %v9583_v35, %v13741_v52  ;;  %v4408_v40 = vmul.f32 %v10079_v6, %v13741_v52  ;;  %v13743_v18 = vld [vmem:[#allocation288_spill] sm:$0xff]  ;;  %v13745_v31 = vld [vmem:[#allocation243_spill] sm:$0xff]  ;;  %v13748_v48 = vld [vmem:[#allocation245_spill] sm:$0xff] }
 0x3a0   : > { %v3007_v33 = vmul.f32 %v9583_v35, %v13742_v63  ;;  %v10581_v1 = vadd.f32 %v13743_v18, %v3088_v14  ;;  %4224 = vperm.xlu1 %5750, %v5641_v0   ;;  %v3090_v22 = vadd.f32 %v13745_v31, %v3034_v51  ;;  %v13746_v59 = vld [vmem:[#allocation244_spill] sm:$0xff]  ;;  %v4407_v8 = vmul.f32 %v10079_v6, %v13742_v63  ;;  %v5643_v47 = vld [vmem:[%s5820_s17 + $0x2e9] sm:$0x3f]  ;;  %v10597_v14 = vld [vmem:[%s12211_s1 + $0x5] ss:$0 sm:$0xff] }
 0x3a1   : > { %v4490_v53 = vadd.f32 %v13746_v59, %v4434_v60  ;;  %v10590_v30 = vadd.f32 %v13747_v56, %v4488_v13  ;;  %4219 = vperm.xlu0 %5749, %v5640_v21   ;;  %v3089_v35 = vadd.f32 %v13748_v48, %v3033_v16  ;;  %v13749_v0 = vld [vmem:[#allocation154_spill] sm:$0xff]  ;;  %v13752_v52 = vld [vmem:[#allocation116_spill] sm:$0xff]  ;;  %v13753_v18 = vld [vmem:[#allocation291_spill] sm:$0xff]  ;;  %v10615_v59 = vpop.permute.xlu1 %3812  ;;  %v3036_v56 = vadd.f32 %v3008_v29, %v10309_v11 }
 0x3a2   : > { %v10583_v25 = vpop.permute.xlu0 %3797  ;;  %v3010_v51 = vmul.f32 %v10597_v14, %v13749_v0  ;;  %v4410_v60 = vmul.f32 %v10079_v6, %v13749_v0  ;;  %v13750_v37 = vld [vmem:[#allocation290_spill] sm:$0xff]  ;;  %v3009_v16 = vmul.f32 %v10597_v14, %v13752_v52  ;;  %v4409_v63 = vmul.f32 %v10079_v6, %v13752_v52  ;;  %13754 = vst [vmem:[#allocation176_spill] sm:$0xff] %v10615_v59  ;;  %v13755_v48 = vld [vmem:[#allocation104_spill] sm:$0xff]  ;;  %v5645_v29 = vld [vmem:[%s5820_s17 + $0x2f9] sm:$0x3f] }
 0x3a3   : > { %13744 = vst [vmem:[#allocation20_spill] sm:$0xff] %v10583_v25  ;;  %v10604_v28 = vadd.f32 %v13750_v37, %v3087_v62  ;;  %v5642_v13 = vld [vmem:[%s5820_s17 + $0x2e1] sm:$0xff]  ;;  %v10613_v31 = vadd.f32 %v13753_v18, %v4487_v10  ;;  %v4436_v62 = vadd.f32 %v4408_v40, %v13755_v48  ;;  %v3035_v0 = vadd.f32 %v3007_v33, %v10318_v54  ;;  %v13761_v48 = vld [vmem:[#allocation241_spill] sm:$0xff] }
 0x3a4   : > { %v13751_v34 = vld [vmem:[#allocation246_spill] sm:$0xff]  ;;  %4738 = vperm.xlu1 %5750, %v5643_v47   ;;  %v10628_v18 = vadd.f32 %v9807_v42, %v3090_v22  ;;  %v10631_v11 = vadd.f32 %v9811_v24, %v4490_v53  ;;  %v3038_v54 = vadd.f32 %v3010_v51, %v10327_v12  ;;  %v3011_v47 = vmul.f32 %v10597_v14, %v13761_v48  ;;  %v13762_v42 = vld [vmem:[#allocation192_spill] sm:$0xff] }
 0x3a5   : > { %v4489_v21 = vadd.f32 %v13751_v34, %v4433_v19  ;;  %v13756_v19 = vld [vmem:[#allocation210_spill] sm:$0xff]  ;;  %4733 = vperm.xlu0 %5749, %v5642_v13   ;;  %v4437_v22 = vadd.f32 %v4409_v63, %v13762_v42  ;;  %v4411_v24 = vmul.f32 %v10079_v6, %v13761_v48  ;;  %v13763_v53 = vld [vmem:[#allocation292_spill] sm:$0xff]  ;;  %v10649_v12 = vpop.permute.xlu1 %3822  ;;  %v13770_v63 = vld [vmem:[#allocation125_spill] sm:$0xff] }
 0x3a6   : > { %v3012_v37 = vmul.f32 %v10597_v14, %v13756_v19  ;;  %v10622_v34 = vpop.permute.xlu0 %3807  ;;  %v13758_v25 = vld [vmem:[#allocation190_spill] sm:$0xff]  ;;  %v4412_v10 = vmul.f32 %v10079_v6, %v13756_v19  ;;  %13759 = vst [vmem:[#allocation109_spill] sm:$0xff] %v10631_v11  ;;  %v3037_v19 = vadd.f32 %v3009_v16, %v10336_v43  ;;  %13765 = vst [vmem:[#allocation178_spill] sm:$0xff] %v10649_v12  ;;  %v13771_v48 = vld [vmem:[#allocation35_spill] sm:$0xff] }
 0x3a7   : > { %13757 = vst [vmem:[#allocation21_spill] sm:$0xff] %v10622_v34  ;;  %v4435_v52 = vadd.f32 %v4407_v8, %v13758_v25  ;;  %v13760_v40 = vld [vmem:[#allocation78_spill] sm:$0xff]  ;;  %v10639_v25 = vadd.f32 %v9815_v49, %v3089_v35  ;;  %v5644_v8 = vld [vmem:[%s5820_s17 + $0x2f1] sm:$0xff]  ;;  %v10647_v13 = vadd.f32 %v13763_v53, %v4489_v21  ;;  %v13768_v35 = vld [vmem:[#allocation123_spill] sm:$0xff] }
 0x3a8   : > { %v4438_v33 = vadd.f32 %v4410_v60, %v13760_v40  ;;  %v13766_v51 = vld [vmem:[#allocation94_spill] sm:$0xff]  ;;  %v13767_v40 = vld [vmem:[#allocation124_spill] sm:$0xff]  ;;  %v3091_v11 = vadd.f32 %v13768_v35, %v3035_v0  ;;  %v3040_v43 = vadd.f32 %v3012_v37, %v10351_v26  ;;  %4748 = vperm.xlu1 %5750, %v5645_v29   ;;  %v4440_v34 = vadd.f32 %v4412_v10, %v13771_v48  ;;  %v13772_v21 = vld [vmem:[#allocation247_spill] sm:$0xff] }
 0x3a9   : > { %13764 = vst [vmem:[#allocation82_spill] sm:$0xff] %v10647_v13  ;;  %v3092_v60 = vadd.f32 %v13766_v51, %v3036_v56  ;;  %v4492_v49 = vadd.f32 %v13767_v40, %v4436_v62  ;;  %v4491_v42 = vadd.f32 %v13770_v63, %v4435_v52  ;;  %v3014_v53 = vmul.f32 %v10597_v14, %v13772_v21  ;;  %v5647_v51 = vld [vmem:[%s5820_s17 + $0x309] sm:$0x3f]  ;;  %v13773_v62 = vld [vmem:[#allocation128_spill] sm:$0xff]  ;;  %v13774_v0 = vld [vmem:[#allocation129_spill] sm:$0xff] }
 0x3aa   : > { %v10655_v16 = vpop.permute.xlu0 %3817  ;;  %v4414_v56 = vmul.f32 %v10079_v6, %v13772_v21  ;;  %4743 = vperm.xlu0 %5749, %v5644_v8   ;;  %v3094_v40 = vadd.f32 %v13773_v62, %v3038_v54  ;;  %v4494_v35 = vadd.f32 %v13774_v0, %v4438_v33  ;;  %v3039_v26 = vadd.f32 %v3011_v47, %v10354_v32  ;;  %v13775_v37 = vld [vmem:[#allocation9_spill] sm:$0xff]  ;;  %v5646_v52 = vld [vmem:[%s5820_s17 + $0x301] sm:$0xff]  ;;  %v13776_v63 = vld [vmem:[#allocation248_spill] sm:$0xff]  ;;  %v10675_v21 = vpop.permute.xlu1 %3832 }
 0x3ab   : > { %13769 = vst [vmem:[#allocation179_spill] sm:$0xff] %v10655_v16  ;;  %v3013_v29 = vmul.f32 %v10597_v14, %v13775_v37  ;;  %v3093_v10 = vadd.f32 %v13776_v63, %v3037_v19  ;;  %v13777_v48 = vld [vmem:[#allocation249_spill] sm:$0xff]  ;;  %v13778_v12 = vld [vmem:[#allocation148_spill] sm:$0xff]  ;;  %v4413_v8 = vmul.f32 %v10079_v6, %v13775_v37  ;;  %13779 = vst [vmem:[#allocation23_spill] sm:$0xff] %v10675_v21 }
 0x3ac   : > { %v4493_v16 = vadd.f32 %v13777_v48, %v4437_v22  ;;  %v4439_v13 = vadd.f32 %v4411_v24, %v13778_v12  ;;  %v13780_v54 = vld [vmem:[#allocation252_spill] sm:$0xff]  ;;  %v13781_v62 = vld [vmem:[#allocation295_spill] sm:$0xff]  ;;  %v13784_v19 = vld [vmem:[#allocation297_spill] sm:$0xff]  ;;  %4758 = vperm.xlu1 %5750, %v5647_v51  }
 0x3ad   : > { %v3096_v33 = vadd.f32 %v13780_v54, %v3040_v43  ;;  %v10679_v32 = vadd.f32 %v13781_v62, %v3092_v60  ;;  %v13782_v47 = vld [vmem:[#allocation296_spill] sm:$0xff]  ;;  %v10685_v63 = vadd.f32 %v13784_v19, %v3091_v11  ;;  %v13786_v24 = vld [vmem:[#allocation253_spill] sm:$0xff]  ;;  %v13787_v37 = vld [vmem:[#allocation74_spill] sm:$0xff] }
 0x3ae   : > { %v10682_v0 = vadd.f32 %v13782_v47, %v4492_v49  ;;  %v10687_v22 = vpop.permute.xlu0 %3827  ;;  %v4496_v12 = vadd.f32 %v13786_v24, %v4440_v34  ;;  %v3042_v48 = vadd.f32 %v3014_v53, %v13787_v37  ;;  %v13788_v21 = vld [vmem:[#allocation40_spill] sm:$0xff]  ;;  %v13789_v43 = vld [vmem:[#allocation298_spill] sm:$0xff]  ;;  %4753 = vperm.xlu0 %5749, %v5646_v52   ;;  %v5649_v60 = vld [vmem:[%s5820_s17 + $0x319] sm:$0x3f] }
 0x3af   : > { %13785 = vst [vmem:[#allocation182_spill] sm:$0xff] %v10687_v22  ;;  %v4442_v59 = vadd.f32 %v4414_v56, %v13788_v21  ;;  %v10693_v54 = vadd.f32 %v13789_v43, %v4491_v42  ;;  %v13790_v62 = vld [vmem:[#allocation254_spill] sm:$0xff]  ;;  %v13793_v22 = vld [vmem:[#allocation303_spill] sm:$0xff]  ;;  %v5648_v34 = vld [vmem:[%s5820_s17 + $0x311] sm:$0xff] }
 0x3b0   : > { %13783 = vst [vmem:[#allocation235_spill] sm:$0xff] %v10682_v0  ;;  %v3095_v49 = vadd.f32 %v13790_v62, %v3039_v26  ;;  %v13791_v47 = vld [vmem:[#allocation14_spill] sm:$0xff]  ;;  %v10702_v51 = vadd.f32 %v13793_v22, %v4494_v35  ;;  %v13794_v24 = vld [vmem:[#allocation255_spill] sm:$0xff]  ;;  %v13795_v37 = vld [vmem:[#allocation41_spill] sm:$0xff]  ;;  %v10713_v26 = vpop.permute.xlu1 %3898  ;;  %4768 = vperm.xlu1 %5750, %v5649_v60  }
 0x3b1   : > { %v3041_v0 = vadd.f32 %v3013_v29, %v13791_v47  ;;  %v13792_v11 = vld [vmem:[#allocation302_spill] sm:$0xff]  ;;  %v4495_v53 = vadd.f32 %v13794_v24, %v4439_v13  ;;  %v4441_v56 = vadd.f32 %v4413_v8, %v13795_v37  ;;  %v13796_v42 = vld [vmem:[#allocation304_spill] sm:$0xff]  ;;  %v13798_v52 = vld [vmem:[#allocation305_spill] sm:$0xff]  ;;  %13800 = vst [vmem:[#allocation111_spill] sm:$0xff] %v10713_v26 }
 0x3b2   : > { %v10699_v19 = vadd.f32 %v13792_v11, %v3094_v40  ;;  %v10708_v21 = vadd.f32 %v13796_v42, %v3093_v10  ;;  %v10711_v43 = vadd.f32 %v13798_v52, %v4493_v16  ;;  %v13801_v29 = vld [vmem:[#allocation12_spill] sm:$0xff]  ;;  %v13802_v22 = vld [vmem:[#allocation15_spill] sm:$0xff]  ;;  %v10724_v10 = vpop.permute.xlu0 %3893  ;;  %v13805_v16 = vld [vmem:[#allocation133_spill] sm:$0xff]  ;;  %4763 = vperm.xlu0 %5749, %v5648_v34  }
 0x3b3   : > { %v3016_v40 = vmul.f32 %v10597_v14, %v13801_v29  ;;  %v4416_v35 = vmul.f32 %v10079_v6, %v13801_v29  ;;  %v3015_v13 = vmul.f32 %v10597_v14, %v13802_v22  ;;  %v13803_v62 = vld [vmem:[#allocation307_spill] sm:$0xff]  ;;  %13804 = vst [vmem:[#allocation186_spill] sm:$0xff] %v10724_v10  ;;  %v3098_v47 = vadd.f32 %v13805_v16, %v3042_v48  ;;  %v13806_v11 = vld [vmem:[#allocation257_spill] sm:$0xff]  ;;  %v13807_v42 = vld [vmem:[#allocation308_spill] sm:$0xff] }
 0x3b4   : > { %13797 = vst [vmem:[#allocation183_spill] sm:$0xff] %v10708_v21  ;;  %13799 = vst [vmem:[#allocation24_spill] sm:$0xff] %v10711_v43  ;;  %v10722_v8 = vadd.f32 %v13803_v62, %v3096_v33  ;;  %v4498_v24 = vadd.f32 %v13806_v11, %v4442_v59  ;;  %v4415_v37 = vmul.f32 %v10079_v6, %v13802_v22  ;;  %v5651_v29 = vld [vmem:[%s5820_s17 + $0x329] sm:$0x3f]  ;;  %v13809_v26 = vld [vmem:[#allocation258_spill] sm:$0xff] }
 0x3b5   : > { %v10731_v52 = vadd.f32 %v13807_v42, %v4496_v12  ;;  %v3097_v43 = vadd.f32 %v13809_v26, %v3041_v0  ;;  %v13810_v21 = vld [vmem:[#allocation19_spill] sm:$0xff]  ;;  %v13811_v62 = vld [vmem:[#allocation309_spill] sm:$0xff]  ;;  %v13814_v22 = vld [vmem:[#allocation256_spill] sm:$0xff]  ;;  %v10751_v42 = vpop.permute.xlu1 %3908  ;;  %4778 = vperm.xlu1 %5750, %v5651_v29  }
 0x3b6   : > { %v3018_v33 = vmul.f32 %v10597_v14, %v13810_v21  ;;  %v4418_v60 = vmul.f32 %v10079_v6, %v13810_v21  ;;  %v10740_v48 = vadd.f32 %v13811_v62, %v3095_v49  ;;  %v5650_v59 = vld [vmem:[%s5820_s17 + $0x321] sm:$0xff]  ;;  %v3017_v12 = vmul.f32 %v10597_v14, %v13814_v22  ;;  %13817 = vst [vmem:[#allocation187_spill] sm:$0xff] %v10751_v42 }
 0x3b7   : > { %13808 = vst [vmem:[#allocation218_spill] sm:$0xff] %v10731_v52  ;;  %v13813_v16 = vld [vmem:[#allocation259_spill] sm:$0xff]  ;;  %v4417_v34 = vmul.f32 %v10079_v6, %v13814_v22  ;;  %v13815_v0 = vld [vmem:[#allocation310_spill] sm:$0xff]  ;;  %v3044_v21 = vadd.f32 %v3016_v40, %v10402_v57  ;;  %v3043_v62 = vadd.f32 %v3015_v13, %v10405_v36  ;;  %v10758_v52 = vpop.permute.xlu0 %3903  ;;  %v13823_v57 = vld [vmem:[#allocation312_spill] sm:$0xff]  ;;  %4773 = vperm.xlu0 %5749, %v5650_v59  }
 0x3b8   : > { %13812 = vst [vmem:[#allocation219_spill] sm:$0xff] %v10740_v48  ;;  %v4497_v11 = vadd.f32 %v13813_v16, %v4441_v56  ;;  %v10749_v26 = vadd.f32 %v13815_v0, %v4495_v53  ;;  %v13818_v10 = vld [vmem:[#allocation199_spill] sm:$0xff]  ;;  %v13819_v56 = vld [vmem:[#allocation260_spill] sm:$0xff]  ;;  %13820 = vst [vmem:[#allocation171_spill] sm:$0xff] %v10758_v52  ;;  %v10767_v40 = vadd.f32 %v13823_v57, %v4498_v24 }
 0x3b9   : > { %v4444_v49 = vadd.f32 %v4416_v35, %v13818_v10  ;;  %v3020_v16 = vmul.f32 %v10597_v14, %v13819_v56  ;;  %v13821_v48 = vld [vmem:[#allocation200_spill] sm:$0xff]  ;;  %v4420_v53 = vmul.f32 %v10079_v6, %v13819_v56  ;;  %v13822_v0 = vld [vmem:[#allocation311_spill] sm:$0xff]  ;;  %v5653_v35 = vld [vmem:[%s5820_s17 + $0x339] sm:$0x3f]  ;;  %v3046_v36 = vadd.f32 %v3018_v33, %v10408_v45  ;;  %v10785_v45 = vpop.permute.xlu1 %3918 }
 0x3ba   : > { %13816 = vst [vmem:[#allocation63_spill] sm:$0xff] %v10749_v26  ;;  %v4443_v22 = vadd.f32 %v4415_v37, %v13821_v48  ;;  %v10764_v42 = vadd.f32 %v13822_v0, %v3098_v47  ;;  %13824 = vst [vmem:[#allocation25_spill] sm:$0xff] %v10767_v40  ;;  %v13825_v13 = vld [vmem:[#allocation84_spill] sm:$0xff]  ;;  %v13826_v26 = vld [vmem:[#allocation173_spill] sm:$0xff]  ;;  %v3045_v56 = vadd.f32 %v3017_v12, %v10416_v15  ;;  %4788 = vperm.xlu1 %5750, %v5653_v35  }
 0x3bb   : > { %v4446_v10 = vadd.f32 %v4418_v60, %v13825_v13  ;;  %v3019_v29 = vmul.f32 %v10597_v14, %v13826_v26  ;;  %v13827_v52 = vld [vmem:[#allocation80_spill] sm:$0xff]  ;;  %v13829_v47 = vld [vmem:[#allocation42_spill] sm:$0xff]  ;;  %v4419_v24 = vmul.f32 %v10079_v6, %v13826_v26  ;;  %v13830_v59 = vld [vmem:[#allocation313_spill] sm:$0xff]  ;;  %13832 = vst [vmem:[#allocation26_spill] sm:$0xff] %v10785_v45  ;;  %v3048_v15 = vadd.f32 %v3020_v16, %v10422_v9  ;;  %v10791_v12 = vpop.permute.xlu0 %3913 }
 0x3bc   : > { %v10775_v37 = vadd.f32 %v13827_v52, %v3097_v43  ;;  %v5652_v48 = vld [vmem:[%s5820_s17 + $0x331] sm:$0xff]  ;;  %v4445_v0 = vadd.f32 %v4417_v34, %v13829_v47  ;;  %v10783_v57 = vadd.f32 %v13830_v59, %v4497_v11  ;;  %v13833_v33 = vld [vmem:[#allocation27_spill] sm:$0xff]  ;;  %v13834_v13 = vld [vmem:[#allocation134_spill] sm:$0xff]  ;;  %13836 = vst [vmem:[#allocation221_spill] sm:$0xff] %v10791_v12 }
 0x3bd   : > { %v3100_v60 = vadd.f32 %v13833_v33, %v3044_v21  ;;  %v4500_v43 = vadd.f32 %v13834_v13, %v4444_v49  ;;  %v13835_v52 = vld [vmem:[#allocation76_spill] sm:$0xff]  ;;  %v13837_v34 = vld [vmem:[#allocation103_spill] sm:$0xff]  ;;  %4783 = vperm.xlu0 %5749, %v5652_v48   ;;  %v13840_v49 = vld [vmem:[#allocation162_spill] sm:$0xff]  ;;  %v3047_v9 = vadd.f32 %v3019_v29, %v10425_v23 }
 0x3be   : > { %13828 = vst [vmem:[#allocation220_spill] sm:$0xff] %v10775_v37  ;;  %13831 = vst [vmem:[#allocation193_spill] sm:$0xff] %v10783_v57  ;;  %v3099_v40 = vadd.f32 %v13835_v52, %v3043_v62  ;;  %v4499_v47 = vadd.f32 %v13837_v34, %v4443_v22  ;;  %v13838_v26 = vld [vmem:[#allocation87_spill] sm:$0xff]  ;;  %v13839_v11 = vld [vmem:[#allocation188_spill] sm:$0xff]  ;;  %v3102_v13 = vadd.f32 %v13840_v49, %v3046_v36 }
 0x3bf   : > { %v4448_v37 = vadd.f32 %v4420_v53, %v13838_v26  ;;  %v3022_v59 = vmul.f32 %v10597_v14, %v13839_v11  ;;  %v4422_v21 = vmul.f32 %v10079_v6, %v13839_v11  ;;  %v5655_v33 = vld [vmem:[%s5820_s17 + $0x349] sm:$0x3f]  ;;  %v13841_v62 = vld [vmem:[#allocation261_spill] sm:$0xff]  ;;  %v5654_v22 = vld [vmem:[%s5820_s17 + $0x341] sm:$0xff]  ;;  %v10811_v11 = vpop.permute.xlu1 %3928 }
 0x3c0   : > { %v4502_v52 = vadd.f32 %v13841_v62, %v4446_v10  ;;  %v13842_v16 = vld [vmem:[#allocation161_spill] sm:$0xff]  ;;  %v13843_v34 = vld [vmem:[#allocation262_spill] sm:$0xff]  ;;  %v13844_v26 = vld [vmem:[#allocation263_spill] sm:$0xff]  ;;  %13846 = vst [vmem:[#allocation222_spill] sm:$0xff] %v10811_v11  ;;  %4798 = vperm.xlu1 %5750, %v5655_v33  }
 0x3c1   : > { %v3021_v35 = vmul.f32 %v10597_v14, %v13842_v16  ;;  %v3101_v53 = vadd.f32 %v13843_v34, %v3045_v56  ;;  %v4501_v12 = vadd.f32 %v13844_v26, %v4445_v0  ;;  %v13845_v45 = vld [vmem:[#allocation88_spill] sm:$0xff]  ;;  %v4421_v48 = vmul.f32 %v10079_v6, %v13842_v16  ;;  %v13848_v49 = vld [vmem:[#allocation318_spill] sm:$0xff]  ;;  %v13849_v29 = vld [vmem:[#allocation319_spill] sm:$0xff]  ;;  %v10823_v0 = vpop.permute.xlu0 %3923  ;;  %4793 = vperm.xlu0 %5749, %v5654_v22  }
 0x3c2   : > { %v4447_v57 = vadd.f32 %v4419_v24, %v13845_v45  ;;  %v13847_v36 = vld [vmem:[#allocation264_spill] sm:$0xff]  ;;  %v10815_v23 = vadd.f32 %v13848_v49, %v3100_v60  ;;  %v10818_v62 = vadd.f32 %v13849_v29, %v4500_v43  ;;  %13852 = vst [vmem:[#allocation172_spill] sm:$0xff] %v10823_v0  ;;  %v13853_v24 = vld [vmem:[#allocation265_spill] sm:$0xff]  ;;  %v13855_v26 = vld [vmem:[#allocation119_spill] sm:$0xff] }
 0x3c3   : > { %v3104_v10 = vadd.f32 %v13847_v36, %v3048_v15  ;;  %v13851_v56 = vld [vmem:[#allocation320_spill] sm:$0xff]  ;;  %v4504_v45 = vadd.f32 %v13853_v24, %v4448_v37  ;;  %v13854_v6 = vld [vmem:[#allocation17_spill] sm:$0xff]  ;;  %v4450_v11 = vadd.f32 %v4422_v21, %v13855_v26  ;;  %v13858_v49 = vld [vmem:[#allocation266_spill] sm:$0xff] }
 0x3c4   : > { %13850 = vst [vmem:[#allocation194_spill] sm:$0xff] %v10818_v62  ;;  %v10821_v34 = vadd.f32 %v13851_v56, %v3099_v40  ;;  %v3050_v16 = vadd.f32 %v3022_v59, %v13854_v6  ;;  %v13856_v15 = vld [vmem:[#allocation321_spill] sm:$0xff]  ;;  %v3103_v43 = vadd.f32 %v13858_v49, %v3047_v9  ;;  %v13859_v29 = vld [vmem:[#allocation167_spill] sm:$0xff]  ;;  %v13861_v0 = vld [vmem:[#allocation326_spill] sm:$0xff]  ;;  %v10849_v9 = vpop.permute.xlu1 %3938 }
 0x3c5   : > { %v10829_v36 = vadd.f32 %v13856_v15, %v4499_v47  ;;  %v5657_v60 = vld [vmem:[%s5820_s17 + $0x359] sm:$0x3f]  ;;  %v3049_v62 = vadd.f32 %v3021_v35, %v13859_v29  ;;  %v10838_v33 = vadd.f32 %v13861_v0, %v4502_v52  ;;  %v5656_v37 = vld [vmem:[%s5820_s17 + $0x351] sm:$0xff]  ;;  %v13863_v24 = vld [vmem:[#allocation267_spill] sm:$0xff]  ;;  %13869 = vst [vmem:[#allocation115_spill] sm:$0xff] %v10849_v9  ;;  %v10865_v49 = vpop.permute.xlu0 %3933 }
 0x3c6   : > { %v13860_v40 = vld [vmem:[#allocation325_spill] sm:$0xff]  ;;  %v4503_v59 = vadd.f32 %v13863_v24, %v4447_v57  ;;  %v13864_v6 = vld [vmem:[#allocation120_spill] sm:$0xff]  ;;  %v13865_v26 = vld [vmem:[#allocation327_spill] sm:$0xff]  ;;  %13875 = vst [vmem:[#allocation196_spill] sm:$0xff] %v10865_v49  ;;  %4808 = vperm.xlu1 %5750, %v5657_v60   ;;  %4803 = vperm.xlu0 %5749, %v5656_v37  }
 0x3c7   : > { %13857 = vst [vmem:[#allocation224_spill] sm:$0xff] %v10829_v36  ;;  %v10835_v56 = vadd.f32 %v13860_v40, %v3102_v13  ;;  %13862 = vst [vmem:[#allocation225_spill] sm:$0xff] %v10838_v33  ;;  %v4449_v21 = vadd.f32 %v4421_v48, %v13864_v6  ;;  %v10844_v47 = vadd.f32 %v13865_v26, %v3101_v53  ;;  %v13867_v22 = vld [vmem:[#allocation328_spill] sm:$0xff]  ;;  %v10854_v13 = vld [vmem:[%s12211_s1 + $0x8] ss:$0 sm:$0xff] }
 0x3c8   : > { %v10847_v15 = vadd.f32 %v13867_v22, %v4501_v12  ;;  %13870 = vst [vmem:[#allocation72_spill] sm:$0xff] %v10854_v13  ;;  %v13871_v52 = vld [vmem:[#allocation163_spill] sm:$0xff]  ;;  %v13872_v48 = vld [vmem:[#allocation268_spill] sm:$0xff]  ;;  %v13877_v24 = vld [vmem:[#allocation5_spill] sm:$0xff] }
 0x3c9   : > { %13866 = vst [vmem:[#allocation113_spill] sm:$0xff] %v10844_v47  ;;  %v3304_v35 = vmul.f32 %v10854_v13, %v13871_v52  ;;  %v4564_v57 = vmul.f32 %v10597_v14, %v13871_v52  ;;  %v3303_v53 = vmul.f32 %v10854_v13, %v13872_v48  ;;  %v13873_v0 = vld [vmem:[#allocation91_spill] sm:$0xff]  ;;  %v13876_v29 = vld [vmem:[#allocation164_spill] sm:$0xff]  ;;  %v4506_v6 = vadd.f32 %v13877_v24, %v4450_v11  ;;  %v13879_v9 = vld [vmem:[#allocation330_spill] sm:$0xff]  ;;  %v10905_v47 = vpop.permute.xlu0 %3943 }
 0x3ca   : > { %13868 = vst [vmem:[#allocation114_spill] sm:$0xff] %v10847_v15  ;;  %v10863_v12 = vadd.f32 %v13873_v0, %v3104_v10  ;;  %v3106_v40 = vadd.f32 %v13876_v29, %v3050_v16  ;;  %v13878_v26 = vld [vmem:[#allocation271_spill] sm:$0xff]  ;;  %v10872_v15 = vadd.f32 %v13879_v9, %v4504_v45  ;;  %v13881_v33 = vld [vmem:[#allocation269_spill] sm:$0xff]  ;;  %v4563_v10 = vmul.f32 %v10597_v14, %v13872_v48  ;;  %v13882_v0 = vld [vmem:[#allocation4_spill] sm:$0xff]  ;;  %v10892_v48 = vpop.permute.xlu1 %3948 }
 0x3cb   : > { %v3306_v22 = vmul.f32 %v10854_v13, %v13878_v26  ;;  %v5659_v52 = vld [vmem:[%s5820_s17 + $0x369] sm:$0x3f]  ;;  %v3105_v36 = vadd.f32 %v13881_v33, %v3049_v62  ;;  %v3305_v60 = vmul.f32 %v10854_v13, %v13882_v0  ;;  %v5658_v11 = vld [vmem:[%s5820_s17 + $0x361] sm:$0xff]  ;;  %v13887_v37 = vld [vmem:[#allocation276_spill] sm:$0xff] }
 0x3cc   : > { %13874 = vst [vmem:[#allocation195_spill] sm:$0xff] %v10863_v12  ;;  %13880 = vst [vmem:[#allocation46_spill] sm:$0xff] %v10872_v15  ;;  %v13883_v49 = vld [vmem:[#allocation331_spill] sm:$0xff]  ;;  %v13885_v29 = vld [vmem:[#allocation270_spill] sm:$0xff]  ;;  %v3307_v9 = vmul.f32 %v10854_v13, %v13887_v37  ;;  %v10895_v15 = vadd.f32 %v3304_v35, %v10445_v38  ;;  %4818 = vperm.xlu1 %5750, %v5659_v52   ;;  %v4565_v38 = vmul.f32 %v10597_v14, %v13882_v0 }
 0x3cd   : > { %v10881_v16 = vadd.f32 %v13883_v49, %v3103_v43  ;;  %v4505_v24 = vadd.f32 %v13885_v29, %v4449_v21  ;;  %v13886_v12 = vld [vmem:[#allocation36_spill] sm:$0xff]  ;;  %v13891_v21 = vld [vmem:[#allocation231_spill] sm:$0xff]  ;;  %v13894_v35 = vld [vmem:[#allocation149_spill] sm:$0xff]  ;;  %4813 = vperm.xlu0 %5749, %v5658_v11  }
 0x3ce   : > { %v3308_v45 = vmul.f32 %v10854_v13, %v13886_v12  ;;  %v13888_v62 = vld [vmem:[#allocation332_spill] sm:$0xff]  ;;  %13889 = vst [vmem:[#allocation197_spill] sm:$0xff] %v10895_v15  ;;  %v10901_v29 = vadd.f32 %v3303_v53, %v13891_v21  ;;  %v5661_v53 = vld [vmem:[%s5820_s17 + $0x379] sm:$0x3f]  ;;  %v10920_v21 = vadd.f32 %v4563_v10, %v10472_v44  ;;  %v4567_v44 = vmul.f32 %v10597_v14, %v13887_v37  ;;  %v13900_v10 = vld [vmem:[#allocation150_spill] sm:$0xff] }
 0x3cf   : > { %13884 = vst [vmem:[#allocation226_spill] sm:$0xff] %v10881_v16  ;;  %v10890_v33 = vadd.f32 %v13888_v62, %v4503_v59  ;;  %v13890_v43 = vld [vmem:[#allocation168_spill] sm:$0xff]  ;;  %v4566_v16 = vmul.f32 %v10597_v14, %v13878_v26  ;;  %v10908_v59 = vadd.f32 %v3306_v22, %v10487_v2  ;;  %v10913_v62 = vadd.f32 %v13894_v35, %v3106_v40  ;;  %v13897_v22 = vld [vmem:[#allocation89_spill] sm:$0xff] }
 0x3d0   : > { %v10898_v49 = vadd.f32 %v4564_v57, %v13890_v43  ;;  %13892 = vst [vmem:[#allocation117_spill] sm:$0xff] %v10901_v29  ;;  %v13895_v57 = vld [vmem:[#allocation336_spill] sm:$0xff]  ;;  %v10923_v26 = vadd.f32 %v3305_v60, %v10498_v7  ;;  %v4568_v2 = vmul.f32 %v10597_v14, %v13886_v12  ;;  %v10928_v52 = vadd.f32 %v13897_v22, %v3105_v36  ;;  %v10942_v60 = vpop.permute.xlu1 %3958  ;;  %v5663_v36 = vld [vmem:[%s5820_s17 + $0x389] sm:$0x3f]  ;;  %v13913_v29 = vld [vmem:[#allocation250_spill] sm:$0xff] }
 0x3d1   : > { %13893 = vst [vmem:[#allocation118_spill] sm:$0xff] %v10908_v59  ;;  %v10916_v43 = vadd.f32 %v13895_v57, %v4506_v6  ;;  %v5660_v0 = vld [vmem:[%s5820_s17 + $0x371] sm:$0xff]  ;;  %v10932_v40 = vadd.f32 %v3308_v45, %v10538_v20  ;;  %v10935_v6 = vadd.f32 %v3307_v9, %v10544_v58  ;;  %v10940_v7 = vadd.f32 %v13900_v10, %v4505_v24  ;;  %v10954_v58 = vld [vmem:[%s12211_s1 + $0x6] ss:$0 sm:$0xff]  ;;  %v10958_v45 = vpop.permute.xlu0 %3953 }
 0x3d2   : > { %13896 = vst [vmem:[#allocation184_spill] sm:$0xff] %v10923_v26  ;;  %v10949_v20 = vadd.f32 %v4566_v16, %v10490_v61  ;;  %v3850_v24 = vmul.f32 %v10954_v58, %v10474_v17  ;;  %4828 = vperm.xlu1 %5750, %v5661_v53   ;;  %v13904_v57 = vld [vmem:[#allocation65_spill] sm:$0xff]  ;;  %v13905_v10 = vld [vmem:[#allocation278_spill] sm:$0xff]  ;;  %v13906_v16 = vld [vmem:[#allocation216_spill] sm:$0xff]  ;;  %4823 = vperm.xlu0 %5749, %v5660_v0  }
 0x3d3   : > { %13898 = vst [vmem:[#allocation198_spill] sm:$0xff] %v10932_v40  ;;  %13899 = vst [vmem:[#allocation212_spill] sm:$0xff] %v10935_v6  ;;  %v10963_v22 = vadd.f32 %v4565_v38, %v13904_v57  ;;  %v3310_v61 = vmul.f32 %v10854_v13, %v13905_v10  ;;  %v3849_v35 = vmul.f32 %v10954_v58, %v13906_v16  ;;  %v13908_v9 = vld [vmem:[#allocation281_spill] sm:$0xff]  ;;  %v5662_v57 = vld [vmem:[%s5820_s17 + $0x381] sm:$0xff] }
 0x3d4   : > { %v10973_v11 = vadd.f32 %v4568_v2, %v10541_v46  ;;  %v4570_v53 = vmul.f32 %v10597_v14, %v13905_v10  ;;  %v3309_v38 = vmul.f32 %v10854_v13, %v13908_v9  ;;  %v10983_v16 = vadd.f32 %v4567_v44, %v10552_v3  ;;  %v10989_v2 = vpop.permute.xlu1 %3968  ;;  %v13912_v10 = vld [vmem:[#allocation285_spill] sm:$0xff]  ;;  %v13914_v12 = vld [vmem:[#allocation66_spill] sm:$0xff]  ;;  %v13916_v6 = vld [vmem:[#allocation251_spill] sm:$0xff] }
 0x3d5   : > { %v4569_v46 = vmul.f32 %v10597_v14, %v13908_v9  ;;  %13911 = vst [vmem:[#allocation49_spill] sm:$0xff] %v10989_v2  ;;  %v3312_v26 = vmul.f32 %v10854_v13, %v13912_v10  ;;  %v3878_v15 = vadd.f32 %v3850_v24, %v13913_v29  ;;  %v3852_v37 = vmul.f32 %v10954_v58, %v13914_v12  ;;  %v10999_v3 = vld [vmem:[%s12211_s1 + $0x7] ss:$0 sm:$0xff]  ;;  %v11003_v9 = vpop.permute.xlu0 %3963  ;;  %v13917_v24 = vld [vmem:[#allocation175_spill] sm:$0xff]  ;;  %v5665_v40 = vld [vmem:[%s5820_s17 + $0x399] sm:$0x3f] }
 0x3d6   : > { %v4046_v44 = vmul.f32 %v10999_v3, %v10989_v2  ;;  %4838 = vperm.xlu1 %5750, %v5663_v36   ;;  %v11006_v17 = vadd.f32 %v3310_v61, %v10558_v41  ;;  %v3877_v29 = vadd.f32 %v3849_v35, %v13916_v6  ;;  %v3851_v0 = vmul.f32 %v10954_v58, %v13917_v24  ;;  %v13919_v36 = vld [vmem:[#allocation55_spill] sm:$0xff]  ;;  %v5664_v6 = vld [vmem:[%s5820_s17 + $0x391] sm:$0xff] }
 0x3d7   : > { %v4045_v12 = vmul.f32 %v10999_v3, %v11003_v9  ;;  %4833 = vperm.xlu0 %5749, %v5662_v57   ;;  %v11015_v59 = vadd.f32 %v4570_v53, %v10561_v50  ;;  %v11018_v2 = vadd.f32 %v3309_v38, %v10567_v4  ;;  %v3311_v41 = vmul.f32 %v10854_v13, %v13919_v36 }
 0x3d8   : > { %13915 = vst [vmem:[#allocation228_spill] sm:$0xff] %v11006_v17  ;;  %v11022_v61 = vadd.f32 %v4046_v44, %v3878_v15  ;;  %v11026_v35 = vadd.f32 %v4569_v46, %v10570_v39  ;;  %v4572_v57 = vmul.f32 %v10597_v14, %v13912_v10  ;;  %v4571_v50 = vmul.f32 %v10597_v14, %v13919_v36  ;;  %v11034_v4 = vpop.permute.xlu1 %3978  ;;  %v13923_v15 = vld [vmem:[#allocation132_spill] sm:$0xff] }
 0x3d9   : > { %13918 = vst [vmem:[#allocation28_spill] sm:$0xff] %v11018_v2  ;;  %v11032_v53 = vadd.f32 %v4045_v12, %v3877_v29  ;;  %v11037_v38 = vadd.f32 %v3312_v26, %v10581_v1  ;;  %v3880_v44 = vadd.f32 %v3852_v37, %v13923_v15  ;;  %v3854_v39 = vmul.f32 %v10954_v58, %v10534_v55  ;;  %v11044_v10 = vpop.permute.xlu0 %3973  ;;  %v13925_v12 = vld [vmem:[#allocation131_spill] sm:$0xff]  ;;  %v13936_v55 = vld [vmem:[#allocation20_spill] sm:$0xff] }
 0x3da   : > { %13920 = vst [vmem:[#allocation2_spill] sm:$0xff] %v11022_v61  ;;  %v4048_v46 = vmul.f32 %v10999_v3, %v11034_v4  ;;  %4848 = vperm.xlu1 %5750, %v5665_v40   ;;  %v3879_v36 = vadd.f32 %v3851_v0, %v13925_v12  ;;  %v3853_v1 = vmul.f32 %v10954_v58, %v10546_v5  ;;  %v5667_v37 = vld [vmem:[%s5820_s17 + $0x3a9] sm:$0x3f]  ;;  %v13928_v40 = vld [vmem:[#allocation64_spill] sm:$0xff]  ;;  %v5666_v0 = vld [vmem:[%s5820_s17 + $0x3a1] sm:$0xff] }
 0x3db   : > { %13921 = vst [vmem:[#allocation29_spill] sm:$0xff] %v11032_v53  ;;  %13922 = vst [vmem:[#allocation51_spill] sm:$0xff] %v11037_v38  ;;  %v4047_v26 = vmul.f32 %v10999_v3, %v11044_v10  ;;  %4843 = vperm.xlu0 %5749, %v5664_v6   ;;  %v11057_v53 = vadd.f32 %v3311_v41, %v10604_v28  ;;  %v3314_v61 = vmul.f32 %v10854_v13, %v13928_v40  ;;  %v13930_v6 = vld [vmem:[#allocation7_spill] sm:$0xff] }
 0x3dc   : > { %v11061_v24 = vadd.f32 %v4048_v46, %v3880_v44  ;;  %v11065_v12 = vadd.f32 %v4572_v57, %v10590_v30  ;;  %v11068_v5 = vadd.f32 %v4571_v50, %v10613_v31  ;;  %v3313_v17 = vmul.f32 %v10854_v13, %v13930_v6  ;;  %v11074_v28 = vpop.permute.xlu1 %3988  ;;  %v13933_v44 = vld [vmem:[#allocation316_spill] sm:$0xff] }
 0x3dd   : > { %13927 = vst [vmem:[#allocation145_spill] sm:$0xff] %v11057_v53  ;;  %v11072_v15 = vadd.f32 %v4047_v26, %v3879_v36  ;;  %v3882_v46 = vadd.f32 %v3854_v39, %v13933_v44  ;;  %v3856_v30 = vmul.f32 %v10954_v58, %v10572_v27  ;;  %v4050_v31 = vmul.f32 %v10999_v3, %v11074_v28  ;;  %v11083_v57 = vpop.permute.xlu0 %3983  ;;  %v13935_v36 = vld [vmem:[#allocation317_spill] sm:$0xff] }
 0x3de   : > { %13929 = vst [vmem:[#allocation191_spill] sm:$0xff] %v11061_v24  ;;  %13934 = vst [vmem:[#allocation30_spill] sm:$0xff] %v11083_v57  ;;  %4858 = vperm.xlu1 %5750, %v5667_v37   ;;  %v4574_v50 = vmul.f32 %v10597_v14, %v13928_v40  ;;  %v3881_v26 = vadd.f32 %v3853_v1, %v13935_v36  ;;  %v3855_v2 = vmul.f32 %v10954_v58, %v13936_v55  ;;  %v5669_v44 = vld [vmem:[%s5820_s17 + $0x3b9] sm:$0x3f]  ;;  %v5668_v1 = vld [vmem:[%s5820_s17 + $0x3b1] sm:$0xff] }
 0x3df   : > { %13931 = vst [vmem:[#allocation229_spill] sm:$0xff] %v11072_v15  ;;  %v4049_v39 = vmul.f32 %v10999_v3, %v11083_v57  ;;  %4853 = vperm.xlu0 %5749, %v5666_v0   ;;  %v11096_v41 = vadd.f32 %v3314_v61, %v10628_v18  ;;  %v4573_v37 = vmul.f32 %v10597_v14, %v13930_v6  ;;  %v13941_v55 = vld [vmem:[#allocation293_spill] sm:$0xff]  ;;  %v13944_v18 = vld [vmem:[#allocation299_spill] sm:$0xff] }
 0x3e0   : > { %v11100_v40 = vadd.f32 %v4050_v31, %v3882_v46  ;;  %v11104_v36 = vadd.f32 %v3313_v17, %v10639_v25  ;;  %v3316_v29 = vmul.f32 %v10854_v13, %v13941_v55  ;;  %v4576_v0 = vmul.f32 %v10597_v14, %v13941_v55  ;;  %v11112_v38 = vpop.permute.xlu1 %3998  ;;  %v13945_v6 = vld [vmem:[#allocation323_spill] sm:$0xff]  ;;  %v13946_v31 = vld [vmem:[#allocation176_spill] sm:$0xff]  ;;  %v13949_v27 = vld [vmem:[#allocation21_spill] sm:$0xff] }
 0x3e1   : > { %13938 = vst [vmem:[#allocation31_spill] sm:$0xff] %v11096_v41  ;;  %v11110_v15 = vadd.f32 %v4049_v39, %v3881_v26  ;;  %13943 = vst [vmem:[#allocation166_spill] sm:$0xff] %v11112_v38  ;;  %v3315_v61 = vmul.f32 %v10854_v13, %v13944_v18  ;;  %v3884_v46 = vadd.f32 %v3856_v30, %v13945_v6  ;;  %v11121_v17 = vpop.permute.xlu0 %3993  ;;  %v13948_v39 = vld [vmem:[#allocation324_spill] sm:$0xff]  ;;  %v13950_v6 = vld [vmem:[#allocation109_spill] sm:$0xff] }
 0x3e2   : > { %13939 = vst [vmem:[#allocation121_spill] sm:$0xff] %v11100_v40  ;;  %13940 = vst [vmem:[#allocation110_spill] sm:$0xff] %v11104_v36  ;;  %v3858_v53 = vmul.f32 %v10954_v58, %v13946_v31  ;;  %v4052_v25 = vmul.f32 %v10999_v3, %v11112_v38  ;;  %4868 = vperm.xlu1 %5750, %v5669_v44   ;;  %v4575_v26 = vmul.f32 %v10597_v14, %v13944_v18  ;;  %v13952_v38 = vld [vmem:[#allocation82_spill] sm:$0xff] }
 0x3e3   : > { %13942 = vst [vmem:[#allocation32_spill] sm:$0xff] %v11110_v15  ;;  %13947 = vst [vmem:[#allocation232_spill] sm:$0xff] %v11121_v17  ;;  %v3883_v55 = vadd.f32 %v3855_v2, %v13948_v39  ;;  %v3857_v15 = vmul.f32 %v10954_v58, %v13949_v27  ;;  %v4051_v30 = vmul.f32 %v10999_v3, %v11121_v17  ;;  %4863 = vperm.xlu0 %5749, %v5668_v1   ;;  %v13956_v39 = vld [vmem:[#allocation235_spill] sm:$0xff]  ;;  %v13972_v40 = vld [vmem:[#allocation170_spill] sm:$0xff] }
 0x3e4   : > { %v11131_v31 = vadd.f32 %v4574_v50, %v13950_v6  ;;  %v11136_v44 = vadd.f32 %v4573_v37, %v13952_v38  ;;  %v11138_v57 = vadd.f32 %v4052_v25, %v3884_v46  ;;  %v11143_v27 = vadd.f32 %v3316_v29, %v10679_v32  ;;  %v11150_v50 = vpop.permute.xlu1 %4008  ;;  %v13960_v38 = vld [vmem:[#allocation48_spill] sm:$0xff]  ;;  %v13961_v46 = vld [vmem:[#allocation178_spill] sm:$0xff] }
 0x3e5   : > { %v11146_v17 = vadd.f32 %v4576_v0, %v13956_v39  ;;  %v11148_v1 = vadd.f32 %v4051_v30, %v3883_v55  ;;  %13958 = vst [vmem:[#allocation86_spill] sm:$0xff] %v11150_v50  ;;  %v11153_v6 = vadd.f32 %v3315_v61, %v10685_v63  ;;  %v3886_v37 = vadd.f32 %v3858_v53, %v13960_v38  ;;  %v11160_v32 = vpop.permute.xlu0 %4003  ;;  %v13963_v0 = vld [vmem:[#allocation147_spill] sm:$0xff]  ;;  %v13965_v53 = vld [vmem:[#allocation306_spill] sm:$0xff] }
 0x3e6   : > { %13953 = vst [vmem:[#allocation202_spill] sm:$0xff] %v11138_v57  ;;  %13955 = vst [vmem:[#allocation203_spill] sm:$0xff] %v11143_v27  ;;  %v3860_v25 = vmul.f32 %v10954_v58, %v13961_v46  ;;  %v4054_v18 = vmul.f32 %v10999_v3, %v11150_v50  ;;  %v11163_v29 = vadd.f32 %v4575_v26, %v10693_v54  ;;  %v13964_v30 = vld [vmem:[#allocation179_spill] sm:$0xff]  ;;  %v13966_v46 = vld [vmem:[#allocation185_spill] sm:$0xff] }
 0x3e7   : > { %13957 = vst [vmem:[#allocation44_spill] sm:$0xff] %v11148_v1  ;;  %13959 = vst [vmem:[#allocation92_spill] sm:$0xff] %v11153_v6  ;;  %v3885_v55 = vadd.f32 %v3857_v15, %v13963_v0  ;;  %v3859_v39 = vmul.f32 %v10954_v58, %v13964_v30  ;;  %v4053_v63 = vmul.f32 %v10999_v3, %v11160_v32  ;;  %v13969_v0 = vld [vmem:[#allocation77_spill] sm:$0xff]  ;;  %v13973_v1 = vld [vmem:[#allocation335_spill] sm:$0xff] }
 0x3e8   : > { %13962 = vst [vmem:[#allocation126_spill] sm:$0xff] %v11160_v32  ;;  %v3318_v61 = vmul.f32 %v10854_v13, %v13965_v53  ;;  %v4578_v38 = vmul.f32 %v10597_v14, %v13965_v53  ;;  %v3317_v24 = vmul.f32 %v10854_v13, %v13966_v46  ;;  %v11176_v36 = vadd.f32 %v4054_v18, %v3886_v37  ;;  %v11186_v41 = vpop.permute.xlu1 %4018  ;;  %v13974_v18 = vld [vmem:[#allocation23_spill] sm:$0xff]  ;;  %v13983_v54 = vld [vmem:[#allocation24_spill] sm:$0xff] }
 0x3e9   : > { %v4577_v26 = vmul.f32 %v10597_v14, %v13966_v46  ;;  %v3320_v30 = vmul.f32 %v10854_v13, %v13969_v0  ;;  %v11184_v2 = vadd.f32 %v4053_v63, %v3885_v55  ;;  %13971 = vst [vmem:[#allocation127_spill] sm:$0xff] %v11186_v41  ;;  %v3319_v53 = vmul.f32 %v10854_v13, %v13972_v40  ;;  %v11195_v27 = vpop.permute.xlu0 %4013  ;;  %v13977_v55 = vld [vmem:[#allocation8_spill] sm:$0xff]  ;;  %v13999_v46 = vld [vmem:[#allocation218_spill] sm:$0xff] }
 0x3ea   : > { %13967 = vst [vmem:[#allocation207_spill] sm:$0xff] %v11176_v36  ;;  %v3888_v57 = vadd.f32 %v3860_v25, %v13973_v1  ;;  %v3862_v37 = vmul.f32 %v10954_v58, %v13974_v18  ;;  %v4056_v15 = vmul.f32 %v10999_v3, %v11186_v41  ;;  %13975 = vst [vmem:[#allocation211_spill] sm:$0xff] %v11195_v27  ;;  %v13980_v18 = vld [vmem:[#allocation183_spill] sm:$0xff] }
 0x3eb   : > { %13970 = vst [vmem:[#allocation208_spill] sm:$0xff] %v11184_v2  ;;  %v3887_v63 = vadd.f32 %v3859_v39, %v13977_v55  ;;  %v13978_v2 = vld [vmem:[#allocation182_spill] sm:$0xff]  ;;  %v4055_v32 = vmul.f32 %v10999_v3, %v11195_v27  ;;  %v11205_v1 = vadd.f32 %v3318_v61, %v10699_v19  ;;  %v11208_v25 = vadd.f32 %v4578_v38, %v10702_v51  ;;  %v14000_v27 = vld [vmem:[#allocation63_spill] sm:$0xff] }
 0x3ec   : > { %v3861_v36 = vmul.f32 %v10954_v58, %v13978_v2  ;;  %v11211_v41 = vadd.f32 %v3317_v24, %v13980_v18  ;;  %v11213_v50 = vadd.f32 %v4056_v15, %v3888_v57  ;;  %v11216_v6 = vadd.f32 %v4577_v26, %v13983_v54  ;;  %v11224_v19 = vpop.permute.xlu1 %4028  ;;  %v13988_v24 = vld [vmem:[#allocation219_spill] sm:$0xff]  ;;  %v13990_v57 = vld [vmem:[#allocation97_spill] sm:$0xff]  ;;  %v13992_v26 = vld [vmem:[#allocation314_spill] sm:$0xff] }
 0x3ed   : > { %13979 = vst [vmem:[#allocation90_spill] sm:$0xff] %v11205_v1  ;;  %v4580_v2 = vmul.f32 %v10597_v14, %v13969_v0  ;;  %v4579_v39 = vmul.f32 %v10597_v14, %v13972_v40  ;;  %v11222_v55 = vadd.f32 %v4055_v32, %v3887_v63  ;;  %13986 = vst [vmem:[#allocation236_spill] sm:$0xff] %v11224_v19  ;;  %v11235_v15 = vpop.permute.xlu0 %4023  ;;  %v13993_v32 = vld [vmem:[#allocation201_spill] sm:$0xff]  ;;  %v13994_v63 = vld [vmem:[#allocation98_spill] sm:$0xff] }
 0x3ee   : > { %13981 = vst [vmem:[#allocation52_spill] sm:$0xff] %v11211_v41  ;;  %13982 = vst [vmem:[#allocation230_spill] sm:$0xff] %v11213_v50  ;;  %v11227_v51 = vadd.f32 %v3320_v30, %v10722_v8  ;;  %v11230_v61 = vadd.f32 %v3319_v53, %v13988_v24  ;;  %v3890_v38 = vadd.f32 %v3862_v37, %v13990_v57  ;;  %v13997_v57 = vld [vmem:[#allocation329_spill] sm:$0xff] }
 0x3ef   : > { %13984 = vst [vmem:[#allocation140_spill] sm:$0xff] %v11216_v6  ;;  %13985 = vst [vmem:[#allocation233_spill] sm:$0xff] %v11222_v55  ;;  %v4058_v54 = vmul.f32 %v10999_v3, %v11224_v19  ;;  %v3322_v40 = vmul.f32 %v10854_v13, %v13992_v26  ;;  %v3321_v0 = vmul.f32 %v10854_v13, %v13993_v32 }
 0x3f0   : > { %13987 = vst [vmem:[#allocation108_spill] sm:$0xff] %v11227_v51  ;;  %13989 = vst [vmem:[#allocation56_spill] sm:$0xff] %v11230_v61  ;;  %v3889_v18 = vadd.f32 %v3861_v36, %v13994_v63  ;;  %v4057_v8 = vmul.f32 %v10999_v3, %v11235_v15  ;;  %v3324_v55 = vmul.f32 %v10854_v13, %v13997_v57  ;;  %v14001_v36 = vld [vmem:[#allocation85_spill] sm:$0xff]  ;;  %v11262_v53 = vpop.permute.xlu1 %4094 }
 0x3f1   : > { %13991 = vst [vmem:[#allocation237_spill] sm:$0xff] %v11235_v15  ;;  %v11250_v50 = vadd.f32 %v4058_v54, %v3890_v38  ;;  %v11253_v19 = vadd.f32 %v4580_v2, %v13999_v46  ;;  %v11256_v6 = vadd.f32 %v4579_v39, %v14000_v27  ;;  %v3323_v63 = vmul.f32 %v10854_v13, %v14001_v36  ;;  %v14003_v54 = vld [vmem:[#allocation217_spill] sm:$0xff]  ;;  %v11272_v39 = vpop.permute.xlu0 %4089 }
 0x3f2   : > { %v11260_v15 = vadd.f32 %v4057_v8, %v3889_v18  ;;  %v4582_v24 = vmul.f32 %v10597_v14, %v13992_v26  ;;  %v4581_v38 = vmul.f32 %v10597_v14, %v13993_v32  ;;  %v3326_v46 = vmul.f32 %v10854_v13, %v14003_v54  ;;  %v14004_v2 = vld [vmem:[#allocation209_spill] sm:$0xff]  ;;  %14005 = vst [vmem:[#allocation239_spill] sm:$0xff] %v11272_v39  ;;  %v14009_v26 = vld [vmem:[#allocation220_spill] sm:$0xff]  ;;  %v14012_v39 = vld [vmem:[#allocation151_spill] sm:$0xff] }
 0x3f3   : > { %13998 = vst [vmem:[#allocation79_spill] sm:$0xff] %v11250_v50  ;;  %v3325_v27 = vmul.f32 %v10854_v13, %v14004_v2  ;;  %v11279_v41 = vadd.f32 %v3322_v40, %v10764_v42  ;;  %v11282_v37 = vadd.f32 %v3321_v0, %v14009_v26  ;;  %v11285_v32 = vadd.f32 %v3324_v55, %v10815_v23  ;;  %v14014_v23 = vld [vmem:[#allocation57_spill] sm:$0xff] }
 0x3f4   : > { %14002 = vst [vmem:[#allocation238_spill] sm:$0xff] %v11260_v15  ;;  %v4584_v1 = vmul.f32 %v10597_v14, %v13997_v57  ;;  %v4583_v30 = vmul.f32 %v10597_v14, %v14001_v36  ;;  %v3328_v18 = vmul.f32 %v10854_v13, %v14012_v39  ;;  %v11294_v15 = vadd.f32 %v3323_v63, %v10821_v34  ;;  %v11302_v0 = vpop.permute.xlu1 %4104  ;;  %v14016_v57 = vld [vmem:[#allocation25_spill] sm:$0xff] }
 0x3f5   : > { %14008 = vst [vmem:[#allocation137_spill] sm:$0xff] %v11279_v41  ;;  %14010 = vst [vmem:[#allocation61_spill] sm:$0xff] %v11282_v37  ;;  %v4586_v42 = vmul.f32 %v10597_v14, %v14003_v54  ;;  %v4585_v40 = vmul.f32 %v10597_v14, %v14004_v2  ;;  %v3327_v55 = vmul.f32 %v10854_v13, %v14014_v23  ;;  %v14017_v36 = vld [vmem:[#allocation193_spill] sm:$0xff]  ;;  %v11316_v54 = vpop.permute.xlu0 %4099  ;;  %v14034_v41 = vld [vmem:[#allocation114_spill] sm:$0xff] }
 0x3f6   : > { %14011 = vst [vmem:[#allocation205_spill] sm:$0xff] %v11285_v32  ;;  %14013 = vst [vmem:[#allocation206_spill] sm:$0xff] %v11294_v15  ;;  %v11305_v26 = vadd.f32 %v4582_v24, %v14016_v57  ;;  %v11308_v61 = vadd.f32 %v4581_v38, %v14017_v36  ;;  %v11311_v34 = vadd.f32 %v3326_v46, %v10835_v56  ;;  %v14019_v63 = vld [vmem:[#allocation113_spill] sm:$0xff]  ;;  %v14024_v57 = vld [vmem:[#allocation194_spill] sm:$0xff] }
 0x3f7   : > { %14015 = vst [vmem:[#allocation130_spill] sm:$0xff] %v11302_v0  ;;  %v11314_v8 = vadd.f32 %v3325_v27, %v14019_v63  ;;  %14021 = vst [vmem:[#allocation139_spill] sm:$0xff] %v11316_v54  ;;  %v4588_v24 = vmul.f32 %v10597_v14, %v14012_v39  ;;  %v4587_v38 = vmul.f32 %v10597_v14, %v14014_v23  ;;  %v14027_v36 = vld [vmem:[#allocation224_spill] sm:$0xff]  ;;  %v14029_v54 = vld [vmem:[#allocation195_spill] sm:$0xff] }
 0x3f8   : > { %14018 = vst [vmem:[#allocation73_spill] sm:$0xff] %v11311_v34  ;;  %v11327_v56 = vadd.f32 %v4584_v1, %v14024_v57  ;;  %v11332_v63 = vadd.f32 %v4583_v30, %v14027_v36  ;;  %v11335_v51 = vadd.f32 %v3328_v18, %v14029_v54  ;;  %v14032_v50 = vld [vmem:[#allocation225_spill] sm:$0xff]  ;;  %v11343_v23 = vadd.f32 %v4585_v40, %v14034_v41  ;;  %v14036_v1 = vld [vmem:[#allocation226_spill] sm:$0xff]  ;;  %v11348_v2 = vpop.permute.xlu1 %4114  ;;  %v14048_v34 = vld [vmem:[#allocation99_spill] sm:$0xff] }
 0x3f9   : > { %14020 = vst [vmem:[#allocation33_spill] sm:$0xff] %v11314_v8  ;;  %v11340_v39 = vadd.f32 %v4586_v42, %v14032_v50  ;;  %v11346_v57 = vadd.f32 %v3327_v55, %v14036_v1  ;;  %14038 = vst [vmem:[#allocation135_spill] sm:$0xff] %v11348_v2  ;;  %v14041_v27 = vld [vmem:[#allocation54_spill] sm:$0xff]  ;;  %v11358_v42 = vpop.permute.xlu0 %4109  ;;  %v11364_v55 = vadd.f32 %v4587_v38, %v10890_v33  ;;  %v14046_v1 = vld [vmem:[#allocation59_spill] sm:$0xff] }
 0x3fa   : > { %14025 = vst [vmem:[#allocation141_spill] sm:$0xff] %v11327_v56  ;;  %14028 = vst [vmem:[#allocation272_spill] sm:$0xff] %v11332_v63  ;;  %v3330_v37 = vmul.f32 %v10854_v13, %v14041_v27  ;;  %v4590_v50 = vmul.f32 %v10597_v14, %v14041_v27  ;;  %v14043_v41 = vld [vmem:[#allocation46_spill] sm:$0xff]  ;;  %v3329_v36 = vmul.f32 %v10854_v13, %v14046_v1  ;;  %v14049_v30 = vld [vmem:[#allocation223_spill] sm:$0xff] }
 0x3fb   : > { %14030 = vst [vmem:[#allocation142_spill] sm:$0xff] %v11335_v51  ;;  %14033 = vst [vmem:[#allocation189_spill] sm:$0xff] %v11340_v39  ;;  %v11361_v40 = vadd.f32 %v4588_v24, %v14043_v41  ;;  %v4589_v54 = vmul.f32 %v10597_v14, %v14046_v1  ;;  %v3836_v27 = vmul.f32 %v10954_v58, %v14048_v34  ;;  %v14050_v24 = vld [vmem:[#allocation60_spill] sm:$0xff]  ;;  %v14052_v0 = vld [vmem:[#allocation101_spill] sm:$0xff] }
 0x3fc   : > { %14035 = vst [vmem:[#allocation273_spill] sm:$0xff] %v11343_v23  ;;  %14037 = vst [vmem:[#allocation143_spill] sm:$0xff] %v11346_v57  ;;  %v3835_v15 = vmul.f32 %v10954_v58, %v14049_v30  ;;  %v3838_v41 = vmul.f32 %v10954_v58, %v14050_v24  ;;  %v3837_v32 = vmul.f32 %v10954_v58, %v14052_v0  ;;  %v14053_v46 = vld [vmem:[#allocation227_spill] sm:$0xff]  ;;  %v14054_v1 = vld [vmem:[#allocation10_spill] sm:$0xff]  ;;  %v11386_v51 = vpop.permute.xlu1 %4124 }
 0x3fd   : > { %14042 = vst [vmem:[#allocation274_spill] sm:$0xff] %v11358_v42  ;;  %14044 = vst [vmem:[#allocation96_spill] sm:$0xff] %v11361_v40  ;;  %v3840_v14 = vmul.f32 %v10954_v58, %v14053_v46  ;;  %v3839_v18 = vmul.f32 %v10954_v58, %v14054_v1  ;;  %v11389_v34 = vadd.f32 %v3330_v37, %v10913_v62  ;;  %v14058_v24 = vld [vmem:[#allocation11_spill] sm:$0xff]  ;;  %v14059_v57 = vld [vmem:[#allocation13_spill] sm:$0xff]  ;;  %v11398_v33 = vpop.permute.xlu0 %4119 }
 0x3fe   : > { %14045 = vst [vmem:[#allocation136_spill] sm:$0xff] %v11364_v55  ;;  %14055 = vst [vmem:[#allocation62_spill] sm:$0xff] %v11386_v51  ;;  %v11392_v30 = vadd.f32 %v4590_v50, %v10916_v43  ;;  %v3842_v38 = vmul.f32 %v10954_v58, %v14058_v24  ;;  %v3841_v0 = vmul.f32 %v10954_v58, %v14059_v57  ;;  %v14063_v8 = vld [vmem:[#allocation105_spill] sm:$0xff]  ;;  %v14067_v42 = vld [vmem:[#allocation279_spill] sm:$0xff] }
 0x3ff   : > { %14056 = vst [vmem:[#allocation68_spill] sm:$0xff] %v11389_v34  ;;  %14060 = vst [vmem:[#allocation174_spill] sm:$0xff] %v11398_v33  ;;  %v11401_v46 = vadd.f32 %v3329_v36, %v10928_v52  ;;  %v11404_v1 = vadd.f32 %v4589_v54, %v10940_v7  ;;  %v3844_v62 = vmul.f32 %v10954_v58, %v14063_v8  ;;  %v14064_v37 = vld [vmem:[#allocation213_spill] sm:$0xff]  ;;  %v14068_v2 = vld [vmem:[#allocation214_spill] sm:$0xff] }
 0x400   : > { %14057 = vst [vmem:[#allocation106_spill] sm:$0xff] %v11392_v30  ;;  %v3843_v43 = vmul.f32 %v10954_v58, %v14064_v37  ;;  %v14065_v50 = vld [vmem:[#allocation277_spill] sm:$0xff]  ;;  %v3866_v57 = vadd.f32 %v3838_v41, %v14067_v42  ;;  %v3846_v33 = vmul.f32 %v10954_v58, %v14068_v2  ;;  %v14069_v52 = vld [vmem:[#allocation280_spill] sm:$0xff]  ;;  %v14071_v54 = vld [vmem:[#allocation283_spill] sm:$0xff]  ;;  %v11420_v55 = vpop.permute.xlu1 %4134 }
 0x401   : > { %14061 = vst [vmem:[#allocation112_spill] sm:$0xff] %v11401_v46  ;;  %14062 = vst [vmem:[#allocation144_spill] sm:$0xff] %v11404_v1  ;;  %v3864_v34 = vadd.f32 %v3836_v27, %v14065_v50  ;;  %v14066_v24 = vld [vmem:[#allocation81_spill] sm:$0xff]  ;;  %v3865_v36 = vadd.f32 %v3837_v32, %v14069_v52  ;;  %v14070_v46 = vld [vmem:[#allocation282_spill] sm:$0xff]  ;;  %v3867_v1 = vadd.f32 %v3839_v18, %v14071_v54  ;;  %v11428_v32 = vpop.permute.xlu0 %4129 }
 0x402   : > { %v3863_v51 = vadd.f32 %v3835_v15, %v14066_v24  ;;  %v3868_v7 = vadd.f32 %v3840_v14, %v14070_v46  ;;  %v14072_v30 = vld [vmem:[#allocation16_spill] sm:$0xff]  ;;  %14073 = vst [vmem:[#allocation146_spill] sm:$0xff] %v11420_v55  ;;  %v14074_v37 = vld [vmem:[#allocation287_spill] sm:$0xff]  ;;  %v14077_v41 = vld [vmem:[#allocation18_spill] sm:$0xff] }
 0x403   : > { %v3845_v8 = vmul.f32 %v10954_v58, %v14072_v30  ;;  %v3870_v27 = vadd.f32 %v3842_v38, %v14074_v37  ;;  %v14075_v50 = vld [vmem:[#allocation159_spill] sm:$0xff]  ;;  %v3847_v2 = vmul.f32 %v10954_v58, %v14077_v41  ;;  %14078 = vst [vmem:[#allocation153_spill] sm:$0xff] %v11428_v32  ;;  %v14079_v14 = vld [vmem:[#allocation242_spill] sm:$0xff]  ;;  %v14089_v39 = vld [vmem:[#allocation301_spill] sm:$0xff] }
 0x404   : > { %v3869_v15 = vadd.f32 %v3841_v0, %v14075_v50  ;;  %v14076_v24 = vld [vmem:[#allocation215_spill] sm:$0xff]  ;;  %v3872_v46 = vadd.f32 %v3844_v62, %v14079_v14  ;;  %v14080_v18 = vld [vmem:[#allocation122_spill] sm:$0xff]  ;;  %v14085_v62 = vld [vmem:[#allocation152_spill] sm:$0xff] }
 0x405   : > { %v3848_v42 = vmul.f32 %v10954_v58, %v14076_v24  ;;  %v3871_v52 = vadd.f32 %v3843_v43, %v14080_v18  ;;  %v14081_v54 = vld [vmem:[#allocation111_spill] sm:$0xff]  ;;  %v14082_v37 = vld [vmem:[#allocation294_spill] sm:$0xff]  ;;  %v3873_v14 = vadd.f32 %v3845_v8, %v14085_v62  ;;  %v11458_v62 = vpop.permute.xlu0 %4139 }
 0x406   : > { %v4032_v30 = vmul.f32 %v10999_v3, %v14081_v54  ;;  %v4620_v38 = vmul.f32 %v10954_v58, %v14081_v54  ;;  %v3874_v0 = vadd.f32 %v3846_v33, %v14082_v37  ;;  %v14083_v50 = vld [vmem:[#allocation186_spill] sm:$0xff]  ;;  %v14084_v55 = vld [vmem:[#allocation187_spill] sm:$0xff]  ;;  %v11450_v54 = vpop.permute.xlu1 %4144  ;;  %v14088_v37 = vld [vmem:[#allocation300_spill] sm:$0xff] }
 0x407   : > { %v4031_v24 = vmul.f32 %v10999_v3, %v14083_v50  ;;  %v4619_v41 = vmul.f32 %v10954_v58, %v14083_v50  ;;  %v4034_v32 = vmul.f32 %v10999_v3, %v14084_v55  ;;  %v4622_v43 = vmul.f32 %v10954_v58, %v14084_v55  ;;  %v14086_v18 = vld [vmem:[#allocation171_spill] sm:$0xff]  ;;  %14087 = vst [vmem:[#allocation100_spill] sm:$0xff] %v11450_v54  ;;  %v14090_v63 = vld [vmem:[#allocation26_spill] sm:$0xff] }
 0x408   : > { %v4033_v40 = vmul.f32 %v10999_v3, %v14086_v18  ;;  %v4621_v33 = vmul.f32 %v10954_v58, %v14086_v18  ;;  %v3876_v23 = vadd.f32 %v3848_v42, %v14088_v37  ;;  %v3875_v50 = vadd.f32 %v3847_v2, %v14089_v39  ;;  %v14091_v18 = vld [vmem:[#allocation221_spill] sm:$0xff] }
 0x409   : > { %v4036_v56 = vmul.f32 %v10999_v3, %v14090_v63  ;;  %v4624_v8 = vmul.f32 %v10954_v58, %v14090_v63  ;;  %v11460_v55 = vadd.f32 %v4032_v30, %v3864_v34  ;;  %v11463_v13 = vadd.f32 %v4620_v38, %v10898_v49  ;;  %v14092_v63 = vld [vmem:[#allocation222_spill] sm:$0xff] }
 0x40a   : > { %v4035_v54 = vmul.f32 %v10999_v3, %v14091_v18  ;;  %v4623_v42 = vmul.f32 %v10954_v58, %v14091_v18  ;;  %v11469_v39 = vadd.f32 %v4031_v24, %v3863_v51  ;;  %v11472_v2 = vadd.f32 %v4619_v41, %v10920_v21  ;;  %v11488_v24 = vpop.permute.xlu1 %4154 }
 0x40b   : > { %v11474_v37 = vadd.f32 %v4034_v32, %v3866_v57  ;;  %v4038_v34 = vmul.f32 %v10999_v3, %v14092_v63  ;;  %v11479_v30 = vadd.f32 %v4622_v43, %v10949_v20  ;;  %v11481_v49 = vadd.f32 %v4033_v40, %v3865_v36  ;;  %v14093_v32 = vld [vmem:[#allocation172_spill] sm:$0xff]  ;;  %v11499_v40 = vpop.permute.xlu0 %4149  ;;  %v14094_v43 = vld [vmem:[#allocation115_spill] sm:$0xff] }
 0x40c   : > { %v11484_v38 = vadd.f32 %v4621_v33, %v10963_v22  ;;  %v4626_v51 = vmul.f32 %v10954_v58, %v14092_v63  ;;  %v11490_v21 = vadd.f32 %v4036_v56, %v3868_v7  ;;  %v11493_v57 = vadd.f32 %v4624_v8, %v10973_v11  ;;  %v14095_v33 = vld [vmem:[#allocation196_spill] sm:$0xff] }
 0x40d   : > { %v4037_v41 = vmul.f32 %v10999_v3, %v14093_v32  ;;  %v4625_v20 = vmul.f32 %v10954_v58, %v14093_v32  ;;  %v11501_v22 = vadd.f32 %v4035_v54, %v3867_v1  ;;  %v11504_v36 = vadd.f32 %v4623_v42, %v10983_v16 }
 0x40e   : > { %v4040_v56 = vmul.f32 %v10999_v3, %v14094_v43  ;;  %v4628_v11 = vmul.f32 %v10954_v58, %v14094_v43  ;;  %v11510_v7 = vadd.f32 %v4038_v34, %v3870_v27  ;;  %v4039_v8 = vmul.f32 %v10999_v3, %v14095_v33  ;;  %v11527_v63 = vpop.permute.xlu1 %4164 }
 0x40f   : > { %v4627_v18 = vmul.f32 %v10954_v58, %v14095_v33  ;;  %v4042_v1 = vmul.f32 %v10999_v3, %v10892_v48  ;;  %v11519_v16 = vadd.f32 %v4626_v51, %v11015_v59  ;;  %v4630_v54 = vmul.f32 %v10954_v58, %v10892_v48  ;;  %v11538_v48 = vpop.permute.xlu0 %4159 }
 0x410   : > { %v4041_v42 = vmul.f32 %v10999_v3, %v10905_v47  ;;  %v4629_v27 = vmul.f32 %v10954_v58, %v10905_v47  ;;  %v11529_v34 = vadd.f32 %v4037_v41, %v3869_v15  ;;  %v11532_v32 = vadd.f32 %v4625_v20, %v11026_v35 }
 0x411   : > { %v4044_v59 = vmul.f32 %v10999_v3, %v10942_v60  ;;  %v4632_v51 = vmul.f32 %v10954_v58, %v10942_v60  ;;  %v11540_v43 = vadd.f32 %v4040_v56, %v3872_v46  ;;  %v11543_v33 = vadd.f32 %v4628_v11, %v11065_v12  ;;  %v14096_v60 = vld [vmem:[#allocation49_spill] sm:$0xff] }
 0x412   : > { %v4043_v47 = vmul.f32 %v10999_v3, %v10958_v45  ;;  %v4631_v35 = vmul.f32 %v10954_v58, %v10958_v45  ;;  %v11549_v15 = vadd.f32 %v4039_v8, %v3871_v52  ;;  %v11552_v41 = vadd.f32 %v4627_v18, %v11068_v5  ;;  %v11568_v52 = vpop.permute.xlu1 %4174 }
 0x413   : > { %v11554_v20 = vadd.f32 %v4042_v1, %v3874_v0  ;;  %v4634_v46 = vmul.f32 %v10954_v58, %v14096_v60  ;;  %v11559_v56 = vadd.f32 %v4630_v54, %v11131_v31  ;;  %v11561_v12 = vadd.f32 %v4041_v42, %v3873_v14  ;;  %v11579_v14 = vpop.permute.xlu0 %4169 }
 0x414   : > { %v11564_v11 = vadd.f32 %v4629_v27, %v11136_v44  ;;  %v4633_v45 = vmul.f32 %v10954_v58, %v11003_v9  ;;  %v11570_v5 = vadd.f32 %v4044_v59, %v3876_v23  ;;  %v11573_v0 = vadd.f32 %v4632_v51, %v11146_v17  ;;  %v14097_v23 = vld [vmem:[#allocation30_spill] sm:$0xff] }
 0x415   : > { %v4636_v8 = vmul.f32 %v10954_v58, %v11034_v4  ;;  %v4635_v31 = vmul.f32 %v10954_v58, %v11044_v10  ;;  %v11581_v44 = vadd.f32 %v4043_v47, %v3875_v50  ;;  %v11584_v18 = vadd.f32 %v4631_v35, %v11163_v29  ;;  %v14098_v4 = vld [vmem:[#allocation166_spill] sm:$0xff]  ;;  %v14099_v10 = vld [vmem:[#allocation232_spill] sm:$0xff]  ;;  %v14103_v47 = vld [vmem:[#allocation127_spill] sm:$0xff] }
 0x416   : > { %v4638_v9 = vmul.f32 %v10954_v58, %v11074_v28  ;;  %v4637_v17 = vmul.f32 %v10954_v58, %v14097_v23  ;;  %v11591_v1 = vadd.f32 %v4634_v46, %v11208_v25  ;;  %v4640_v54 = vmul.f32 %v10954_v58, %v14098_v4  ;;  %v14100_v50 = vld [vmem:[#allocation86_spill] sm:$0xff]  ;;  %v14101_v29 = vld [vmem:[#allocation140_spill] sm:$0xff]  ;;  %v14104_v25 = vld [vmem:[#allocation211_spill] sm:$0xff]  ;;  %v11608_v46 = vpop.permute.xlu1 %4184 }
 0x417   : > { %v4639_v42 = vmul.f32 %v10954_v58, %v14099_v10  ;;  %v4642_v27 = vmul.f32 %v10954_v58, %v14100_v50  ;;  %v11600_v59 = vadd.f32 %v4633_v45, %v14101_v29  ;;  %v14102_v51 = vld [vmem:[#allocation126_spill] sm:$0xff]  ;;  %v4644_v35 = vmul.f32 %v10954_v58, %v14103_v47  ;;  %v14107_v10 = vld [vmem:[#allocation236_spill] sm:$0xff]  ;;  %v14108_v50 = vld [vmem:[#allocation237_spill] sm:$0xff] }
 0x418   : > { %v4641_v28 = vmul.f32 %v10954_v58, %v14102_v51  ;;  %v4643_v60 = vmul.f32 %v10954_v58, %v14104_v25  ;;  %v11611_v23 = vadd.f32 %v4636_v8, %v11253_v19  ;;  %v11614_v4 = vadd.f32 %v4635_v31, %v11256_v6  ;;  %v11620_v51 = vpop.permute.xlu0 %4179  ;;  %v14112_v19 = vld [vmem:[#allocation72_spill] sm:$0xff]  ;;  %v14113_v31 = vld [vmem:[#allocation141_spill] sm:$0xff] }
 0x419   : > { %v4646_v45 = vmul.f32 %v10954_v58, %v14107_v10  ;;  %v4645_v29 = vmul.f32 %v10954_v58, %v14108_v50  ;;  %14109 = vst [vmem:[#allocation156_spill] sm:$0xff] %v11620_v51  ;;  %v11623_v47 = vadd.f32 %v4638_v9, %v11305_v26  ;;  %v11626_v25 = vadd.f32 %v4637_v17, %v11308_v61  ;;  %v14114_v10 = vld [vmem:[#allocation272_spill] sm:$0xff]  ;;  %v14115_v58 = vld [vmem:[#allocation189_spill] sm:$0xff]  ;;  %v14117_v26 = vld [vmem:[#allocation239_spill] sm:$0xff] }
 0x41a   : > { %14105 = vst [vmem:[#allocation107_spill] sm:$0xff] %v11611_v23  ;;  %14106 = vst [vmem:[#allocation155_spill] sm:$0xff] %v11614_v4  ;;  %v4228_v8 = vmul.f32 %v14112_v19, %v11262_v53  ;;  %v4676_v6 = vmul.f32 %v10999_v3, %v11262_v53  ;;  %v11633_v4 = vadd.f32 %v4640_v54, %v14113_v31  ;;  %v14118_v61 = vld [vmem:[#allocation273_spill] sm:$0xff]  ;;  %v14122_v51 = vld [vmem:[#allocation136_spill] sm:$0xff] }
 0x41b   : > { %14110 = vst [vmem:[#allocation138_spill] sm:$0xff] %v11623_v47  ;;  %14111 = vst [vmem:[#allocation157_spill] sm:$0xff] %v11626_v25  ;;  %v11636_v23 = vadd.f32 %v4639_v42, %v14114_v10  ;;  %v11639_v50 = vadd.f32 %v4642_v27, %v14115_v58  ;;  %v4227_v9 = vmul.f32 %v14112_v19, %v14117_v26  ;;  %v14120_v25 = vld [vmem:[#allocation96_spill] sm:$0xff]  ;;  %v11654_v42 = vpop.permute.xlu1 %4194  ;;  %v14124_v31 = vld [vmem:[#allocation106_spill] sm:$0xff] }
 0x41c   : > { %v11644_v17 = vadd.f32 %v4641_v28, %v14118_v61  ;;  %v11647_v47 = vadd.f32 %v4644_v35, %v14120_v25  ;;  %v11650_v53 = vadd.f32 %v4643_v60, %v14122_v51  ;;  %v4675_v54 = vmul.f32 %v10999_v3, %v14117_v26  ;;  %v14126_v10 = vld [vmem:[#allocation144_spill] sm:$0xff]  ;;  %v11666_v25 = vpop.permute.xlu0 %4189  ;;  %v14129_v26 = vld [vmem:[#allocation139_spill] sm:$0xff] }
 0x41d   : > { %14116 = vst [vmem:[#allocation158_spill] sm:$0xff] %v11639_v50  ;;  %v11657_v27 = vadd.f32 %v4646_v45, %v14124_v31  ;;  %v11660_v58 = vadd.f32 %v4645_v29, %v14126_v10  ;;  %v14128_v50 = vld [vmem:[#allocation130_spill] sm:$0xff]  ;;  %v11669_v60 = vadd.f32 %v4228_v8, %v11460_v55  ;;  %v11672_v51 = vadd.f32 %v4676_v6, %v11463_v13  ;;  %v14130_v31 = vld [vmem:[#allocation135_spill] sm:$0xff] }
 0x41e   : > { %14119 = vst [vmem:[#allocation177_spill] sm:$0xff] %v11644_v17  ;;  %14121 = vst [vmem:[#allocation160_spill] sm:$0xff] %v11647_v47  ;;  %v4230_v28 = vmul.f32 %v14112_v19, %v14128_v50  ;;  %v4678_v35 = vmul.f32 %v10999_v3, %v14128_v50  ;;  %v4229_v45 = vmul.f32 %v14112_v19, %v14129_v26  ;;  %v14131_v55 = vld [vmem:[#allocation274_spill] sm:$0xff] }
 0x41f   : > { %14123 = vst [vmem:[#allocation165_spill] sm:$0xff] %v11650_v53  ;;  %14125 = vst [vmem:[#allocation102_spill] sm:$0xff] %v11657_v27  ;;  %v4677_v29 = vmul.f32 %v10999_v3, %v14129_v26  ;;  %v11679_v61 = vadd.f32 %v4227_v9, %v11469_v39  ;;  %v4232_v50 = vmul.f32 %v14112_v19, %v14130_v31  ;;  %v11696_v9 = vpop.permute.xlu1 %4204  ;;  %v14133_v53 = vld [vmem:[#allocation174_spill] sm:$0xff] }
 0x420   : > { %14127 = vst [vmem:[#allocation3_spill] sm:$0xff] %v11660_v58  ;;  %v4680_v10 = vmul.f32 %v10999_v3, %v14130_v31  ;;  %v4231_v8 = vmul.f32 %v14112_v19, %v14131_v55  ;;  %v11688_v13 = vadd.f32 %v4675_v54, %v11472_v2  ;;  %v4679_v6 = vmul.f32 %v10999_v3, %v14131_v55  ;;  %v14132_v58 = vld [vmem:[#allocation62_spill] sm:$0xff]  ;;  %v11708_v55 = vpop.permute.xlu0 %4199 }
 0x421   : > { %v4234_v26 = vmul.f32 %v14112_v19, %v14132_v58  ;;  %v4682_v39 = vmul.f32 %v10999_v3, %v14132_v58  ;;  %v11699_v27 = vadd.f32 %v4230_v28, %v11474_v37  ;;  %v11702_v31 = vadd.f32 %v4678_v35, %v11479_v30  ;;  %v14134_v17 = vld [vmem:[#allocation146_spill] sm:$0xff] }
 0x422   : > { %v4233_v2 = vmul.f32 %v14112_v19, %v14133_v53  ;;  %v4681_v54 = vmul.f32 %v10999_v3, %v14133_v53  ;;  %v11711_v47 = vadd.f32 %v4229_v45, %v11481_v49  ;;  %v11714_v58 = vadd.f32 %v4677_v29, %v11484_v38  ;;  %v14135_v49 = vld [vmem:[#allocation153_spill] sm:$0xff] }
 0x423   : > { %v4236_v37 = vmul.f32 %v14112_v19, %v14134_v17  ;;  %v4684_v30 = vmul.f32 %v10999_v3, %v14134_v17  ;;  %v11721_v28 = vadd.f32 %v4232_v50, %v11490_v21  ;;  %v11724_v35 = vadd.f32 %v4680_v10, %v11493_v57  ;;  %v11742_v57 = vpop.permute.xlu1 %4214  ;;  %v14136_v10 = vld [vmem:[#allocation100_spill] sm:$0xff] }
 0x424   : > { %v11727_v53 = vadd.f32 %v4231_v8, %v11501_v22  ;;  %v4235_v45 = vmul.f32 %v14112_v19, %v14135_v49  ;;  %v11732_v38 = vadd.f32 %v4679_v6, %v11504_v36  ;;  %v11735_v29 = vadd.f32 %v4234_v26, %v11510_v7  ;;  %v11754_v8 = vpop.permute.xlu0 %4209 }
 0x425   : > { %v11738_v17 = vadd.f32 %v4682_v39, %v11519_v16  ;;  %v4683_v21 = vmul.f32 %v10999_v3, %v14135_v49  ;;  %v11745_v22 = vadd.f32 %v4233_v2, %v11529_v34  ;;  %v11748_v50 = vadd.f32 %v4681_v54, %v11532_v32 }
 0x426   : > { %v4238_v36 = vmul.f32 %v14112_v19, %v14136_v10  ;;  %v4686_v7 = vmul.f32 %v10999_v3, %v14136_v10  ;;  %v11757_v16 = vadd.f32 %v4236_v37, %v11540_v43  ;;  %v11760_v6 = vadd.f32 %v4684_v30, %v11543_v33 }
 0x427   : > { %v4237_v34 = vmul.f32 %v14112_v19, %v11458_v62  ;;  %v4685_v32 = vmul.f32 %v10999_v3, %v11458_v62  ;;  %v11767_v26 = vadd.f32 %v4235_v45, %v11549_v15  ;;  %v4240_v39 = vmul.f32 %v14112_v19, %v11488_v24  ;;  %v11784_v37 = vpop.permute.xlu1 %4224 }
 0x428   : > { %v4688_v2 = vmul.f32 %v10999_v3, %v11488_v24  ;;  %v4239_v43 = vmul.f32 %v14112_v19, %v11499_v40  ;;  %v11776_v33 = vadd.f32 %v4683_v21, %v11552_v41  ;;  %v4687_v54 = vmul.f32 %v10999_v3, %v11499_v40  ;;  %14137 = vst [vmem:[#allocation240_spill] sm:$0xff] %v11784_v37  ;;  %v11796_v49 = vpop.permute.xlu0 %4219 }
 0x429   : > { %v4242_v62 = vmul.f32 %v14112_v19, %v11527_v63  ;;  %v4690_v15 = vmul.f32 %v10999_v3, %v11527_v63  ;;  %v11787_v30 = vadd.f32 %v4238_v36, %v11554_v20  ;;  %v11790_v24 = vadd.f32 %v4686_v7, %v11559_v56  ;;  %14138 = vst [vmem:[#allocation180_spill] sm:$0xff] %v11796_v49  ;;  %v14139_v36 = vld [vmem:[#allocation2_spill] sm:$0xff] }
 0x42a   : > { %v4241_v41 = vmul.f32 %v14112_v19, %v11538_v48  ;;  %v4689_v40 = vmul.f32 %v10999_v3, %v11538_v48  ;;  %v11799_v45 = vadd.f32 %v4237_v34, %v11561_v12  ;;  %v11802_v63 = vadd.f32 %v4685_v32, %v11564_v11  ;;  %v14140_v34 = vld [vmem:[#allocation29_spill] sm:$0xff] }
 0x42b   : > { %v4244_v20 = vmul.f32 %v14112_v19, %v11568_v52  ;;  %v4692_v56 = vmul.f32 %v10999_v3, %v11568_v52  ;;  %v11809_v21 = vadd.f32 %v4240_v39, %v11570_v5  ;;  %v11812_v10 = vadd.f32 %v4688_v2, %v11573_v0  ;;  %v4739_v0 = vpop.permute.xlu1 %4738 }
 0x42c   : > { %v11815_v48 = vadd.f32 %v4239_v43, %v11581_v44  ;;  %v4243_v12 = vmul.f32 %v14112_v19, %v11579_v14  ;;  %v11820_v11 = vadd.f32 %v4687_v54, %v11584_v18  ;;  %v11823_v7 = vadd.f32 %v4242_v62, %v14139_v36  ;;  %v4734_v2 = vpop.permute.xlu0 %4733  ;;  %v14141_v43 = vld [vmem:[#allocation191_spill] sm:$0xff] }
 0x42d   : > { %v11826_v52 = vadd.f32 %v4690_v15, %v11591_v1  ;;  %v4691_v5 = vmul.f32 %v10999_v3, %v11579_v14  ;;  %v11831_v32 = vadd.f32 %v4241_v41, %v14140_v34  ;;  %v11834_v44 = vadd.f32 %v4689_v40, %v11600_v59  ;;  %v14143_v1 = vld [vmem:[#allocation107_spill] sm:$0xff]  ;;  %v14144_v41 = vld [vmem:[#allocation229_spill] sm:$0xff]  ;;  %v14146_v40 = vld [vmem:[#allocation156_spill] sm:$0xff] }
 0x42e   : > { %v4246_v18 = vmul.f32 %v14112_v19, %v11608_v46  ;;  %v4872_v39 = vmul.f32 %v14112_v19, %v4739_v0  ;;  %v11840_v54 = vadd.f32 %v4244_v20, %v14141_v43  ;;  %v11843_v62 = vadd.f32 %v4692_v56, %v14143_v1  ;;  %v14147_v34 = vld [vmem:[#allocation155_spill] sm:$0xff]  ;;  %v14148_v1 = vld [vmem:[#allocation121_spill] sm:$0xff] }
 0x42f   : > { %v4694_v14 = vmul.f32 %v10999_v3, %v11608_v46  ;;  %v4871_v15 = vmul.f32 %v14112_v19, %v4734_v2  ;;  %v11849_v59 = vadd.f32 %v4243_v12, %v14144_v41  ;;  %v4245_v36 = vmul.f32 %v14112_v19, %v14146_v40  ;;  %v4749_v2 = vpop.permute.xlu1 %4748 }
 0x430   : > { %14142 = vst [vmem:[#allocation284_spill] sm:$0xff] %v11840_v54  ;;  %v4693_v0 = vmul.f32 %v10999_v3, %v14146_v40  ;;  %v4900_v20 = vadd.f32 %v4872_v39, %v11672_v51  ;;  %v11857_v43 = vadd.f32 %v4691_v5, %v14147_v34  ;;  %v4248_v56 = vmul.f32 %v14112_v19, %v11654_v42  ;;  %v4744_v39 = vpop.permute.xlu0 %4743  ;;  %v14150_v34 = vld [vmem:[#allocation138_spill] sm:$0xff] }
 0x431   : > { %14145 = vst [vmem:[#allocation39_spill] sm:$0xff] %v11849_v59  ;;  %v4696_v46 = vmul.f32 %v10999_v3, %v11654_v42  ;;  %v4899_v12 = vadd.f32 %v4871_v15, %v11688_v13  ;;  %v11865_v41 = vadd.f32 %v4246_v18, %v14148_v1  ;;  %v4247_v40 = vmul.f32 %v14112_v19, %v11666_v25  ;;  %v11879_v13 = vld [vmem:[%s12212_s2] ss:$0 sm:$0xff] }
 0x432   : > { %v4956_v51 = vmax.f32 %v11669_v60, %v4900_v20  ;;  %v4874_v5 = vmul.f32 %v14112_v19, %v4749_v2  ;;  %v11872_v49 = vadd.f32 %v4694_v14, %v14150_v34  ;;  %v4695_v42 = vmul.f32 %v10999_v3, %v11666_v25  ;;  %v14152_v60 = vld [vmem:[#allocation32_spill] sm:$0xff]  ;;  %v14154_v2 = vld [vmem:[#allocation157_spill] sm:$0xff]  ;;  %v14155_v14 = vld [vmem:[#allocation38_spill] sm:$0xff] }
 0x433   : > { %14149 = vst [vmem:[#allocation234_spill] sm:$0xff] %v11865_v41  ;;  %v4955_v18 = vmax.f32 %v11679_v61, %v4899_v12  ;;  %v4873_v15 = vmul.f32 %v14112_v19, %v4744_v39  ;;  %v11884_v20 = vadd.f32 %v4245_v36, %v14152_v60  ;;  %v11887_v1 = vadd.f32 %v4693_v0, %v14154_v2  ;;  %v14156_v34 = vld [vmem:[#allocation197_spill] sm:$0xff]  ;;  %v14159_v61 = vld [vmem:[#allocation275_spill] sm:$0xff]  ;;  %v4759_v60 = vpop.permute.xlu1 %4758  ;;  %v14162_v2 = vld [vmem:[#allocation44_spill] sm:$0xff] }
 0x434   : > { %14151 = vst [vmem:[#allocation288_spill] sm:$0xff] %v11872_v49  ;;  %v14157_v37 = vmax.f32 %v14155_v14, %v14156_v34  ;;  %v4902_v25 = vadd.f32 %v4874_v5, %v11702_v31  ;;  %v14158_v49 = vld [vmem:[#allocation202_spill] sm:$0xff]  ;;  %v11897_v54 = vadd.f32 %v4696_v46, %v11633_v4  ;;  %v14160_v12 = vld [vmem:[#allocation117_spill] sm:$0xff]  ;;  %v11911_v4 = vadd.f32 %v4695_v42, %v11636_v23  ;;  %v14167_v34 = vld [vmem:[#allocation184_spill] sm:$0xff] }
 0x435   : > { %14153 = vst [vmem:[#allocation243_spill] sm:$0xff] %v11884_v20  ;;  %v11894_v59 = vadd.f32 %v4248_v56, %v14158_v49  ;;  %v14161_v36 = vmax.f32 %v14159_v61, %v14160_v12  ;;  %v4901_v0 = vadd.f32 %v4873_v15, %v11714_v58  ;;  %v11905_v20 = vadd.f32 %v4247_v40, %v14162_v2  ;;  %v4754_v56 = vpop.permute.xlu0 %4753  ;;  %v14166_v42 = vld [vmem:[#allocation45_spill] sm:$0xff] }
 0x436   : > { %v4984_v41 = vmax.f32 %v14157_v37, %v4956_v51  ;;  %v4958_v31 = vmax.f32 %v11699_v27, %v4902_v25  ;;  %v4876_v49 = vmul.f32 %v14112_v19, %v4759_v60  ;;  %v4875_v58 = vmul.f32 %v14112_v19, %v4754_v56  ;;  %v14169_v56 = vld [vmem:[#allocation47_spill] sm:$0xff] }
 0x437   : > { %v4983_v39 = vmax.f32 %v14161_v36, %v4955_v18  ;;  %v4957_v51 = vmax.f32 %v11711_v47, %v4901_v0  ;;  %v4250_v40 = vmul.f32 %v14112_v19, %v11696_v9  ;;  %v14163_v18 = vld [vmem:[#allocation43_spill] sm:$0xff]  ;;  %v4698_v23 = vmul.f32 %v10999_v3, %v11696_v9  ;;  %v4769_v12 = vpop.permute.xlu1 %4768 }
 0x438   : > { %v5019_v37 = vadd.f32 %v11879_v13, %v4984_v41  ;;  %v14164_v41 = vld [vmem:[#allocation118_spill] sm:$0xff]  ;;  %v4904_v14 = vadd.f32 %v4876_v49, %v11724_v35  ;;  %v14168_v19 = vmax.f32 %v14166_v42, %v14167_v34  ;;  %v4903_v61 = vadd.f32 %v4875_v58, %v11732_v38 }
 0x439   : > { %v5018_v46 = vadd.f32 %v11879_v13, %v4983_v39  ;;  %v14165_v15 = vmax.f32 %v14163_v18, %v14164_v41  ;;  %v11938_v39 = vld [vmem:[%s12211_s1 + $0x8] ss:$0 sm:$0xff]  ;;  %v4764_v60 = vpop.permute.xlu0 %4763  ;;  %v4697_v18 = vmul.f32 %v10999_v3, %v11708_v55  ;;  %v14172_v41 = vld [vmem:[#allocation50_spill] sm:$0xff] }
 0x43a   : > { %v5047_v5 = vmax.f32 %v5019_v37, 0.0  ;;  %v4985_v25 = vmax.f32 %v14168_v19, %v4957_v51  ;;  %v4960_v9 = vmax.f32 %v11721_v28, %v4904_v14  ;;  %v4878_v0 = vmul.f32 %v11938_v39, %v4769_v12 }
 0x43b   : > { %v4986_v27 = vmax.f32 %v14165_v15, %v4958_v31  ;;  %v5046_v47 = vmax.f32 %v5018_v46, 0.0  ;;  %v4959_v38 = vmax.f32 %v11727_v53, %v4903_v61  ;;  %v4877_v31 = vmul.f32 %v11938_v39, %v4764_v60  ;;  %v14170_v46 = vld [vmem:[#allocation198_spill] sm:$0xff]  ;;  %v14173_v15 = vld [vmem:[#allocation212_spill] sm:$0xff]  ;;  %v4779_v42 = vpop.permute.xlu1 %4778 }
 0x43c   : > { %v5711_v36 = vpack.c.bf16 %v5047_v5, %v5047_v5  ;;  %v5020_v37 = vadd.f32 %v11879_v13, %v4985_v25  ;;  %v4249_v49 = vmul.f32 %v11938_v39, %v11708_v55  ;;  %v14171_v51 = vmax.f32 %v14169_v56, %v14170_v46  ;;  %v14177_v60 = vld [vmem:[#allocation228_spill] sm:$0xff] }
 0x43d   : > { %v5021_v35 = vadd.f32 %v11879_v13, %v4986_v27  ;;  %v5710_v2 = vpack.c.bf16 %v5046_v47, %v5046_v47  ;;  %v4906_v5 = vadd.f32 %v4878_v0, %v11738_v17  ;;  %v14174_v27 = vmax.f32 %v14172_v41, %v14173_v15  ;;  %v4774_v3 = vpop.permute.xlu0 %4773  ;;  %v14176_v0 = vld [vmem:[#allocation58_spill] sm:$0xff]  ;;  %v14181_v56 = vld [vmem:[#allocation28_spill] sm:$0xff] }
 0x43e   : > { %5189 = vst.msk [vmem:[%s11927_s10 + $0x4] sm:$0x7] %vm5188_vm0, %v5711_v36  ;;  %v4988_v58 = vmax.f32 %v14171_v51, %v4960_v9  ;;  %v5048_v53 = vmax.f32 %v5020_v37, 0.0  ;;  %v4905_v47 = vadd.f32 %v4877_v31, %v11748_v50  ;;  %v4880_v25 = vmul.f32 %v11938_v39, %v4779_v42  ;;  %v14183_v42 = vld [vmem:[#allocation208_spill] sm:$0xff] }
 0x43f   : > { %v5049_v28 = vmax.f32 %v5021_v35, 0.0  ;;  %5187 = vst.msk [vmem:[%s11927_s10] sm:$0xf] %vm5186_vm1, %v5710_v2  ;;  %v4987_v14 = vmax.f32 %v14174_v27, %v4959_v38  ;;  %v4962_v17 = vmax.f32 %v11735_v29, %v4906_v5  ;;  %v4879_v36 = vmul.f32 %v11938_v39, %v4774_v3  ;;  %v14175_v35 = vld [vmem:[#allocation207_spill] sm:$0xff]  ;;  %v14179_v38 = vld [vmem:[#allocation158_spill] sm:$0xff] }
 0x440   : > { %v5023_v19 = vadd.f32 %v11879_v13, %v4988_v58  ;;  %v5712_v55 = vpack.c.bf16 %v5048_v53, %v5048_v53  ;;  %v4961_v12 = vmax.f32 %v11745_v22, %v4905_v47  ;;  %v11967_v9 = vadd.f32 %v4250_v40, %v14175_v35  ;;  %v4789_v58 = vpop.permute.xlu1 %4788 }
 0x441   : > { %v5713_v34 = vpack.c.bf16 %v5049_v28, %v5049_v28  ;;  %v5022_v61 = vadd.f32 %v11879_v13, %v4987_v14  ;;  %v14178_v2 = vmax.f32 %v14176_v0, %v14177_v60  ;;  %v4908_v37 = vadd.f32 %v4880_v25, %v11760_v6  ;;  %v14180_v28 = vld [vmem:[#allocation286_spill] sm:$0xff]  ;;  %v4784_v41 = vpop.permute.xlu0 %4783 }
 0x442   : > { %v5051_v50 = vmax.f32 %v5023_v19, 0.0  ;;  %v11976_v31 = vadd.f32 %v4698_v23, %v14179_v38  ;;  %5190 = vst.msk [vmem:[%s11927_s10 + $0x8] sm:$0xf] %vm5186_vm1, %v5712_v55  ;;  %v14182_v40 = vmax.f32 %v14180_v28, %v14181_v56  ;;  %v4907_v51 = vadd.f32 %v4879_v36, %v11776_v33  ;;  %v14184_v19 = vld [vmem:[#allocation67_spill] sm:$0xff]  ;;  %v14187_v55 = vld [vmem:[#allocation177_spill] sm:$0xff] }
 0x443   : > { %5191 = vst.msk [vmem:[%s11927_s10 + $0xc] sm:$0x7] %vm5188_vm0, %v5713_v34  ;;  %v4990_v29 = vmax.f32 %v14178_v2, %v4962_v17  ;;  %v5050_v22 = vmax.f32 %v5022_v61, 0.0  ;;  %v4964_v6 = vmax.f32 %v11757_v16, %v4908_v37  ;;  %v4882_v23 = vmul.f32 %v11938_v39, %v4789_v58  ;;  %v14185_v17 = vld [vmem:[#allocation51_spill] sm:$0xff]  ;;  %v14189_v36 = vld [vmem:[#allocation145_spill] sm:$0xff] }
 0x444   : > { %v4989_v46 = vmax.f32 %v14182_v40, %v4961_v12  ;;  %v5715_v5 = vpack.c.bf16 %v5051_v50, %v5051_v50  ;;  %v4963_v14 = vmax.f32 %v11767_v26, %v4907_v51  ;;  %v4881_v47 = vmul.f32 %v11938_v39, %v4784_v41  ;;  %v14188_v12 = vld [vmem:[#allocation6_spill] sm:$0xff]  ;;  %v4799_v0 = vpop.permute.xlu1 %4798  ;;  %v14191_v40 = vld [vmem:[#allocation69_spill] sm:$0xff] }
 0x445   : > { %v5025_v53 = vadd.f32 %v11879_v13, %v4990_v29  ;;  %v5714_v15 = vpack.c.bf16 %v5050_v22, %v5050_v22  ;;  %v11991_v34 = vadd.f32 %v4249_v49, %v14183_v42  ;;  %v14186_v25 = vmax.f32 %v14184_v19, %v14185_v17  ;;  %v4794_v29 = vpop.permute.xlu0 %4793 }
 0x446   : > { %v5024_v27 = vadd.f32 %v11879_v13, %v4989_v46  ;;  %5193 = vst.msk [vmem:[%s11927_s10 + $0x14] sm:$0x7] %vm5188_vm0, %v5715_v5  ;;  %v4910_v3 = vadd.f32 %v4882_v23, %v11790_v24  ;;  %v12000_v61 = vadd.f32 %v4697_v18, %v14187_v55  ;;  %v14190_v49 = vmax.f32 %v14188_v12, %v14189_v36  ;;  %v14192_v46 = vld [vmem:[#allocation31_spill] sm:$0xff]  ;;  %v12025_v5 = vld [vmem:[%s12211_s1 + $0x7] ss:$0 sm:$0xff] }
 0x447   : > { %v5053_v33 = vmax.f32 %v5025_v53, 0.0  ;;  %v4992_v16 = vmax.f32 %v14186_v25, %v4964_v6  ;;  %5192 = vst.msk [vmem:[%s11927_s10 + $0x10] sm:$0xf] %vm5186_vm1, %v5714_v15  ;;  %v4909_v50 = vadd.f32 %v4881_v47, %v11802_v63  ;;  %v4884_v18 = vmul.f32 %v11938_v39, %v4799_v0  ;;  %v14194_v6 = vld [vmem:[#allocation70_spill] sm:$0xff]  ;;  %v14197_v55 = vld [vmem:[#allocation71_spill] sm:$0xff] }
 0x448   : > { %v5052_v26 = vmax.f32 %v5024_v27, 0.0  ;;  %v4991_v35 = vmax.f32 %v14190_v49, %v4963_v14  ;;  %v4966_v24 = vmax.f32 %v11787_v30, %v4910_v3  ;;  %v4883_v28 = vmul.f32 %v11938_v39, %v4794_v29  ;;  %v14195_v23 = vld [vmem:[#allocation110_spill] sm:$0xff]  ;;  %v4809_v14 = vpop.permute.xlu1 %4808 }
 0x449   : > { %v5717_v60 = vpack.c.bf16 %v5053_v33, %v5053_v33  ;;  %v5027_v2 = vadd.f32 %v11879_v13, %v4992_v16  ;;  %v4965_v22 = vmax.f32 %v11799_v45, %v4909_v50  ;;  %v4252_v63 = vmul.f32 %v11938_v39, %v11742_v57  ;;  %v14201_v50 = vld [vmem:[#allocation92_spill] sm:$0xff] }
 0x44a   : > { %v5716_v37 = vpack.c.bf16 %v5052_v26, %v5052_v26  ;;  %v5026_v38 = vadd.f32 %v11879_v13, %v4991_v35  ;;  %v14193_v51 = vmax.f32 %v14191_v40, %v14192_v46  ;;  %v4912_v58 = vadd.f32 %v4884_v18, %v11812_v10  ;;  %v14198_v26 = vld [vmem:[#allocation203_spill] sm:$0xff]  ;;  %v14200_v35 = vld [vmem:[#allocation181_spill] sm:$0xff]  ;;  %v14203_v40 = vld [vmem:[#allocation230_spill] sm:$0xff] }
 0x44b   : > { %5195 = vst.msk [vmem:[%s11927_s10 + $0x1c] sm:$0x7] %vm5188_vm0, %v5717_v60  ;;  %v5055_v56 = vmax.f32 %v5027_v2, 0.0  ;;  %v4700_v45 = vmul.f32 %v12025_v5, %v11742_v57  ;;  %v14196_v41 = vmax.f32 %v14194_v6, %v14195_v23  ;;  %v4911_v27 = vadd.f32 %v4883_v28, %v11820_v11  ;;  %v4804_v57 = vpop.permute.xlu0 %4803  ;;  %v14207_v6 = vld [vmem:[#allocation160_spill] sm:$0xff] }
 0x44c   : > { %v4994_v30 = vmax.f32 %v14193_v51, %v4966_v24  ;;  %5194 = vst.msk [vmem:[%s11927_s10 + $0x18] sm:$0xf] %vm5186_vm1, %v5716_v37  ;;  %v5054_v53 = vmax.f32 %v5026_v38, 0.0  ;;  %v4968_v42 = vmax.f32 %v11809_v21, %v4912_v58  ;;  %v4886_v33 = vmul.f32 %v11938_v39, %v4809_v14  ;;  %v4819_v24 = vpop.permute.xlu1 %4818  ;;  %v14204_v51 = vld [vmem:[#allocation75_spill] sm:$0xff] }
 0x44d   : > { %v4993_v15 = vmax.f32 %v14196_v41, %v4965_v22  ;;  %v5719_v10 = vpack.c.bf16 %v5055_v56, %v5055_v56  ;;  %v4967_v25 = vmax.f32 %v11815_v48, %v4911_v27  ;;  %v4885_v16 = vmul.f32 %v11938_v39, %v4804_v57  ;;  %v14208_v41 = vld [vmem:[#allocation169_spill] sm:$0xff] }
 0x44e   : > { %v5029_v47 = vadd.f32 %v11879_v13, %v4994_v30  ;;  %v5718_v19 = vpack.c.bf16 %v5054_v53, %v5054_v53  ;;  %v4251_v11 = vmul.f32 %v11938_v39, %v11754_v8  ;;  %v14199_v12 = vmax.f32 %v14197_v55, %v14198_v26  ;;  %v14205_v30 = vld [vmem:[#allocation90_spill] sm:$0xff]  ;;  %v14213_v55 = vld [vmem:[#allocation233_spill] sm:$0xff] }
 0x44f   : > { %v5028_v17 = vadd.f32 %v11879_v13, %v4993_v15  ;;  %5197 = vst.msk [vmem:[%s11927_s10 + $0x24] sm:$0x7] %vm5188_vm0, %v5719_v10  ;;  %v4914_v36 = vadd.f32 %v4886_v33, %v11826_v52  ;;  %v4699_v49 = vmul.f32 %v12025_v5, %v11754_v8  ;;  %v14202_v0 = vmax.f32 %v14200_v35, %v14201_v50  ;;  %v4814_v8 = vpop.permute.xlu0 %4813  ;;  %v14209_v15 = vld [vmem:[#allocation52_spill] sm:$0xff] }
 0x450   : > { %v5057_v3 = vmax.f32 %v5029_v47, 0.0  ;;  %v4996_v21 = vmax.f32 %v14199_v12, %v4968_v42  ;;  %5196 = vst.msk [vmem:[%s11927_s10 + $0x20] sm:$0xf] %vm5186_vm1, %v5718_v19  ;;  %v4913_v2 = vadd.f32 %v4885_v16, %v11834_v44  ;;  %v4888_v37 = vmul.f32 %v11938_v39, %v4819_v24  ;;  %v4829_v10 = vpop.permute.xlu1 %4828  ;;  %v14211_v33 = vld [vmem:[#allocation284_spill] sm:$0xff]  ;;  %v14214_v12 = vld [vmem:[#allocation34_spill] sm:$0xff] }
 0x451   : > { %v5056_v48 = vmax.f32 %v5028_v17, 0.0  ;;  %v4995_v60 = vmax.f32 %v14202_v0, %v4967_v25  ;;  %v4970_v52 = vmax.f32 %v11823_v7, %v4914_v36  ;;  %v4887_v56 = vmul.f32 %v11938_v39, %v4814_v8  ;;  %v14212_v25 = vld [vmem:[#allocation39_spill] sm:$0xff]  ;;  %v14217_v35 = vld [vmem:[#allocation288_spill] sm:$0xff]  ;;  %v14218_v0 = vld [vmem:[#allocation165_spill] sm:$0xff] }
 0x452   : > { %v5721_v18 = vpack.c.bf16 %v5057_v3, %v5057_v3  ;;  %v5031_v29 = vadd.f32 %v11879_v13, %v4996_v21  ;;  %v4969_v28 = vmax.f32 %v11831_v32, %v4913_v2  ;;  %v12064_v46 = vadd.f32 %v4252_v63, %v14203_v40  ;;  %v14215_v21 = vld [vmem:[#allocation108_spill] sm:$0xff]  ;;  %v14219_v24 = vld [vmem:[#allocation22_spill] sm:$0xff] }
 0x453   : > { %v5720_v38 = vpack.c.bf16 %v5056_v48, %v5056_v48  ;;  %v5030_v22 = vadd.f32 %v11879_v13, %v4995_v60  ;;  %v14206_v58 = vmax.f32 %v14204_v51, %v14205_v30  ;;  %v4916_v53 = vadd.f32 %v4888_v37, %v11843_v62  ;;  %v4824_v57 = vpop.permute.xlu0 %4823  ;;  %v14223_v51 = vld [vmem:[#allocation243_spill] sm:$0xff] }
 0x454   : > { %5199 = vst.msk [vmem:[%s11927_s10 + $0x2c] sm:$0x7] %vm5188_vm0, %v5721_v18  ;;  %v5059_v44 = vmax.f32 %v5031_v29, 0.0  ;;  %v12073_v23 = vadd.f32 %v4700_v45, %v14207_v6  ;;  %v14210_v63 = vmax.f32 %v14208_v41, %v14209_v15  ;;  %v4915_v14 = vadd.f32 %v4887_v56, %v11857_v43  ;;  %v14220_v18 = vld [vmem:[#allocation56_spill] sm:$0xff]  ;;  %v4839_v37 = vpop.permute.xlu1 %4838  ;;  %v14225_v6 = vld [vmem:[#allocation37_spill] sm:$0xff] }
 0x455   : > { %v4998_v7 = vmax.f32 %v14206_v58, %v4970_v52  ;;  %5198 = vst.msk [vmem:[%s11927_s10 + $0x28] sm:$0xf] %vm5186_vm1, %v5720_v38  ;;  %v5058_v32 = vmax.f32 %v5030_v22, 0.0  ;;  %v4972_v62 = vmax.f32 %v14211_v33, %v4916_v53  ;;  %v4890_v45 = vmul.f32 %v11938_v39, %v4829_v10  ;;  %v14222_v22 = vld [vmem:[#allocation234_spill] sm:$0xff]  ;;  %v14228_v10 = vld [vmem:[#allocation315_spill] sm:$0xff] }
 0x456   : > { %v4997_v27 = vmax.f32 %v14210_v63, %v4969_v28  ;;  %v5723_v47 = vpack.c.bf16 %v5059_v44, %v5059_v44  ;;  %v4971_v16 = vmax.f32 %v14212_v25, %v4915_v14  ;;  %v4889_v3 = vmul.f32 %v11938_v39, %v4824_v57 }
 0x457   : > { %v5033_v42 = vadd.f32 %v11879_v13, %v4998_v7  ;;  %v5722_v19 = vpack.c.bf16 %v5058_v32, %v5058_v32  ;;  %v12088_v26 = vadd.f32 %v4251_v11, %v14213_v55  ;;  %v14216_v36 = vmax.f32 %v14214_v12, %v14215_v21  ;;  %v4834_v56 = vpop.permute.xlu0 %4833  ;;  %v14224_v7 = vld [vmem:[#allocation240_spill] sm:$0xff]  ;;  %v14226_v32 = vld [vmem:[#allocation137_spill] sm:$0xff] }
 0x458   : > { %v5032_v17 = vadd.f32 %v11879_v13, %v4997_v27  ;;  %5201 = vst.msk [vmem:[%s11927_s10 + $0x34] sm:$0x7] %vm5188_vm0, %v5723_v47  ;;  %v4918_v50 = vadd.f32 %v4890_v45, %v14217_v35  ;;  %v12097_v60 = vadd.f32 %v4699_v49, %v14218_v0  ;;  %v14221_v11 = vmax.f32 %v14219_v24, %v14220_v18  ;;  %v14229_v47 = vld [vmem:[#allocation61_spill] sm:$0xff]  ;;  %v4849_v45 = vpop.permute.xlu1 %4848  ;;  %v14231_v12 = vld [vmem:[#allocation180_spill] sm:$0xff]  ;;  %v14236_v24 = vld [vmem:[#allocation206_spill] sm:$0xff] }
 0x459   : > { %v5061_v43 = vmax.f32 %v5033_v42, 0.0  ;;  %v5000_v48 = vmax.f32 %v14216_v36, %v4972_v62  ;;  %5200 = vst.msk [vmem:[%s11927_s10 + $0x30] sm:$0xf] %vm5186_vm1, %v5722_v19  ;;  %v4917_v52 = vadd.f32 %v4889_v3, %v11887_v1  ;;  %v4892_v49 = vmul.f32 %v11938_v39, %v4839_v37  ;;  %v14232_v36 = vld [vmem:[#allocation322_spill] sm:$0xff] }
 0x45a   : > { %v5060_v2 = vmax.f32 %v5032_v17, 0.0  ;;  %v4999_v29 = vmax.f32 %v14221_v11, %v4971_v16  ;;  %v4974_v28 = vmax.f32 %v14222_v22, %v4918_v50  ;;  %v4891_v58 = vmul.f32 %v11938_v39, %v4834_v56 }
 0x45b   : > { %v5725_v8 = vpack.c.bf16 %v5061_v43, %v5061_v43  ;;  %v5035_v38 = vadd.f32 %v11879_v13, %v5000_v48  ;;  %v4973_v30 = vmax.f32 %v14223_v51, %v4917_v52  ;;  %v4254_v1 = vmul.f32 %v11938_v39, %v14224_v7  ;;  %v4844_v25 = vpop.permute.xlu0 %4843  ;;  %v14233_v48 = vld [vmem:[#allocation205_spill] sm:$0xff]  ;;  %v14239_v51 = vld [vmem:[#allocation204_spill] sm:$0xff] }
 0x45c   : > { %v5724_v40 = vpack.c.bf16 %v5060_v2, %v5060_v2  ;;  %v5034_v44 = vadd.f32 %v11879_v13, %v4999_v29  ;;  %v14227_v41 = vmax.f32 %v14225_v6, %v14226_v32  ;;  %v4920_v63 = vadd.f32 %v4892_v49, %v11897_v54  ;;  %v14235_v2 = vld [vmem:[#allocation83_spill] sm:$0xff]  ;;  %v4859_v52 = vpop.permute.xlu1 %4858 }
 0x45d   : > { %5203 = vst.msk [vmem:[%s11927_s10 + $0x3c] sm:$0x7] %vm5188_vm0, %v5725_v8  ;;  %v5063_v53 = vmax.f32 %v5035_v38, 0.0  ;;  %v4702_v27 = vmul.f32 %v12025_v5, %v14224_v7  ;;  %v14230_v42 = vmax.f32 %v14228_v10, %v14229_v47  ;;  %v4919_v62 = vadd.f32 %v4891_v58, %v11911_v4 }
 0x45e   : > { %v5002_v15 = vmax.f32 %v14227_v41, %v4974_v28  ;;  %5202 = vst.msk [vmem:[%s11927_s10 + $0x38] sm:$0xf] %vm5186_vm1, %v5724_v40  ;;  %v5062_v14 = vmax.f32 %v5034_v44, 0.0  ;;  %v4976_v54 = vmax.f32 %v11894_v59, %v4920_v63  ;;  %v4894_v17 = vmul.f32 %v11938_v39, %v4849_v45  ;;  %v14238_v40 = vld [vmem:[#allocation102_spill] sm:$0xff]  ;;  %v14244_v41 = vld [vmem:[#allocation33_spill] sm:$0xff] }
 0x45f   : > { %v5001_v33 = vmax.f32 %v14230_v42, %v4973_v30  ;;  %v5727_v57 = vpack.c.bf16 %v5063_v53, %v5063_v53  ;;  %v4975_v55 = vmax.f32 %v11905_v20, %v4919_v62  ;;  %v4893_v43 = vmul.f32 %v11938_v39, %v4844_v25  ;;  %v14240_v30 = vld [vmem:[#allocation73_spill] sm:$0xff]  ;;  %v14242_v53 = vld [vmem:[#allocation3_spill] sm:$0xff] }
 0x460   : > { %v5037_v19 = vadd.f32 %v11879_v13, %v5002_v15  ;;  %v5726_v16 = vpack.c.bf16 %v5062_v14, %v5062_v14  ;;  %v4253_v4 = vmul.f32 %v11938_v39, %v14231_v12  ;;  %v14234_v35 = vmax.f32 %v14232_v36, %v14233_v48  ;;  %v4869_v14 = vpop.permute.xlu1 %4868  ;;  %v14247_v25 = vld [vmem:[#allocation333_spill] sm:$0xff]  ;;  %v14252_v36 = vld [vmem:[#allocation143_spill] sm:$0xff] }
 0x461   : > { %v5036_v3 = vadd.f32 %v11879_v13, %v5001_v33  ;;  %5205 = vst.msk [vmem:[%s11927_s10 + $0x44] sm:$0x7] %vm5188_vm0, %v5727_v57  ;;  %v4922_v50 = vadd.f32 %v4894_v17, %v11976_v31  ;;  %v4701_v0 = vmul.f32 %v12025_v5, %v14231_v12  ;;  %v14237_v18 = vmax.f32 %v14235_v2, %v14236_v24  ;;  %v4854_v5 = vpop.permute.xlu0 %4853  ;;  %v14256_v24 = vld [vmem:[#allocation112_spill] sm:$0xff] }
 0x462   : > { %v5065_v21 = vmax.f32 %v5037_v19, 0.0  ;;  %v5004_v59 = vmax.f32 %v14234_v35, %v4976_v54  ;;  %5204 = vst.msk [vmem:[%s11927_s10 + $0x40] sm:$0xf] %vm5186_vm1, %v5726_v16  ;;  %v4921_v29 = vadd.f32 %v4893_v43, %v12000_v61  ;;  %v4896_v38 = vmul.f32 %v11938_v39, %v4859_v52  ;;  %v14246_v54 = vld [vmem:[#allocation79_spill] sm:$0xff]  ;;  %v14248_v16 = vld [vmem:[#allocation142_spill] sm:$0xff]  ;;  %v14254_v35 = vld [vmem:[#allocation68_spill] sm:$0xff] }
 0x463   : > { %v5064_v20 = vmax.f32 %v5036_v3, 0.0  ;;  %v5003_v11 = vmax.f32 %v14237_v18, %v4975_v55  ;;  %v4978_v31 = vmax.f32 %v11967_v9, %v4922_v50  ;;  %v4895_v56 = vmul.f32 %v11938_v39, %v4854_v5  ;;  %v14250_v43 = vld [vmem:[#allocation238_spill] sm:$0xff]  ;;  %v14257_v18 = vld [vmem:[#allocation53_spill] sm:$0xff] }
 0x464   : > { %v5729_v37 = vpack.c.bf16 %v5065_v21, %v5065_v21  ;;  %v5039_v8 = vadd.f32 %v11879_v13, %v5004_v59  ;;  %v4977_v49 = vmax.f32 %v11991_v34, %v4921_v29  ;;  %v4730_v44 = vadd.f32 %v4702_v27, %v14238_v40  ;;  %v14243_v34 = vld [vmem:[#allocation93_spill] sm:$0xff]  ;;  %v14255_v59 = vld [vmem:[#allocation95_spill] sm:$0xff] }
 0x465   : > { %v5728_v22 = vpack.c.bf16 %v5064_v20, %v5064_v20  ;;  %v5038_v28 = vadd.f32 %v11879_v13, %v5003_v11  ;;  %v14241_v58 = vmax.f32 %v14239_v51, %v14240_v30  ;;  %v4924_v9 = vadd.f32 %v4896_v38, %v12073_v23  ;;  %v4864_v33 = vpop.permute.xlu0 %4863 }
 0x466   : > { %5207 = vst.msk [vmem:[%s11927_s10 + $0x4c] sm:$0x7] %vm5188_vm0, %v5729_v37  ;;  %v5067_v61 = vmax.f32 %v5039_v8, 0.0  ;;  %v4729_v6 = vadd.f32 %v4701_v0, %v14242_v53  ;;  %v14245_v15 = vmax.f32 %v14243_v34, %v14244_v41  ;;  %v4923_v27 = vadd.f32 %v4895_v56, %v12097_v60 }
 0x467   : > { %v5006_v7 = vmax.f32 %v14241_v58, %v4978_v31  ;;  %5206 = vst.msk [vmem:[%s11927_s10 + $0x48] sm:$0xf] %vm5186_vm1, %v5728_v22  ;;  %v5066_v32 = vmax.f32 %v5038_v28, 0.0  ;;  %v4980_v42 = vmax.f32 %v12064_v46, %v4924_v9  ;;  %v4898_v23 = vmul.f32 %v11938_v39, %v4869_v14 }
 0x468   : > { %v5005_v63 = vmax.f32 %v14245_v15, %v4977_v49  ;;  %v5731_v10 = vpack.c.bf16 %v5067_v61, %v5067_v61  ;;  %v4979_v57 = vmax.f32 %v12088_v26, %v4923_v27  ;;  %v4897_v19 = vmul.f32 %v11938_v39, %v4864_v33  ;;  %v14251_v26 = vld [vmem:[#allocation334_spill] sm:$0xff] }
 0x469   : > { %v5041_v47 = vadd.f32 %v11879_v13, %v5006_v7  ;;  %v5730_v62 = vpack.c.bf16 %v5066_v32, %v5066_v32  ;;  %v4282_v17 = vadd.f32 %v4254_v1, %v14246_v54  ;;  %v14249_v3 = vmax.f32 %v14247_v25, %v14248_v16 }
 0x46a   : > { %v5040_v45 = vadd.f32 %v11879_v13, %v5005_v63  ;;  %5209 = vst.msk [vmem:[%s11927_s10 + $0x54] sm:$0x7] %vm5188_vm0, %v5731_v10  ;;  %v4926_v55 = vadd.f32 %v4898_v23, %v4730_v44  ;;  %v4281_v12 = vadd.f32 %v4253_v4, %v14250_v43  ;;  %v14253_v39 = vmax.f32 %v14251_v26, %v14252_v36 }
 0x46b   : > { %v5069_v60 = vmax.f32 %v5041_v47, 0.0  ;;  %v5008_v46 = vmax.f32 %v14249_v3, %v4980_v42  ;;  %5208 = vst.msk [vmem:[%s11927_s10 + $0x50] sm:$0xf] %vm5186_vm1, %v5730_v62  ;;  %v4925_v1 = vadd.f32 %v4897_v19, %v4729_v6  ;;  %v4954_v50 = vmax.f32 %v14255_v59, %v14254_v35 }
 0x46c   : > { %v5068_v21 = vmax.f32 %v5040_v45, 0.0  ;;  %v5007_v48 = vmax.f32 %v14253_v39, %v4979_v57  ;;  %v4982_v2 = vmax.f32 %v4282_v17, %v4926_v55  ;;  %v4953_v4 = vmax.f32 %v14257_v18, %v14256_v24 }
 0x46d   : > { %v5733_v0 = vpack.c.bf16 %v5069_v60, %v5069_v60  ;;  %v5043_v20 = vadd.f32 %v11879_v13, %v5008_v46  ;;  %v4981_v52 = vmax.f32 %v4281_v12, %v4925_v1 }
 0x46e   : > { %v5732_v11 = vpack.c.bf16 %v5068_v21, %v5068_v21  ;;  %v5042_v29 = vadd.f32 %v11879_v13, %v5007_v48  ;;  %v5010_v8 = vmax.f32 %v4954_v50, %v4982_v2 }
 0x46f   : > { %5211 = vst.msk [vmem:[%s11927_s10 + $0x5c] sm:$0x7] %vm5188_vm0, %v5733_v0  ;;  %v5071_v37 = vmax.f32 %v5043_v20, 0.0  ;;  %v5009_v38 = vmax.f32 %v4953_v4, %v4981_v52 }
 0x470   : > { %5210 = vst.msk [vmem:[%s11927_s10 + $0x58] sm:$0xf] %vm5186_vm1, %v5732_v11  ;;  %v5070_v31 = vmax.f32 %v5042_v29, 0.0  ;;  %v5045_v22 = vadd.f32 %v11879_v13, %v5010_v8 }
 0x471   : > { %v5735_v5 = vpack.c.bf16 %v5071_v37, %v5071_v37  ;;  %v5044_v49 = vadd.f32 %v11879_v13, %v5009_v38 }
 0x472   : > { %v5734_v28 = vpack.c.bf16 %v5070_v31, %v5070_v31  ;;  %v5073_v56 = vmax.f32 %v5045_v22, 0.0 }
 0x473   : > { %5213 = vst.msk [vmem:[%s11927_s10 + $0x64] sm:$0x7] %vm5188_vm0, %v5735_v5  ;;  %v5072_v40 = vmax.f32 %v5044_v49, 0.0 }
 0x474   : > { %5212 = vst.msk [vmem:[%s11927_s10 + $0x60] sm:$0xf] %vm5186_vm1, %v5734_v28  ;;  %v5737_v44 = vpack.c.bf16 %v5073_v56, %v5073_v56 }
 0x475   : > { %v5736_v61 = vpack.c.bf16 %v5072_v40, %v5072_v40 }
 0x476   : > { %5215 = vst.msk [vmem:[%s11927_s10 + $0x6c] sm:$0x7] %vm5188_vm0, %v5737_v44 }
 0x477   : > { %5214 = vst.msk [vmem:[%s11927_s10 + $0x68] sm:$0xf] %vm5186_vm1, %v5736_v61 }
 0x478 PF: > { %s13_s12 = sadd.s32 1, %s5783_s12  }
 0x479   : > { %p10_p4 = scmp.ge.s32.totalorder %s13_s12, 4  }
 0x47b   :  { %12 = sbr.rel (!%p10_p4) target bundleno = 1 (0x1), region = 69 }

// kernel: mnist_net_forward.5
= control target key start
LH: loop header
LB: loop body
LE: loop exit
PB: predicated region body
PF: predicated region fallthrough
CT: control target
= control target key end

     0   :  { %v439_v27 = vlaneseq  ;;  %v3236_v35 = vmov 1966171168   ;;  %s3964_s0 = inlined_call_operand.vmem [shape: bf16[2,3136], index: 0, kind: input, shape index: {}]   ;;  %s3965_s1 = inlined_call_operand.vmem [shape: bf16[3136,64], index: 1, kind: input, shape index: {}]   ;;  %s3966_s2 = inlined_call_operand.vmem [shape: f32[1,64], index: 2, kind: input, shape index: {}]   ;;  %s3967_s3 = inlined_call_operand.vmem [shape: bf16[64,32], index: 3, kind: input, shape index: {}]   ;;  %s3968_s4 = inlined_call_operand.vmem [shape: f32[1,32], index: 4, kind: input, shape index: {}]   ;;  %s3969_s5 = inlined_call_operand.vmem [shape: bf16[32,10], index: 5, kind: input, shape index: {}]   ;;  %s3970_s6 = inlined_call_operand.vmem [shape: f32[1,10], index: 6, kind: input, shape index: {}]   ;;  %s3971_s7 = inlined_call_operand.hbm [shape: f32[2,10], index: 7, kind: output, shape index: {}]  }
   0x1   :  { %v3009_v0 = vld [vmem:[%s3965_s1 + $0x78] sm:$0xff]   ;;  %v3013_v4 = vld [vmem:[%s3965_s1 + $0x70] sm:$0xff]   ;;  %v3017_v8 = vld [vmem:[%s3965_s1 + $0x68] sm:$0xff]   ;;  %v437_v36 = vunpack.c.l.s4 %v3236_v35 }
   0x2   :  { %v3010_v1 = vld [vmem:[%s3965_s1 + $0x38] sm:$0xff]   ;;  %2696 = vmatprep.subr.bf16.mxu0 %v3009_v0  ;;  %v3014_v5 = vld [vmem:[%s3965_s1 + $0x30] sm:$0xff]   ;;  %v3018_v9 = vld [vmem:[%s3965_s1 + $0x28] sm:$0xff]   ;;  %v440_v32 = vshrl.u32 %v439_v27, 7 }
   0x3   :  { %v3011_v2 = vld [vmem:[%s3965_s1 + $0xf8] sm:$0xff]   ;;  %2697 = vmatpush3.bf16.msra.mxu0 %v3010_v1  ;;  %v3015_v6 = vld [vmem:[%s3965_s1 + $0xf0] sm:$0xff]   ;;  %v3019_v10 = vld [vmem:[%s3965_s1 + $0xe8] sm:$0xff]   ;;  %v438_v39 = vunpack.c.0.s8 %v437_v36 }
   0x4   :  { %v3012_v3 = vld [vmem:[%s3965_s1 + $0xb8] sm:$0xff]   ;;  %2718 = vmatprep.subr.bf16.mxu1 %v3011_v2  ;;  %2698 = vmatprep.subr.bf16.mxu0 %v3013_v4  ;;  %v3016_v7 = vld [vmem:[%s3965_s1 + $0xb0] sm:$0xff]   ;;  %v3020_v11 = vld [vmem:[%s3965_s1 + $0xa8] sm:$0xff]  }
   0x5   :  { %2719 = vmatpush3.bf16.msra.mxu1 %v3012_v3  ;;  %v3021_v12 = vld [vmem:[%s3965_s1 + $0x60] sm:$0xff]   ;;  %v3025_v16 = vld [vmem:[%s3965_s1 + $0x58] sm:$0xff]   ;;  %v3029_v20 = vld [vmem:[%s3965_s1 + $0x50] sm:$0xff]   ;;  %v3385_v41 = vsub.s32 %v438_v39, %v440_v32 }
   0x6   :  { %2720 = vmatprep.subr.bf16.mxu1 %v3015_v6  ;;  %v3022_v13 = vld [vmem:[%s3965_s1 + $0x20] sm:$0xff]   ;;  %v3026_v17 = vld [vmem:[%s3965_s1 + $0x18] sm:$0xff]   ;;  %v3030_v21 = vld [vmem:[%s3965_s1 + $0x10] sm:$0xff]  }
   0x7   :  { %2699 = vmatpush3.bf16.msra.mxu0 %v3014_v5  ;;  %v3023_v14 = vld [vmem:[%s3965_s1 + $0xe0] sm:$0xff]   ;;  %v3027_v18 = vld [vmem:[%s3965_s1 + $0xd8] sm:$0xff]   ;;  %v3031_v22 = vld [vmem:[%s3965_s1 + $0xd0] sm:$0xff]  }
   0x8   :  { %2700 = vmatprep.subr.bf16.mxu0 %v3017_v8  ;;  %v3024_v15 = vld [vmem:[%s3965_s1 + $0xa0] sm:$0xff]   ;;  %v3028_v19 = vld [vmem:[%s3965_s1 + $0x98] sm:$0xff]   ;;  %v3032_v23 = vld [vmem:[%s3965_s1 + $0x90] sm:$0xff]  }
   0x9   :  { %2721 = vmatpush3.bf16.msra.mxu1 %v3016_v7  ;;  %v3033_v24 = vld [vmem:[%s3965_s1 + $0x48] sm:$0xff]   ;;  %v3037_v29 = vld [vmem:[%s3965_s1 + $0x40] sm:$0xff]   ;;  %v3042_v37 = vld [vmem:[%s3965_s1 + $0x178] sm:$0xff]  }
   0xa   :  { %2722 = vmatprep.subr.bf16.mxu1 %v3019_v10  ;;  %v3034_v25 = vld [vmem:[%s3965_s1 + $0x8] sm:$0xff]   ;;  %v3038_v30 = vld [vmem:[%s3965_s1] sm:$0xff]   ;;  %v3044_v40 = vld [vmem:[%s3965_s1 + $0x1f8] sm:$0xff]  }
   0xb   :  { %2701 = vmatpush3.bf16.msra.mxu0 %v3018_v9  ;;  %v3035_v26 = vld [vmem:[%s3965_s1 + $0xc8] sm:$0xff]   ;;  %v3039_v31 = vld [vmem:[%s3965_s1 + $0xc0] sm:$0xff]   ;;  %v3043_v48 = vld [vmem:[%s3965_s1 + $0x138] sm:$0xff]  }
   0xc   :  { %2702 = vmatprep.subr.bf16.mxu0 %v3021_v12  ;;  %v3036_v28 = vld [vmem:[%s3965_s1 + $0x88] sm:$0xff]   ;;  %v28_v33 = vld [vmem:[%s3964_s0] sm:$0xff]  ;;  %v3046_v51 = vld [vmem:[%s3965_s1 + $0x170] sm:$0xff]  }
   0xd   :  { %2723 = vmatpush3.bf16.msra.mxu1 %v3020_v11  ;;  %v3041_v34 = vld [vmem:[%s3965_s1 + $0x80] sm:$0xff]   ;;  %v435_v38 = vcombine.high %v28_v33, %v28_v33  ;;  %v442_v42 = vrot.slane %v28_v33, %v3385_v41  ;;  %v3045_v53 = vld [vmem:[%s3965_s1 + $0x1b8] sm:$0xff]   ;;  %v3048_v54 = vld [vmem:[%s3965_s1 + $0x1f0] sm:$0xff]  }
   0xe   :  { %2724 = vmatprep.subr.bf16.mxu1 %v3023_v14  ;;  %v3047_v56 = vld [vmem:[%s3965_s1 + $0x130] sm:$0xff]   ;;  %v3050_v57 = vld [vmem:[%s3965_s1 + $0x168] sm:$0xff]   ;;  %v3054_v61 = vld [vmem:[%s3965_s1 + $0x160] sm:$0xff]  }
   0xf   :  { %2703 = vmatpush3.bf16.msra.mxu0 %v3022_v13  ;;  %v3389_v43 = vrot.slane %v435_v38, %v3385_v41  ;;  %v450_v44 = vcombine.high %v442_v42, %v442_v42  ;;  %v458_v45 = vrot.slane %v442_v42, %v3385_v41  ;;  %v3049_v58 = vld [vmem:[%s3965_s1 + $0x1b0] sm:$0xff]   ;;  %v3052_v59 = vld [vmem:[%s3965_s1 + $0x1e8] sm:$0xff]   ;;  %v3056_v63 = vld [vmem:[%s3965_s1 + $0x1e0] sm:$0xff]  }
  0x10   :  { %2704 = vmatprep.subr.bf16.mxu0 %v3025_v16  ;;  %v3051_v60 = vld [vmem:[%s3965_s1 + $0x128] sm:$0xff]   ;;  %v3055_v0 = vld [vmem:[%s3965_s1 + $0x120] sm:$0xff]   ;;  %v3058_v1 = vld [vmem:[%s3965_s1 + $0x158] sm:$0xff]  }
  0x11   :  { %2725 = vmatpush3.bf16.msra.mxu1 %v3024_v15  ;;  %v451_v46 = vcombine.high %v3389_v43, %v3389_v43  ;;  %v472_v47 = vrot.slane %v450_v44, %v3385_v41  ;;  %v480_v50 = vcombine.high %v458_v45, %v458_v45  ;;  %v3053_v62 = vld [vmem:[%s3965_s1 + $0x1a8] sm:$0xff]   ;;  %v3057_v2 = vld [vmem:[%s3965_s1 + $0x1a0] sm:$0xff]   ;;  %v3060_v3 = vld [vmem:[%s3965_s1 + $0x1d8] sm:$0xff]  }
  0x12   :  { %2726 = vmatprep.subr.bf16.mxu1 %v3027_v18  ;;  %v3059_v4 = vld [vmem:[%s3965_s1 + $0x118] sm:$0xff]   ;;  %v3062_v5 = vld [vmem:[%s3965_s1 + $0x150] sm:$0xff]   ;;  %v3066_v9 = vld [vmem:[%s3965_s1 + $0x148] sm:$0xff]  }
  0x13   :  { %2705 = vmatpush3.bf16.msra.mxu0 %v3026_v17  ;;  %v479_v49 = vrot.slane %v451_v46, %v3385_v41  ;;  %1832 = vmatprep.mubr.bf16.mxu0 %v472_v47  ;;  %v482_v52 = vcombine.high %v472_v47, %v472_v47  ;;  %v3061_v6 = vld [vmem:[%s3965_s1 + $0x198] sm:$0xff]   ;;  %v3064_v7 = vld [vmem:[%s3965_s1 + $0x1d0] sm:$0xff]   ;;  %v3068_v11 = vld [vmem:[%s3965_s1 + $0x1c8] sm:$0xff]   ;;  %v465_v17 = vrot.slane %v3389_v43, %v3385_v41 }
  0x14   :  { %2706 = vmatprep.subr.bf16.mxu0 %v3029_v20  ;;  %v3063_v8 = vld [vmem:[%s3965_s1 + $0x110] sm:$0xff]   ;;  %v3067_v12 = vld [vmem:[%s3965_s1 + $0x108] sm:$0xff]   ;;  %v3070_v13 = vld [vmem:[%s3965_s1 + $0x140] sm:$0xff]  }
  0x15   :  { %2727 = vmatpush3.bf16.msra.mxu1 %v3028_v19  ;;  %v483_v55 = vcombine.high %v479_v49, %v479_v49  ;;  %1872 = vmatprep.mubr.bf16.mxu1 %v482_v52  ;;  %v3065_v10 = vld [vmem:[%s3965_s1 + $0x190] sm:$0xff]   ;;  %v3069_v14 = vld [vmem:[%s3965_s1 + $0x188] sm:$0xff]   ;;  %v3072_v15 = vld [vmem:[%s3965_s1 + $0x1c0] sm:$0xff]  }
  0x16   :  { %2728 = vmatprep.subr.bf16.mxu1 %v3031_v22  ;;  %v3071_v16 = vld [vmem:[%s3965_s1 + $0x100] sm:$0xff]   ;;  %v3074_v18 = vld [vmem:[%s3965_s1 + $0x278] sm:$0xff]   ;;  %v481_v22 = vcombine.high %v465_v17, %v465_v17  ;;  %v3082_v27 = vld [vmem:[%s3965_s1 + $0x268] sm:$0xff]  }
  0x17   :  { %2707 = vmatpush3.bf16.msra.mxu0 %v3030_v21  ;;  %v3073_v19 = vld [vmem:[%s3965_s1 + $0x180] sm:$0xff]   ;;  %v3076_v20 = vld [vmem:[%s3965_s1 + $0x2f8] sm:$0xff]   ;;  %v3085_v32 = vld [vmem:[%s3965_s1 + $0x2a8] sm:$0xff]  }
  0x18   :  { %2708 = vmatprep.subr.bf16.mxu0 %v3033_v24  ;;  %v3075_v21 = vld [vmem:[%s3965_s1 + $0x238] sm:$0xff]   ;;  %v3088_v33 = vld [vmem:[%s3965_s1 + $0x2e0] sm:$0xff]   ;;  %v3094_v39 = vld [vmem:[%s3965_s1 + $0x250] sm:$0xff]  }
  0x19   :  { %2729 = vmatpush3.bf16.msra.mxu1 %v3032_v23  ;;  %v3078_v23 = vld [vmem:[%s3965_s1 + $0x270] sm:$0xff]   ;;  %v3077_v24 = vld [vmem:[%s3965_s1 + $0x2b8] sm:$0xff]   ;;  %v3089_v36 = vld [vmem:[%s3965_s1 + $0x2a0] sm:$0xff]  }
  0x1a   :  { %2730 = vmatprep.subr.bf16.mxu1 %v3035_v26  ;;  %v3079_v26 = vld [vmem:[%s3965_s1 + $0x230] sm:$0xff]   ;;  %v3090_v35 = vld [vmem:[%s3965_s1 + $0x258] sm:$0xff]   ;;  %v3098_v44 = vld [vmem:[%s3965_s1 + $0x248] sm:$0xff]  }
  0x1b   :  { %2709 = vmatpush3.bf16.msra.mxu0 %v3034_v25  ;;  %v3080_v25 = vld [vmem:[%s3965_s1 + $0x2f0] sm:$0xff]   ;;  %v3091_v38 = vld [vmem:[%s3965_s1 + $0x218] sm:$0xff]  }
  0x1c   :  { %2710 = vmatprep.subr.bf16.mxu0 %v3037_v29  ;;  %v3084_v29 = vld [vmem:[%s3965_s1 + $0x2e8] sm:$0xff]   ;;  %v3096_v42 = vld [vmem:[%s3965_s1 + $0x2d0] sm:$0xff]  }
  0x1d   :  { %2731 = vmatpush3.bf16.msra.mxu1 %v3036_v28  ;;  %v3081_v28 = vld [vmem:[%s3965_s1 + $0x2b0] sm:$0xff]  }
  0x1e   :  { %2732 = vmatprep.subr.bf16.mxu1 %v3039_v31  ;;  %v3086_v31 = vld [vmem:[%s3965_s1 + $0x260] sm:$0xff]   ;;  %v3095_v43 = vld [vmem:[%s3965_s1 + $0x210] sm:$0xff]  }
  0x1f   :  { %2711 = vmatpush3.bf16.msra.mxu0 %v3038_v30  ;;  %v3083_v30 = vld [vmem:[%s3965_s1 + $0x228] sm:$0xff]   ;;  %v3097_v46 = vld [vmem:[%s3965_s1 + $0x290] sm:$0xff]  }
  0x20   :  { %2740 = vmatprep.subr.bf16.mxu0 %v3042_v37  ;;  %v3092_v37 = vld [vmem:[%s3965_s1 + $0x2d8] sm:$0xff]  }
  0x21   :  { %2733 = vmatpush3.bf16.msra.mxu1 %v3041_v34  ;;  %v3087_v34 = vld [vmem:[%s3965_s1 + $0x220] sm:$0xff]  }
  0x22   :  { %2762 = vmatprep.subr.bf16.mxu1 %v3044_v40  ;;  %1833 = vmatmul.mubr.bf16.vlgmr.msra.gmra.mxu0 %v458_v45  ;;  %v3093_v40 = vld [vmem:[%s3965_s1 + $0x298] sm:$0xff]   ;;  %v29_v45 = vld [vmem:[%s3964_s0 + $0x8] sm:$0xff] }
  0x23   :  { %2741 = vmatpush3.bf16.msra.mxu0 %v3043_v48  ;;  %1912 = vmatprep.mubr.bf16.mxu0 %v479_v49  ;;  %v491_v47 = vrot.slane %v29_v45, %v3385_v41  ;;  %v484_v48 = vcombine.high %v29_v45, %v29_v45  ;;  %v3100_v49 = vld [vmem:[%s3965_s1 + $0x2c8] sm:$0xff]  }
  0x24   :  { %1873 = vmatmul.mubr.bf16.vlgmr.msra.gmra.mxu1 %v480_v50  ;;  %2742 = vmatprep.subr.bf16.mxu0 %v3046_v51  ;;  %v3099_v50 = vld [vmem:[%s3965_s1 + $0x208] sm:$0xff]  }
  0x25   :  { %2763 = vmatpush3.bf16.msra.mxu1 %v3045_v53  ;;  %1952 = vmatprep.mubr.bf16.mxu1 %v483_v55  ;;  %v499_v51 = vcombine.high %v491_v47, %v491_v47  ;;  %v3574_v52 = vrot.slane %v484_v48, %v3385_v41  ;;  %v3102_v53 = vld [vmem:[%s3965_s1 + $0x240] sm:$0xff]   ;;  %v3149_v45 = vld [vmem:[%s3965_s1 + $0x4e8] sm:$0xff]  }
  0x26   :  { %2764 = vmatprep.subr.bf16.mxu1 %v3048_v54  ;;  %v3101_v54 = vld [vmem:[%s3965_s1 + $0x288] sm:$0xff]  }
  0x27   :  { %2743 = vmatpush3.bf16.msra.mxu0 %v3047_v56  ;;  %v521_v55 = vrot.slane %v499_v51, %v3385_v41  ;;  %v500_v56 = vcombine.high %v3574_v52, %v3574_v52  ;;  %v3150_v48 = vld [vmem:[%s3965_s1 + $0x4a8] sm:$0xff]   ;;  %v3155_v51 = vld [vmem:[%s3965_s1 + $0x458] sm:$0xff]  }
  0x28   :  { %2744 = vmatprep.subr.bf16.mxu0 %v3050_v57  ;;  %v3104_v57 = vld [vmem:[%s3965_s1 + $0x2c0] sm:$0xff]  }
  0x29   :  { %2765 = vmatpush3.bf16.msra.mxu1 %v3049_v58  ;;  %v3103_v58 = vld [vmem:[%s3965_s1 + $0x200] sm:$0xff]  }
  0x2a   :  { %2766 = vmatprep.subr.bf16.mxu1 %v3052_v59  ;;  %v531_v59 = vcombine.high %v521_v55, %v521_v55 }
  0x2b   :  { %2745 = vmatpush3.bf16.msra.mxu0 %v3051_v60  ;;  %v507_v60 = vrot.slane %v491_v47, %v3385_v41  ;;  %v3151_v47 = vld [vmem:[%s3965_s1 + $0x460] sm:$0xff]  }
  0x2c   :  { %2746 = vmatprep.subr.bf16.mxu0 %v3054_v61  ;;  %v3106_v61 = vld [vmem:[%s3965_s1 + $0x378] sm:$0xff]  }
  0x2d   :  { %2767 = vmatpush3.bf16.msra.mxu1 %v3053_v62  ;;  %v3105_v62 = vld [vmem:[%s3965_s1 + $0x280] sm:$0xff]  }
  0x2e   :  { %2768 = vmatprep.subr.bf16.mxu1 %v3056_v63  ;;  %v528_v63 = vrot.slane %v500_v56, %v3385_v41  ;;  %v3158_v56 = vld [vmem:[%s3965_s1 + $0x498] sm:$0xff]  }
  0x2f   :  { %2747 = vmatpush3.bf16.msra.mxu0 %v3055_v0  ;;  %v3108_v0 = vld [vmem:[%s3965_s1 + $0x3f8] sm:$0xff]  }
  0x30   :  { %2748 = vmatprep.subr.bf16.mxu0 %v3058_v1  ;;  %v3107_v1 = vld [vmem:[%s3965_s1 + $0x338] sm:$0xff]  }
  0x31   :  { %2769 = vmatpush3.bf16.msra.mxu1 %v3057_v2  ;;  %v529_v2 = vcombine.high %v507_v60, %v507_v60 }
  0x32   :  { %2770 = vmatprep.subr.bf16.mxu1 %v3060_v3  ;;  %v3110_v3 = vld [vmem:[%s3965_s1 + $0x370] sm:$0xff]  }
  0x33   :  { %2749 = vmatpush3.bf16.msra.mxu0 %v3059_v4  ;;  %v3109_v4 = vld [vmem:[%s3965_s1 + $0x3b8] sm:$0xff]  }
  0x34   :  { %2750 = vmatprep.subr.bf16.mxu0 %v3062_v5  ;;  %v532_v5 = vcombine.high %v528_v63, %v528_v63 }
  0x35   :  { %2771 = vmatpush3.bf16.msra.mxu1 %v3061_v6  ;;  %v3112_v6 = vld [vmem:[%s3965_s1 + $0x3f0] sm:$0xff]  }
  0x36   :  { %2772 = vmatprep.subr.bf16.mxu1 %v3064_v7  ;;  %v3111_v7 = vld [vmem:[%s3965_s1 + $0x330] sm:$0xff]  }
  0x37   :  { %2751 = vmatpush3.bf16.msra.mxu0 %v3063_v8  ;;  %v3114_v8 = vld [vmem:[%s3965_s1 + $0x368] sm:$0xff]  }
  0x38   :  { %2752 = vmatprep.subr.bf16.mxu0 %v3066_v9  ;;  %v3113_v9 = vld [vmem:[%s3965_s1 + $0x3b0] sm:$0xff]  }
  0x39   :  { %2773 = vmatpush3.bf16.msra.mxu1 %v3065_v10  ;;  %v3116_v10 = vld [vmem:[%s3965_s1 + $0x3e8] sm:$0xff]  }
  0x3a   :  { %2774 = vmatprep.subr.bf16.mxu1 %v3068_v11  ;;  %v3115_v11 = vld [vmem:[%s3965_s1 + $0x328] sm:$0xff]  }
  0x3b   :  { %2753 = vmatpush3.bf16.msra.mxu0 %v3067_v12  ;;  %v3118_v12 = vld [vmem:[%s3965_s1 + $0x360] sm:$0xff]  }
  0x3c   :  { %2754 = vmatprep.subr.bf16.mxu0 %v3070_v13  ;;  %v3117_v13 = vld [vmem:[%s3965_s1 + $0x3a8] sm:$0xff]  }
  0x3d   :  { %2775 = vmatpush3.bf16.msra.mxu1 %v3069_v14  ;;  %v3120_v14 = vld [vmem:[%s3965_s1 + $0x3e0] sm:$0xff]  }
  0x3e   :  { %2776 = vmatprep.subr.bf16.mxu1 %v3072_v15  ;;  %v3119_v15 = vld [vmem:[%s3965_s1 + $0x320] sm:$0xff]  }
  0x3f   :  { %2755 = vmatpush3.bf16.msra.mxu0 %v3071_v16  ;;  %v3122_v16 = vld [vmem:[%s3965_s1 + $0x358] sm:$0xff]  }
  0x40   :  { %2784 = vmatprep.subr.bf16.mxu0 %v3074_v18  ;;  %v3124_v18 = vld [vmem:[%s3965_s1 + $0x3d8] sm:$0xff]  }
  0x41   :  { %2777 = vmatpush3.bf16.msra.mxu1 %v3073_v19  ;;  %v3123_v19 = vld [vmem:[%s3965_s1 + $0x318] sm:$0xff]  }
  0x42   :  { %1913 = vmatmul.mubr.bf16.vlgmr.msra.gmra.mxu0 %v465_v17  ;;  %2806 = vmatprep.subr.bf16.mxu1 %v3076_v20  ;;  %v3121_v17 = vld [vmem:[%s3965_s1 + $0x3a0] sm:$0xff]   ;;  %v3126_v20 = vld [vmem:[%s3965_s1 + $0x350] sm:$0xff]  }
  0x43   :  { %2785 = vmatpush3.bf16.msra.mxu0 %v3075_v21  ;;  %1992 = vmatprep.mubr.bf16.mxu0 %v521_v55  ;;  %v3125_v21 = vld [vmem:[%s3965_s1 + $0x398] sm:$0xff]   ;;  %v3159_v55 = vld [vmem:[%s3965_s1 + $0x450] sm:$0xff]  }
  0x44   :  { %1953 = vmatmul.mubr.bf16.vlgmr.msra.gmra.mxu1 %v481_v22  ;;  %2786 = vmatprep.subr.bf16.mxu0 %v3078_v23  ;;  %v3128_v22 = vld [vmem:[%s3965_s1 + $0x3d0] sm:$0xff]  }
  0x45   :  { %2807 = vmatpush3.bf16.msra.mxu1 %v3077_v24  ;;  %2032 = vmatprep.mubr.bf16.mxu1 %v531_v59  ;;  %v3127_v23 = vld [vmem:[%s3965_s1 + $0x310] sm:$0xff]   ;;  %v3130_v24 = vld [vmem:[%s3965_s1 + $0x348] sm:$0xff]  }
  0x46   :  { %2808 = vmatprep.subr.bf16.mxu1 %v3080_v25  ;;  %v3129_v25 = vld [vmem:[%s3965_s1 + $0x390] sm:$0xff]   ;;  %v3163_v59 = vld [vmem:[%s3965_s1 + $0x448] sm:$0xff]  }
  0x47   :  { %2787 = vmatpush3.bf16.msra.mxu0 %v3079_v26  ;;  %v3132_v26 = vld [vmem:[%s3965_s1 + $0x3c8] sm:$0xff]  }
  0x48   :  { %2788 = vmatprep.subr.bf16.mxu0 %v3082_v27  ;;  %v3131_v27 = vld [vmem:[%s3965_s1 + $0x308] sm:$0xff]  }
  0x49   :  { %2809 = vmatpush3.bf16.msra.mxu1 %v3081_v28  ;;  %v3134_v28 = vld [vmem:[%s3965_s1 + $0x340] sm:$0xff]  }
  0x4a   :  { %2810 = vmatprep.subr.bf16.mxu1 %v3084_v29  ;;  %v3133_v29 = vld [vmem:[%s3965_s1 + $0x388] sm:$0xff]  }
  0x4b   :  { %2789 = vmatpush3.bf16.msra.mxu0 %v3083_v30  ;;  %v3136_v30 = vld [vmem:[%s3965_s1 + $0x3c0] sm:$0xff]  }
  0x4c   :  { %2790 = vmatprep.subr.bf16.mxu0 %v3086_v31  ;;  %v3135_v31 = vld [vmem:[%s3965_s1 + $0x300] sm:$0xff]  }
  0x4d   :  { %2811 = vmatpush3.bf16.msra.mxu1 %v3085_v32  ;;  %v514_v32 = vrot.slane %v3574_v52, %v3385_v41  ;;  %v3154_v52 = vld [vmem:[%s3965_s1 + $0x4a0] sm:$0xff]  }
  0x4e   :  { %2812 = vmatprep.subr.bf16.mxu1 %v3088_v33  ;;  %v3139_v33 = vld [vmem:[%s3965_s1 + $0x478] sm:$0xff]  }
  0x4f   :  { %2791 = vmatpush3.bf16.msra.mxu0 %v3087_v34  ;;  %v3138_v34 = vld [vmem:[%s3965_s1 + $0x380] sm:$0xff]  }
  0x50   :  { %2792 = vmatprep.subr.bf16.mxu0 %v3090_v35  ;;  %v3141_v35 = vld [vmem:[%s3965_s1 + $0x4f8] sm:$0xff]  }
  0x51   :  { %2813 = vmatpush3.bf16.msra.mxu1 %v3089_v36  ;;  %v3140_v36 = vld [vmem:[%s3965_s1 + $0x438] sm:$0xff]  }
  0x52   :  { %2814 = vmatprep.subr.bf16.mxu1 %v3092_v37  ;;  %v530_v37 = vcombine.high %v514_v32, %v514_v32 }
  0x53   :  { %2793 = vmatpush3.bf16.msra.mxu0 %v3091_v38  ;;  %v3143_v38 = vld [vmem:[%s3965_s1 + $0x470] sm:$0xff]  }
  0x54   :  { %2794 = vmatprep.subr.bf16.mxu0 %v3094_v39  ;;  %v3142_v39 = vld [vmem:[%s3965_s1 + $0x4b8] sm:$0xff]  }
  0x55   :  { %2815 = vmatpush3.bf16.msra.mxu1 %v3093_v40  ;;  %v3145_v40 = vld [vmem:[%s3965_s1 + $0x4f0] sm:$0xff]  }
  0x56   :  { %2816 = vmatprep.subr.bf16.mxu1 %v3096_v42  ;;  %v3144_v42 = vld [vmem:[%s3965_s1 + $0x430] sm:$0xff]  }
  0x57   :  { %2795 = vmatpush3.bf16.msra.mxu0 %v3095_v43  ;;  %v3147_v43 = vld [vmem:[%s3965_s1 + $0x468] sm:$0xff]  }
  0x58   :  { %2796 = vmatprep.subr.bf16.mxu0 %v3098_v44  ;;  %v3146_v44 = vld [vmem:[%s3965_s1 + $0x4b0] sm:$0xff]  }
  0x59   :  { %2817 = vmatpush3.bf16.msra.mxu1 %v3097_v46  ;;  %v3148_v46 = vld [vmem:[%s3965_s1 + $0x428] sm:$0xff]  }
  0x5a   :  { %2818 = vmatprep.subr.bf16.mxu1 %v3100_v49  ;;  %v3153_v49 = vld [vmem:[%s3965_s1 + $0x4e0] sm:$0xff]  }
  0x5b   :  { %2797 = vmatpush3.bf16.msra.mxu0 %v3099_v50  ;;  %v3152_v50 = vld [vmem:[%s3965_s1 + $0x420] sm:$0xff]  }
  0x5c   :  { %2798 = vmatprep.subr.bf16.mxu0 %v3102_v53  ;;  %v3157_v53 = vld [vmem:[%s3965_s1 + $0x4d8] sm:$0xff]  }
  0x5d   :  { %2819 = vmatpush3.bf16.msra.mxu1 %v3101_v54  ;;  %v3156_v54 = vld [vmem:[%s3965_s1 + $0x418] sm:$0xff]  }
  0x5e   :  { %2820 = vmatprep.subr.bf16.mxu1 %v3104_v57  ;;  %v3161_v57 = vld [vmem:[%s3965_s1 + $0x4d0] sm:$0xff]  }
  0x5f   :  { %2799 = vmatpush3.bf16.msra.mxu0 %v3103_v58  ;;  %v3160_v58 = vld [vmem:[%s3965_s1 + $0x410] sm:$0xff]  }
  0x60   :  { %2828 = vmatprep.subr.bf16.mxu0 %v3106_v61  ;;  %v3162_v61 = vld [vmem:[%s3965_s1 + $0x490] sm:$0xff]  }
  0x61   :  { %2821 = vmatpush3.bf16.msra.mxu1 %v3105_v62 }
  0x62   :  { %1993 = vmatmul.mubr.bf16.vlgmr.msra.gmra.mxu0 %v507_v60  ;;  %2850 = vmatprep.subr.bf16.mxu1 %v3108_v0  ;;  %v30_v60 = vld [vmem:[%s3964_s0 + $0x10] sm:$0xff]  ;;  %v3165_v0 = vld [vmem:[%s3965_s1 + $0x4c8] sm:$0xff]  }
  0x63   :  { %2829 = vmatpush3.bf16.msra.mxu0 %v3107_v1  ;;  %2072 = vmatprep.mubr.bf16.mxu0 %v528_v63  ;;  %v540_v62 = vrot.slane %v30_v60, %v3385_v41  ;;  %v533_v63 = vcombine.high %v30_v60, %v30_v60  ;;  %v3164_v1 = vld [vmem:[%s3965_s1 + $0x408] sm:$0xff]  }
  0x64   :  { %2033 = vmatmul.mubr.bf16.vlgmr.msra.gmra.mxu1 %v529_v2  ;;  %2830 = vmatprep.subr.bf16.mxu0 %v3110_v3 }
  0x65   :  { %2851 = vmatpush3.bf16.msra.mxu1 %v3109_v4  ;;  %2112 = vmatprep.mubr.bf16.mxu1 %v532_v5  ;;  %v548_v2 = vcombine.high %v540_v62, %v540_v62  ;;  %v3780_v3 = vrot.slane %v533_v63, %v3385_v41  ;;  %v3167_v4 = vld [vmem:[%s3965_s1 + $0x440] sm:$0xff]   ;;  %v3166_v5 = vld [vmem:[%s3965_s1 + $0x488] sm:$0xff]  }
  0x66   :  { %2852 = vmatprep.subr.bf16.mxu1 %v3112_v6 }
  0x67   :  { %2831 = vmatpush3.bf16.msra.mxu0 %v3111_v7  ;;  %v570_v6 = vrot.slane %v548_v2, %v3385_v41  ;;  %v549_v7 = vcombine.high %v3780_v3, %v3780_v3 }
  0x68   :  { %2832 = vmatprep.subr.bf16.mxu0 %v3114_v8  ;;  %v3169_v8 = vld [vmem:[%s3965_s1 + $0x4c0] sm:$0xff]  }
  0x69   :  { %2853 = vmatpush3.bf16.msra.mxu1 %v3113_v9  ;;  %v3168_v9 = vld [vmem:[%s3965_s1 + $0x400] sm:$0xff]  }
  0x6a   :  { %2854 = vmatprep.subr.bf16.mxu1 %v3116_v10  ;;  %v580_v10 = vcombine.high %v570_v6, %v570_v6 }
  0x6b   :  { %2833 = vmatpush3.bf16.msra.mxu0 %v3115_v11  ;;  %v556_v11 = vrot.slane %v540_v62, %v3385_v41 }
  0x6c   :  { %2834 = vmatprep.subr.bf16.mxu0 %v3118_v12  ;;  %v3171_v12 = vld [vmem:[%s3965_s1 + $0x578] sm:$0xff]  }
  0x6d   :  { %2855 = vmatpush3.bf16.msra.mxu1 %v3117_v13  ;;  %v3170_v13 = vld [vmem:[%s3965_s1 + $0x480] sm:$0xff]  }
  0x6e   :  { %2856 = vmatprep.subr.bf16.mxu1 %v3120_v14  ;;  %v577_v14 = vrot.slane %v549_v7, %v3385_v41 }
  0x6f   :  { %2835 = vmatpush3.bf16.msra.mxu0 %v3119_v15  ;;  %v3173_v15 = vld [vmem:[%s3965_s1 + $0x5f8] sm:$0xff]  }
  0x70   :  { %2836 = vmatprep.subr.bf16.mxu0 %v3122_v16  ;;  %v3172_v16 = vld [vmem:[%s3965_s1 + $0x538] sm:$0xff]  }
  0x71   :  { %2857 = vmatpush3.bf16.msra.mxu1 %v3121_v17  ;;  %v578_v17 = vcombine.high %v556_v11, %v556_v11 }
  0x72   :  { %2858 = vmatprep.subr.bf16.mxu1 %v3124_v18  ;;  %v3175_v18 = vld [vmem:[%s3965_s1 + $0x570] sm:$0xff]  }
  0x73   :  { %2837 = vmatpush3.bf16.msra.mxu0 %v3123_v19  ;;  %v3174_v19 = vld [vmem:[%s3965_s1 + $0x5b8] sm:$0xff]  }
  0x74   :  { %2838 = vmatprep.subr.bf16.mxu0 %v3126_v20  ;;  %v581_v20 = vcombine.high %v577_v14, %v577_v14 }
  0x75   :  { %2859 = vmatpush3.bf16.msra.mxu1 %v3125_v21  ;;  %v3177_v21 = vld [vmem:[%s3965_s1 + $0x5f0] sm:$0xff]  }
  0x76   :  { %2860 = vmatprep.subr.bf16.mxu1 %v3128_v22  ;;  %v3176_v22 = vld [vmem:[%s3965_s1 + $0x530] sm:$0xff]  }
  0x77   :  { %2839 = vmatpush3.bf16.msra.mxu0 %v3127_v23  ;;  %v3179_v23 = vld [vmem:[%s3965_s1 + $0x568] sm:$0xff]  }
  0x78   :  { %2840 = vmatprep.subr.bf16.mxu0 %v3130_v24  ;;  %v3178_v24 = vld [vmem:[%s3965_s1 + $0x5b0] sm:$0xff]  }
  0x79   :  { %2861 = vmatpush3.bf16.msra.mxu1 %v3129_v25  ;;  %v3181_v25 = vld [vmem:[%s3965_s1 + $0x5e8] sm:$0xff]  }
  0x7a   :  { %2862 = vmatprep.subr.bf16.mxu1 %v3132_v26  ;;  %v3180_v26 = vld [vmem:[%s3965_s1 + $0x528] sm:$0xff]  }
  0x7b   :  { %2841 = vmatpush3.bf16.msra.mxu0 %v3131_v27  ;;  %v3183_v27 = vld [vmem:[%s3965_s1 + $0x560] sm:$0xff]  }
  0x7c   :  { %2842 = vmatprep.subr.bf16.mxu0 %v3134_v28  ;;  %v3182_v28 = vld [vmem:[%s3965_s1 + $0x5a8] sm:$0xff]  }
  0x7d   :  { %2863 = vmatpush3.bf16.msra.mxu1 %v3133_v29  ;;  %v3185_v29 = vld [vmem:[%s3965_s1 + $0x5e0] sm:$0xff]  }
  0x7e   :  { %2864 = vmatprep.subr.bf16.mxu1 %v3136_v30  ;;  %v3184_v30 = vld [vmem:[%s3965_s1 + $0x520] sm:$0xff]  }
  0x7f   :  { %2843 = vmatpush3.bf16.msra.mxu0 %v3135_v31  ;;  %v3187_v31 = vld [vmem:[%s3965_s1 + $0x558] sm:$0xff]  }
  0x80   :  { %2872 = vmatprep.subr.bf16.mxu0 %v3139_v33  ;;  %v3189_v33 = vld [vmem:[%s3965_s1 + $0x5d8] sm:$0xff]  }
  0x81   :  { %2865 = vmatpush3.bf16.msra.mxu1 %v3138_v34  ;;  %v3188_v34 = vld [vmem:[%s3965_s1 + $0x518] sm:$0xff]  }
  0x82   :  { %2073 = vmatmul.mubr.bf16.vlgmr.msra.gmra.mxu0 %v514_v32  ;;  %2894 = vmatprep.subr.bf16.mxu1 %v3141_v35  ;;  %v3186_v32 = vld [vmem:[%s3965_s1 + $0x5a0] sm:$0xff]   ;;  %v3191_v35 = vld [vmem:[%s3965_s1 + $0x550] sm:$0xff]  }
  0x83   :  { %2873 = vmatpush3.bf16.msra.mxu0 %v3140_v36  ;;  %2152 = vmatprep.mubr.bf16.mxu0 %v570_v6  ;;  %v3190_v36 = vld [vmem:[%s3965_s1 + $0x598] sm:$0xff]  }
  0x84   :  { %2113 = vmatmul.mubr.bf16.vlgmr.msra.gmra.mxu1 %v530_v37  ;;  %2874 = vmatprep.subr.bf16.mxu0 %v3143_v38  ;;  %v3193_v37 = vld [vmem:[%s3965_s1 + $0x5d0] sm:$0xff]  }
  0x85   :  { %2895 = vmatpush3.bf16.msra.mxu1 %v3142_v39  ;;  %2192 = vmatprep.mubr.bf16.mxu1 %v580_v10  ;;  %v3192_v38 = vld [vmem:[%s3965_s1 + $0x510] sm:$0xff]   ;;  %v3195_v39 = vld [vmem:[%s3965_s1 + $0x548] sm:$0xff]  }
  0x86   :  { %2896 = vmatprep.subr.bf16.mxu1 %v3145_v40  ;;  %v3194_v40 = vld [vmem:[%s3965_s1 + $0x590] sm:$0xff]  }
  0x87   :  { %2875 = vmatpush3.bf16.msra.mxu0 %v3144_v42  ;;  %v3197_v42 = vld [vmem:[%s3965_s1 + $0x5c8] sm:$0xff]  }
  0x88   :  { %2876 = vmatprep.subr.bf16.mxu0 %v3147_v43  ;;  %v3196_v43 = vld [vmem:[%s3965_s1 + $0x508] sm:$0xff]  }
  0x89   :  { %2897 = vmatpush3.bf16.msra.mxu1 %v3146_v44  ;;  %v3199_v44 = vld [vmem:[%s3965_s1 + $0x540] sm:$0xff]  }
  0x8a   :  { %2898 = vmatprep.subr.bf16.mxu1 %v3149_v45  ;;  %v3198_v45 = vld [vmem:[%s3965_s1 + $0x588] sm:$0xff]  }
  0x8b   :  { %2877 = vmatpush3.bf16.msra.mxu0 %v3148_v46  ;;  %v3200_v46 = vld [vmem:[%s3965_s1 + $0x500] sm:$0xff]  }
  0x8c   :  { %2878 = vmatprep.subr.bf16.mxu0 %v3151_v47  ;;  %v3201_v47 = vld [vmem:[%s3965_s1 + $0x5c0] sm:$0xff]  }
  0x8d   :  { %2899 = vmatpush3.bf16.msra.mxu1 %v3150_v48  ;;  %v3203_v48 = vld [vmem:[%s3965_s1 + $0x580] sm:$0xff]  }
  0x8e   :  { %2900 = vmatprep.subr.bf16.mxu1 %v3153_v49  ;;  %v563_v49 = vrot.slane %v3780_v3, %v3385_v41 }
  0x8f   :  { %2879 = vmatpush3.bf16.msra.mxu0 %v3152_v50  ;;  %v3204_v50 = vld [vmem:[%s3965_s1 + $0x618] sm:$0xff]  }
  0x90   :  { %2880 = vmatprep.subr.bf16.mxu0 %v3155_v51 }
  0x91   :  { %2901 = vmatpush3.bf16.msra.mxu1 %v3154_v52 }
  0x92   :  { %2902 = vmatprep.subr.bf16.mxu1 %v3157_v53 }
  0x93   :  { %2881 = vmatpush3.bf16.msra.mxu0 %v3156_v54 }
  0x94   :  { %2882 = vmatprep.subr.bf16.mxu0 %v3159_v55 }
  0x95   :  { %2903 = vmatpush3.bf16.msra.mxu1 %v3158_v56 }
  0x96   :  { %2904 = vmatprep.subr.bf16.mxu1 %v3161_v57 }
  0x97   :  { %2883 = vmatpush3.bf16.msra.mxu0 %v3160_v58 }
  0x98   :  { %2884 = vmatprep.subr.bf16.mxu0 %v3163_v59 }
  0x99   :  { %2905 = vmatpush3.bf16.msra.mxu1 %v3162_v61 }
  0x9a   :  { %2906 = vmatprep.subr.bf16.mxu1 %v3165_v0 }
  0x9b   :  { %2885 = vmatpush3.bf16.msra.mxu0 %v3164_v1 }
  0x9c   :  { %2886 = vmatprep.subr.bf16.mxu0 %v3167_v4 }
  0x9d   :  { %2907 = vmatpush3.bf16.msra.mxu1 %v3166_v5 }
  0x9e   :  { %2908 = vmatprep.subr.bf16.mxu1 %v3169_v8 }
  0x9f   :  { %2887 = vmatpush3.bf16.msra.mxu0 %v3168_v9 }
  0xa0   :  { %2916 = vmatprep.subr.bf16.mxu0 %v3171_v12 }
  0xa1   :  { %2909 = vmatpush3.bf16.msra.mxu1 %v3170_v13 }
  0xa2   :  { %2153 = vmatmul.mubr.bf16.vlgmr.msra.gmra.mxu0 %v556_v11  ;;  %2938 = vmatprep.subr.bf16.mxu1 %v3173_v15 }
  0xa3   :  { %2917 = vmatpush3.bf16.msra.mxu0 %v3172_v16  ;;  %2232 = vmatprep.mubr.bf16.mxu0 %v577_v14 }
  0xa4   :  { %2193 = vmatmul.mubr.bf16.vlgmr.msra.gmra.mxu1 %v578_v17  ;;  %2918 = vmatprep.subr.bf16.mxu0 %v3175_v18 }
  0xa5   :  { %2939 = vmatpush3.bf16.msra.mxu1 %v3174_v19  ;;  %2272 = vmatprep.mubr.bf16.mxu1 %v581_v20 }
  0xa6   :  { %2940 = vmatprep.subr.bf16.mxu1 %v3177_v21 }
  0xa7   :  { %2919 = vmatpush3.bf16.msra.mxu0 %v3176_v22 }
  0xa8   :  { %2920 = vmatprep.subr.bf16.mxu0 %v3179_v23 }
  0xa9   :  { %2941 = vmatpush3.bf16.msra.mxu1 %v3178_v24 }
  0xaa   :  { %2942 = vmatprep.subr.bf16.mxu1 %v3181_v25 }
  0xab   :  { %2921 = vmatpush3.bf16.msra.mxu0 %v3180_v26 }
  0xac   :  { %2922 = vmatprep.subr.bf16.mxu0 %v3183_v27 }
  0xad   :  { %2943 = vmatpush3.bf16.msra.mxu1 %v3182_v28 }
  0xae   :  { %2944 = vmatprep.subr.bf16.mxu1 %v3185_v29 }
  0xaf   :  { %2923 = vmatpush3.bf16.msra.mxu0 %v3184_v30 }
  0xb0   :  { %2924 = vmatprep.subr.bf16.mxu0 %v3187_v31 }
  0xb1   :  { %2945 = vmatpush3.bf16.msra.mxu1 %v3186_v32 }
  0xb2   :  { %2946 = vmatprep.subr.bf16.mxu1 %v3189_v33 }
  0xb3   :  { %2925 = vmatpush3.bf16.msra.mxu0 %v3188_v34 }
  0xb4   :  { %2926 = vmatprep.subr.bf16.mxu0 %v3191_v35 }
  0xb5   :  { %2947 = vmatpush3.bf16.msra.mxu1 %v3190_v36 }
  0xb6   :  { %2948 = vmatprep.subr.bf16.mxu1 %v3193_v37 }
  0xb7   :  { %2927 = vmatpush3.bf16.msra.mxu0 %v3192_v38 }
  0xb8   :  { %2928 = vmatprep.subr.bf16.mxu0 %v3195_v39 }
  0xb9   :  { %2949 = vmatpush3.bf16.msra.mxu1 %v3194_v40 }
  0xba   :  { %2950 = vmatprep.subr.bf16.mxu1 %v3197_v42 }
  0xbb   :  { %2929 = vmatpush3.bf16.msra.mxu0 %v3196_v43 }
  0xbc   :  { %2930 = vmatprep.subr.bf16.mxu0 %v3199_v44 }
  0xbd   :  { %2951 = vmatpush3.bf16.msra.mxu1 %v3198_v45 }
  0xbe   :  { %2952 = vmatprep.subr.bf16.mxu1 %v3201_v47 }
  0xbf   :  { %2931 = vmatpush3.bf16.msra.mxu0 %v3200_v46 }
  0xc0   :  { %12 = vsyncpa [#allocation3], 0  ;;  %v3237_v51 = vmov 0.0   ;;  %v579_v52 = vcombine.high %v563_v49, %v563_v49  ;;  %v3205_v53 = vld [vmem:[%s3965_s1 + $0x610] sm:$0xff]   ;;  %vm3238_vm0 = vmmov 0   ;;  %v3206_v54 = vld [vmem:[%s3965_s1 + $0x608] sm:$0xff]  }
  0xc1   :  { %2973 = vmatprep.subr.bf16.mxu0 %v3237_v51  ;;  %2953 = vmatpush3.bf16.msra.mxu1 %v3203_v48  ;;  %v3207_v55 = vld [vmem:[%s3965_s1 + $0x600] sm:$0xff]   ;;  %v2488_v56 = vld.sshfl [vmem:[%s3964_s0 + $0x18] sm:$0x1 pattern:$0x75316420]  ;;  %vm1796_vm1 = vcmask 523264  }
  0xc2   :  { %2233 = vmatmul.mubr.bf16.vlgmr.msra.gmra.mxu0 %v563_v49  ;;  %2985 = vmatprep.subr.bf16.mxu1 %v3237_v51  ;;  %v595_v57 = vrot.slane %v2488_v56, %v3385_v41  ;;  %v2487_v59 = vld [vmem:[%s3966_s2] ss:$0 sm:$0xff]  ;;  %v3208_v12 = vld [vmem:[%s3967_s3 + $0x18] sm:$0xff]   ;;  %v3209_v19 = vld [vmem:[%s3967_s3 + $0x10] sm:$0xff]   ;;  %vm2427_vm2 = vcmask 261120   ;;  %s3239_s24 = smov [#allocation2]  }
  0xc3   :  { %2974 = vmatpush3.bf16.msra.mxu0 %v3204_v50  ;;  %2981 = vmatprep.mubr.msk.bf16.mxu0 %vm3238_vm0, %v3237_v51  ;;  %v3210_v20 = vld [vmem:[%s3967_s3 + $0x8] sm:$0xff]   ;;  %v3211_v21 = vld [vmem:[%s3967_s3] sm:$0xff]   ;;  %s2479_s25 = sshll.u32 %s3239_s24, 4  ;;  %vm2471_vm3 = vcmask 74752   ;;  %s2480_s25 = int_to_ptr.vmem [resolvable:$true] %s2479_s25 }
  0xc4   :  { %2273 = vmatmul.mubr.bf16.vlgmr.msra.gmra.mxu1 %v579_v52  ;;  %2975 = vmatprep.subr.bf16.mxu0 %v3237_v51  ;;  %v3212_v22 = vld [vmem:[%s3969_s5 + $0x8] sm:$0xff]   ;;  %p3219_p1 = scmp.lt.s32.totalorder %s2480_s25, %s2480_s25 }
  0xc5   :  { %2993 = vmatprep.mubr.msk.bf16.mxu1 %vm3238_vm0, %v3237_v51  ;;  %2986 = vmatpush3.bf16.msra.mxu1 %v3208_v12 }
  0xc6   :  { %2987 = vmatprep.subr.bf16.mxu1 %v3237_v51 }
  0xc7   :  { %2976 = vmatpush3.bf16.msra.mxu0 %v3205_v53 }
  0xc8   :  { %2977 = vmatprep.subr.bf16.mxu0 %v3237_v51 }
  0xc9   :  { %2988 = vmatpush3.bf16.msra.mxu1 %v3209_v19 }
  0xca   :  { %2989 = vmatprep.subr.bf16.mxu1 %v3237_v51 }
  0xcb   :  { %2978 = vmatpush3.bf16.msra.mxu0 %v3206_v54 }
  0xcc   :  { %2979 = vmatprep.subr.bf16.mxu0 %v3237_v51 }
  0xcd   :  { %2990 = vmatpush3.bf16.msra.mxu1 %v3210_v20 }
  0xce   :  { %2991 = vmatprep.subr.bf16.mxu1 %v3237_v51 }
  0xcf   :  { %2980 = vmatpush3.bf16.msra.mxu0 %v3207_v55 }
  0xd0   :  { %2997 = vmatprep.subr.bf16.mxu0 %v3237_v51 }
  0xd1   :  { %2992 = vmatpush3.bf16.msra.mxu1 %v3211_v21  ;;  %v2692_v21 = vld [vmem:[%s3970_s6] ss:$0 sm:$0xff] }
  0xd2   :  { %2982 = vmatmul.mubr.msk.bf16.vlgmr.msra.gmra.mxu0 %vm1796_vm1, %v595_v57 }
  0xd3   :  { %3001 = vmatprep.mubr.msk.bf16.mxu0 %vm3238_vm0, %v3237_v51  ;;  %2998 = vmatpush3.bf16.msra.mxu0 %v3212_v22 }
  0xd4   :  { %2999 = vmatprep.subr.bf16.mxu0 %v3237_v51 }
  0xe2   :  { %v2712_v58 = vpop.f32.mrf.mxu0 }
  0xe4   :  { %v2713_v60 = vpop.f32.mrf.mxu0  ;;  %v2734_v61 = vpop.f32.mrf.mxu1 }
  0xe5   :  { %v2714_v62 = vadd.f32 %v2713_v60, %v2712_v58 }
  0xe6   :  { %v2715_v63 = vpop.f32.mrf.mxu0  ;;  %v2735_v0 = vpop.f32.mrf.mxu1 }
  0xe7   :  { %v1835_v41 = vadd.f32 %v2714_v62, %v2487_v59  ;;  %v2736_v1 = vadd.f32 %v2735_v0, %v2734_v61 }
  0xe8   :  { %v2716_v2 = vpop.f32.mrf.mxu0  ;;  %v2737_v3 = vpop.f32.mrf.mxu1 }
  0xe9   :  { %v1875_v4 = vadd.f32 %v2736_v1, %v1835_v41 }
  0xea   :  { %v2738_v5 = vpop.f32.mrf.mxu1 }
 0x102   :  { %v2756_v6 = vpop.f32.mrf.mxu0 }
 0x104   :  { %v2757_v7 = vpop.f32.mrf.mxu0  ;;  %v2778_v8 = vpop.f32.mrf.mxu1 }
 0x105   :  { %v2758_v9 = vadd.f32 %v2757_v7, %v2756_v6 }
 0x106   :  { %v2759_v10 = vpop.f32.mrf.mxu0  ;;  %v2779_v11 = vpop.f32.mrf.mxu1 }
 0x107   :  { %v1915_v13 = vadd.f32 %v2758_v9, %v1875_v4  ;;  %v2780_v14 = vadd.f32 %v2779_v11, %v2778_v8 }
 0x108   :  { %v2760_v15 = vpop.f32.mrf.mxu0  ;;  %v2781_v16 = vpop.f32.mrf.mxu1 }
 0x109   :  { %v1955_v17 = vadd.f32 %v2780_v14, %v1915_v13  ;;  %v3213_v13 = vld [vmem:[%s3969_s5] sm:$0xff]  }
 0x10a   :  { %v2782_v18 = vpop.f32.mrf.mxu1  ;;  %3000 = vmatpush3.bf16.msra.mxu0 %v3213_v13  ;;  %v2686_v14 = vld [vmem:[%s3968_s4] ss:$0 sm:$0xff]  ;;  %s3214_s4 = scalar_lea.vmem %s2480_s25, 32 }
 0x10b   :  { %p3215_p0 = scmp.ne.s32.totalorder %s2480_s25, %s3214_s4  ;;  %p3220_p2 = scmp.lt.s32.totalorder %s3214_s4, %s3214_s4 }
 0x10d   :  { %p3221_p3 = por %p3220_p2, %p3219_p1 }
 0x10f   :  { %p3222_p4 = pnand %p3221_p3, %p3215_p0 }
 0x122   :  { %v2800_v23 = vpop.f32.mrf.mxu0 }
 0x124   :  { %v2801_v24 = vpop.f32.mrf.mxu0  ;;  %v2822_v25 = vpop.f32.mrf.mxu1 }
 0x125   :  { %v2802_v26 = vadd.f32 %v2801_v24, %v2800_v23 }
 0x126   :  { %v2803_v27 = vpop.f32.mrf.mxu0  ;;  %v2823_v28 = vpop.f32.mrf.mxu1 }
 0x127   :  { %v1995_v29 = vadd.f32 %v2802_v26, %v1955_v17  ;;  %v2824_v30 = vadd.f32 %v2823_v28, %v2822_v25 }
 0x128   :  { %v2804_v31 = vpop.f32.mrf.mxu0  ;;  %v2825_v32 = vpop.f32.mrf.mxu1 }
 0x129   :  { %v2035_v33 = vadd.f32 %v2824_v30, %v1995_v29 }
 0x12a   :  { %v2826_v34 = vpop.f32.mrf.mxu1 }
 0x142   :  { %v2844_v35 = vpop.f32.mrf.mxu0 }
 0x144   :  { %v2845_v36 = vpop.f32.mrf.mxu0  ;;  %v2866_v37 = vpop.f32.mrf.mxu1 }
 0x145   :  { %v2846_v38 = vadd.f32 %v2845_v36, %v2844_v35 }
 0x146   :  { %v2847_v39 = vpop.f32.mrf.mxu0  ;;  %v2867_v40 = vpop.f32.mrf.mxu1 }
 0x147   :  { %v2075_v42 = vadd.f32 %v2846_v38, %v2035_v33  ;;  %v2868_v43 = vadd.f32 %v2867_v40, %v2866_v37 }
 0x148   :  { %v2848_v44 = vpop.f32.mrf.mxu0  ;;  %v2869_v45 = vpop.f32.mrf.mxu1 }
 0x149   :  { %v2115_v46 = vadd.f32 %v2868_v43, %v2075_v42 }
 0x14a   :  { %v2870_v47 = vpop.f32.mrf.mxu1 }
 0x162   :  { %v2888_v48 = vpop.f32.mrf.mxu0 }
 0x164   :  { %v2889_v49 = vpop.f32.mrf.mxu0  ;;  %v2910_v50 = vpop.f32.mrf.mxu1 }
 0x165   :  { %v2890_v57 = vadd.f32 %v2889_v49, %v2888_v48 }
 0x166   :  { %v2891_v51 = vpop.f32.mrf.mxu0  ;;  %v2911_v52 = vpop.f32.mrf.mxu1 }
 0x167   :  { %v2155_v62 = vadd.f32 %v2890_v57, %v2115_v46  ;;  %v2912_v63 = vadd.f32 %v2911_v52, %v2910_v50 }
 0x168   :  { %v2892_v53 = vpop.f32.mrf.mxu0  ;;  %v2913_v54 = vpop.f32.mrf.mxu1 }
 0x169   :  { %v2195_v3 = vadd.f32 %v2912_v63, %v2155_v62 }
 0x16a   :  { %v2914_v55 = vpop.f32.mrf.mxu1 }
 0x182   :  { %v2932_v56 = vpop.f32.mrf.mxu0 }
 0x184   :  { %v2933_v58 = vpop.f32.mrf.mxu0  ;;  %v2954_v59 = vpop.f32.mrf.mxu1 }
 0x185   :  { %v2934_v1 = vadd.f32 %v2933_v58, %v2932_v56 }
 0x186   :  { %v2935_v60 = vpop.f32.mrf.mxu0  ;;  %v2955_v61 = vpop.f32.mrf.mxu1 }
 0x187   :  { %v2235_v4 = vadd.f32 %v2934_v1, %v2195_v3  ;;  %v2956_v5 = vadd.f32 %v2955_v61, %v2954_v59 }
 0x188   :  { %v2936_v0 = vpop.f32.mrf.mxu0  ;;  %v2957_v41 = vpop.f32.mrf.mxu1 }
 0x189   :  { %v2275_v6 = vadd.f32 %v2956_v5, %v2235_v4 }
 0x18a   :  { %v2958_v2 = vpop.f32.mrf.mxu1 }
 0x192   :  { %v2314_v7 = vpop.f32.mrf.mxu0 }
 0x193   :  { %v2315_v8 = vadd.f32 %v2314_v7, %v2275_v6 }
 0x194   :  { %v2983_v9 = vpop.f32.mrf.mxu0 }
 0x195   :  { %v2320_v10 = vpack.c.bf16 %v2315_v8, %v2315_v8 }
 0x196   :  { %v2317_v11 = vpop.f32.mrf.mxu0 }
 0x197   :  { %2994 = vmatmul.mubr.msk.bf16.vlgmr.msra.gmra.mxu1 %vm1796_vm1, %v2320_v10 }
 0x198   :  { %v2984_v12 = vpop.f32.mrf.mxu0 }
 0x257   :  { %v2397_v15 = vpop.f32.mrf.mxu1 }
 0x258   :  { %v2398_v16 = vadd.f32 %v2686_v14, %v2397_v15 }
 0x259   :  { %v2995_v17 = vpop.f32.mrf.mxu1 }
 0x25a   :  { %v2403_v18 = vpack.c.bf16 %v2398_v16, %v2398_v16 }
 0x25b   :  { %v2400_v19 = vpop.f32.mrf.mxu1 }
 0x25c   :  { %3002 = vmatmul.mubr.msk.bf16.vlgmr.msra.gmra.mxu0 %vm2427_vm2, %v2403_v18 }
 0x25d   :  { %v2996_v20 = vpop.f32.mrf.mxu1 }
 0x31c   :  { %v2465_v22 = vpop.f32.mrf.mxu0 }
 0x31d   :  { %v2466_v23 = vadd.f32 %v2692_v21, %v2465_v22 }
 0x31e   :  { %v3003_v24 = vpop.f32.mrf.mxu0 }
 0x31f   :  { %2472 = vst.msk [vmem:[#allocation2] sm:$0x3] %vm2471_vm3, %v2466_v23 }
 0x320   :  { %v2468_v25 = vpop.f32.mrf.mxu0 }
 0x321   :  { %3225 = shalt.err (!%p3222_p4)
}
 0x322   :  { %2482 = dma.vmem_to_hbm [thread:$0]  %s2480_s25, 32, %s3971_s7, [#allocation3]   ;;  %v3004_v26 = vpop.f32.mrf.mxu0 }
 0x323   :  { %3234 = dma.done.wait [#allocation3], 32  }
 0x324   :  { %3235 = vsyncadd [#allocation3], 4294967264 }
 0x325   :  { %2486 = vsyncpa [#allocation3], 1 }

</bundles_post_ra>
